<compile_context>
chip_gen: v5e
topology: v5e:2x2
jax: 0.10.0
libtpu: 0.0.40
codegen_flags: <defaults>
</compile_context>

<pallas_src>
import functools
import math

import jax
import jax.numpy as jnp
from jax.experimental import pallas as pl
from jax.experimental.pallas import tpu as pltpu

HIGHEST = jax.lax.Precision.HIGHEST
EPS = 1e-5
N_CONV = 5
VMEM_SPEC = pl.BlockSpec(memory_space=pltpu.MemorySpace.VMEM)


# ----------------------------- fused Pallas kernel ---------------------------

def _qtchessnet_kernel(x_ref, wc_ref, sc_ref, tc_ref,
                       fw1_ref, fs1_ref, ft1_ref, fw2_ref, fb2_ref,
                       out_ref, pad_ref, *, N, H, W, C):
    """Whole QTChessNET forward, VMEM-resident.

    x_ref   : (N, H, W, C)      f32   NHWC input, channels zero-padded 12 -> C
    wc_ref  : (5, 9*C, C)       bf16  im2col conv weights (tap-major rows)
    sc_ref  : (5, 1, C)         f32   folded BN scale  (gamma / sqrt(var+eps))
    tc_ref  : (5, 1, C)         f32   folded BN shift  ((bias - mu)*scale + beta)
    fw1_ref : (H*W*C, 128)      bf16  fc1, rows permuted for the NHWC flatten,
                                      out dim zero-padded 64 -> 128
    fs1/ft1 : (1, 128)          f32   folded BN1d affine (zero-padded)
    fw2_ref : (128, 128)        bf16  fc2 (both dims zero-padded 64 -> 128)
    fb2_ref : (1, 128)          f32
    out_ref : (N, 128)          f32   sigmoid output (cols >= 64 are discarded)
    pad_ref : (N, H+2, W+2, C)  f32   scratch: zero-padded activation slab
    """
    HW = H * W

    # Zero the slab once; the 1-wide border stays zero for every layer.
    pad_ref[...] = jnp.zeros_like(pad_ref)

    a = x_ref[...]                                             # (N, H, W, C) f32
    for li in range(N_CONV):
        # in-kernel padding=1: write interior, border already zero.
        pad_ref[:, 1:H + 1, 1:W + 1, :] = a
        taps = [
            pad_ref[:, dy:dy + H, dx:dx + W, :].reshape(N * HW, C)
            for dy in range(3) for dx in range(3)
        ]
        # im2col: lane-aligned concat + one long-K (9*C) MXU matmul in bf16,
        # accumulated in f32.
        patches = jnp.concatenate(taps, axis=-1).astype(jnp.bfloat16)
        acc = jnp.dot(patches, wc_ref[li],
                      preferred_element_type=jnp.float32)      # (N*HW, C) f32
        a = jnp.maximum(acc * sc_ref[li] + tc_ref[li], 0.0)     # f32 epilogue
        a = a.reshape(N, H, W, C)

    # Flatten: stage the final activation in the slab and gather HW
    # lane-aligned (N, C) pieces; fc1 rows were permuted at fold time to
    # consume exactly this NHWC order (no runtime NCHW transpose).
    pad_ref[:, 1:H + 1, 1:W + 1, :] = a
    pieces = [pad_ref[:, 1 + yy, 1 + xx, :].reshape(N, C)
              for yy in range(H) for xx in range(W)]
    xf = jnp.concatenate(pieces, axis=-1).astype(jnp.bfloat16)  # (N, HW*C)

    h = jnp.dot(xf, fw1_ref[...], preferred_element_type=jnp.float32)
    h = jnp.maximum(h * fs1_ref[...] + ft1_ref[...], 0.0)       # f32 epilogue
    o = jnp.dot(h.astype(jnp.bfloat16), fw2_ref[...],
                preferred_element_type=jnp.float32) + fb2_ref[...]
    out_ref[...] = 1.0 / (1.0 + jnp.exp(-o))


# ------------------------------ wrapper --------------------------------------

@jax.jit
def qtchessnet_forward(folded, x_nchw):
    """quant_1..quant_5 / QuantReLU / QuantSigmoid fake-quant treated as identity."""
    N, cin, H, W = x_nchw.shape
    C = folded["sc"].shape[-1]
    # Glue: NCHW -> NHWC + zero-pad input planes 12 -> C (matching zero rows
    # were added to the layer-1 weights, so the extra channels contribute 0).
    x = jnp.transpose(x_nchw, (0, 2, 3, 1))
    x = jnp.pad(x, ((0, 0), (0, 0), (0, 0), (0, C - cin)))

    args = (x, folded["wc"], folded["sc"], folded["tc"], folded["fw1"],
            folded["fs1"], folded["ft1"], folded["fw2"], folded["fb2"])
    flops = int(2 * N_CONV * (N * H * W) * (9 * C) * C
                + 2 * N * (H * W * C) * 128 + 2 * N * 128 * 128)
    bytes_accessed = int(sum(int(a.size) * a.dtype.itemsize for a in args)
                         + N * 128 * 4)

    # Gridless single-block kernel: ~2.5 MB of weights + <1 MB activations fit
    # VMEM on v5e/v6e/v7x.
    # TODO(synk): for large serving batches add a batch grid with
    # dimension_semantics=("parallel",) to shard across the 2 v7x TensorCores.
    out = pl.pallas_call(
        functools.partial(_qtchessnet_kernel, N=N, H=H, W=W, C=C),
        out_shape=jax.ShapeDtypeStruct((N, 128), jnp.float32),
        in_specs=[VMEM_SPEC] * len(args),
        out_specs=VMEM_SPEC,
        scratch_shapes=[pltpu.VMEM((N, H + 2, W + 2, C), jnp.float32)],
        compiler_params=pltpu.CompilerParams(
            vmem_limit_bytes=32 * 1024 * 1024),
        cost_estimate=pl.CostEstimate(flops=flops,
                                      transcendentals=int(N * 128),
                                      bytes_accessed=bytes_accessed),
    )(*args)
    return out[:, :64]


# --------------------------- parameter setup ---------------------------------

def init_params(key, hidden=128):
    keys = iter(jax.random.split(key, 48))

    def unif(shape, bound):
        return jax.random.uniform(next(keys), shape, jnp.float32, -bound, bound)

    def bn_stats(c):
        g = jax.random.uniform(next(keys), (c,), jnp.float32, 0.5, 1.5)
        b = 0.1 * jax.random.normal(next(keys), (c,), jnp.float32)
        mu = 0.1 * jax.random.normal(next(keys), (c,), jnp.float32)
        var = jax.random.uniform(next(keys), (c,), jnp.float32, 0.5, 1.5)
        return g, b, mu, var

    C = hidden
    raw = {"convs": []}
    w_stack, s_stack, t_stack = [], [], []

    cin = 12
    for _ in range(N_CONV):
        fan_in = cin * 9
        bound = 1.0 / math.sqrt(fan_in)
        Wc = unif((hidden, cin, 3, 3), bound)                  # PyTorch OIHW
        b = unif((hidden,), bound)
        # emulate prune.l1_unstructured: keep only the 84*Cout largest-|w|
        n_active = 84
        if fan_in > n_active:
            n_prune = (fan_in - n_active) * hidden
            thresh = jnp.sort(jnp.abs(Wc).reshape(-1))[n_prune - 1]
            Wc = jnp.where(jnp.abs(Wc) > thresh, Wc, 0.0)
        g, be, mu, var = bn_stats(hidden)
        raw["convs"].append((Wc, b, g, be, mu, var))

        s = g / jnp.sqrt(var + EPS)
        t = (b - mu) * s + be
        # im2col layout: OIHW -> (3,3,cin,cout), pad cin -> C, -> (9*C, cout)
        w9 = jnp.transpose(Wc, (2, 3, 1, 0))
        w9 = jnp.pad(w9, ((0, 0), (0, 0), (0, C - cin), (0, 0)))
        w_stack.append(w9.reshape(9 * C, hidden))
        s_stack.append(s.reshape(1, hidden))
        t_stack.append(t.reshape(1, hidden))
        cin = hidden

    folded = {
        "wc": jnp.stack(w_stack).astype(jnp.bfloat16),         # (5, 9*C, C)
        "sc": jnp.stack(s_stack),                              # (5, 1, C) f32
        "tc": jnp.stack(t_stack),                              # (5, 1, C) f32
    }

    fan1 = hidden * 64
    W1 = unif((64, fan1), 1.0 / math.sqrt(fan1))               # PyTorch (out, in)
    b1 = unif((64,), 1.0 / math.sqrt(fan1))
    g6, be6, mu6, v6 = bn_stats(64)
    raw["fc1"] = (W1, b1, g6, be6, mu6, v6)

    W2 = unif((64, 64), 1.0 / 8.0)
    b2 = unif((64,), 1.0 / 8.0)
    raw["fc2"] = (W2, b2)

    s1 = g6 / jnp.sqrt(v6 + EPS)
    t1 = (b1 - mu6) * s1 + be6
    # Permute fc1 rows so it consumes the kernel's NHWC flatten (hw*C + c),
    # matching the PyTorch NCHW flatten (c*64 + hw); pad out dims 64 -> 128.
    w1p = jnp.transpose(W1.reshape(64, hidden, 64), (2, 1, 0)).reshape(64 * hidden, 64)
    folded["fw1"] = jnp.pad(w1p, ((0, 0), (0, 64))).astype(jnp.bfloat16)   # (8192,128)
    folded["fs1"] = jnp.pad(s1.reshape(1, 64), ((0, 0), (0, 64)))
    folded["ft1"] = jnp.pad(t1.reshape(1, 64), ((0, 0), (0, 64)))
    folded["fw2"] = jnp.pad(W2.T, ((0, 64), (0, 64))).astype(jnp.bfloat16)  # (128,128)
    folded["fb2"] = jnp.pad(b2.reshape(1, 64), ((0, 0), (0, 64)))
    return raw, folded


# ------------------------- pure-JAX references (NCHW) ------------------------

def reference_forward_bf16(raw, x_nchw):
    """Same numerics as the kernel: bf16 matmul inputs, f32 accumulate/epilogue."""
    bf = jnp.bfloat16
    x = x_nchw
    for (Wc, b, g, be, mu, var) in raw["convs"]:
        y = jax.lax.conv_general_dilated(
            x.astype(bf), Wc.astype(bf), (1, 1), "SAME",
            dimension_numbers=("NCHW", "OIHW", "NCHW"),
            preferred_element_type=jnp.float32)
        y = y + b[None, :, None, None]
        y = ((y - mu[None, :, None, None])
             / jnp.sqrt(var[None, :, None, None] + EPS)
             * g[None, :, None, None] + be[None, :, None, None])
        x = jnp.maximum(y, 0.0)
    xf = x.reshape(x.shape[0], -1)                             # NCHW flatten
    W1, b1, g6, be6, mu6, v6 = raw["fc1"]
    h = jnp.dot(xf.astype(bf), W1.T.astype(bf),
                preferred_element_type=jnp.float32) + b1
    h = (h - mu6) / jnp.sqrt(v6 + EPS) * g6 + be6
    h = jnp.maximum(h, 0.0)
    W2, b2 = raw["fc2"]
    o = jnp.dot(h.astype(bf), W2.T.astype(bf),
                preferred_element_type=jnp.float32) + b2
    return 1.0 / (1.0 + jnp.exp(-o))


def reference_forward_f32(raw, x_nchw):
    """Full-f32 HIGHEST reference (loose sanity check of overall accuracy)."""
    x = x_nchw
    for (Wc, b, g, be, mu, var) in raw["convs"]:
        y = jax.lax.conv_general_dilated(
            x, Wc, (1, 1), "SAME",
            dimension_numbers=("NCHW", "OIHW", "NCHW"), precision=HIGHEST)
        y = y + b[None, :, None, None]
        y = ((y - mu[None, :, None, None])
             / jnp.sqrt(var[None, :, None, None] + EPS)
             * g[None, :, None, None] + be[None, :, None, None])
        x = jnp.maximum(y, 0.0)
    xf = x.reshape(x.shape[0], -1)
    W1, b1, g6, be6, mu6, v6 = raw["fc1"]
    h = jnp.dot(xf, W1.T, precision=HIGHEST) + b1
    h = (h - mu6) / jnp.sqrt(v6 + EPS) * g6 + be6
    h = jnp.maximum(h, 0.0)
    W2, b2 = raw["fc2"]
    o = jnp.dot(h, W2.T, precision=HIGHEST) + b2
    return 1.0 / (1.0 + jnp.exp(-o))


# ----------------------------------- main ------------------------------------

if __name__ == "__main__":
    key = jax.random.PRNGKey(0)
    kx, kp = jax.random.split(key)
    N, hidden = 2, 128                      # 8x8 chess board, 12 input planes
    x = jax.random.normal(kx, (N, 12, 8, 8), jnp.float32)   # PyTorch NCHW input
    raw, folded = init_params(kp, hidden)

    out = jax.block_until_ready(qtchessnet_forward(folded, x))
    assert out.shape == (N, 64) and out.dtype == jnp.float32
    assert bool(jnp.isfinite(out).all())

    ref = reference_forward_bf16(raw, x)
    err = float(jnp.max(jnp.abs(out - ref)))
    assert err < 1e-3, f"mismatch vs bf16-matched reference: {err}"

    ref32 = reference_forward_f32(raw, x)
    err32 = float(jnp.max(jnp.abs(out - ref32)))
    assert err32 < 5e-2, f"mismatch vs f32 reference: {err32}"

    print("KERNEL_OK")
</pallas_src>

<mosaic_0001>
module attributes {stable_mosaic.version = 11 : i64} {
  func.func @_qtchessnet_kernel(%arg0: memref<2x8x8x128xf32, #tpu.memory_space<vmem>>, %arg1: memref<5x1152x128xbf16, #tpu.memory_space<vmem>>, %arg2: memref<5x1x128xf32, #tpu.memory_space<vmem>>, %arg3: memref<5x1x128xf32, #tpu.memory_space<vmem>>, %arg4: memref<8192x128xbf16, #tpu.memory_space<vmem>>, %arg5: memref<1x128xf32, #tpu.memory_space<vmem>>, %arg6: memref<1x128xf32, #tpu.memory_space<vmem>>, %arg7: memref<128x128xbf16, #tpu.memory_space<vmem>>, %arg8: memref<1x128xf32, #tpu.memory_space<vmem>>, %arg9: memref<2x128xf32, #tpu.memory_space<vmem>>, %arg10: memref<2x10x10x128xf32, #tpu.memory_space<vmem>>) attributes {dimension_semantics = [], scalar_prefetch = 0 : i64, scratch_operands = 1 : i64, tpu.core_type = #tpu.core_type<tc>} {
    %cst = arith.constant 0.000000e+00 : f32
    %0 = vector.broadcast %cst : f32 to vector<2x10x10x128xf32>
    %c0 = arith.constant 0 : index
    %c0_0 = arith.constant 0 : index
    %c0_1 = arith.constant 0 : index
    %c0_2 = arith.constant 0 : index
    %1 = vector.load %arg10[%c0, %c0_0, %c0_1, %c0_2] : memref<2x10x10x128xf32, #tpu.memory_space<vmem>>, vector<2x10x10x128xf32>
    tpu.vector_store %arg10[%c0, %c0_0, %c0_1, %c0_2], %0 {strides = array<i32>} : memref<2x10x10x128xf32, #tpu.memory_space<vmem>>, vector<2x10x10x128xf32>,
    %c0_3 = arith.constant 0 : index
    %c0_4 = arith.constant 0 : index
    %c0_5 = arith.constant 0 : index
    %c0_6 = arith.constant 0 : index
    %2 = vector.load %arg0[%c0_3, %c0_4, %c0_5, %c0_6] : memref<2x8x8x128xf32, #tpu.memory_space<vmem>>, vector<2x8x8x128xf32>
    %c0_7 = arith.constant 0 : index
    %c1 = arith.constant 1 : index
    %c1_8 = arith.constant 1 : index
    %c0_9 = arith.constant 0 : index
    %3 = vector.load %arg10[%c0_7, %c1, %c1_8, %c0_9] : memref<2x10x10x128xf32, #tpu.memory_space<vmem>>, vector<2x8x8x128xf32>
    tpu.vector_store %arg10[%c0_7, %c1, %c1_8, %c0_9], %2 {strides = array<i32>} : memref<2x10x10x128xf32, #tpu.memory_space<vmem>>, vector<2x8x8x128xf32>,
    %c0_10 = arith.constant 0 : index
    %c0_11 = arith.constant 0 : index
    %c0_12 = arith.constant 0 : index
    %c0_13 = arith.constant 0 : index
    %4 = vector.load %arg10[%c0_10, %c0_11, %c0_12, %c0_13] : memref<2x10x10x128xf32, #tpu.memory_space<vmem>>, vector<2x8x8x128xf32>
    %5 = vector.shape_cast %4 : vector<2x8x8x128xf32> to vector<128x128xf32>
    %c0_14 = arith.constant 0 : index
    %c0_15 = arith.constant 0 : index
    %c1_16 = arith.constant 1 : index
    %c0_17 = arith.constant 0 : index
    %6 = vector.load %arg10[%c0_14, %c0_15, %c1_16, %c0_17] : memref<2x10x10x128xf32, #tpu.memory_space<vmem>>, vector<2x8x8x128xf32>
    %7 = vector.shape_cast %6 : vector<2x8x8x128xf32> to vector<128x128xf32>
    %c0_18 = arith.constant 0 : index
    %c0_19 = arith.constant 0 : index
    %c2 = arith.constant 2 : index
    %c0_20 = arith.constant 0 : index
    %8 = vector.load %arg10[%c0_18, %c0_19, %c2, %c0_20] : memref<2x10x10x128xf32, #tpu.memory_space<vmem>>, vector<2x8x8x128xf32>
    %9 = vector.shape_cast %8 : vector<2x8x8x128xf32> to vector<128x128xf32>
    %c0_21 = arith.constant 0 : index
    %c1_22 = arith.constant 1 : index
    %c0_23 = arith.constant 0 : index
    %c0_24 = arith.constant 0 : index
    %10 = vector.load %arg10[%c0_21, %c1_22, %c0_23, %c0_24] : memref<2x10x10x128xf32, #tpu.memory_space<vmem>>, vector<2x8x8x128xf32>
    %11 = vector.shape_cast %10 : vector<2x8x8x128xf32> to vector<128x128xf32>
    %c0_25 = arith.constant 0 : index
    %c1_26 = arith.constant 1 : index
    %c1_27 = arith.constant 1 : index
    %c0_28 = arith.constant 0 : index
    %12 = vector.load %arg10[%c0_25, %c1_26, %c1_27, %c0_28] : memref<2x10x10x128xf32, #tpu.memory_space<vmem>>, vector<2x8x8x128xf32>
    %13 = vector.shape_cast %12 : vector<2x8x8x128xf32> to vector<128x128xf32>
    %c0_29 = arith.constant 0 : index
    %c1_30 = arith.constant 1 : index
    %c2_31 = arith.constant 2 : index
    %c0_32 = arith.constant 0 : index
    %14 = vector.load %arg10[%c0_29, %c1_30, %c2_31, %c0_32] : memref<2x10x10x128xf32, #tpu.memory_space<vmem>>, vector<2x8x8x128xf32>
    %15 = vector.shape_cast %14 : vector<2x8x8x128xf32> to vector<128x128xf32>
    %c0_33 = arith.constant 0 : index
    %c2_34 = arith.constant 2 : index
    %c0_35 = arith.constant 0 : index
    %c0_36 = arith.constant 0 : index
    %16 = vector.load %arg10[%c0_33, %c2_34, %c0_35, %c0_36] : memref<2x10x10x128xf32, #tpu.memory_space<vmem>>, vector<2x8x8x128xf32>
    %17 = vector.shape_cast %16 : vector<2x8x8x128xf32> to vector<128x128xf32>
    %c0_37 = arith.constant 0 : index
    %c2_38 = arith.constant 2 : index
    %c1_39 = arith.constant 1 : index
    %c0_40 = arith.constant 0 : index
    %18 = vector.load %arg10[%c0_37, %c2_38, %c1_39, %c0_40] : memref<2x10x10x128xf32, #tpu.memory_space<vmem>>, vector<2x8x8x128xf32>
    %19 = vector.shape_cast %18 : vector<2x8x8x128xf32> to vector<128x128xf32>
    %c0_41 = arith.constant 0 : index
    %c2_42 = arith.constant 2 : index
    %c2_43 = arith.constant 2 : index
    %c0_44 = arith.constant 0 : index
    %20 = vector.load %arg10[%c0_41, %c2_42, %c2_43, %c0_44] : memref<2x10x10x128xf32, #tpu.memory_space<vmem>>, vector<2x8x8x128xf32>
    %21 = vector.shape_cast %20 : vector<2x8x8x128xf32> to vector<128x128xf32>
    %22 = tpu.concatenate %5, %7, %9, %11, %13, %15, %17, %19, %21 in 1 : vector<128x128xf32>, vector<128x128xf32>, vector<128x128xf32>, vector<128x128xf32>, vector<128x128xf32>, vector<128x128xf32>, vector<128x128xf32>, vector<128x128xf32>, vector<128x128xf32> -> vector<128x1152xf32>
    %23 = arith.truncf %22 : vector<128x1152xf32> to vector<128x1152xbf16>
    %c0_45 = arith.constant 0 : index
    %c0_46 = arith.constant 0 : index
    %c0_47 = arith.constant 0 : index
    %24 = vector.load %arg1[%c0_45, %c0_46, %c0_47] : memref<5x1152x128xbf16, #tpu.memory_space<vmem>>, vector<1x1152x128xbf16>
    %25 = vector.shape_cast %24 : vector<1x1152x128xbf16> to vector<1152x128xbf16>
    %cst_48 = arith.constant dense<0.000000e+00> : vector<128x128xf32>
    %26 = tpu.matmul %23, %25, %cst_48 {dimension_numbers = #tpu.dot_dimension_numbers<[1], [0], [0], [1], [0, 0, 1, 1], [], []>} : vector<128x1152xbf16>, vector<1152x128xbf16>, vector<128x128xf32> -> vector<128x128xf32>
    %c0_49 = arith.constant 0 : index
    %c0_50 = arith.constant 0 : index
    %c0_51 = arith.constant 0 : index
    %27 = vector.load %arg2[%c0_49, %c0_50, %c0_51] : memref<5x1x128xf32, #tpu.memory_space<vmem>>, vector<1x1x128xf32>
    %28 = vector.shape_cast %27 : vector<1x1x128xf32> to vector<1x128xf32>
    %29 = vector.broadcast %28 : vector<1x128xf32> to vector<128x128xf32>
    %30 = arith.mulf %26, %29 : vector<128x128xf32>
    %c0_52 = arith.constant 0 : index
    %c0_53 = arith.constant 0 : index
    %c0_54 = arith.constant 0 : index
    %31 = vector.load %arg3[%c0_52, %c0_53, %c0_54] : memref<5x1x128xf32, #tpu.memory_space<vmem>>, vector<1x1x128xf32>
    %32 = vector.shape_cast %31 : vector<1x1x128xf32> to vector<1x128xf32>
    %33 = vector.broadcast %32 : vector<1x128xf32> to vector<128x128xf32>
    %34 = arith.addf %30, %33 : vector<128x128xf32>
    %cst_55 = arith.constant 0.000000e+00 : f32
    %35 = vector.broadcast %cst_55 : f32 to vector<128x128xf32>
    %36 = arith.maximumf %34, %35 : vector<128x128xf32>
    %37 = vector.shape_cast %36 : vector<128x128xf32> to vector<2x8x8x128xf32>
    %c0_56 = arith.constant 0 : index
    %c1_57 = arith.constant 1 : index
    %c1_58 = arith.constant 1 : index
    %c0_59 = arith.constant 0 : index
    %38 = vector.load %arg10[%c0_56, %c1_57, %c1_58, %c0_59] : memref<2x10x10x128xf32, #tpu.memory_space<vmem>>, vector<2x8x8x128xf32>
    tpu.vector_store %arg10[%c0_56, %c1_57, %c1_58, %c0_59], %37 {strides = array<i32>} : memref<2x10x10x128xf32, #tpu.memory_space<vmem>>, vector<2x8x8x128xf32>,
    %c0_60 = arith.constant 0 : index
    %c0_61 = arith.constant 0 : index
    %c0_62 = arith.constant 0 : index
    %c0_63 = arith.constant 0 : index
    %39 = vector.load %arg10[%c0_60, %c0_61, %c0_62, %c0_63] : memref<2x10x10x128xf32, #tpu.memory_space<vmem>>, vector<2x8x8x128xf32>
    %40 = vector.shape_cast %39 : vector<2x8x8x128xf32> to vector<128x128xf32>
    %c0_64 = arith.constant 0 : index
    %c0_65 = arith.constant 0 : index
    %c1_66 = arith.constant 1 : index
    %c0_67 = arith.constant 0 : index
    %41 = vector.load %arg10[%c0_64, %c0_65, %c1_66, %c0_67] : memref<2x10x10x128xf32, #tpu.memory_space<vmem>>, vector<2x8x8x128xf32>
    %42 = vector.shape_cast %41 : vector<2x8x8x128xf32> to vector<128x128xf32>
    %c0_68 = arith.constant 0 : index
    %c0_69 = arith.constant 0 : index
    %c2_70 = arith.constant 2 : index
    %c0_71 = arith.constant 0 : index
    %43 = vector.load %arg10[%c0_68, %c0_69, %c2_70, %c0_71] : memref<2x10x10x128xf32, #tpu.memory_space<vmem>>, vector<2x8x8x128xf32>
    %44 = vector.shape_cast %43 : vector<2x8x8x128xf32> to vector<128x128xf32>
    %c0_72 = arith.constant 0 : index
    %c1_73 = arith.constant 1 : index
    %c0_74 = arith.constant 0 : index
    %c0_75 = arith.constant 0 : index
    %45 = vector.load %arg10[%c0_72, %c1_73, %c0_74, %c0_75] : memref<2x10x10x128xf32, #tpu.memory_space<vmem>>, vector<2x8x8x128xf32>
    %46 = vector.shape_cast %45 : vector<2x8x8x128xf32> to vector<128x128xf32>
    %c0_76 = arith.constant 0 : index
    %c1_77 = arith.constant 1 : index
    %c1_78 = arith.constant 1 : index
    %c0_79 = arith.constant 0 : index
    %47 = vector.load %arg10[%c0_76, %c1_77, %c1_78, %c0_79] : memref<2x10x10x128xf32, #tpu.memory_space<vmem>>, vector<2x8x8x128xf32>
    %48 = vector.shape_cast %47 : vector<2x8x8x128xf32> to vector<128x128xf32>
    %c0_80 = arith.constant 0 : index
    %c1_81 = arith.constant 1 : index
    %c2_82 = arith.constant 2 : index
    %c0_83 = arith.constant 0 : index
    %49 = vector.load %arg10[%c0_80, %c1_81, %c2_82, %c0_83] : memref<2x10x10x128xf32, #tpu.memory_space<vmem>>, vector<2x8x8x128xf32>
    %50 = vector.shape_cast %49 : vector<2x8x8x128xf32> to vector<128x128xf32>
    %c0_84 = arith.constant 0 : index
    %c2_85 = arith.constant 2 : index
    %c0_86 = arith.constant 0 : index
    %c0_87 = arith.constant 0 : index
    %51 = vector.load %arg10[%c0_84, %c2_85, %c0_86, %c0_87] : memref<2x10x10x128xf32, #tpu.memory_space<vmem>>, vector<2x8x8x128xf32>
    %52 = vector.shape_cast %51 : vector<2x8x8x128xf32> to vector<128x128xf32>
    %c0_88 = arith.constant 0 : index
    %c2_89 = arith.constant 2 : index
    %c1_90 = arith.constant 1 : index
    %c0_91 = arith.constant 0 : index
    %53 = vector.load %arg10[%c0_88, %c2_89, %c1_90, %c0_91] : memref<2x10x10x128xf32, #tpu.memory_space<vmem>>, vector<2x8x8x128xf32>
    %54 = vector.shape_cast %53 : vector<2x8x8x128xf32> to vector<128x128xf32>
    %c0_92 = arith.constant 0 : index
    %c2_93 = arith.constant 2 : index
    %c2_94 = arith.constant 2 : index
    %c0_95 = arith.constant 0 : index
    %55 = vector.load %arg10[%c0_92, %c2_93, %c2_94, %c0_95] : memref<2x10x10x128xf32, #tpu.memory_space<vmem>>, vector<2x8x8x128xf32>
    %56 = vector.shape_cast %55 : vector<2x8x8x128xf32> to vector<128x128xf32>
    %57 = tpu.concatenate %40, %42, %44, %46, %48, %50, %52, %54, %56 in 1 : vector<128x128xf32>, vector<128x128xf32>, vector<128x128xf32>, vector<128x128xf32>, vector<128x128xf32>, vector<128x128xf32>, vector<128x128xf32>, vector<128x128xf32>, vector<128x128xf32> -> vector<128x1152xf32>
    %58 = arith.truncf %57 : vector<128x1152xf32> to vector<128x1152xbf16>
    %c1_96 = arith.constant 1 : index
    %c0_97 = arith.constant 0 : index
    %c0_98 = arith.constant 0 : index
    %59 = vector.load %arg1[%c1_96, %c0_97, %c0_98] : memref<5x1152x128xbf16, #tpu.memory_space<vmem>>, vector<1x1152x128xbf16>
    %60 = vector.shape_cast %59 : vector<1x1152x128xbf16> to vector<1152x128xbf16>
    %cst_99 = arith.constant dense<0.000000e+00> : vector<128x128xf32>
    %61 = tpu.matmul %58, %60, %cst_99 {dimension_numbers = #tpu.dot_dimension_numbers<[1], [0], [0], [1], [0, 0, 1, 1], [], []>} : vector<128x1152xbf16>, vector<1152x128xbf16>, vector<128x128xf32> -> vector<128x128xf32>
    %c1_100 = arith.constant 1 : index
    %c0_101 = arith.constant 0 : index
    %c0_102 = arith.constant 0 : index
    %62 = vector.load %arg2[%c1_100, %c0_101, %c0_102] : memref<5x1x128xf32, #tpu.memory_space<vmem>>, vector<1x1x128xf32>
    %63 = vector.shape_cast %62 : vector<1x1x128xf32> to vector<1x128xf32>
    %64 = vector.broadcast %63 : vector<1x128xf32> to vector<128x128xf32>
    %65 = arith.mulf %61, %64 : vector<128x128xf32>
    %c1_103 = arith.constant 1 : index
    %c0_104 = arith.constant 0 : index
    %c0_105 = arith.constant 0 : index
    %66 = vector.load %arg3[%c1_103, %c0_104, %c0_105] : memref<5x1x128xf32, #tpu.memory_space<vmem>>, vector<1x1x128xf32>
    %67 = vector.shape_cast %66 : vector<1x1x128xf32> to vector<1x128xf32>
    %68 = vector.broadcast %67 : vector<1x128xf32> to vector<128x128xf32>
    %69 = arith.addf %65, %68 : vector<128x128xf32>
    %cst_106 = arith.constant 0.000000e+00 : f32
    %70 = vector.broadcast %cst_106 : f32 to vector<128x128xf32>
    %71 = arith.maximumf %69, %70 : vector<128x128xf32>
    %72 = vector.shape_cast %71 : vector<128x128xf32> to vector<2x8x8x128xf32>
    %c0_107 = arith.constant 0 : index
    %c1_108 = arith.constant 1 : index
    %c1_109 = arith.constant 1 : index
    %c0_110 = arith.constant 0 : index
    %73 = vector.load %arg10[%c0_107, %c1_108, %c1_109, %c0_110] : memref<2x10x10x128xf32, #tpu.memory_space<vmem>>, vector<2x8x8x128xf32>
    tpu.vector_store %arg10[%c0_107, %c1_108, %c1_109, %c0_110], %72 {strides = array<i32>} : memref<2x10x10x128xf32, #tpu.memory_space<vmem>>, vector<2x8x8x128xf32>,
    %c0_111 = arith.constant 0 : index
    %c0_112 = arith.constant 0 : index
    %c0_113 = arith.constant 0 : index
    %c0_114 = arith.constant 0 : index
    %74 = vector.load %arg10[%c0_111, %c0_112, %c0_113, %c0_114] : memref<2x10x10x128xf32, #tpu.memory_space<vmem>>, vector<2x8x8x128xf32>
    %75 = vector.shape_cast %74 : vector<2x8x8x128xf32> to vector<128x128xf32>
    %c0_115 = arith.constant 0 : index
    %c0_116 = arith.constant 0 : index
    %c1_117 = arith.constant 1 : index
    %c0_118 = arith.constant 0 : index
    %76 = vector.load %arg10[%c0_115, %c0_116, %c1_117, %c0_118] : memref<2x10x10x128xf32, #tpu.memory_space<vmem>>, vector<2x8x8x128xf32>
    %77 = vector.shape_cast %76 : vector<2x8x8x128xf32> to vector<128x128xf32>
    %c0_119 = arith.constant 0 : index
    %c0_120 = arith.constant 0 : index
    %c2_121 = arith.constant 2 : index
    %c0_122 = arith.constant 0 : index
    %78 = vector.load %arg10[%c0_119, %c0_120, %c2_121, %c0_122] : memref<2x10x10x128xf32, #tpu.memory_space<vmem>>, vector<2x8x8x128xf32>
    %79 = vector.shape_cast %78 : vector<2x8x8x128xf32> to vector<128x128xf32>
    %c0_123 = arith.constant 0 : index
    %c1_124 = arith.constant 1 : index
    %c0_125 = arith.constant 0 : index
    %c0_126 = arith.constant 0 : index
    %80 = vector.load %arg10[%c0_123, %c1_124, %c0_125, %c0_126] : memref<2x10x10x128xf32, #tpu.memory_space<vmem>>, vector<2x8x8x128xf32>
    %81 = vector.shape_cast %80 : vector<2x8x8x128xf32> to vector<128x128xf32>
    %c0_127 = arith.constant 0 : index
    %c1_128 = arith.constant 1 : index
    %c1_129 = arith.constant 1 : index
    %c0_130 = arith.constant 0 : index
    %82 = vector.load %arg10[%c0_127, %c1_128, %c1_129, %c0_130] : memref<2x10x10x128xf32, #tpu.memory_space<vmem>>, vector<2x8x8x128xf32>
    %83 = vector.shape_cast %82 : vector<2x8x8x128xf32> to vector<128x128xf32>
    %c0_131 = arith.constant 0 : index
    %c1_132 = arith.constant 1 : index
    %c2_133 = arith.constant 2 : index
    %c0_134 = arith.constant 0 : index
    %84 = vector.load %arg10[%c0_131, %c1_132, %c2_133, %c0_134] : memref<2x10x10x128xf32, #tpu.memory_space<vmem>>, vector<2x8x8x128xf32>
    %85 = vector.shape_cast %84 : vector<2x8x8x128xf32> to vector<128x128xf32>
    %c0_135 = arith.constant 0 : index
    %c2_136 = arith.constant 2 : index
    %c0_137 = arith.constant 0 : index
    %c0_138 = arith.constant 0 : index
    %86 = vector.load %arg10[%c0_135, %c2_136, %c0_137, %c0_138] : memref<2x10x10x128xf32, #tpu.memory_space<vmem>>, vector<2x8x8x128xf32>
    %87 = vector.shape_cast %86 : vector<2x8x8x128xf32> to vector<128x128xf32>
    %c0_139 = arith.constant 0 : index
    %c2_140 = arith.constant 2 : index
    %c1_141 = arith.constant 1 : index
    %c0_142 = arith.constant 0 : index
    %88 = vector.load %arg10[%c0_139, %c2_140, %c1_141, %c0_142] : memref<2x10x10x128xf32, #tpu.memory_space<vmem>>, vector<2x8x8x128xf32>
    %89 = vector.shape_cast %88 : vector<2x8x8x128xf32> to vector<128x128xf32>
    %c0_143 = arith.constant 0 : index
    %c2_144 = arith.constant 2 : index
    %c2_145 = arith.constant 2 : index
    %c0_146 = arith.constant 0 : index
    %90 = vector.load %arg10[%c0_143, %c2_144, %c2_145, %c0_146] : memref<2x10x10x128xf32, #tpu.memory_space<vmem>>, vector<2x8x8x128xf32>
    %91 = vector.shape_cast %90 : vector<2x8x8x128xf32> to vector<128x128xf32>
    %92 = tpu.concatenate %75, %77, %79, %81, %83, %85, %87, %89, %91 in 1 : vector<128x128xf32>, vector<128x128xf32>, vector<128x128xf32>, vector<128x128xf32>, vector<128x128xf32>, vector<128x128xf32>, vector<128x128xf32>, vector<128x128xf32>, vector<128x128xf32> -> vector<128x1152xf32>
    %93 = arith.truncf %92 : vector<128x1152xf32> to vector<128x1152xbf16>
    %c2_147 = arith.constant 2 : index
    %c0_148 = arith.constant 0 : index
    %c0_149 = arith.constant 0 : index
    %94 = vector.load %arg1[%c2_147, %c0_148, %c0_149] : memref<5x1152x128xbf16, #tpu.memory_space<vmem>>, vector<1x1152x128xbf16>
    %95 = vector.shape_cast %94 : vector<1x1152x128xbf16> to vector<1152x128xbf16>
    %cst_150 = arith.constant dense<0.000000e+00> : vector<128x128xf32>
    %96 = tpu.matmul %93, %95, %cst_150 {dimension_numbers = #tpu.dot_dimension_numbers<[1], [0], [0], [1], [0, 0, 1, 1], [], []>} : vector<128x1152xbf16>, vector<1152x128xbf16>, vector<128x128xf32> -> vector<128x128xf32>
    %c2_151 = arith.constant 2 : index
    %c0_152 = arith.constant 0 : index
    %c0_153 = arith.constant 0 : index
    %97 = vector.load %arg2[%c2_151, %c0_152, %c0_153] : memref<5x1x128xf32, #tpu.memory_space<vmem>>, vector<1x1x128xf32>
    %98 = vector.shape_cast %97 : vector<1x1x128xf32> to vector<1x128xf32>
    %99 = vector.broadcast %98 : vector<1x128xf32> to vector<128x128xf32>
    %100 = arith.mulf %96, %99 : vector<128x128xf32>
    %c2_154 = arith.constant 2 : index
    %c0_155 = arith.constant 0 : index
    %c0_156 = arith.constant 0 : index
    %101 = vector.load %arg3[%c2_154, %c0_155, %c0_156] : memref<5x1x128xf32, #tpu.memory_space<vmem>>, vector<1x1x128xf32>
    %102 = vector.shape_cast %101 : vector<1x1x128xf32> to vector<1x128xf32>
    %103 = vector.broadcast %102 : vector<1x128xf32> to vector<128x128xf32>
    %104 = arith.addf %100, %103 : vector<128x128xf32>
    %cst_157 = arith.constant 0.000000e+00 : f32
    %105 = vector.broadcast %cst_157 : f32 to vector<128x128xf32>
    %106 = arith.maximumf %104, %105 : vector<128x128xf32>
    %107 = vector.shape_cast %106 : vector<128x128xf32> to vector<2x8x8x128xf32>
    %c0_158 = arith.constant 0 : index
    %c1_159 = arith.constant 1 : index
    %c1_160 = arith.constant 1 : index
    %c0_161 = arith.constant 0 : index
    %108 = vector.load %arg10[%c0_158, %c1_159, %c1_160, %c0_161] : memref<2x10x10x128xf32, #tpu.memory_space<vmem>>, vector<2x8x8x128xf32>
    tpu.vector_store %arg10[%c0_158, %c1_159, %c1_160, %c0_161], %107 {strides = array<i32>} : memref<2x10x10x128xf32, #tpu.memory_space<vmem>>, vector<2x8x8x128xf32>,
    %c0_162 = arith.constant 0 : index
    %c0_163 = arith.constant 0 : index
    %c0_164 = arith.constant 0 : index
    %c0_165 = arith.constant 0 : index
    %109 = vector.load %arg10[%c0_162, %c0_163, %c0_164, %c0_165] : memref<2x10x10x128xf32, #tpu.memory_space<vmem>>, vector<2x8x8x128xf32>
    %110 = vector.shape_cast %109 : vector<2x8x8x128xf32> to vector<128x128xf32>
    %c0_166 = arith.constant 0 : index
    %c0_167 = arith.constant 0 : index
    %c1_168 = arith.constant 1 : index
    %c0_169 = arith.constant 0 : index
    %111 = vector.load %arg10[%c0_166, %c0_167, %c1_168, %c0_169] : memref<2x10x10x128xf32, #tpu.memory_space<vmem>>, vector<2x8x8x128xf32>
    %112 = vector.shape_cast %111 : vector<2x8x8x128xf32> to vector<128x128xf32>
    %c0_170 = arith.constant 0 : index
    %c0_171 = arith.constant 0 : index
    %c2_172 = arith.constant 2 : index
    %c0_173 = arith.constant 0 : index
    %113 = vector.load %arg10[%c0_170, %c0_171, %c2_172, %c0_173] : memref<2x10x10x128xf32, #tpu.memory_space<vmem>>, vector<2x8x8x128xf32>
    %114 = vector.shape_cast %113 : vector<2x8x8x128xf32> to vector<128x128xf32>
    %c0_174 = arith.constant 0 : index
    %c1_175 = arith.constant 1 : index
    %c0_176 = arith.constant 0 : index
    %c0_177 = arith.constant 0 : index
    %115 = vector.load %arg10[%c0_174, %c1_175, %c0_176, %c0_177] : memref<2x10x10x128xf32, #tpu.memory_space<vmem>>, vector<2x8x8x128xf32>
    %116 = vector.shape_cast %115 : vector<2x8x8x128xf32> to vector<128x128xf32>
    %c0_178 = arith.constant 0 : index
    %c1_179 = arith.constant 1 : index
    %c1_180 = arith.constant 1 : index
    %c0_181 = arith.constant 0 : index
    %117 = vector.load %arg10[%c0_178, %c1_179, %c1_180, %c0_181] : memref<2x10x10x128xf32, #tpu.memory_space<vmem>>, vector<2x8x8x128xf32>
    %118 = vector.shape_cast %117 : vector<2x8x8x128xf32> to vector<128x128xf32>
    %c0_182 = arith.constant 0 : index
    %c1_183 = arith.constant 1 : index
    %c2_184 = arith.constant 2 : index
    %c0_185 = arith.constant 0 : index
    %119 = vector.load %arg10[%c0_182, %c1_183, %c2_184, %c0_185] : memref<2x10x10x128xf32, #tpu.memory_space<vmem>>, vector<2x8x8x128xf32>
    %120 = vector.shape_cast %119 : vector<2x8x8x128xf32> to vector<128x128xf32>
    %c0_186 = arith.constant 0 : index
    %c2_187 = arith.constant 2 : index
    %c0_188 = arith.constant 0 : index
    %c0_189 = arith.constant 0 : index
    %121 = vector.load %arg10[%c0_186, %c2_187, %c0_188, %c0_189] : memref<2x10x10x128xf32, #tpu.memory_space<vmem>>, vector<2x8x8x128xf32>
    %122 = vector.shape_cast %121 : vector<2x8x8x128xf32> to vector<128x128xf32>
    %c0_190 = arith.constant 0 : index
    %c2_191 = arith.constant 2 : index
    %c1_192 = arith.constant 1 : index
    %c0_193 = arith.constant 0 : index
    %123 = vector.load %arg10[%c0_190, %c2_191, %c1_192, %c0_193] : memref<2x10x10x128xf32, #tpu.memory_space<vmem>>, vector<2x8x8x128xf32>
    %124 = vector.shape_cast %123 : vector<2x8x8x128xf32> to vector<128x128xf32>
    %c0_194 = arith.constant 0 : index
    %c2_195 = arith.constant 2 : index
    %c2_196 = arith.constant 2 : index
    %c0_197 = arith.constant 0 : index
    %125 = vector.load %arg10[%c0_194, %c2_195, %c2_196, %c0_197] : memref<2x10x10x128xf32, #tpu.memory_space<vmem>>, vector<2x8x8x128xf32>
    %126 = vector.shape_cast %125 : vector<2x8x8x128xf32> to vector<128x128xf32>
    %127 = tpu.concatenate %110, %112, %114, %116, %118, %120, %122, %124, %126 in 1 : vector<128x128xf32>, vector<128x128xf32>, vector<128x128xf32>, vector<128x128xf32>, vector<128x128xf32>, vector<128x128xf32>, vector<128x128xf32>, vector<128x128xf32>, vector<128x128xf32> -> vector<128x1152xf32>
    %128 = arith.truncf %127 : vector<128x1152xf32> to vector<128x1152xbf16>
    %c3 = arith.constant 3 : index
    %c0_198 = arith.constant 0 : index
    %c0_199 = arith.constant 0 : index
    %129 = vector.load %arg1[%c3, %c0_198, %c0_199] : memref<5x1152x128xbf16, #tpu.memory_space<vmem>>, vector<1x1152x128xbf16>
    %130 = vector.shape_cast %129 : vector<1x1152x128xbf16> to vector<1152x128xbf16>
    %cst_200 = arith.constant dense<0.000000e+00> : vector<128x128xf32>
    %131 = tpu.matmul %128, %130, %cst_200 {dimension_numbers = #tpu.dot_dimension_numbers<[1], [0], [0], [1], [0, 0, 1, 1], [], []>} : vector<128x1152xbf16>, vector<1152x128xbf16>, vector<128x128xf32> -> vector<128x128xf32>
    %c3_201 = arith.constant 3 : index
    %c0_202 = arith.constant 0 : index
    %c0_203 = arith.constant 0 : index
    %132 = vector.load %arg2[%c3_201, %c0_202, %c0_203] : memref<5x1x128xf32, #tpu.memory_space<vmem>>, vector<1x1x128xf32>
    %133 = vector.shape_cast %132 : vector<1x1x128xf32> to vector<1x128xf32>
    %134 = vector.broadcast %133 : vector<1x128xf32> to vector<128x128xf32>
    %135 = arith.mulf %131, %134 : vector<128x128xf32>
    %c3_204 = arith.constant 3 : index
    %c0_205 = arith.constant 0 : index
    %c0_206 = arith.constant 0 : index
    %136 = vector.load %arg3[%c3_204, %c0_205, %c0_206] : memref<5x1x128xf32, #tpu.memory_space<vmem>>, vector<1x1x128xf32>
    %137 = vector.shape_cast %136 : vector<1x1x128xf32> to vector<1x128xf32>
    %138 = vector.broadcast %137 : vector<1x128xf32> to vector<128x128xf32>
    %139 = arith.addf %135, %138 : vector<128x128xf32>
    %cst_207 = arith.constant 0.000000e+00 : f32
    %140 = vector.broadcast %cst_207 : f32 to vector<128x128xf32>
    %141 = arith.maximumf %139, %140 : vector<128x128xf32>
    %142 = vector.shape_cast %141 : vector<128x128xf32> to vector<2x8x8x128xf32>
    %c0_208 = arith.constant 0 : index
    %c1_209 = arith.constant 1 : index
    %c1_210 = arith.constant 1 : index
    %c0_211 = arith.constant 0 : index
    %143 = vector.load %arg10[%c0_208, %c1_209, %c1_210, %c0_211] : memref<2x10x10x128xf32, #tpu.memory_space<vmem>>, vector<2x8x8x128xf32>
    tpu.vector_store %arg10[%c0_208, %c1_209, %c1_210, %c0_211], %142 {strides = array<i32>} : memref<2x10x10x128xf32, #tpu.memory_space<vmem>>, vector<2x8x8x128xf32>,
    %c0_212 = arith.constant 0 : index
    %c0_213 = arith.constant 0 : index
    %c0_214 = arith.constant 0 : index
    %c0_215 = arith.constant 0 : index
    %144 = vector.load %arg10[%c0_212, %c0_213, %c0_214, %c0_215] : memref<2x10x10x128xf32, #tpu.memory_space<vmem>>, vector<2x8x8x128xf32>
    %145 = vector.shape_cast %144 : vector<2x8x8x128xf32> to vector<128x128xf32>
    %c0_216 = arith.constant 0 : index
    %c0_217 = arith.constant 0 : index
    %c1_218 = arith.constant 1 : index
    %c0_219 = arith.constant 0 : index
    %146 = vector.load %arg10[%c0_216, %c0_217, %c1_218, %c0_219] : memref<2x10x10x128xf32, #tpu.memory_space<vmem>>, vector<2x8x8x128xf32>
    %147 = vector.shape_cast %146 : vector<2x8x8x128xf32> to vector<128x128xf32>
    %c0_220 = arith.constant 0 : index
    %c0_221 = arith.constant 0 : index
    %c2_222 = arith.constant 2 : index
    %c0_223 = arith.constant 0 : index
    %148 = vector.load %arg10[%c0_220, %c0_221, %c2_222, %c0_223] : memref<2x10x10x128xf32, #tpu.memory_space<vmem>>, vector<2x8x8x128xf32>
    %149 = vector.shape_cast %148 : vector<2x8x8x128xf32> to vector<128x128xf32>
    %c0_224 = arith.constant 0 : index
    %c1_225 = arith.constant 1 : index
    %c0_226 = arith.constant 0 : index
    %c0_227 = arith.constant 0 : index
    %150 = vector.load %arg10[%c0_224, %c1_225, %c0_226, %c0_227] : memref<2x10x10x128xf32, #tpu.memory_space<vmem>>, vector<2x8x8x128xf32>
    %151 = vector.shape_cast %150 : vector<2x8x8x128xf32> to vector<128x128xf32>
    %c0_228 = arith.constant 0 : index
    %c1_229 = arith.constant 1 : index
    %c1_230 = arith.constant 1 : index
    %c0_231 = arith.constant 0 : index
    %152 = vector.load %arg10[%c0_228, %c1_229, %c1_230, %c0_231] : memref<2x10x10x128xf32, #tpu.memory_space<vmem>>, vector<2x8x8x128xf32>
    %153 = vector.shape_cast %152 : vector<2x8x8x128xf32> to vector<128x128xf32>
    %c0_232 = arith.constant 0 : index
    %c1_233 = arith.constant 1 : index
    %c2_234 = arith.constant 2 : index
    %c0_235 = arith.constant 0 : index
    %154 = vector.load %arg10[%c0_232, %c1_233, %c2_234, %c0_235] : memref<2x10x10x128xf32, #tpu.memory_space<vmem>>, vector<2x8x8x128xf32>
    %155 = vector.shape_cast %154 : vector<2x8x8x128xf32> to vector<128x128xf32>
    %c0_236 = arith.constant 0 : index
    %c2_237 = arith.constant 2 : index
    %c0_238 = arith.constant 0 : index
    %c0_239 = arith.constant 0 : index
    %156 = vector.load %arg10[%c0_236, %c2_237, %c0_238, %c0_239] : memref<2x10x10x128xf32, #tpu.memory_space<vmem>>, vector<2x8x8x128xf32>
    %157 = vector.shape_cast %156 : vector<2x8x8x128xf32> to vector<128x128xf32>
    %c0_240 = arith.constant 0 : index
    %c2_241 = arith.constant 2 : index
    %c1_242 = arith.constant 1 : index
    %c0_243 = arith.constant 0 : index
    %158 = vector.load %arg10[%c0_240, %c2_241, %c1_242, %c0_243] : memref<2x10x10x128xf32, #tpu.memory_space<vmem>>, vector<2x8x8x128xf32>
    %159 = vector.shape_cast %158 : vector<2x8x8x128xf32> to vector<128x128xf32>
    %c0_244 = arith.constant 0 : index
    %c2_245 = arith.constant 2 : index
    %c2_246 = arith.constant 2 : index
    %c0_247 = arith.constant 0 : index
    %160 = vector.load %arg10[%c0_244, %c2_245, %c2_246, %c0_247] : memref<2x10x10x128xf32, #tpu.memory_space<vmem>>, vector<2x8x8x128xf32>
    %161 = vector.shape_cast %160 : vector<2x8x8x128xf32> to vector<128x128xf32>
    %162 = tpu.concatenate %145, %147, %149, %151, %153, %155, %157, %159, %161 in 1 : vector<128x128xf32>, vector<128x128xf32>, vector<128x128xf32>, vector<128x128xf32>, vector<128x128xf32>, vector<128x128xf32>, vector<128x128xf32>, vector<128x128xf32>, vector<128x128xf32> -> vector<128x1152xf32>
    %163 = arith.truncf %162 : vector<128x1152xf32> to vector<128x1152xbf16>
    %c4 = arith.constant 4 : index
    %c0_248 = arith.constant 0 : index
    %c0_249 = arith.constant 0 : index
    %164 = vector.load %arg1[%c4, %c0_248, %c0_249] : memref<5x1152x128xbf16, #tpu.memory_space<vmem>>, vector<1x1152x128xbf16>
    %165 = vector.shape_cast %164 : vector<1x1152x128xbf16> to vector<1152x128xbf16>
    %cst_250 = arith.constant dense<0.000000e+00> : vector<128x128xf32>
    %166 = tpu.matmul %163, %165, %cst_250 {dimension_numbers = #tpu.dot_dimension_numbers<[1], [0], [0], [1], [0, 0, 1, 1], [], []>} : vector<128x1152xbf16>, vector<1152x128xbf16>, vector<128x128xf32> -> vector<128x128xf32>
    %c4_251 = arith.constant 4 : index
    %c0_252 = arith.constant 0 : index
    %c0_253 = arith.constant 0 : index
    %167 = vector.load %arg2[%c4_251, %c0_252, %c0_253] : memref<5x1x128xf32, #tpu.memory_space<vmem>>, vector<1x1x128xf32>
    %168 = vector.shape_cast %167 : vector<1x1x128xf32> to vector<1x128xf32>
    %169 = vector.broadcast %168 : vector<1x128xf32> to vector<128x128xf32>
    %170 = arith.mulf %166, %169 : vector<128x128xf32>
    %c4_254 = arith.constant 4 : index
    %c0_255 = arith.constant 0 : index
    %c0_256 = arith.constant 0 : index
    %171 = vector.load %arg3[%c4_254, %c0_255, %c0_256] : memref<5x1x128xf32, #tpu.memory_space<vmem>>, vector<1x1x128xf32>
    %172 = vector.shape_cast %171 : vector<1x1x128xf32> to vector<1x128xf32>
    %173 = vector.broadcast %172 : vector<1x128xf32> to vector<128x128xf32>
    %174 = arith.addf %170, %173 : vector<128x128xf32>
    %cst_257 = arith.constant 0.000000e+00 : f32
    %175 = vector.broadcast %cst_257 : f32 to vector<128x128xf32>
    %176 = arith.maximumf %174, %175 : vector<128x128xf32>
    %177 = vector.shape_cast %176 : vector<128x128xf32> to vector<2x8x8x128xf32>
    %c0_258 = arith.constant 0 : index
    %c1_259 = arith.constant 1 : index
    %c1_260 = arith.constant 1 : index
    %c0_261 = arith.constant 0 : index
    %178 = vector.load %arg10[%c0_258, %c1_259, %c1_260, %c0_261] : memref<2x10x10x128xf32, #tpu.memory_space<vmem>>, vector<2x8x8x128xf32>
    tpu.vector_store %arg10[%c0_258, %c1_259, %c1_260, %c0_261], %177 {strides = array<i32>} : memref<2x10x10x128xf32, #tpu.memory_space<vmem>>, vector<2x8x8x128xf32>,
    %c0_262 = arith.constant 0 : index
    %c1_263 = arith.constant 1 : index
    %c1_264 = arith.constant 1 : index
    %c0_265 = arith.constant 0 : index
    %179 = vector.load %arg10[%c0_262, %c1_263, %c1_264, %c0_265] : memref<2x10x10x128xf32, #tpu.memory_space<vmem>>, vector<2x1x1x128xf32>
    %180 = vector.shape_cast %179 : vector<2x1x1x128xf32> to vector<2x128xf32>
    %c0_266 = arith.constant 0 : index
    %c1_267 = arith.constant 1 : index
    %c2_268 = arith.constant 2 : index
    %c0_269 = arith.constant 0 : index
    %181 = vector.load %arg10[%c0_266, %c1_267, %c2_268, %c0_269] : memref<2x10x10x128xf32, #tpu.memory_space<vmem>>, vector<2x1x1x128xf32>
    %182 = vector.shape_cast %181 : vector<2x1x1x128xf32> to vector<2x128xf32>
    %c0_270 = arith.constant 0 : index
    %c1_271 = arith.constant 1 : index
    %c3_272 = arith.constant 3 : index
    %c0_273 = arith.constant 0 : index
    %183 = vector.load %arg10[%c0_270, %c1_271, %c3_272, %c0_273] : memref<2x10x10x128xf32, #tpu.memory_space<vmem>>, vector<2x1x1x128xf32>
    %184 = vector.shape_cast %183 : vector<2x1x1x128xf32> to vector<2x128xf32>
    %c0_274 = arith.constant 0 : index
    %c1_275 = arith.constant 1 : index
    %c4_276 = arith.constant 4 : index
    %c0_277 = arith.constant 0 : index
    %185 = vector.load %arg10[%c0_274, %c1_275, %c4_276, %c0_277] : memref<2x10x10x128xf32, #tpu.memory_space<vmem>>, vector<2x1x1x128xf32>
    %186 = vector.shape_cast %185 : vector<2x1x1x128xf32> to vector<2x128xf32>
    %c0_278 = arith.constant 0 : index
    %c1_279 = arith.constant 1 : index
    %c5 = arith.constant 5 : index
    %c0_280 = arith.constant 0 : index
    %187 = vector.load %arg10[%c0_278, %c1_279, %c5, %c0_280] : memref<2x10x10x128xf32, #tpu.memory_space<vmem>>, vector<2x1x1x128xf32>
    %188 = vector.shape_cast %187 : vector<2x1x1x128xf32> to vector<2x128xf32>
    %c0_281 = arith.constant 0 : index
    %c1_282 = arith.constant 1 : index
    %c6 = arith.constant 6 : index
    %c0_283 = arith.constant 0 : index
    %189 = vector.load %arg10[%c0_281, %c1_282, %c6, %c0_283] : memref<2x10x10x128xf32, #tpu.memory_space<vmem>>, vector<2x1x1x128xf32>
    %190 = vector.shape_cast %189 : vector<2x1x1x128xf32> to vector<2x128xf32>
    %c0_284 = arith.constant 0 : index
    %c1_285 = arith.constant 1 : index
    %c7 = arith.constant 7 : index
    %c0_286 = arith.constant 0 : index
    %191 = vector.load %arg10[%c0_284, %c1_285, %c7, %c0_286] : memref<2x10x10x128xf32, #tpu.memory_space<vmem>>, vector<2x1x1x128xf32>
    %192 = vector.shape_cast %191 : vector<2x1x1x128xf32> to vector<2x128xf32>
    %c0_287 = arith.constant 0 : index
    %c1_288 = arith.constant 1 : index
    %c8 = arith.constant 8 : index
    %c0_289 = arith.constant 0 : index
    %193 = vector.load %arg10[%c0_287, %c1_288, %c8, %c0_289] : memref<2x10x10x128xf32, #tpu.memory_space<vmem>>, vector<2x1x1x128xf32>
    %194 = vector.shape_cast %193 : vector<2x1x1x128xf32> to vector<2x128xf32>
    %c0_290 = arith.constant 0 : index
    %c2_291 = arith.constant 2 : index
    %c1_292 = arith.constant 1 : index
    %c0_293 = arith.constant 0 : index
    %195 = vector.load %arg10[%c0_290, %c2_291, %c1_292, %c0_293] : memref<2x10x10x128xf32, #tpu.memory_space<vmem>>, vector<2x1x1x128xf32>
    %196 = vector.shape_cast %195 : vector<2x1x1x128xf32> to vector<2x128xf32>
    %c0_294 = arith.constant 0 : index
    %c2_295 = arith.constant 2 : index
    %c2_296 = arith.constant 2 : index
    %c0_297 = arith.constant 0 : index
    %197 = vector.load %arg10[%c0_294, %c2_295, %c2_296, %c0_297] : memref<2x10x10x128xf32, #tpu.memory_space<vmem>>, vector<2x1x1x128xf32>
    %198 = vector.shape_cast %197 : vector<2x1x1x128xf32> to vector<2x128xf32>
    %c0_298 = arith.constant 0 : index
    %c2_299 = arith.constant 2 : index
    %c3_300 = arith.constant 3 : index
    %c0_301 = arith.constant 0 : index
    %199 = vector.load %arg10[%c0_298, %c2_299, %c3_300, %c0_301] : memref<2x10x10x128xf32, #tpu.memory_space<vmem>>, vector<2x1x1x128xf32>
    %200 = vector.shape_cast %199 : vector<2x1x1x128xf32> to vector<2x128xf32>
    %c0_302 = arith.constant 0 : index
    %c2_303 = arith.constant 2 : index
    %c4_304 = arith.constant 4 : index
    %c0_305 = arith.constant 0 : index
    %201 = vector.load %arg10[%c0_302, %c2_303, %c4_304, %c0_305] : memref<2x10x10x128xf32, #tpu.memory_space<vmem>>, vector<2x1x1x128xf32>
    %202 = vector.shape_cast %201 : vector<2x1x1x128xf32> to vector<2x128xf32>
    %c0_306 = arith.constant 0 : index
    %c2_307 = arith.constant 2 : index
    %c5_308 = arith.constant 5 : index
    %c0_309 = arith.constant 0 : index
    %203 = vector.load %arg10[%c0_306, %c2_307, %c5_308, %c0_309] : memref<2x10x10x128xf32, #tpu.memory_space<vmem>>, vector<2x1x1x128xf32>
    %204 = vector.shape_cast %203 : vector<2x1x1x128xf32> to vector<2x128xf32>
    %c0_310 = arith.constant 0 : index
    %c2_311 = arith.constant 2 : index
    %c6_312 = arith.constant 6 : index
    %c0_313 = arith.constant 0 : index
    %205 = vector.load %arg10[%c0_310, %c2_311, %c6_312, %c0_313] : memref<2x10x10x128xf32, #tpu.memory_space<vmem>>, vector<2x1x1x128xf32>
    %206 = vector.shape_cast %205 : vector<2x1x1x128xf32> to vector<2x128xf32>
    %c0_314 = arith.constant 0 : index
    %c2_315 = arith.constant 2 : index
    %c7_316 = arith.constant 7 : index
    %c0_317 = arith.constant 0 : index
    %207 = vector.load %arg10[%c0_314, %c2_315, %c7_316, %c0_317] : memref<2x10x10x128xf32, #tpu.memory_space<vmem>>, vector<2x1x1x128xf32>
    %208 = vector.shape_cast %207 : vector<2x1x1x128xf32> to vector<2x128xf32>
    %c0_318 = arith.constant 0 : index
    %c2_319 = arith.constant 2 : index
    %c8_320 = arith.constant 8 : index
    %c0_321 = arith.constant 0 : index
    %209 = vector.load %arg10[%c0_318, %c2_319, %c8_320, %c0_321] : memref<2x10x10x128xf32, #tpu.memory_space<vmem>>, vector<2x1x1x128xf32>
    %210 = vector.shape_cast %209 : vector<2x1x1x128xf32> to vector<2x128xf32>
    %c0_322 = arith.constant 0 : index
    %c3_323 = arith.constant 3 : index
    %c1_324 = arith.constant 1 : index
    %c0_325 = arith.constant 0 : index
    %211 = vector.load %arg10[%c0_322, %c3_323, %c1_324, %c0_325] : memref<2x10x10x128xf32, #tpu.memory_space<vmem>>, vector<2x1x1x128xf32>
    %212 = vector.shape_cast %211 : vector<2x1x1x128xf32> to vector<2x128xf32>
    %c0_326 = arith.constant 0 : index
    %c3_327 = arith.constant 3 : index
    %c2_328 = arith.constant 2 : index
    %c0_329 = arith.constant 0 : index
    %213 = vector.load %arg10[%c0_326, %c3_327, %c2_328, %c0_329] : memref<2x10x10x128xf32, #tpu.memory_space<vmem>>, vector<2x1x1x128xf32>
    %214 = vector.shape_cast %213 : vector<2x1x1x128xf32> to vector<2x128xf32>
    %c0_330 = arith.constant 0 : index
    %c3_331 = arith.constant 3 : index
    %c3_332 = arith.constant 3 : index
    %c0_333 = arith.constant 0 : index
    %215 = vector.load %arg10[%c0_330, %c3_331, %c3_332, %c0_333] : memref<2x10x10x128xf32, #tpu.memory_space<vmem>>, vector<2x1x1x128xf32>
    %216 = vector.shape_cast %215 : vector<2x1x1x128xf32> to vector<2x128xf32>
    %c0_334 = arith.constant 0 : index
    %c3_335 = arith.constant 3 : index
    %c4_336 = arith.constant 4 : index
    %c0_337 = arith.constant 0 : index
    %217 = vector.load %arg10[%c0_334, %c3_335, %c4_336, %c0_337] : memref<2x10x10x128xf32, #tpu.memory_space<vmem>>, vector<2x1x1x128xf32>
    %218 = vector.shape_cast %217 : vector<2x1x1x128xf32> to vector<2x128xf32>
    %c0_338 = arith.constant 0 : index
    %c3_339 = arith.constant 3 : index
    %c5_340 = arith.constant 5 : index
    %c0_341 = arith.constant 0 : index
    %219 = vector.load %arg10[%c0_338, %c3_339, %c5_340, %c0_341] : memref<2x10x10x128xf32, #tpu.memory_space<vmem>>, vector<2x1x1x128xf32>
    %220 = vector.shape_cast %219 : vector<2x1x1x128xf32> to vector<2x128xf32>
    %c0_342 = arith.constant 0 : index
    %c3_343 = arith.constant 3 : index
    %c6_344 = arith.constant 6 : index
    %c0_345 = arith.constant 0 : index
    %221 = vector.load %arg10[%c0_342, %c3_343, %c6_344, %c0_345] : memref<2x10x10x128xf32, #tpu.memory_space<vmem>>, vector<2x1x1x128xf32>
    %222 = vector.shape_cast %221 : vector<2x1x1x128xf32> to vector<2x128xf32>
    %c0_346 = arith.constant 0 : index
    %c3_347 = arith.constant 3 : index
    %c7_348 = arith.constant 7 : index
    %c0_349 = arith.constant 0 : index
    %223 = vector.load %arg10[%c0_346, %c3_347, %c7_348, %c0_349] : memref<2x10x10x128xf32, #tpu.memory_space<vmem>>, vector<2x1x1x128xf32>
    %224 = vector.shape_cast %223 : vector<2x1x1x128xf32> to vector<2x128xf32>
    %c0_350 = arith.constant 0 : index
    %c3_351 = arith.constant 3 : index
    %c8_352 = arith.constant 8 : index
    %c0_353 = arith.constant 0 : index
    %225 = vector.load %arg10[%c0_350, %c3_351, %c8_352, %c0_353] : memref<2x10x10x128xf32, #tpu.memory_space<vmem>>, vector<2x1x1x128xf32>
    %226 = vector.shape_cast %225 : vector<2x1x1x128xf32> to vector<2x128xf32>
    %c0_354 = arith.constant 0 : index
    %c4_355 = arith.constant 4 : index
    %c1_356 = arith.constant 1 : index
    %c0_357 = arith.constant 0 : index
    %227 = vector.load %arg10[%c0_354, %c4_355, %c1_356, %c0_357] : memref<2x10x10x128xf32, #tpu.memory_space<vmem>>, vector<2x1x1x128xf32>
    %228 = vector.shape_cast %227 : vector<2x1x1x128xf32> to vector<2x128xf32>
    %c0_358 = arith.constant 0 : index
    %c4_359 = arith.constant 4 : index
    %c2_360 = arith.constant 2 : index
    %c0_361 = arith.constant 0 : index
    %229 = vector.load %arg10[%c0_358, %c4_359, %c2_360, %c0_361] : memref<2x10x10x128xf32, #tpu.memory_space<vmem>>, vector<2x1x1x128xf32>
    %230 = vector.shape_cast %229 : vector<2x1x1x128xf32> to vector<2x128xf32>
    %c0_362 = arith.constant 0 : index
    %c4_363 = arith.constant 4 : index
    %c3_364 = arith.constant 3 : index
    %c0_365 = arith.constant 0 : index
    %231 = vector.load %arg10[%c0_362, %c4_363, %c3_364, %c0_365] : memref<2x10x10x128xf32, #tpu.memory_space<vmem>>, vector<2x1x1x128xf32>
    %232 = vector.shape_cast %231 : vector<2x1x1x128xf32> to vector<2x128xf32>
    %c0_366 = arith.constant 0 : index
    %c4_367 = arith.constant 4 : index
    %c4_368 = arith.constant 4 : index
    %c0_369 = arith.constant 0 : index
    %233 = vector.load %arg10[%c0_366, %c4_367, %c4_368, %c0_369] : memref<2x10x10x128xf32, #tpu.memory_space<vmem>>, vector<2x1x1x128xf32>
    %234 = vector.shape_cast %233 : vector<2x1x1x128xf32> to vector<2x128xf32>
    %c0_370 = arith.constant 0 : index
    %c4_371 = arith.constant 4 : index
    %c5_372 = arith.constant 5 : index
    %c0_373 = arith.constant 0 : index
    %235 = vector.load %arg10[%c0_370, %c4_371, %c5_372, %c0_373] : memref<2x10x10x128xf32, #tpu.memory_space<vmem>>, vector<2x1x1x128xf32>
    %236 = vector.shape_cast %235 : vector<2x1x1x128xf32> to vector<2x128xf32>
    %c0_374 = arith.constant 0 : index
    %c4_375 = arith.constant 4 : index
    %c6_376 = arith.constant 6 : index
    %c0_377 = arith.constant 0 : index
    %237 = vector.load %arg10[%c0_374, %c4_375, %c6_376, %c0_377] : memref<2x10x10x128xf32, #tpu.memory_space<vmem>>, vector<2x1x1x128xf32>
    %238 = vector.shape_cast %237 : vector<2x1x1x128xf32> to vector<2x128xf32>
    %c0_378 = arith.constant 0 : index
    %c4_379 = arith.constant 4 : index
    %c7_380 = arith.constant 7 : index
    %c0_381 = arith.constant 0 : index
    %239 = vector.load %arg10[%c0_378, %c4_379, %c7_380, %c0_381] : memref<2x10x10x128xf32, #tpu.memory_space<vmem>>, vector<2x1x1x128xf32>
    %240 = vector.shape_cast %239 : vector<2x1x1x128xf32> to vector<2x128xf32>
    %c0_382 = arith.constant 0 : index
    %c4_383 = arith.constant 4 : index
    %c8_384 = arith.constant 8 : index
    %c0_385 = arith.constant 0 : index
    %241 = vector.load %arg10[%c0_382, %c4_383, %c8_384, %c0_385] : memref<2x10x10x128xf32, #tpu.memory_space<vmem>>, vector<2x1x1x128xf32>
    %242 = vector.shape_cast %241 : vector<2x1x1x128xf32> to vector<2x128xf32>
    %c0_386 = arith.constant 0 : index
    %c5_387 = arith.constant 5 : index
    %c1_388 = arith.constant 1 : index
    %c0_389 = arith.constant 0 : index
    %243 = vector.load %arg10[%c0_386, %c5_387, %c1_388, %c0_389] : memref<2x10x10x128xf32, #tpu.memory_space<vmem>>, vector<2x1x1x128xf32>
    %244 = vector.shape_cast %243 : vector<2x1x1x128xf32> to vector<2x128xf32>
    %c0_390 = arith.constant 0 : index
    %c5_391 = arith.constant 5 : index
    %c2_392 = arith.constant 2 : index
    %c0_393 = arith.constant 0 : index
    %245 = vector.load %arg10[%c0_390, %c5_391, %c2_392, %c0_393] : memref<2x10x10x128xf32, #tpu.memory_space<vmem>>, vector<2x1x1x128xf32>
    %246 = vector.shape_cast %245 : vector<2x1x1x128xf32> to vector<2x128xf32>
    %c0_394 = arith.constant 0 : index
    %c5_395 = arith.constant 5 : index
    %c3_396 = arith.constant 3 : index
    %c0_397 = arith.constant 0 : index
    %247 = vector.load %arg10[%c0_394, %c5_395, %c3_396, %c0_397] : memref<2x10x10x128xf32, #tpu.memory_space<vmem>>, vector<2x1x1x128xf32>
    %248 = vector.shape_cast %247 : vector<2x1x1x128xf32> to vector<2x128xf32>
    %c0_398 = arith.constant 0 : index
    %c5_399 = arith.constant 5 : index
    %c4_400 = arith.constant 4 : index
    %c0_401 = arith.constant 0 : index
    %249 = vector.load %arg10[%c0_398, %c5_399, %c4_400, %c0_401] : memref<2x10x10x128xf32, #tpu.memory_space<vmem>>, vector<2x1x1x128xf32>
    %250 = vector.shape_cast %249 : vector<2x1x1x128xf32> to vector<2x128xf32>
    %c0_402 = arith.constant 0 : index
    %c5_403 = arith.constant 5 : index
    %c5_404 = arith.constant 5 : index
    %c0_405 = arith.constant 0 : index
    %251 = vector.load %arg10[%c0_402, %c5_403, %c5_404, %c0_405] : memref<2x10x10x128xf32, #tpu.memory_space<vmem>>, vector<2x1x1x128xf32>
    %252 = vector.shape_cast %251 : vector<2x1x1x128xf32> to vector<2x128xf32>
    %c0_406 = arith.constant 0 : index
    %c5_407 = arith.constant 5 : index
    %c6_408 = arith.constant 6 : index
    %c0_409 = arith.constant 0 : index
    %253 = vector.load %arg10[%c0_406, %c5_407, %c6_408, %c0_409] : memref<2x10x10x128xf32, #tpu.memory_space<vmem>>, vector<2x1x1x128xf32>
    %254 = vector.shape_cast %253 : vector<2x1x1x128xf32> to vector<2x128xf32>
    %c0_410 = arith.constant 0 : index
    %c5_411 = arith.constant 5 : index
    %c7_412 = arith.constant 7 : index
    %c0_413 = arith.constant 0 : index
    %255 = vector.load %arg10[%c0_410, %c5_411, %c7_412, %c0_413] : memref<2x10x10x128xf32, #tpu.memory_space<vmem>>, vector<2x1x1x128xf32>
    %256 = vector.shape_cast %255 : vector<2x1x1x128xf32> to vector<2x128xf32>
    %c0_414 = arith.constant 0 : index
    %c5_415 = arith.constant 5 : index
    %c8_416 = arith.constant 8 : index
    %c0_417 = arith.constant 0 : index
    %257 = vector.load %arg10[%c0_414, %c5_415, %c8_416, %c0_417] : memref<2x10x10x128xf32, #tpu.memory_space<vmem>>, vector<2x1x1x128xf32>
    %258 = vector.shape_cast %257 : vector<2x1x1x128xf32> to vector<2x128xf32>
    %c0_418 = arith.constant 0 : index
    %c6_419 = arith.constant 6 : index
    %c1_420 = arith.constant 1 : index
    %c0_421 = arith.constant 0 : index
    %259 = vector.load %arg10[%c0_418, %c6_419, %c1_420, %c0_421] : memref<2x10x10x128xf32, #tpu.memory_space<vmem>>, vector<2x1x1x128xf32>
    %260 = vector.shape_cast %259 : vector<2x1x1x128xf32> to vector<2x128xf32>
    %c0_422 = arith.constant 0 : index
    %c6_423 = arith.constant 6 : index
    %c2_424 = arith.constant 2 : index
    %c0_425 = arith.constant 0 : index
    %261 = vector.load %arg10[%c0_422, %c6_423, %c2_424, %c0_425] : memref<2x10x10x128xf32, #tpu.memory_space<vmem>>, vector<2x1x1x128xf32>
    %262 = vector.shape_cast %261 : vector<2x1x1x128xf32> to vector<2x128xf32>
    %c0_426 = arith.constant 0 : index
    %c6_427 = arith.constant 6 : index
    %c3_428 = arith.constant 3 : index
    %c0_429 = arith.constant 0 : index
    %263 = vector.load %arg10[%c0_426, %c6_427, %c3_428, %c0_429] : memref<2x10x10x128xf32, #tpu.memory_space<vmem>>, vector<2x1x1x128xf32>
    %264 = vector.shape_cast %263 : vector<2x1x1x128xf32> to vector<2x128xf32>
    %c0_430 = arith.constant 0 : index
    %c6_431 = arith.constant 6 : index
    %c4_432 = arith.constant 4 : index
    %c0_433 = arith.constant 0 : index
    %265 = vector.load %arg10[%c0_430, %c6_431, %c4_432, %c0_433] : memref<2x10x10x128xf32, #tpu.memory_space<vmem>>, vector<2x1x1x128xf32>
    %266 = vector.shape_cast %265 : vector<2x1x1x128xf32> to vector<2x128xf32>
    %c0_434 = arith.constant 0 : index
    %c6_435 = arith.constant 6 : index
    %c5_436 = arith.constant 5 : index
    %c0_437 = arith.constant 0 : index
    %267 = vector.load %arg10[%c0_434, %c6_435, %c5_436, %c0_437] : memref<2x10x10x128xf32, #tpu.memory_space<vmem>>, vector<2x1x1x128xf32>
    %268 = vector.shape_cast %267 : vector<2x1x1x128xf32> to vector<2x128xf32>
    %c0_438 = arith.constant 0 : index
    %c6_439 = arith.constant 6 : index
    %c6_440 = arith.constant 6 : index
    %c0_441 = arith.constant 0 : index
    %269 = vector.load %arg10[%c0_438, %c6_439, %c6_440, %c0_441] : memref<2x10x10x128xf32, #tpu.memory_space<vmem>>, vector<2x1x1x128xf32>
    %270 = vector.shape_cast %269 : vector<2x1x1x128xf32> to vector<2x128xf32>
    %c0_442 = arith.constant 0 : index
    %c6_443 = arith.constant 6 : index
    %c7_444 = arith.constant 7 : index
    %c0_445 = arith.constant 0 : index
    %271 = vector.load %arg10[%c0_442, %c6_443, %c7_444, %c0_445] : memref<2x10x10x128xf32, #tpu.memory_space<vmem>>, vector<2x1x1x128xf32>
    %272 = vector.shape_cast %271 : vector<2x1x1x128xf32> to vector<2x128xf32>
    %c0_446 = arith.constant 0 : index
    %c6_447 = arith.constant 6 : index
    %c8_448 = arith.constant 8 : index
    %c0_449 = arith.constant 0 : index
    %273 = vector.load %arg10[%c0_446, %c6_447, %c8_448, %c0_449] : memref<2x10x10x128xf32, #tpu.memory_space<vmem>>, vector<2x1x1x128xf32>
    %274 = vector.shape_cast %273 : vector<2x1x1x128xf32> to vector<2x128xf32>
    %c0_450 = arith.constant 0 : index
    %c7_451 = arith.constant 7 : index
    %c1_452 = arith.constant 1 : index
    %c0_453 = arith.constant 0 : index
    %275 = vector.load %arg10[%c0_450, %c7_451, %c1_452, %c0_453] : memref<2x10x10x128xf32, #tpu.memory_space<vmem>>, vector<2x1x1x128xf32>
    %276 = vector.shape_cast %275 : vector<2x1x1x128xf32> to vector<2x128xf32>
    %c0_454 = arith.constant 0 : index
    %c7_455 = arith.constant 7 : index
    %c2_456 = arith.constant 2 : index
    %c0_457 = arith.constant 0 : index
    %277 = vector.load %arg10[%c0_454, %c7_455, %c2_456, %c0_457] : memref<2x10x10x128xf32, #tpu.memory_space<vmem>>, vector<2x1x1x128xf32>
    %278 = vector.shape_cast %277 : vector<2x1x1x128xf32> to vector<2x128xf32>
    %c0_458 = arith.constant 0 : index
    %c7_459 = arith.constant 7 : index
    %c3_460 = arith.constant 3 : index
    %c0_461 = arith.constant 0 : index
    %279 = vector.load %arg10[%c0_458, %c7_459, %c3_460, %c0_461] : memref<2x10x10x128xf32, #tpu.memory_space<vmem>>, vector<2x1x1x128xf32>
    %280 = vector.shape_cast %279 : vector<2x1x1x128xf32> to vector<2x128xf32>
    %c0_462 = arith.constant 0 : index
    %c7_463 = arith.constant 7 : index
    %c4_464 = arith.constant 4 : index
    %c0_465 = arith.constant 0 : index
    %281 = vector.load %arg10[%c0_462, %c7_463, %c4_464, %c0_465] : memref<2x10x10x128xf32, #tpu.memory_space<vmem>>, vector<2x1x1x128xf32>
    %282 = vector.shape_cast %281 : vector<2x1x1x128xf32> to vector<2x128xf32>
    %c0_466 = arith.constant 0 : index
    %c7_467 = arith.constant 7 : index
    %c5_468 = arith.constant 5 : index
    %c0_469 = arith.constant 0 : index
    %283 = vector.load %arg10[%c0_466, %c7_467, %c5_468, %c0_469] : memref<2x10x10x128xf32, #tpu.memory_space<vmem>>, vector<2x1x1x128xf32>
    %284 = vector.shape_cast %283 : vector<2x1x1x128xf32> to vector<2x128xf32>
    %c0_470 = arith.constant 0 : index
    %c7_471 = arith.constant 7 : index
    %c6_472 = arith.constant 6 : index
    %c0_473 = arith.constant 0 : index
    %285 = vector.load %arg10[%c0_470, %c7_471, %c6_472, %c0_473] : memref<2x10x10x128xf32, #tpu.memory_space<vmem>>, vector<2x1x1x128xf32>
    %286 = vector.shape_cast %285 : vector<2x1x1x128xf32> to vector<2x128xf32>
    %c0_474 = arith.constant 0 : index
    %c7_475 = arith.constant 7 : index
    %c7_476 = arith.constant 7 : index
    %c0_477 = arith.constant 0 : index
    %287 = vector.load %arg10[%c0_474, %c7_475, %c7_476, %c0_477] : memref<2x10x10x128xf32, #tpu.memory_space<vmem>>, vector<2x1x1x128xf32>
    %288 = vector.shape_cast %287 : vector<2x1x1x128xf32> to vector<2x128xf32>
    %c0_478 = arith.constant 0 : index
    %c7_479 = arith.constant 7 : index
    %c8_480 = arith.constant 8 : index
    %c0_481 = arith.constant 0 : index
    %289 = vector.load %arg10[%c0_478, %c7_479, %c8_480, %c0_481] : memref<2x10x10x128xf32, #tpu.memory_space<vmem>>, vector<2x1x1x128xf32>
    %290 = vector.shape_cast %289 : vector<2x1x1x128xf32> to vector<2x128xf32>
    %c0_482 = arith.constant 0 : index
    %c8_483 = arith.constant 8 : index
    %c1_484 = arith.constant 1 : index
    %c0_485 = arith.constant 0 : index
    %291 = vector.load %arg10[%c0_482, %c8_483, %c1_484, %c0_485] : memref<2x10x10x128xf32, #tpu.memory_space<vmem>>, vector<2x1x1x128xf32>
    %292 = vector.shape_cast %291 : vector<2x1x1x128xf32> to vector<2x128xf32>
    %c0_486 = arith.constant 0 : index
    %c8_487 = arith.constant 8 : index
    %c2_488 = arith.constant 2 : index
    %c0_489 = arith.constant 0 : index
    %293 = vector.load %arg10[%c0_486, %c8_487, %c2_488, %c0_489] : memref<2x10x10x128xf32, #tpu.memory_space<vmem>>, vector<2x1x1x128xf32>
    %294 = vector.shape_cast %293 : vector<2x1x1x128xf32> to vector<2x128xf32>
    %c0_490 = arith.constant 0 : index
    %c8_491 = arith.constant 8 : index
    %c3_492 = arith.constant 3 : index
    %c0_493 = arith.constant 0 : index
    %295 = vector.load %arg10[%c0_490, %c8_491, %c3_492, %c0_493] : memref<2x10x10x128xf32, #tpu.memory_space<vmem>>, vector<2x1x1x128xf32>
    %296 = vector.shape_cast %295 : vector<2x1x1x128xf32> to vector<2x128xf32>
    %c0_494 = arith.constant 0 : index
    %c8_495 = arith.constant 8 : index
    %c4_496 = arith.constant 4 : index
    %c0_497 = arith.constant 0 : index
    %297 = vector.load %arg10[%c0_494, %c8_495, %c4_496, %c0_497] : memref<2x10x10x128xf32, #tpu.memory_space<vmem>>, vector<2x1x1x128xf32>
    %298 = vector.shape_cast %297 : vector<2x1x1x128xf32> to vector<2x128xf32>
    %c0_498 = arith.constant 0 : index
    %c8_499 = arith.constant 8 : index
    %c5_500 = arith.constant 5 : index
    %c0_501 = arith.constant 0 : index
    %299 = vector.load %arg10[%c0_498, %c8_499, %c5_500, %c0_501] : memref<2x10x10x128xf32, #tpu.memory_space<vmem>>, vector<2x1x1x128xf32>
    %300 = vector.shape_cast %299 : vector<2x1x1x128xf32> to vector<2x128xf32>
    %c0_502 = arith.constant 0 : index
    %c8_503 = arith.constant 8 : index
    %c6_504 = arith.constant 6 : index
    %c0_505 = arith.constant 0 : index
    %301 = vector.load %arg10[%c0_502, %c8_503, %c6_504, %c0_505] : memref<2x10x10x128xf32, #tpu.memory_space<vmem>>, vector<2x1x1x128xf32>
    %302 = vector.shape_cast %301 : vector<2x1x1x128xf32> to vector<2x128xf32>
    %c0_506 = arith.constant 0 : index
    %c8_507 = arith.constant 8 : index
    %c7_508 = arith.constant 7 : index
    %c0_509 = arith.constant 0 : index
    %303 = vector.load %arg10[%c0_506, %c8_507, %c7_508, %c0_509] : memref<2x10x10x128xf32, #tpu.memory_space<vmem>>, vector<2x1x1x128xf32>
    %304 = vector.shape_cast %303 : vector<2x1x1x128xf32> to vector<2x128xf32>
    %c0_510 = arith.constant 0 : index
    %c8_511 = arith.constant 8 : index
    %c8_512 = arith.constant 8 : index
    %c0_513 = arith.constant 0 : index
    %305 = vector.load %arg10[%c0_510, %c8_511, %c8_512, %c0_513] : memref<2x10x10x128xf32, #tpu.memory_space<vmem>>, vector<2x1x1x128xf32>
    %306 = vector.shape_cast %305 : vector<2x1x1x128xf32> to vector<2x128xf32>
    %307 = tpu.concatenate %180, %182, %184, %186, %188, %190, %192, %194, %196, %198, %200, %202, %204, %206, %208, %210 in 1 : vector<2x128xf32>, vector<2x128xf32>, vector<2x128xf32>, vector<2x128xf32>, vector<2x128xf32>, vector<2x128xf32>, vector<2x128xf32>, vector<2x128xf32>, vector<2x128xf32>, vector<2x128xf32>, vector<2x128xf32>, vector<2x128xf32>, vector<2x128xf32>, vector<2x128xf32>, vector<2x128xf32>, vector<2x128xf32> -> vector<2x2048xf32>
    %308 = tpu.concatenate %212, %214, %216, %218, %220, %222, %224, %226, %228, %230, %232, %234, %236, %238, %240, %242 in 1 : vector<2x128xf32>, vector<2x128xf32>, vector<2x128xf32>, vector<2x128xf32>, vector<2x128xf32>, vector<2x128xf32>, vector<2x128xf32>, vector<2x128xf32>, vector<2x128xf32>, vector<2x128xf32>, vector<2x128xf32>, vector<2x128xf32>, vector<2x128xf32>, vector<2x128xf32>, vector<2x128xf32>, vector<2x128xf32> -> vector<2x2048xf32>
    %309 = tpu.concatenate %244, %246, %248, %250, %252, %254, %256, %258, %260, %262, %264, %266, %268, %270, %272, %274 in 1 : vector<2x128xf32>, vector<2x128xf32>, vector<2x128xf32>, vector<2x128xf32>, vector<2x128xf32>, vector<2x128xf32>, vector<2x128xf32>, vector<2x128xf32>, vector<2x128xf32>, vector<2x128xf32>, vector<2x128xf32>, vector<2x128xf32>, vector<2x128xf32>, vector<2x128xf32>, vector<2x128xf32>, vector<2x128xf32> -> vector<2x2048xf32>
    %310 = tpu.concatenate %276, %278, %280, %282, %284, %286, %288, %290, %292, %294, %296, %298, %300, %302, %304, %306 in 1 : vector<2x128xf32>, vector<2x128xf32>, vector<2x128xf32>, vector<2x128xf32>, vector<2x128xf32>, vector<2x128xf32>, vector<2x128xf32>, vector<2x128xf32>, vector<2x128xf32>, vector<2x128xf32>, vector<2x128xf32>, vector<2x128xf32>, vector<2x128xf32>, vector<2x128xf32>, vector<2x128xf32>, vector<2x128xf32> -> vector<2x2048xf32>
    %311 = tpu.concatenate %307, %308, %309, %310 in 1 : vector<2x2048xf32>, vector<2x2048xf32>, vector<2x2048xf32>, vector<2x2048xf32> -> vector<2x8192xf32>
    %312 = arith.truncf %311 : vector<2x8192xf32> to vector<2x8192xbf16>
    %c0_514 = arith.constant 0 : index
    %c0_515 = arith.constant 0 : index
    %313 = vector.load %arg4[%c0_514, %c0_515] : memref<8192x128xbf16, #tpu.memory_space<vmem>>, vector<8192x128xbf16>
    %cst_516 = arith.constant dense<0.000000e+00> : vector<2x128xf32>
    %314 = tpu.matmul %312, %313, %cst_516 {dimension_numbers = #tpu.dot_dimension_numbers<[1], [0], [0], [1], [0, 0, 1, 1], [], []>} : vector<2x8192xbf16>, vector<8192x128xbf16>, vector<2x128xf32> -> vector<2x128xf32>
    %c0_517 = arith.constant 0 : index
    %c0_518 = arith.constant 0 : index
    %315 = vector.load %arg5[%c0_517, %c0_518] : memref<1x128xf32, #tpu.memory_space<vmem>>, vector<1x128xf32>
    %316 = vector.broadcast %315 : vector<1x128xf32> to vector<2x128xf32>
    %317 = arith.mulf %314, %316 : vector<2x128xf32>
    %c0_519 = arith.constant 0 : index
    %c0_520 = arith.constant 0 : index
    %318 = vector.load %arg6[%c0_519, %c0_520] : memref<1x128xf32, #tpu.memory_space<vmem>>, vector<1x128xf32>
    %319 = vector.broadcast %318 : vector<1x128xf32> to vector<2x128xf32>
    %320 = arith.addf %317, %319 : vector<2x128xf32>
    %cst_521 = arith.constant 0.000000e+00 : f32
    %321 = vector.broadcast %cst_521 : f32 to vector<2x128xf32>
    %322 = arith.maximumf %320, %321 : vector<2x128xf32>
    %323 = arith.truncf %322 : vector<2x128xf32> to vector<2x128xbf16>
    %c0_522 = arith.constant 0 : index
    %c0_523 = arith.constant 0 : index
    %324 = vector.load %arg7[%c0_522, %c0_523] : memref<128x128xbf16, #tpu.memory_space<vmem>>, vector<128x128xbf16>
    %cst_524 = arith.constant dense<0.000000e+00> : vector<2x128xf32>
    %325 = tpu.matmul %323, %324, %cst_524 {dimension_numbers = #tpu.dot_dimension_numbers<[1], [0], [0], [1], [0, 0, 1, 1], [], []>} : vector<2x128xbf16>, vector<128x128xbf16>, vector<2x128xf32> -> vector<2x128xf32>
    %c0_525 = arith.constant 0 : index
    %c0_526 = arith.constant 0 : index
    %326 = vector.load %arg8[%c0_525, %c0_526] : memref<1x128xf32, #tpu.memory_space<vmem>>, vector<1x128xf32>
    %327 = vector.broadcast %326 : vector<1x128xf32> to vector<2x128xf32>
    %328 = arith.addf %325, %327 : vector<2x128xf32>
    %cst_527 = arith.constant 0.000000e+00 : f32
    %329 = vector.broadcast %cst_527 : f32 to vector<2x128xf32>
    %330 = arith.subf %329, %328 : vector<2x128xf32>
    %331 = math.exp %330 : vector<2x128xf32>
    %cst_528 = arith.constant 1.000000e+00 : f32
    %332 = vector.broadcast %cst_528 : f32 to vector<2x128xf32>
    %333 = arith.addf %332, %331 : vector<2x128xf32>
    %cst_529 = arith.constant 1.000000e+00 : f32
    %334 = vector.broadcast %cst_529 : f32 to vector<2x128xf32>
    %335 = arith.divf %334, %333 : vector<2x128xf32>
    %c0_530 = arith.constant 0 : index
    %c0_531 = arith.constant 0 : index
    %336 = vector.load %arg9[%c0_530, %c0_531] : memref<2x128xf32, #tpu.memory_space<vmem>>, vector<2x128xf32>
    tpu.vector_store %arg9[%c0_530, %c0_531], %335 {strides = array<i32>} : memref<2x128xf32, #tpu.memory_space<vmem>>, vector<2x128xf32>,
    return
  }
}

</mosaic_0001>

<bundles_post_ra>
// kernel: qtchessnet_forward.1
= control target key start
LH: loop header
LB: loop body
LE: loop exit
PB: predicated region body
PF: predicated region fallthrough
CT: control target
= control target key end

     0   :  { %14 = vsyncpa [#allocation4], 0  ;;  %s19412_s0 = inlined_call_operand.vmem [shape: f32[2,8,8,128], index: 0, kind: input, shape index: {}]   ;;  %s19413_s1 = inlined_call_operand.hbm [shape: bf16[5,1152,128], index: 1, kind: input, shape index: {}]   ;;  %s19414_s2 = inlined_call_operand.hbm [shape: f32[5,1,128], index: 2, kind: input, shape index: {}]   ;;  %s19415_s3 = inlined_call_operand.hbm [shape: f32[5,1,128], index: 3, kind: input, shape index: {}]   ;;  %s19416_s4 = inlined_call_operand.hbm [shape: bf16[8192,128], index: 4, kind: input, shape index: {}]   ;;  %s19417_s5 = inlined_call_operand.hbm [shape: f32[1,128], index: 5, kind: input, shape index: {}]   ;;  %s19418_s6 = inlined_call_operand.hbm [shape: f32[1,128], index: 6, kind: input, shape index: {}]   ;;  %s19419_s7 = inlined_call_operand.hbm [shape: bf16[128,128], index: 7, kind: input, shape index: {}]   ;;  %s19420_s8 = inlined_call_operand.hbm [shape: f32[1,128], index: 8, kind: input, shape index: {}]   ;;  %s19421_s9 = inlined_call_operand.hbm [shape: f32[2,128], index: 9, kind: output, shape index: {}]  }
   0x1   :  { %15 = vsyncpa [#allocation7], 0 }
   0x2   :  { %16 = vsyncpa [#allocation10], 0 }
   0x3   :  { %17 = vsyncpa [#allocation13], 0 }
   0x4   :  { %18 = vsyncpa [#allocation16], 0  ;;  %s39_s11 = sshll.u32 %s19414_s2, 4  ;;  %s40_s11 = int_to_ptr.hbm [resolvable:$true] %s39_s11 }
   0x5   :  { %19 = vsyncpa [#allocation5], 0  ;;  %s17007_s12 = smov [#allocation6]   ;;  %s17008_s14 = smov 16  }
   0x6   :  { %s41_s13 = sshll.u32 %s17007_s12, 4  ;;  %s17009_s15 = smov 1   ;;  %s42_s13 = int_to_ptr.vmem [resolvable:$true] %s41_s13 }
   0x7   :  { %47 = dma.hbm_to_vmem [thread:$0]  %s40_s11, 80, %s42_s13, [#allocation7], %s17008_s14, %s17008_s14, %s17009_s15  }
   0x8   :  { %s65_s18 = sshll.u32 %s19416_s4, 4  ;;  %s17010_s19 = smov [#allocation9]   ;;  %s66_s18 = int_to_ptr.hbm [resolvable:$true] %s65_s18 }
   0x9   :  { %s67_s20 = sshll.u32 %s17010_s19, 4  ;;  %s90_s22 = sshll.u32 %s19418_s6, 4  ;;  %s68_s20 = int_to_ptr.vmem [resolvable:$true] %s67_s20  ;;  %s91_s22 = int_to_ptr.hbm [resolvable:$true] %s90_s22 }
   0xa   :  { %s17011_s23 = smov 64   ;;  %s17012_s24 = smov 4  }
   0xb   :  { %73 = dma.hbm_to_vmem [thread:$0]  %s66_s18, 65536, %s68_s20, [#allocation10], %s17011_s23, %s17011_s23, %s17012_s24  }
   0xc   :  { %s26_s27 = sshll.u32 %s19413_s1, 4  ;;  %s17013_s4 = smov [#allocation12]   ;;  %s27_s27 = int_to_ptr.hbm [resolvable:$true] %s26_s27 }
   0xd   :  { %s92_s28 = sshll.u32 %s17013_s4, 4  ;;  %s17014_s29 = smov [#allocation3]   ;;  %s93_s28 = int_to_ptr.vmem [resolvable:$true] %s92_s28 }
   0xe   :  { %95 = dma.hbm_to_vmem [thread:$0]  %s91_s22, 16, %s93_s28, [#allocation13]  }
   0xf   :  { %s28_s30 = sshll.u32 %s17014_s29, 4  ;;  %s52_s11 = sshll.u32 %s19415_s3, 4  ;;  %s29_s30 = int_to_ptr.vmem [resolvable:$true] %s28_s30  ;;  %s53_s11 = int_to_ptr.hbm [resolvable:$true] %s52_s11 }
  0x10   :  { %34 = dma.hbm_to_vmem [thread:$0]  %s27_s27, 46080, %s29_s30, [#allocation4], %s17011_s23, %s17011_s23, %s17012_s24  }
  0x11   :  { %s79_s1 = sshll.u32 %s19417_s5, 4  ;;  %s17015_s16 = smov [#allocation8]   ;;  %s80_s1 = int_to_ptr.hbm [resolvable:$true] %s79_s1 }
  0x12   :  { %s54_s17 = sshll.u32 %s17015_s16, 4  ;;  %s17016_s18 = smov [#allocation11]   ;;  %s55_s17 = int_to_ptr.vmem [resolvable:$true] %s54_s17 }
  0x13   :  { %60 = dma.hbm_to_vmem [thread:$0]  %s53_s11, 80, %s55_s17, [#allocation7], %s17008_s14, %s17008_s14, %s17009_s15  }
  0x14   :  { %s81_s3 = sshll.u32 %s17016_s18, 4  ;;  %s100_s21 = sshll.u32 %s19419_s7, 4  ;;  %s82_s3 = int_to_ptr.vmem [resolvable:$true] %s81_s3  ;;  %s101_s21 = int_to_ptr.hbm [resolvable:$true] %s100_s21 }
  0x15   :  { %84 = dma.hbm_to_vmem [thread:$0]  %s80_s1, 16, %s82_s3, [#allocation10]  }
  0x16   :  { %s114_s5 = sshll.u32 %s19420_s8, 4  ;;  %s17017_s25 = smov [#allocation14]   ;;  %s115_s5 = int_to_ptr.hbm [resolvable:$true] %s114_s5 }
  0x17   :  { %s102_s26 = sshll.u32 %s17017_s25, 4  ;;  %s17018_s14 = smov [#allocation15]   ;;  %s103_s26 = int_to_ptr.vmem [resolvable:$true] %s102_s26 }
  0x18   :  { %108 = dma.hbm_to_vmem [thread:$0]  %s101_s21, 1024, %s103_s26, [#allocation13], %s17011_s23, %s17011_s23, %s17012_s24  }
  0x19   :  { %s116_s15 = sshll.u32 %s17018_s14, 4  ;;  %s117_s15 = int_to_ptr.vmem [resolvable:$true] %s116_s15 }
  0x1a   :  { %119 = dma.hbm_to_vmem [thread:$0]  %s115_s5, 16, %s117_s15, [#allocation16]  }
  0x1b   :  { %16995 = dma.done.wait [#allocation4], 46080  }
  0x1c   :  { %16996 = vsyncadd [#allocation4], 4294921216 }
  0x1d   :  { %16997 = dma.done.wait [#allocation7], 160  }
  0x1e   :  { %16998 = vsyncadd [#allocation7], 4294967136 }
  0x1f   :  { %16999 = dma.done.wait [#allocation10], 65552  }
  0x20   :  { %17000 = vsyncadd [#allocation10], 4294901744 }
  0x21   :  { %17001 = dma.done.wait [#allocation13], 1040  }
  0x22   :  { %17002 = vsyncadd [#allocation13], 4294966256 }
  0x23   :  { %17003 = dma.done.wait [#allocation16], 16  }
  0x24   :  { %17004 = vsyncadd [#allocation16], 4294967280  ;;  %v17019_v0 = vmov 0.0   ;;  %v15871_v1 = vld [vmem:[#allocation3 + $0x38] sm:$0xff]  ;;  %v15870_v5 = vld [vmem:[#allocation3 + $0x30] sm:$0xff]  ;;  %vm6900_vm0 = vcmask 1041409  }
  0x25   :  { %152 = vst [vmem:[#allocation2] sm:$0xff] %v17019_v0  ;;  %v15879_v2 = vld [vmem:[#allocation3 + $0x78] sm:$0xff]  ;;  %1018 = vmatpush.bf16.msra.mxu0 %v15871_v1  ;;  %v15878_v6 = vld [vmem:[#allocation3 + $0x70] sm:$0xff]  ;;  %v15869_v9 = vld [vmem:[#allocation3 + $0x28] sm:$0xff]  ;;  %s12330_s28 = sshll.u32 %s19421_s9, 4  ;;  %s12331_s28 = int_to_ptr.hbm [resolvable:$true] %s12330_s28 }
  0x26   :  { %154 = vst [vmem:[#allocation2 + $0x10] sm:$0xff] %v17019_v0  ;;  %v15887_v3 = vld [vmem:[#allocation3 + $0xb8] sm:$0xff]  ;;  %1067 = vmatpush.bf16.msra.mxu1 %v15879_v2  ;;  %v15886_v7 = vld [vmem:[#allocation3 + $0xb0] sm:$0xff]  ;;  %v15877_v10 = vld [vmem:[#allocation3 + $0x68] sm:$0xff] }
  0x27   :  { %155 = vst [vmem:[#allocation2 + $0x18] sm:$0x3] %v17019_v0  ;;  %v15895_v4 = vld [vmem:[#allocation3 + $0xf8] sm:$0xff]  ;;  %1116 = vmatpush.bf16.msra.mxu2 %v15887_v3  ;;  %v15894_v8 = vld [vmem:[#allocation3 + $0xf0] sm:$0xff]  ;;  %v15885_v11 = vld [vmem:[#allocation3 + $0xa8] sm:$0xff] }
  0x28   :  { %153 = vst [vmem:[#allocation2 + $0x8] sm:$0x3] %v17019_v0  ;;  %1165 = vmatpush.bf16.msra.mxu3 %v15895_v4  ;;  %v15893_v12 = vld [vmem:[#allocation3 + $0xe8] sm:$0xff]  ;;  %v15868_v13 = vld [vmem:[#allocation3 + $0x20] sm:$0xff]  ;;  %v15867_v18 = vld [vmem:[#allocation3 + $0x18] sm:$0xff] }
  0x29   :  { %156 = vst [vmem:[#allocation2 + $0x20] sm:$0xff] %v17019_v0  ;;  %1019 = vmatpush.bf16.msra.mxu0 %v15870_v5  ;;  %v15876_v14 = vld [vmem:[#allocation3 + $0x60] sm:$0xff]  ;;  %v15875_v19 = vld [vmem:[#allocation3 + $0x58] sm:$0xff]  ;;  %v15866_v22 = vld [vmem:[#allocation3 + $0x10] sm:$0xff] }
  0x2a   :  { %157 = vst [vmem:[#allocation2 + $0x28] sm:$0x3] %v17019_v0  ;;  %1068 = vmatpush.bf16.msra.mxu1 %v15878_v6  ;;  %v17129_v15 = vld [vmem:[%s19412_s0] sm:$0xff]  ;;  %v15883_v20 = vld [vmem:[#allocation3 + $0x98] sm:$0xff]  ;;  %v15874_v23 = vld [vmem:[#allocation3 + $0x50] sm:$0xff] }
  0x2b   :  { %158 = vst [vmem:[#allocation2 + $0x30] sm:$0xff] %v17019_v0  ;;  %1117 = vmatpush.bf16.msra.mxu2 %v15886_v7  ;;  %v15884_v16 = vld [vmem:[#allocation3 + $0xa0] sm:$0xff]  ;;  %v15891_v21 = vld [vmem:[#allocation3 + $0xd8] sm:$0xff]  ;;  %v15882_v24 = vld [vmem:[#allocation3 + $0x90] sm:$0xff] }
  0x2c   :  { %159 = vst [vmem:[#allocation2 + $0x38] sm:$0x3] %v17019_v0  ;;  %1166 = vmatpush.bf16.msra.mxu3 %v15894_v8  ;;  %v15892_v17 = vld [vmem:[#allocation3 + $0xe0] sm:$0xff]  ;;  %v15890_v25 = vld [vmem:[#allocation3 + $0xd0] sm:$0xff]  ;;  %v15865_v26 = vld [vmem:[#allocation3 + $0x8] sm:$0xff] }
  0x2d   :  { %160 = vst [vmem:[#allocation2 + $0x40] sm:$0xff] %v17019_v0  ;;  %1020 = vmatpush.bf16.msra.mxu0 %v15869_v9  ;;  %v15873_v27 = vld [vmem:[#allocation3 + $0x48] sm:$0xff]  ;;  %v15864_v30 = vld [vmem:[#allocation3] sm:$0xff]  ;;  %v17168_v42 = vld [vmem:[%s19412_s0 + $0x10] sm:$0xff] }
  0x2e   :  { %161 = vst [vmem:[#allocation2 + $0x48] sm:$0x3] %v17019_v0  ;;  %1069 = vmatpush.bf16.msra.mxu1 %v15877_v10  ;;  %v15881_v28 = vld [vmem:[#allocation3 + $0x88] sm:$0xff]  ;;  %v15872_v31 = vld [vmem:[#allocation3 + $0x40] sm:$0xff]  ;;  %v17174_v43 = vld [vmem:[%s19412_s0 + $0x18] sm:$0xff] }
  0x2f   :  { %162 = vst [vmem:[#allocation2 + $0x50] sm:$0xff] %v17019_v0  ;;  %1118 = vmatpush.bf16.msra.mxu2 %v15885_v11  ;;  %v15889_v29 = vld [vmem:[#allocation3 + $0xc8] sm:$0xff]  ;;  %v15880_v32 = vld [vmem:[#allocation3 + $0x80] sm:$0xff]  ;;  %v17204_v53 = vld [vmem:[%s19412_s0 + $0x30] sm:$0xff] }
  0x30   :  { %163 = vst [vmem:[#allocation2 + $0x58] sm:$0x3] %v17019_v0  ;;  %1167 = vmatpush.bf16.msra.mxu3 %v15893_v12  ;;  %v241_v34 = vld [vmem:[#allocation2 + $0x1] sm:$0xff]  ;;  %v17214_v55 = vld [vmem:[%s19412_s0 + $0x38] sm:$0xff]  ;;  %v17256_v10 = vld [vmem:[%s19412_s0 + $0x50] sm:$0xff] }
  0x31   :  { %164 = vst [vmem:[#allocation2 + $0x60] sm:$0xff] %v17019_v0  ;;  %1021 = vmatpush.bf16.msra.mxu0 %v15868_v13  ;;  %v15888_v35 = vld [vmem:[#allocation3 + $0xc0] sm:$0xff]  ;;  %v371_v39 = vpack.c.bf16 %v17129_v15, %v241_v34  ;;  %v17162_v41 = vld [vmem:[%s19412_s0 + $0x8] sm:$0xff]  ;;  %v17266_v12 = vld [vmem:[%s19412_s0 + $0x58] sm:$0xff] }
  0x32   :  { %165 = vst [vmem:[#allocation2 + $0x68] sm:$0x3] %v17019_v0  ;;  %1070 = vmatpush.bf16.msra.mxu1 %v15876_v14  ;;  %v257_v36 = vld [vmem:[#allocation2 + $0x2] sm:$0xff]  ;;  %v17199_v52 = vpack.c.bf16 %v17168_v42, %v17162_v41 }
  0x33   :  { %166 = vst [vmem:[#allocation2 + $0x70] sm:$0xff] %v17019_v0  ;;  %1119 = vmatpush.bf16.msra.mxu2 %v15884_v16  ;;  %v17180_v44 = vld [vmem:[%s19412_s0 + $0x20] sm:$0xff]  ;;  %v17186_v45 = vld [vmem:[%s19412_s0 + $0x28] sm:$0xff] }
  0x34   :  { %167 = vst [vmem:[#allocation2 + $0x78] sm:$0x3] %v17019_v0  ;;  %1168 = vmatpush.bf16.msra.mxu3 %v15892_v17  ;;  %v17225_v62 = vpack.c.bf16 %v17180_v44, %v17174_v43  ;;  %v17230_v63 = vld [vmem:[%s19412_s0 + $0x40] sm:$0xff]  ;;  %v17240_v2 = vld [vmem:[%s19412_s0 + $0x48] sm:$0xff]  ;;  %v17251_v9 = vpack.c.bf16 %v17204_v53, %v17186_v45 }
  0x35   :  { %168 = vst [vmem:[#allocation2 + $0x80] sm:$0xff] %v17019_v0  ;;  %1022 = vmatpush.bf16.msra.mxu0 %v15867_v18  ;;  %v17297_v34 = vpack.c.bf16 %v17256_v10, %v17240_v2 }
  0x36   :  { %209 = vst [vmem:[#allocation2 + $0x11] sm:$0xff] %v17129_v15  ;;  %1071 = vmatpush.bf16.msra.mxu1 %v15875_v19 }
  0x37   :  { %169 = vst [vmem:[#allocation2 + $0x88] sm:$0x3] %v17019_v0  ;;  %1120 = vmatpush.bf16.msra.mxu2 %v15883_v20 }
  0x38   :  { %170 = vst [vmem:[#allocation2 + $0x90] sm:$0xff] %v17019_v0  ;;  %1169 = vmatpush.bf16.msra.mxu3 %v15891_v21 }
  0x39   :  { %171 = vst [vmem:[#allocation2 + $0x98] sm:$0x3] %v17019_v0  ;;  %1023 = vmatpush.bf16.msra.mxu0 %v15866_v22  ;;  %v17279_v22 = vld [vmem:[%s19412_s0 + $0x60] sm:$0xff] }
  0x3a   :  { %172 = vst [vmem:[#allocation2 + $0xa0] sm:$0xff] %v17019_v0  ;;  %1072 = vmatpush.bf16.msra.mxu1 %v15874_v23 }
  0x3b   :  { %173 = vst [vmem:[#allocation2 + $0xa8] sm:$0x3] %v17019_v0  ;;  %1121 = vmatpush.bf16.msra.mxu2 %v15882_v24  ;;  %v15903_v24 = vld [vmem:[#allocation3 + $0x138] sm:$0xff] }
  0x3c   :  { %174 = vst [vmem:[#allocation2 + $0xb0] sm:$0xff] %v17019_v0  ;;  %1170 = vmatpush.bf16.msra.mxu3 %v15890_v25  ;;  %v15919_v25 = vld [vmem:[#allocation3 + $0x1b8] sm:$0xff] }
  0x3d   :  { %175 = vst [vmem:[#allocation2 + $0xb8] sm:$0x3] %v17019_v0  ;;  %1024 = vmatpush.bf16.msra.mxu0 %v15865_v26  ;;  %v226_v33 = vld [vmem:[#allocation2 + $0x10] sm:$0xff] }
  0x3e   :  { %176 = vst [vmem:[#allocation2 + $0xc0] sm:$0xff] %v17019_v0  ;;  %1073 = vmatpush.bf16.msra.mxu1 %v15873_v27  ;;  %v17149_v37 = vld [vmem:[#allocation2 + $0x12] sm:$0xff]  ;;  %v370_v38 = vpack.c.bf16 %v226_v33, %v17019_v0 }
  0x3f   :  { %177 = vst [vmem:[#allocation2 + $0xc8] sm:$0x3] %v17019_v0  ;;  %1122 = vmatpush.bf16.msra.mxu2 %v15881_v28  ;;  %v372_v40 = vpack.c.bf16 %v17149_v37, %v257_v36  ;;  %v15918_v36 = vld [vmem:[#allocation3 + $0x1b0] sm:$0xff] }
  0x40   :  { %178 = vst [vmem:[#allocation2 + $0xd0] sm:$0xff] %v17019_v0  ;;  %1171 = vmatpush.bf16.msra.mxu3 %v15889_v29 }
  0x41   :  { %179 = vst [vmem:[#allocation2 + $0xd8] sm:$0x3] %v17019_v0  ;;  %1025 = vmatpush.bf16.msra.mxu0 %v15864_v30 }
  0x42   :  { %180 = vst [vmem:[#allocation2 + $0xe0] sm:$0xff] %v17019_v0  ;;  %1074 = vmatpush.bf16.msra.mxu1 %v15872_v31  ;;  %v249_v17 = vld [vmem:[#allocation2 + $0xa1] sm:$0xff]  ;;  %v15911_v31 = vld [vmem:[#allocation3 + $0x178] sm:$0xff] }
  0x43   :  { %181 = vst [vmem:[#allocation2 + $0xe8] sm:$0x3] %v17019_v0  ;;  %1123 = vmatpush.bf16.msra.mxu2 %v15880_v32  ;;  %v265_v18 = vld [vmem:[#allocation2 + $0xa2] sm:$0xff]  ;;  %v407_v21 = vpack.c.bf16 %v17230_v63, %v249_v17  ;;  %v15927_v32 = vld [vmem:[#allocation3 + $0x1f8] sm:$0xff] }
  0x44   :  { %182 = vst [vmem:[#allocation2 + $0xf0] sm:$0xff] %v17019_v0  ;;  %1172 = vmatpush.bf16.msra.mxu3 %v15888_v35  ;;  %1026 = vmatmul.bf16.vlgmr.msra.gmra.mxu0 %v370_v38  ;;  %v15902_v35 = vld [vmem:[#allocation3 + $0x130] sm:$0xff] }
  0x45   :  { %183 = vst [vmem:[#allocation2 + $0xf8] sm:$0x3] %v17019_v0  ;;  %1075 = vmatmul.bf16.vlgmr.msra.gmra.mxu1 %v371_v39  ;;  %1214 = vmatpush.bf16.msrb.mxu0 %v15903_v24  ;;  %v15910_v39 = vld [vmem:[#allocation3 + $0x170] sm:$0xff] }
  0x46   :  { %184 = vst [vmem:[#allocation2 + $0x100] sm:$0xff] %v17019_v0  ;;  %1124 = vmatmul.bf16.vlgmr.msra.gmra.mxu2 %v372_v40  ;;  %1263 = vmatpush.bf16.msrb.mxu1 %v15911_v31  ;;  %v15926_v40 = vld [vmem:[#allocation3 + $0x1f0] sm:$0xff] }
  0x47   :  { %185 = vst [vmem:[#allocation2 + $0x108] sm:$0x3] %v17019_v0  ;;  %1312 = vmatpush.bf16.msrb.mxu2 %v15919_v25  ;;  %v17323_v25 = vpack.c.bf16 %v17279_v22, %v17266_v12  ;;  %v15906_v31 = vld [vmem:[#allocation3 + $0x150] sm:$0xff] }
  0x48   :  { %186 = vst [vmem:[#allocation2 + $0x110] sm:$0xff] %v17019_v0  ;;  %1361 = vmatpush.bf16.msrb.mxu3 %v15927_v32  ;;  %v15922_v32 = vld [vmem:[#allocation3 + $0x1d0] sm:$0xff] }
  0x49   :  { %187 = vst [vmem:[#allocation2 + $0x118] sm:$0x3] %v17019_v0  ;;  %1215 = vmatpush.bf16.msrb.mxu0 %v15902_v35  ;;  %v15897_v35 = vld [vmem:[#allocation3 + $0x108] sm:$0xff] }
  0x4a   :  { %188 = vst [vmem:[#allocation2 + $0x120] sm:$0xff] %v17019_v0  ;;  %1264 = vmatpush.bf16.msrb.mxu1 %v15910_v39  ;;  %v15921_v39 = vld [vmem:[#allocation3 + $0x1c8] sm:$0xff] }
  0x4b   :  { %189 = vst [vmem:[#allocation2 + $0x128] sm:$0x3] %v17019_v0  ;;  %1313 = vmatpush.bf16.msrb.mxu2 %v15918_v36  ;;  %v15913_v36 = vld [vmem:[#allocation3 + $0x188] sm:$0xff] }
  0x4c   :  { %190 = vst [vmem:[#allocation2 + $0x130] sm:$0xff] %v17019_v0  ;;  %1362 = vmatpush.bf16.msrb.mxu3 %v15926_v40  ;;  %v15896_v40 = vld [vmem:[#allocation3 + $0x100] sm:$0xff] }
  0x4d   :  { %191 = vst [vmem:[#allocation2 + $0x138] sm:$0x3] %v17019_v0 }
  0x4e   :  { %210 = vst [vmem:[#allocation2 + $0x21] sm:$0xff] %v17162_v41 }
  0x4f   :  { %211 = vst [vmem:[#allocation2 + $0x31] sm:$0xff] %v17168_v42 }
  0x50   :  { %212 = vst [vmem:[#allocation2 + $0x41] sm:$0xff] %v17174_v43 }
  0x51   :  { %213 = vst [vmem:[#allocation2 + $0x51] sm:$0xff] %v17180_v44 }
  0x52   :  { %214 = vst [vmem:[#allocation2 + $0x61] sm:$0xff] %v17186_v45 }
  0x53   :  { %215 = vst [vmem:[#allocation2 + $0x71] sm:$0xff] %v17204_v53 }
  0x54   :  { %216 = vst [vmem:[#allocation2 + $0x81] sm:$0xff] %v17214_v55 }
  0x55   :  { %v274_v46 = vld [vmem:[#allocation2 + $0x20] sm:$0xff]  ;;  %1080 = vmatmul.bf16.gmra.mxu1 %v17199_v52  ;;  %217 = vst [vmem:[#allocation2 + $0xb1] sm:$0xff] %v17230_v63 }
  0x56   :  { %v373_v47 = vpack.c.bf16 %v274_v46, %v226_v33  ;;  %v228_v48 = vld [vmem:[#allocation2 + $0x30] sm:$0xff]  ;;  %v17191_v49 = vld [vmem:[#allocation2 + $0x22] sm:$0xff]  ;;  %218 = vst [vmem:[#allocation2 + $0xc1] sm:$0xff] %v17240_v2 }
  0x57   :  { %v17193_v50 = vld [vmem:[#allocation2 + $0x32] sm:$0xff]  ;;  %v17195_v51 = vpack.c.bf16 %v228_v48, %v274_v46  ;;  %v276_v56 = vld [vmem:[#allocation2 + $0x40] sm:$0xff]  ;;  %219 = vst [vmem:[#allocation2 + $0xd1] sm:$0xff] %v17256_v10  ;;  %v15901_v46 = vld [vmem:[#allocation3 + $0x128] sm:$0xff] }
  0x58   :  { %1173 = vmatmul.bf16.vlgmr.msra.gmra.mxu3 %v373_v47  ;;  %v381_v54 = vpack.c.bf16 %v17193_v50, %v17191_v49  ;;  %v382_v57 = vpack.c.bf16 %v276_v56, %v228_v48  ;;  %v230_v58 = vld [vmem:[#allocation2 + $0x50] sm:$0xff]  ;;  %v17217_v59 = vld [vmem:[#allocation2 + $0x42] sm:$0xff]  ;;  %220 = vst [vmem:[#allocation2 + $0xe1] sm:$0xff] %v17266_v12  ;;  %1216 = vmatpush.bf16.msrb.mxu0 %v15901_v46 }
  0x59   :  { %1031 = vmatmul.bf16.gmra.mxu0 %v17195_v51  ;;  %v17219_v60 = vld [vmem:[#allocation2 + $0x52] sm:$0xff]  ;;  %v17221_v61 = vpack.c.bf16 %v230_v58, %v276_v56  ;;  %v278_v3 = vld [vmem:[#allocation2 + $0x60] sm:$0xff]  ;;  %221 = vst [vmem:[#allocation2 + $0xf1] sm:$0xff] %v17279_v22  ;;  %v15917_v47 = vld [vmem:[#allocation3 + $0x1a8] sm:$0xff] }
  0x5a   :  { %1129 = vmatmul.bf16.gmra.mxu2 %v381_v54  ;;  %v390_v1 = vpack.c.bf16 %v17219_v60, %v17217_v59  ;;  %v391_v4 = vpack.c.bf16 %v278_v3, %v230_v58  ;;  %v232_v5 = vld [vmem:[#allocation2 + $0x70] sm:$0xff]  ;;  %v17243_v6 = vld [vmem:[#allocation2 + $0x62] sm:$0xff]  ;;  %v17312_v56 = vld [vmem:[%s19412_s0 + $0x78] sm:$0xff] }
  0x5b   :  { %v17245_v7 = vld [vmem:[#allocation2 + $0x72] sm:$0xff]  ;;  %v17247_v8 = vpack.c.bf16 %v232_v5, %v278_v3  ;;  %v17269_v13 = vld [vmem:[#allocation2 + $0x80] sm:$0xff]  ;;  %v15909_v54 = vld [vmem:[#allocation3 + $0x168] sm:$0xff]  ;;  %224 = vst [vmem:[#allocation2 + $0x121] sm:$0xff] %v17312_v56  ;;  %1314 = vmatpush.bf16.msrb.mxu2 %v15917_v47 }
  0x5c   :  { %v399_v11 = vpack.c.bf16 %v17245_v7, %v17243_v6  ;;  %v400_v14 = vpack.c.bf16 %v17269_v13, %v232_v5  ;;  %v234_v16 = vld [vmem:[#allocation2 + $0xb0] sm:$0xff]  ;;  %v15900_v58 = vld [vmem:[#allocation3 + $0x120] sm:$0xff]  ;;  %1265 = vmatpush.bf16.msrb.mxu1 %v15909_v54 }
  0x5d   :  { %v17272_v19 = vld [vmem:[#allocation2 + $0xb2] sm:$0xff]  ;;  %v406_v20 = vpack.c.bf16 %v234_v16, %v17019_v0  ;;  %v17286_v0 = vld [vmem:[%s19412_s0 + $0x68] sm:$0xff]  ;;  %v282_v26 = vld [vmem:[#allocation2 + $0xc0] sm:$0xff]  ;;  %1217 = vmatpush.bf16.msrb.mxu0 %v15900_v58 }
  0x5e   :  { %v408_v23 = vpack.c.bf16 %v17272_v19, %v265_v18  ;;  %222 = vst [vmem:[#allocation2 + $0x101] sm:$0xff] %v17286_v0  ;;  %v409_v27 = vpack.c.bf16 %v282_v26, %v234_v16  ;;  %v236_v28 = vld [vmem:[#allocation2 + $0xd0] sm:$0xff]  ;;  %v17289_v29 = vld [vmem:[#allocation2 + $0xc2] sm:$0xff] }
  0x5f   :  { %v17291_v30 = vld [vmem:[#allocation2 + $0xd2] sm:$0xff]  ;;  %v17293_v33 = vpack.c.bf16 %v236_v28, %v282_v26  ;;  %v284_v3 = vld [vmem:[#allocation2 + $0xe0] sm:$0xff] }
  0x60   :  { %v417_v38 = vpack.c.bf16 %v17291_v30, %v17289_v29  ;;  %v17306_v48 = vld [vmem:[%s19412_s0 + $0x70] sm:$0xff]  ;;  %v15924_v5 = vld [vmem:[#allocation3 + $0x1e0] sm:$0xff]  ;;  %v418_v16 = vpack.c.bf16 %v284_v3, %v236_v28  ;;  %s17020_s0 = smov [#allocation17]  }
  0x61   :  { %223 = vst [vmem:[#allocation2 + $0x111] sm:$0xff] %v17306_v48  ;;  %v238_v17 = vld [vmem:[#allocation2 + $0xf0] sm:$0xff]  ;;  %v17315_v18 = vld [vmem:[#allocation2 + $0xe2] sm:$0xff]  ;;  %s12328_s24 = sshll.u32 %s17020_s0, 4  ;;  %s12329_s24 = int_to_ptr.vmem [resolvable:$true] %s12328_s24 }
  0x62   :  { %v17319_v24 = vpack.c.bf16 %v238_v17, %v284_v3  ;;  %v15898_v26 = vld [vmem:[#allocation3 + $0x110] sm:$0xff]  ;;  %v15912_v46 = vld [vmem:[#allocation3 + $0x180] sm:$0xff] }
  0x63   :  { %v15904_v54 = vld [vmem:[#allocation3 + $0x140] sm:$0xff] }
  0x65   :  { %1085 = vmatmul.bf16.gmra.mxu1 %v17225_v62  ;;  %v286_v47 = vld [vmem:[#allocation2 + $0x100] sm:$0xff] }
  0x66   :  { %v427_v58 = vpack.c.bf16 %v286_v47, %v238_v17  ;;  %v17329_v3 = vld [vmem:[#allocation2 + $0x102] sm:$0xff] }
  0x68   :  { %1178 = vmatmul.bf16.gmra.mxu3 %v382_v57  ;;  %v15925_v57 = vld [vmem:[#allocation3 + $0x1e8] sm:$0xff] }
  0x69   :  { %1036 = vmatmul.bf16.gmra.mxu0 %v17221_v61  ;;  %1363 = vmatpush.bf16.msrb.mxu3 %v15925_v57  ;;  %v15920_v57 = vld [vmem:[#allocation3 + $0x1c0] sm:$0xff] }
  0x6a   :  { %1134 = vmatmul.bf16.gmra.mxu2 %v390_v1  ;;  %v15916_v1 = vld [vmem:[#allocation3 + $0x1a0] sm:$0xff] }
  0x6b   :  { %1315 = vmatpush.bf16.msrb.mxu2 %v15916_v1  ;;  %v240_v1 = vld [vmem:[#allocation2 + $0x110] sm:$0xff] }
  0x6d   :  { %1364 = vmatpush.bf16.msrb.mxu3 %v15924_v5  ;;  %v17333_v5 = vpack.c.bf16 %v240_v1, %v286_v47 }
  0x75   :  { %1090 = vmatmul.bf16.gmra.mxu1 %v17251_v9 }
  0x78   :  { %1183 = vmatmul.bf16.gmra.mxu3 %v391_v4  ;;  %v15908_v4 = vld [vmem:[#allocation3 + $0x160] sm:$0xff] }
  0x79   :  { %1041 = vmatmul.bf16.gmra.mxu0 %v17247_v8  ;;  %1266 = vmatpush.bf16.msrb.mxu1 %v15908_v4  ;;  %v17331_v4 = vld [vmem:[#allocation2 + $0x112] sm:$0xff] }
  0x7a   :  { %1139 = vmatmul.bf16.gmra.mxu2 %v399_v11  ;;  %v15899_v11 = vld [vmem:[#allocation3 + $0x118] sm:$0xff] }
  0x7b   :  { %1218 = vmatpush.bf16.msrb.mxu0 %v15899_v11  ;;  %v17337_v11 = vpack.c.bf16 %v17306_v48, %v17286_v0 }
  0x7f   :  { %1219 = vmatpush.bf16.msrb.mxu0 %v15898_v26 }
  0x83   :  { %1220 = vmatpush.bf16.msrb.mxu0 %v15897_v35 }
  0x85   :  { %1095 = vmatmul.bf16.gmra.mxu1 %v407_v21  ;;  %v15907_v21 = vld [vmem:[#allocation3 + $0x158] sm:$0xff] }
  0x86   :  { %1267 = vmatpush.bf16.msrb.mxu1 %v15907_v21  ;;  %v374_v21 = vpack.c.bf16 %v17162_v41, %v17129_v15  ;;  %v383_v15 = vpack.c.bf16 %v17174_v43, %v17168_v42 }
  0x87   :  { %1221 = vmatpush.bf16.msrb.mxu0 %v15896_v40 }
  0x88   :  { %1188 = vmatmul.bf16.gmra.mxu3 %v400_v14  ;;  %v15915_v14 = vld [vmem:[#allocation3 + $0x198] sm:$0xff] }
  0x89   :  { %1046 = vmatmul.bf16.gmra.mxu0 %v406_v20  ;;  %v17317_v20 = vld [vmem:[#allocation2 + $0xf2] sm:$0xff]  ;;  %1316 = vmatpush.bf16.msrb.mxu2 %v15915_v14  ;;  %v17341_v14 = vpack.c.bf16 %v17331_v4, %v17329_v3 }
  0x8a   :  { %1144 = vmatmul.bf16.gmra.mxu2 %v408_v23  ;;  %v15923_v23 = vld [vmem:[#allocation3 + $0x1d8] sm:$0xff]  ;;  %v426_v28 = vpack.c.bf16 %v17317_v20, %v17315_v18  ;;  %1268 = vmatpush.bf16.msrb.mxu1 %v15906_v31 }
  0x8b   :  { %1365 = vmatpush.bf16.msrb.mxu3 %v15923_v23  ;;  %v375_v23 = vpack.c.bf16 %v17191_v49, %v17149_v37  ;;  %v384_v37 = vpack.c.bf16 %v17217_v59, %v17193_v50  ;;  %v392_v59 = vpack.c.bf16 %v17186_v45, %v17180_v44 }
  0x8f   :  { %1366 = vmatpush.bf16.msrb.mxu3 %v15922_v32 }
  0x93   :  { %1367 = vmatpush.bf16.msrb.mxu3 %v15921_v39 }
  0x95   :  { %1100 = vmatmul.bf16.gmra.mxu1 %v17297_v34 }
  0x97   :  { %1368 = vmatpush.bf16.msrb.mxu3 %v15920_v57 }
  0x98   :  { %1193 = vmatmul.bf16.gmra.mxu3 %v409_v27  ;;  %v15914_v27 = vld [vmem:[#allocation3 + $0x190] sm:$0xff] }
  0x99   :  { %1051 = vmatmul.bf16.gmra.mxu0 %v17293_v33  ;;  %1317 = vmatpush.bf16.msrb.mxu2 %v15914_v27 }
  0x9a   :  { %1149 = vmatmul.bf16.gmra.mxu2 %v417_v38  ;;  %v15905_v38 = vld [vmem:[#allocation3 + $0x148] sm:$0xff] }
  0x9b   :  { %1269 = vmatpush.bf16.msrb.mxu1 %v15905_v38 }
  0x9d   :  { %1318 = vmatpush.bf16.msrb.mxu2 %v15913_v36 }
  0x9f   :  { %1270 = vmatpush.bf16.msrb.mxu1 %v15904_v54 }
  0xa1   :  { %1319 = vmatpush.bf16.msrb.mxu2 %v15912_v46 }
  0xa5   :  { %1105 = vmatmul.bf16.gmra.mxu1 %v17323_v25 }
  0xa8   :  { %1198 = vmatmul.bf16.gmra.mxu3 %v418_v16  ;;  %v17346_v16 = vld [vmem:[#allocation2 + $0x120] sm:$0xff] }
  0xa9   :  { %1056 = vmatmul.bf16.gmra.mxu0 %v17319_v24  ;;  %v436_v17 = vpack.c.bf16 %v17346_v16, %v240_v1 }
  0xaa   :  { %1154 = vmatmul.bf16.gmra.mxu2 %v426_v28 }
  0xb5   :  { %1110 = vmatmul.bf16.gmra.mxu1 %v17337_v11 }
  0xb8   :  { %1203 = vmatmul.bf16.gmra.mxu3 %v427_v58 }
  0xb9   :  { %1061 = vmatmul.bf16.gmra.mxu0 %v17333_v5 }
  0xba   :  { %1159 = vmatmul.bf16.gmra.mxu2 %v17341_v14 }
  0xc1   :  { %v1027_v26 = vpop.f32.mrf.mxu0 }
  0xc2   :  { %v1076_v27 = vpop.f32.mrf.mxu1 }
  0xc3   :  { %v1077_v28 = vadd.f32 %v1076_v27, %v1027_v26 }
  0xc5   :  { %1271 = vmatmul.bf16.vlgmr.msrb.gmra.mxu1 %v375_v23 }
  0xc8   :  { %1208 = vmatmul.bf16.gmra.mxu3 %v436_v17  ;;  %v393_v17 = vpack.c.bf16 %v17243_v6, %v17219_v60  ;;  %v17374_v60 = vld [vmem:[#allocation2 + $0x82] sm:$0xff] }
  0xc9   :  { %1222 = vmatmul.bf16.vlgmr.msrb.gmra.mxu0 %v374_v21  ;;  %v1125_v31 = vpop.f32.mrf.mxu2  ;;  %v1029_v35 = vpop.f32.mrf.mxu0 }
  0xca   :  { %1320 = vmatmul.bf16.vlgmr.msrb.gmra.mxu2 %v17195_v51  ;;  %v1126_v32 = vadd.f32 %v1125_v31, %v1077_v28  ;;  %v1078_v36 = vpop.f32.mrf.mxu1 }
  0xcb   :  { %v1079_v38 = vadd.f32 %v1078_v36, %v1029_v35 }
  0xd1   :  { %v1127_v39 = vpop.f32.mrf.mxu2 }
  0xd2   :  { %v1128_v41 = vadd.f32 %v1127_v39, %v1079_v38  ;;  %v1081_v40 = vpop.f32.mrf.mxu1  ;;  %v401_v38 = vpack.c.bf16 %v17214_v55, %v17204_v53  ;;  %v402_v39 = vpack.c.bf16 %v17374_v60, %v17245_v7 }
  0xd5   :  { %1276 = vmatmul.bf16.gmra.mxu1 %v384_v37 }
  0xd6   :  { %v1032_v49 = vpop.f32.mrf.mxu0 }
  0xd7   :  { %v1082_v46 = vadd.f32 %v1081_v40, %v1032_v49 }
  0xd8   :  { %1369 = vmatmul.bf16.vlgmr.msrb.gmra.mxu3 %v17199_v52 }
  0xd9   :  { %1227 = vmatmul.bf16.gmra.mxu0 %v383_v15 }
  0xda   :  { %1325 = vmatmul.bf16.gmra.mxu2 %v17221_v61  ;;  %v1083_v58 = vpop.f32.mrf.mxu1 }
  0xdb   :  { %v1174_v47 = vpop.f32.mrf.mxu3 }
  0xdc   :  { %v17359_v51 = vadd.f32 %v1174_v47, %v1126_v32  ;;  %v345_v47 = vld [vmem:[#allocation2 + $0x91] sm:$0xff] }
  0xdd   :  { %v1130_v54 = vpop.f32.mrf.mxu2 }
  0xde   :  { %v1131_v52 = vadd.f32 %v1130_v54, %v1082_v46  ;;  %v1034_v57 = vpop.f32.mrf.mxu0 }
  0xdf   :  { %v1084_v1 = vadd.f32 %v1083_v58, %v1034_v57 }
  0xe2   :  { %v1086_v61 = vpop.f32.mrf.mxu1 }
  0xe3   :  { %v1176_v42 = vpop.f32.mrf.mxu3 }
  0xe4   :  { %v17362_v43 = vadd.f32 %v1176_v42, %v1128_v41  ;;  %v403_v41 = vpack.c.bf16 0.0, %v17269_v13  ;;  %v410_v42 = vpack.c.bf16 %v17240_v2, %v17230_v63 }
  0xe5   :  { %v1132_v50 = vpop.f32.mrf.mxu2  ;;  %1281 = vmatmul.bf16.gmra.mxu1 %v393_v17 }
  0xe6   :  { %v1133_v21 = vadd.f32 %v1132_v50, %v1084_v1  ;;  %v1037_v23 = vpop.f32.mrf.mxu0  ;;  %v404_v1 = vpack.c.bf16 %v345_v47, %v17214_v55  ;;  %v411_v50 = vpack.c.bf16 %v17289_v29, %v17272_v19  ;;  %v15935_v19 = vld [vmem:[#allocation3 + $0x238] sm:$0xff]  ;;  %v15930_v47 = vld [vmem:[#allocation3 + $0x210] sm:$0xff] }
  0xe7   :  { %v1087_v26 = vadd.f32 %v1086_v61, %v1037_v23  ;;  %1410 = vmatpush.bf16.msra.mxu0 %v15935_v19  ;;  %v354_v19 = vld [vmem:[#allocation2 + $0x22] sm:$0xff] }
  0xe8   :  { %1374 = vmatmul.bf16.gmra.mxu3 %v17225_v62 }
  0xe9   :  { %1232 = vmatmul.bf16.gmra.mxu0 %v392_v59 }
  0xea   :  { %1330 = vmatmul.bf16.gmra.mxu2 %v17247_v8  ;;  %v1088_v35 = vpop.f32.mrf.mxu1 }
  0xeb   :  { %v1179_v27 = vpop.f32.mrf.mxu3 }
  0xec   :  { %v17369_v28 = vadd.f32 %v1179_v27, %v1131_v52 }
  0xed   :  { %v1135_v31 = vpop.f32.mrf.mxu2 }
  0xee   :  { %v1136_v62 = vadd.f32 %v1135_v31, %v1087_v26  ;;  %v1039_v32 = vpop.f32.mrf.mxu0 }
  0xef   :  { %v1089_v36 = vadd.f32 %v1088_v35, %v1039_v32  ;;  %v419_v32 = vpack.c.bf16 %v17266_v12, %v17256_v10 }
  0xf2   :  { %v1091_v37 = vpop.f32.mrf.mxu1 }
  0xf3   :  { %v1181_v44 = vpop.f32.mrf.mxu3 }
  0xf4   :  { %v17372_v45 = vadd.f32 %v1181_v44, %v1133_v21  ;;  %v15934_v44 = vld [vmem:[#allocation3 + $0x230] sm:$0xff] }
  0xf5   :  { %v1137_v6 = vpop.f32.mrf.mxu2  ;;  %1286 = vmatmul.bf16.gmra.mxu1 %v402_v39  ;;  %1411 = vmatpush.bf16.msra.mxu0 %v15934_v44 }
  0xf6   :  { %v1138_v8 = vadd.f32 %v1137_v6, %v1089_v36  ;;  %v1042_v15 = vpop.f32.mrf.mxu0 }
  0xf7   :  { %v1092_v49 = vadd.f32 %v1091_v37, %v1042_v15  ;;  %v15931_v37 = vld [vmem:[#allocation3 + $0x218] sm:$0xff] }
  0xf8   :  { %1379 = vmatmul.bf16.gmra.mxu3 %v17251_v9 }
  0xf9   :  { %1237 = vmatmul.bf16.gmra.mxu0 %v401_v38 }
  0xfa   :  { %1335 = vmatmul.bf16.gmra.mxu2 %v403_v41  ;;  %v1093_v53 = vpop.f32.mrf.mxu1 }
  0xfb   :  { %v1184_v40 = vpop.f32.mrf.mxu3 }
  0xfc   :  { %v17382_v46 = vadd.f32 %v1184_v40, %v1136_v62 }
  0xfd   :  { %v1140_v9 = vpop.f32.mrf.mxu2 }
  0xfe   :  { %v1141_v54 = vadd.f32 %v1140_v9, %v1092_v49  ;;  %v1044_v52 = vpop.f32.mrf.mxu0  ;;  %v429_v49 = vpack.c.bf16 %v17329_v3, %v17317_v20  ;;  %v15928_v20 = vld [vmem:[#allocation3 + $0x200] sm:$0xff] }
  0xff   :  { %v1094_v57 = vadd.f32 %v1093_v53, %v1044_v52 }
 0x102   :  { %v1096_v21 = vpop.f32.mrf.mxu1 }
 0x103   :  { %v1186_v58 = vpop.f32.mrf.mxu3 }
 0x104   :  { %v17384_v7 = vadd.f32 %v1186_v58, %v1138_v8  ;;  %v15933_v8 = vld [vmem:[#allocation3 + $0x228] sm:$0xff] }
 0x105   :  { %v1142_v13 = vpop.f32.mrf.mxu2  ;;  %1291 = vmatmul.bf16.gmra.mxu1 %v411_v50  ;;  %1412 = vmatpush.bf16.msra.mxu0 %v15933_v8  ;;  %v356_v8 = vld [vmem:[#allocation2 + $0x42] sm:$0xff] }
 0x106   :  { %v1143_v59 = vadd.f32 %v1142_v13, %v1094_v57  ;;  %v1047_v17 = vpop.f32.mrf.mxu0  ;;  %v15929_v57 = vld [vmem:[#allocation3 + $0x208] sm:$0xff] }
 0x107   :  { %v1097_v23 = vadd.f32 %v1096_v21, %v1047_v17  ;;  %v439_v17 = vpack.c.bf16 0.0, %v17346_v16 }
 0x108   :  { %1384 = vmatmul.bf16.gmra.mxu3 %v404_v1  ;;  %v17432_v1 = vld [vmem:[#allocation2 + $0x122] sm:$0xff] }
 0x109   :  { %1242 = vmatmul.bf16.gmra.mxu0 %v410_v42  ;;  %v438_v42 = vpack.c.bf16 %v17432_v1, %v17331_v4 }
 0x10a   :  { %1340 = vmatmul.bf16.gmra.mxu2 %v17293_v33  ;;  %v17396_v62 = vpop.f32.mrf.mxu1  ;;  %v420_v33 = vpack.c.bf16 %v17315_v18, %v17291_v30  ;;  %v15932_v30 = vld [vmem:[#allocation3 + $0x220] sm:$0xff] }
 0x10b   :  { %v1189_v61 = vpop.f32.mrf.mxu3  ;;  %1413 = vmatpush.bf16.msra.mxu0 %v15932_v30 }
 0x10c   :  { %v17391_v26 = vadd.f32 %v1189_v61, %v1141_v54 }
 0x10d   :  { %v1145_v55 = vpop.f32.mrf.mxu2 }
 0x10e   :  { %v1146_v27 = vadd.f32 %v1145_v55, %v1097_v23  ;;  %v17394_v31 = vpop.f32.mrf.mxu0  ;;  %v353_v55 = vld [vmem:[#allocation2 + $0x131] sm:$0xff] }
 0x10f   :  { %1414 = vmatpush.bf16.msra.mxu0 %v15931_v37  ;;  %v440_v4 = vpack.c.bf16 %v353_v55, %v17312_v56  ;;  %v15951_v55 = vld [vmem:[#allocation3 + $0x2b8] sm:$0xff] }
 0x110   :  { %2373 = vmatpush.bf16.msra.mxu2 %v15951_v55  ;;  %v15938_v55 = vld [vmem:[#allocation3 + $0x250] sm:$0xff] }
 0x112   :  { %v1101_v36 = vpop.f32.mrf.mxu1 }
 0x113   :  { %v1191_v63 = vpop.f32.mrf.mxu3  ;;  %1415 = vmatpush.bf16.msra.mxu0 %v15930_v47 }
 0x114   :  { %v17398_v2 = vadd.f32 %v1191_v63, %v1143_v59 }
 0x115   :  { %v17401_v29 = vpop.f32.mrf.mxu2  ;;  %1296 = vmatmul.bf16.gmra.mxu1 %v420_v33 }
 0x116   :  { %v1052_v35 = vpop.f32.mrf.mxu0 }
 0x117   :  { %v1102_v6 = vadd.f32 %v1101_v36, %v1052_v35  ;;  %1416 = vmatpush.bf16.msra.mxu0 %v15929_v57 }
 0x118   :  { %1389 = vmatmul.bf16.gmra.mxu3 %v17297_v34 }
 0x119   :  { %1247 = vmatmul.bf16.gmra.mxu0 %v419_v32  ;;  %v355_v32 = vld [vmem:[#allocation2 + $0x32] sm:$0xff] }
 0x11a   :  { %1345 = vmatmul.bf16.gmra.mxu2 %v17319_v24  ;;  %v17412_v12 = vpop.f32.mrf.mxu1  ;;  %v428_v24 = vpack.c.bf16 %v17286_v0, %v17279_v22  ;;  %v378_v16 = vpack.c.bf16 %v355_v32, %v354_v19  ;;  %v15943_v32 = vld [vmem:[#allocation3 + $0x278] sm:$0xff] }
 0x11b   :  { %v1194_v38 = vpop.f32.mrf.mxu3  ;;  %1417 = vmatpush.bf16.msra.mxu0 %v15928_v20  ;;  %v362_v20 = vld [vmem:[#allocation2 + $0xc2] sm:$0xff]  ;;  %2324 = vmatpush.bf16.msra.mxu1 %v15943_v32 }
 0x11c   :  { %v17407_v39 = vadd.f32 %v1194_v38, %v1146_v27  ;;  %v15964_v32 = vld [vmem:[#allocation3 + $0x320] sm:$0xff] }
 0x11d   :  { %v1150_v34 = vpop.f32.mrf.mxu2 }
 0x11e   :  { %v1151_v15 = vadd.f32 %v1150_v34, %v1102_v6  ;;  %v17410_v10 = vpop.f32.mrf.mxu0  ;;  %v357_v34 = vld [vmem:[#allocation2 + $0x52] sm:$0xff] }
 0x122   :  { %v1106_v9 = vpop.f32.mrf.mxu1 }
 0x123   :  { %v17414_v18 = vpop.f32.mrf.mxu3 }
 0x125   :  { %v17417_v41 = vpop.f32.mrf.mxu2  ;;  %1301 = vmatmul.bf16.gmra.mxu1 %v429_v49  ;;  %v359_v49 = vld [vmem:[#allocation2 + $0x72] sm:$0xff] }
 0x126   :  { %v1057_v40 = vpop.f32.mrf.mxu0 }
 0x127   :  { %v1107_v54 = vadd.f32 %v1106_v9, %v1057_v40 }
 0x128   :  { %1394 = vmatmul.bf16.gmra.mxu3 %v17323_v25 }
 0x129   :  { %1252 = vmatmul.bf16.gmra.mxu0 %v428_v24  ;;  %v358_v24 = vld [vmem:[#allocation2 + $0x62] sm:$0xff] }
 0x12a   :  { %1350 = vmatmul.bf16.gmra.mxu2 %v17333_v5  ;;  %v17428_v0 = vpop.f32.mrf.mxu1  ;;  %v437_v5 = vpack.c.bf16 %v17312_v56, %v17306_v48  ;;  %v396_v40 = vpack.c.bf16 %v359_v49, %v358_v24  ;;  %v15957_v24 = vld [vmem:[#allocation3 + $0x2e8] sm:$0xff]  ;;  %v15967_v49 = vld [vmem:[#allocation3 + $0x338] sm:$0xff] }
 0x12b   :  { %v1199_v52 = vpop.f32.mrf.mxu3  ;;  %2471 = vmatpush.bf16.msrb.mxu0 %v15967_v49  ;;  %v15936_v49 = vld [vmem:[#allocation3 + $0x240] sm:$0xff] }
 0x12c   :  { %v17423_v53 = vadd.f32 %v1199_v52, %v1151_v15  ;;  %v387_v15 = vpack.c.bf16 %v357_v34, %v356_v8  ;;  %v361_v52 = vld [vmem:[#allocation2 + $0x92] sm:$0xff]  ;;  %v15948_v34 = vld [vmem:[#allocation3 + $0x2a0] sm:$0xff] }
 0x12d   :  { %v1155_v25 = vpop.f32.mrf.mxu2  ;;  %v15958_v8 = vld [vmem:[#allocation3 + $0x2f0] sm:$0xff] }
 0x12e   :  { %v1156_v58 = vadd.f32 %v1155_v25, %v1107_v54  ;;  %v17426_v22 = vpop.f32.mrf.mxu0 }
 0x132   :  { %v1111_v59 = vpop.f32.mrf.mxu1 }
 0x133   :  { %v17430_v3 = vpop.f32.mrf.mxu3 }
 0x135   :  { %v17435_v13 = vpop.f32.mrf.mxu2  ;;  %1306 = vmatmul.bf16.gmra.mxu1 %v438_v42 }
 0x136   :  { %v1062_v50 = vpop.f32.mrf.mxu0 }
 0x137   :  { %v1112_v21 = vadd.f32 %v1111_v59, %v1062_v50  ;;  %v365_v59 = vld [vmem:[#allocation2 + $0xf2] sm:$0xff] }
 0x138   :  { %1399 = vmatmul.bf16.gmra.mxu3 %v17337_v11 }
 0x139   :  { %1257 = vmatmul.bf16.gmra.mxu0 %v437_v5 }
 0x13a   :  { %1355 = vmatmul.bf16.gmra.mxu2 %v439_v17  ;;  %v17481_v17 = vpop.f32.mrf.mxu1 }
 0x13b   :  { %v1204_v23 = vpop.f32.mrf.mxu3 }
 0x13c   :  { %v17442_v61 = vadd.f32 %v1204_v23, %v1156_v58 }
 0x13d   :  { %v1160_v11 = vpop.f32.mrf.mxu2 }
 0x13e   :  { %v1161_v27 = vadd.f32 %v1160_v11, %v1112_v21  ;;  %v17444_v63 = vpop.f32.mrf.mxu0 }
 0x143   :  { %v17446_v48 = vpop.f32.mrf.mxu3 }
 0x145   :  { %v17483_v21 = vpop.f32.mrf.mxu2 }
 0x146   :  { %v1223_v33 = vpop.f32.mrf.mxu0 }
 0x147   :  { %v17450_v35 = vadd.f32 %v1223_v33, %v17359_v51  ;;  %v15949_v33 = vld [vmem:[#allocation3 + $0x2a8] sm:$0xff] }
 0x148   :  { %1404 = vmatmul.bf16.gmra.mxu3 %v440_v4  ;;  %v15950_v4 = vld [vmem:[#allocation3 + $0x2b0] sm:$0xff] }
 0x149   :  { %1418 = vmatmul.bf16.vlgmr.msra.gmra.mxu0 %v378_v16  ;;  %2374 = vmatpush.bf16.msra.mxu2 %v15950_v4  ;;  %v15959_v16 = vld [vmem:[#allocation3 + $0x2f8] sm:$0xff]  ;;  %v15954_v4 = vld [vmem:[#allocation3 + $0x2d0] sm:$0xff] }
 0x14a   :  { %2422 = vmatpush.bf16.msra.mxu3 %v15959_v16 }
 0x14b   :  { %v1209_v36 = vpop.f32.mrf.mxu3 }
 0x14c   :  { %v17452_v44 = vadd.f32 %v1209_v36, %v1161_v27 }
 0x14d   :  { %v17494_v19 = vpop.f32.mrf.mxu2  ;;  %2375 = vmatpush.bf16.msra.mxu2 %v15949_v33 }
 0x14e   :  { %v1225_v6 = vpop.f32.mrf.mxu0  ;;  %2423 = vmatpush.bf16.msra.mxu3 %v15958_v8  ;;  %v15944_v8 = vld [vmem:[#allocation3 + $0x280] sm:$0xff] }
 0x14f   :  { %v17455_v38 = vadd.f32 %v1225_v6, %v17362_v43  ;;  %v15942_v6 = vld [vmem:[#allocation3 + $0x270] sm:$0xff] }
 0x150   :  { %2325 = vmatpush.bf16.msra.mxu1 %v15942_v6  ;;  %v15953_v6 = vld [vmem:[#allocation3 + $0x2c8] sm:$0xff] }
 0x151   :  { %2376 = vmatpush.bf16.msra.mxu2 %v15948_v34  ;;  %v15963_v34 = vld [vmem:[#allocation3 + $0x318] sm:$0xff] }
 0x152   :  { %2424 = vmatpush.bf16.msra.mxu3 %v15957_v24 }
 0x153   :  { %v17488_v11 = vpop.f32.mrf.mxu3 }
 0x156   :  { %v1228_v56 = vpop.f32.mrf.mxu0 }
 0x157   :  { %v17458_v30 = vadd.f32 %v1228_v56, %v17369_v28  ;;  %v405_v28 = vpack.c.bf16 %v361_v52, %v17374_v60  ;;  %v364_v60 = vld [vmem:[#allocation2 + $0xe2] sm:$0xff] }
 0x159   :  { %1423 = vmatmul.bf16.gmra.mxu0 %v387_v15 }
 0x15e   :  { %v1230_v37 = vpop.f32.mrf.mxu0 }
 0x15f   :  { %v17461_v51 = vadd.f32 %v1230_v37, %v17372_v45  ;;  %v15941_v37 = vld [vmem:[#allocation3 + $0x268] sm:$0xff] }
 0x160   :  { %2326 = vmatpush.bf16.msra.mxu1 %v15941_v37 }
 0x166   :  { %v1233_v9 = vpop.f32.mrf.mxu0 }
 0x167   :  { %v17464_v47 = vadd.f32 %v1233_v9, %v17382_v46  ;;  %v363_v46 = vld [vmem:[#allocation2 + $0xd2] sm:$0xff] }
 0x168   :  { %v414_v5 = vpack.c.bf16 %v363_v46, %v362_v20  ;;  %v15947_v9 = vld [vmem:[#allocation3 + $0x298] sm:$0xff] }
 0x169   :  { %1428 = vmatmul.bf16.gmra.mxu0 %v396_v40  ;;  %v17504_v40 = vpop.f32.mrf.mxu2  ;;  %2377 = vmatpush.bf16.msra.mxu2 %v15947_v9  ;;  %v369_v20 = vld [vmem:[#allocation2 + $0x132] sm:$0xff] }
 0x16a   :  { %v15939_v46 = vld [vmem:[#allocation3 + $0x258] sm:$0xff]  ;;  %v15962_v9 = vld [vmem:[#allocation3 + $0x310] sm:$0xff] }
 0x16e   :  { %v1235_v43 = vpop.f32.mrf.mxu0 }
 0x16f   :  { %v17467_v54 = vadd.f32 %v1235_v43, %v17384_v7 }
 0x176   :  { %v1238_v57 = vpop.f32.mrf.mxu0 }
 0x177   :  { %v17471_v25 = vadd.f32 %v1238_v57, %v17391_v26  ;;  %v423_v26 = vpack.c.bf16 %v365_v59, %v364_v60  ;;  %v15966_v57 = vld [vmem:[#allocation3 + $0x330] sm:$0xff]  ;;  %v15945_v60 = vld [vmem:[#allocation3 + $0x288] sm:$0xff]  ;;  %v1326_v59 = vpop.f32.mrf.mxu2 }
 0x178   :  { %2472 = vmatpush.bf16.msrb.mxu0 %v15966_v57 }
 0x179   :  { %1433 = vmatmul.bf16.gmra.mxu0 %v405_v28  ;;  %v15956_v28 = vld [vmem:[#allocation3 + $0x2e0] sm:$0xff] }
 0x17a   :  { %2425 = vmatpush.bf16.msra.mxu3 %v15956_v28 }
 0x17e   :  { %v1240_v45 = vpop.f32.mrf.mxu0 }
 0x17f   :  { %v17474_v58 = vadd.f32 %v1240_v45, %v17398_v2  ;;  %v15946_v45 = vld [vmem:[#allocation3 + $0x290] sm:$0xff]  ;;  %v1328_v37 = vpop.f32.mrf.mxu2 }
 0x180   :  { %2378 = vmatpush.bf16.msra.mxu2 %v15946_v45  ;;  %v15961_v45 = vld [vmem:[#allocation3 + $0x308] sm:$0xff] }
 0x184   :  { %2379 = vmatpush.bf16.msra.mxu2 %v15945_v60  ;;  %v15960_v60 = vld [vmem:[#allocation3 + $0x300] sm:$0xff] }
 0x186   :  { %v1243_v42 = vpop.f32.mrf.mxu0 }
 0x187   :  { %v17477_v50 = vadd.f32 %v1243_v42, %v17407_v39  ;;  %v17490_v39 = vpop.f32.mrf.mxu1  ;;  %v15965_v42 = vld [vmem:[#allocation3 + $0x328] sm:$0xff] }
 0x188   :  { %2473 = vmatpush.bf16.msrb.mxu0 %v15965_v42  ;;  %2380 = vmatpush.bf16.msra.mxu2 %v15944_v8 }
 0x189   :  { %1438 = vmatmul.bf16.gmra.mxu0 %v414_v5  ;;  %v15955_v5 = vld [vmem:[#allocation3 + $0x2d8] sm:$0xff] }
 0x18a   :  { %2426 = vmatpush.bf16.msra.mxu3 %v15955_v5  ;;  %v17522_v5 = vld [vmem:[#allocation6] ss:$0 sm:$0xff] }
 0x18c   :  { %2474 = vmatpush.bf16.msrb.mxu0 %v15964_v32  ;;  %v1547_v32 = vld [vmem:[#allocation2 + $0x1] sm:$0xff] }
 0x18e   :  { %v17479_v7 = vpop.f32.mrf.mxu0  ;;  %2427 = vmatpush.bf16.msra.mxu3 %v15954_v4 }
 0x18f   :  { %v17498_v15 = vpop.f32.mrf.mxu1 }
 0x190   :  { %2475 = vmatpush.bf16.msrb.mxu0 %v15963_v34 }
 0x192   :  { %2428 = vmatpush.bf16.msra.mxu3 %v15953_v6 }
 0x194   :  { %2476 = vmatpush.bf16.msrb.mxu0 %v15962_v9 }
 0x196   :  { %v1248_v23 = vpop.f32.mrf.mxu0 }
 0x197   :  { %v17486_v2 = vadd.f32 %v1248_v23, %v17423_v53  ;;  %v17496_v53 = vpop.f32.mrf.mxu3 }
 0x198   :  { %2477 = vmatpush.bf16.msrb.mxu0 %v15961_v45 }
 0x199   :  { %1443 = vmatmul.bf16.gmra.mxu0 %v423_v26  ;;  %v441_v26 = vpack.c.bf16 %v369_v20, %v17432_v1 }
 0x19c   :  { %2478 = vmatpush.bf16.msrb.mxu0 %v15960_v60 }
 0x19e   :  { %v17492_v27 = vpop.f32.mrf.mxu0 }
 0x19f   :  { %v17506_v43 = vpop.f32.mrf.mxu3 }
 0x1a6   :  { %v1253_v36 = vpop.f32.mrf.mxu0 }
 0x1a7   :  { %v17501_v56 = vadd.f32 %v1253_v36, %v17442_v61  ;;  %v15940_v61 = vld [vmem:[#allocation3 + $0x260] sm:$0xff]  ;;  %v1375_v33 = vpop.f32.mrf.mxu3  ;;  %v15937_v36 = vld [vmem:[#allocation3 + $0x248] sm:$0xff] }
 0x1a8   :  { %2327 = vmatpush.bf16.msra.mxu1 %v15940_v61  ;;  %v1273_v61 = vadd.f32 %v17490_v39, %v17450_v35  ;;  %v17526_v35 = vld [vmem:[#allocation8] ss:$0 sm:$0xff]  ;;  %v1331_v39 = vpop.f32.mrf.mxu2 }
 0x1a9   :  { %1448 = vmatmul.bf16.gmra.mxu0 %v17341_v14  ;;  %v17510_v14 = vpop.f32.mrf.mxu1 }
 0x1aa   :  { %v1322_v28 = vadd.f32 %v17494_v19, %v1273_v61 }
 0x1ac   :  { %2328 = vmatpush.bf16.msra.mxu1 %v15939_v46  ;;  %v1371_v20 = vadd.f32 %v17496_v53, %v1322_v28 }
 0x1ae   :  { %v17508_v52 = vpop.f32.mrf.mxu0 }
 0x1af   :  { %v1377_v57 = vpop.f32.mrf.mxu3 }
 0x1b0   :  { %2329 = vmatpush.bf16.msra.mxu1 %v15938_v55  ;;  %v1333_v9 = vpop.f32.mrf.mxu2 }
 0x1b1   :  { %v1279_v1 = vpop.f32.mrf.mxu1 }
 0x1b4   :  { %2330 = vmatpush.bf16.msra.mxu1 %v15937_v36 }
 0x1b6   :  { %v1258_v23 = vpop.f32.mrf.mxu0 }
 0x1b7   :  { %v17514_v16 = vadd.f32 %v1258_v23, %v17452_v44  ;;  %v15952_v44 = vld [vmem:[#allocation3 + $0x2c0] sm:$0xff]  ;;  %v1380_v4 = vpop.f32.mrf.mxu3 }
 0x1b8   :  { %2331 = vmatpush.bf16.msra.mxu1 %v15936_v49  ;;  %2429 = vmatpush.bf16.msra.mxu3 %v15952_v44 }
 0x1b9   :  { %1453 = vmatmul.bf16.gmra.mxu0 %v441_v26  ;;  %v1282_v46 = vpop.f32.mrf.mxu1  ;;  %v1275_v26 = vadd.f32 %v17498_v15, %v17455_v38  ;;  %v1278_v38 = vadd.f32 %v17510_v14, %v17458_v30 }
 0x1bb   :  { %v1324_v19 = vadd.f32 %v17504_v40, %v1275_v26  ;;  %v1327_v49 = vadd.f32 %v1326_v59, %v1278_v38  ;;  %v17546_v26 = vld [vmem:[#allocation2] sm:$0xff] }
 0x1bd   :  { %v1373_v36 = vadd.f32 %v17506_v43, %v1324_v19  ;;  %v1563_v43 = vld [vmem:[#allocation2 + $0x2] sm:$0xff]  ;;  %v1376_v28 = vadd.f32 %v1375_v33, %v1327_v49 }
 0x1be   :  { %v17516_v24 = vpop.f32.mrf.mxu0 }
 0x1bf   :  { %v1382_v30 = vpop.f32.mrf.mxu3 }
 0x1c1   :  { %v1284_v15 = vpop.f32.mrf.mxu1 }
 0x1c6   :  { %v1419_v42 = vpop.f32.mrf.mxu0 }
 0x1c7   :  { %v1420_v23 = vadd.f32 %v1419_v42, %v1371_v20  ;;  %v1280_v20 = vadd.f32 %v1279_v1, %v17461_v51 }
 0x1c9   :  { %v1463_v55 = vmul.f32 %v17522_v5, %v1420_v23 }
 0x1cb   :  { %v1483_v53 = vadd.f32 %v17526_v35, %v1463_v55  ;;  %v1329_v55 = vadd.f32 %v1328_v37, %v1280_v20 }
 0x1cd   :  { %v17532_v6 = vmax.f32 %v1483_v53, 0.0  ;;  %v1287_v53 = vpop.f32.mrf.mxu1 }
 0x1ce   :  { %v1421_v8 = vpop.f32.mrf.mxu0 }
 0x1cf   :  { %1515 = vst [vmem:[#allocation2 + $0x11] sm:$0xff] %v17532_v6  ;;  %v1422_v34 = vadd.f32 %v1421_v8, %v1373_v36  ;;  %v1676_v40 = vpack.c.bf16 %v17532_v6, %v1547_v32  ;;  %v1336_v32 = vpop.f32.mrf.mxu2  ;;  %v1378_v36 = vadd.f32 %v1377_v57, %v1329_v55 }
 0x1d1   :  { %v1464_v44 = vmul.f32 %v17522_v5, %v1422_v34  ;;  %2381 = vmatmul.bf16.vlgmr.msra.gmra.mxu2 %v1676_v40  ;;  %v1283_v40 = vadd.f32 %v1282_v46, %v17464_v47  ;;  %v1285_v46 = vadd.f32 %v1284_v15, %v17467_v54 }
 0x1d3   :  { %v1484_v61 = vadd.f32 %v17526_v35, %v1464_v44 }
 0x1d5   :  { %v17540_v45 = vmax.f32 %v1484_v61, 0.0  ;;  %v1385_v61 = vpop.f32.mrf.mxu3  ;;  %v1289_v57 = vpop.f32.mrf.mxu1 }
 0x1d6   :  { %v1424_v14 = vpop.f32.mrf.mxu0  ;;  %v1532_v42 = vld [vmem:[#allocation2 + $0x10] sm:$0xff] }
 0x1d7   :  { %v17543_v60 = vld [vmem:[#allocation2 + $0x12] sm:$0xff]  ;;  %1516 = vst [vmem:[#allocation2 + $0x21] sm:$0xff] %v17540_v45  ;;  %v1425_v59 = vadd.f32 %v1424_v14, %v1376_v28  ;;  %v1675_v23 = vpack.c.bf16 %v1532_v42, %v17546_v26  ;;  %v1679_v33 = vpack.c.bf16 %v17540_v45, %v17532_v6 }
 0x1d8   :  { %v1677_v19 = vpack.c.bf16 %v17543_v60, %v1563_v43  ;;  %v1332_v43 = vadd.f32 %v1331_v39, %v1283_v40 }
 0x1d9   :  { %v1465_v51 = vmul.f32 %v17522_v5, %v1425_v59  ;;  %2332 = vmatmul.bf16.vlgmr.msra.gmra.mxu1 %v1675_v23 }
 0x1da   :  { %2430 = vmatmul.bf16.vlgmr.msra.gmra.mxu3 %v1677_v19  ;;  %v1381_v14 = vadd.f32 %v1380_v4, %v1332_v43 }
 0x1db   :  { %v1485_v1 = vadd.f32 %v17526_v35, %v1465_v51 }
 0x1dd   :  { %v17554_v8 = vmax.f32 %v1485_v1, 0.0  ;;  %v1387_v15 = vpop.f32.mrf.mxu3 }
 0x1de   :  { %v1426_v38 = vpop.f32.mrf.mxu0  ;;  %v1580_v34 = vld [vmem:[#allocation2 + $0x20] sm:$0xff] }
 0x1df   :  { %1517 = vst [vmem:[#allocation2 + $0x31] sm:$0xff] %v17554_v8  ;;  %v1427_v49 = vadd.f32 %v1426_v38, %v1378_v36  ;;  %v1678_v44 = vpack.c.bf16 %v1580_v34, %v1532_v42  ;;  %v17560_v37 = vpack.c.bf16 %v17554_v8, %v17540_v45  ;;  %v1338_v42 = vpop.f32.mrf.mxu2  ;;  %v17568_v19 = vld [vmem:[#allocation2 + $0x22] sm:$0xff]  ;;  %v1334_v36 = vadd.f32 %v1333_v9, %v1285_v46 }
 0x1e1   :  { %v1466_v28 = vmul.f32 %v17522_v5, %v1427_v49  ;;  %2479 = vmatmul.bf16.vlgmr.msrb.gmra.mxu0 %v1678_v44  ;;  %2386 = vmatmul.bf16.gmra.mxu2 %v17560_v37  ;;  %v1383_v40 = vadd.f32 %v1382_v30, %v1334_v36  ;;  %v1292_v49 = vpop.f32.mrf.mxu1 }
 0x1e3   :  { %v1486_v20 = vadd.f32 %v17526_v35, %v1466_v28  ;;  %v1288_v28 = vadd.f32 %v1287_v53, %v17471_v25  ;;  %v1290_v53 = vadd.f32 %v1289_v57, %v17474_v58  ;;  %v1099_v57 = vadd.f32 %v17396_v62, %v17394_v31 }
 0x1e5   :  { %v17565_v47 = vmax.f32 %v1486_v20, 0.0 }
 0x1e6   :  { %v1429_v59 = vpop.f32.mrf.mxu0  ;;  %v1534_v23 = vld [vmem:[#allocation2 + $0x30] sm:$0xff] }
 0x1e7   :  { %v17570_v55 = vld [vmem:[#allocation2 + $0x32] sm:$0xff]  ;;  %1518 = vst [vmem:[#allocation2 + $0x41] sm:$0xff] %v17565_v47  ;;  %v1430_v39 = vadd.f32 %v1429_v59, %v1381_v14  ;;  %v17573_v51 = vpack.c.bf16 %v1534_v23, %v1580_v34  ;;  %v1341_v46 = vpop.f32.mrf.mxu2  ;;  %v1337_v59 = vadd.f32 %v1336_v32, %v1288_v28 }
 0x1e8   :  { %v1686_v1 = vpack.c.bf16 %v17570_v55, %v17568_v19 }
 0x1e9   :  { %v1467_v54 = vmul.f32 %v17522_v5, %v1430_v39  ;;  %2337 = vmatmul.bf16.gmra.mxu1 %v17573_v51  ;;  %v1386_v36 = vadd.f32 %v1385_v61, %v1337_v59  ;;  %v1294_v32 = vpop.f32.mrf.mxu1 }
 0x1ea   :  { %2435 = vmatmul.bf16.gmra.mxu3 %v1686_v1  ;;  %v1390_v1 = vpop.f32.mrf.mxu3 }
 0x1eb   :  { %v1487_v38 = vadd.f32 %v17526_v35, %v1467_v54 }
 0x1ed   :  { %v17582_v44 = vmax.f32 %v1487_v38, 0.0 }
 0x1ee   :  { %v1431_v34 = vpop.f32.mrf.mxu0  ;;  %v1582_v43 = vld [vmem:[#allocation2 + $0x40] sm:$0xff] }
 0x1ef   :  { %1519 = vst [vmem:[#allocation2 + $0x51] sm:$0xff] %v17582_v44  ;;  %v1432_v20 = vadd.f32 %v1431_v34, %v1383_v40  ;;  %v1687_v9 = vpack.c.bf16 %v1582_v43, %v1534_v23  ;;  %v17588_v14 = vpack.c.bf16 %v17582_v44, %v17565_v47  ;;  %v17596_v38 = vld [vmem:[#allocation2 + $0x42] sm:$0xff]  ;;  %v1343_v59 = vpop.f32.mrf.mxu2 }
 0x1f1   :  { %v1468_v39 = vmul.f32 %v17522_v5, %v1432_v20  ;;  %2484 = vmatmul.bf16.gmra.mxu0 %v1687_v9  ;;  %2391 = vmatmul.bf16.gmra.mxu2 %v17588_v14  ;;  %v1339_v9 = vadd.f32 %v1338_v42, %v1290_v53  ;;  %v1293_v42 = vadd.f32 %v1292_v49, %v17477_v50 }
 0x1f3   :  { %v1488_v30 = vadd.f32 %v17526_v35, %v1468_v39 }
 0x1f5   :  { %v17593_v25 = vmax.f32 %v1488_v30, 0.0  ;;  %v1388_v30 = vadd.f32 %v1387_v15, %v1339_v9 }
 0x1f6   :  { %v1434_v23 = vpop.f32.mrf.mxu0  ;;  %v1536_v54 = vld [vmem:[#allocation2 + $0x50] sm:$0xff] }
 0x1f7   :  { %v17598_v40 = vld [vmem:[#allocation2 + $0x52] sm:$0xff]  ;;  %1520 = vst [vmem:[#allocation2 + $0x61] sm:$0xff] %v17593_v25  ;;  %v1435_v34 = vadd.f32 %v1434_v23, %v1386_v36  ;;  %v17601_v28 = vpack.c.bf16 %v1536_v54, %v1582_v43  ;;  %v1148_v43 = vadd.f32 %v17401_v29, %v1099_v57  ;;  %v1392_v23 = vpop.f32.mrf.mxu3  ;;  %v1297_v29 = vpop.f32.mrf.mxu1 }
 0x1f8   :  { %v1695_v20 = vpack.c.bf16 %v17598_v40, %v17596_v38  ;;  %v1346_v49 = vpop.f32.mrf.mxu2 }
 0x1f9   :  { %v1469_v58 = vmul.f32 %v17522_v5, %v1435_v34  ;;  %2342 = vmatmul.bf16.gmra.mxu1 %v17601_v28  ;;  %v1197_v62 = vadd.f32 %v17414_v18, %v1148_v43 }
 0x1fa   :  { %2440 = vmatmul.bf16.gmra.mxu3 %v1695_v20  ;;  %v1342_v20 = vadd.f32 %v1341_v46, %v1293_v42 }
 0x1fb   :  { %v1489_v39 = vadd.f32 %v17526_v35, %v1469_v58  ;;  %v1246_v9 = vadd.f32 %v17479_v7, %v1197_v62 }
 0x1fd   :  { %v17613_v36 = vmax.f32 %v1489_v39, 0.0  ;;  %v1295_v58 = vadd.f32 %v1294_v32, %v1246_v9 }
 0x1fe   :  { %v1436_v4 = vpop.f32.mrf.mxu0  ;;  %v1584_v61 = vld [vmem:[#allocation2 + $0x60] sm:$0xff] }
 0x1ff   :  { %1521 = vst [vmem:[#allocation2 + $0x71] sm:$0xff] %v17613_v36  ;;  %v1437_v53 = vadd.f32 %v1436_v4, %v1388_v30  ;;  %v1696_v34 = vpack.c.bf16 %v1584_v61, %v1536_v54  ;;  %v17619_v31 = vpack.c.bf16 %v17613_v36, %v17593_v25  ;;  %v1391_v4 = vadd.f32 %v1390_v1, %v1342_v20  ;;  %v17628_v30 = vld [vmem:[#allocation2 + $0x62] sm:$0xff]  ;;  %v1395_v42 = vpop.f32.mrf.mxu3  ;;  %v1299_v62 = vpop.f32.mrf.mxu1 }
 0x201   :  { %v1470_v15 = vmul.f32 %v17522_v5, %v1437_v53  ;;  %2489 = vmatmul.bf16.gmra.mxu0 %v1696_v34  ;;  %2396 = vmatmul.bf16.gmra.mxu2 %v17619_v31  ;;  %v1344_v53 = vadd.f32 %v1343_v59, %v1295_v58  ;;  %v1104_v34 = vadd.f32 %v17412_v12, %v17410_v10 }
 0x202   :  { %v1298_v58 = vadd.f32 %v1297_v29, %v17486_v2  ;;  %v1571_v2 = vld [vmem:[#allocation2 + $0xa2] sm:$0xff] }
 0x203   :  { %v1490_v50 = vadd.f32 %v17526_v35, %v1470_v15  ;;  %v1153_v20 = vadd.f32 %v17417_v41, %v1104_v34  ;;  %v1555_v15 = vld [vmem:[#allocation2 + $0xa1] sm:$0xff]  ;;  %v1393_v9 = vadd.f32 %v1392_v23, %v1344_v53 }
 0x204   :  { %v1347_v41 = vadd.f32 %v1346_v49, %v1298_v58 }
 0x205   :  { %v17626_v54 = vmax.f32 %v1490_v50, 0.0 }
 0x206   :  { %v1439_v57 = vpop.f32.mrf.mxu0  ;;  %v1538_v39 = vld [vmem:[#allocation2 + $0x70] sm:$0xff]  ;;  %v1396_v29 = vadd.f32 %v1395_v42, %v1347_v41 }
 0x207   :  { %v17630_v18 = vld [vmem:[#allocation2 + $0x72] sm:$0xff]  ;;  %1522 = vst [vmem:[#allocation2 + $0x81] sm:$0xff] %v17626_v54  ;;  %v1440_v46 = vadd.f32 %v1439_v57, %v1391_v4  ;;  %v17633_v43 = vpack.c.bf16 %v1538_v39, %v1584_v61  ;;  %v1348_v4 = vpop.f32.mrf.mxu2 }
 0x208   :  { %v1704_v7 = vpack.c.bf16 %v17630_v18, %v17628_v30 }
 0x209   :  { %v1471_v32 = vmul.f32 %v17522_v5, %v1440_v46  ;;  %2347 = vmatmul.bf16.gmra.mxu1 %v17633_v43 }
 0x20a   :  { %2445 = vmatmul.bf16.gmra.mxu3 %v1704_v7  ;;  %v1202_v7 = vadd.f32 %v17430_v3, %v1153_v20 }
 0x20b   :  { %v1491_v61 = vadd.f32 %v17526_v35, %v1471_v32  ;;  %v1397_v32 = vpop.f32.mrf.mxu3 }
 0x20c   :  { %v1251_v53 = vadd.f32 %v17492_v27, %v1202_v7 }
 0x20d   :  { %v17645_v50 = vmax.f32 %v1491_v61, 0.0  ;;  %v1302_v61 = vpop.f32.mrf.mxu1 }
 0x20e   :  { %v1441_v57 = vpop.f32.mrf.mxu0  ;;  %v17647_v59 = vld [vmem:[#allocation2 + $0x80] sm:$0xff] }
 0x20f   :  { %1523 = vst [vmem:[#allocation2 + $0xb1] sm:$0xff] %v17645_v50  ;;  %v1442_v46 = vadd.f32 %v1441_v57, %v1393_v9  ;;  %v1705_v10 = vpack.c.bf16 %v17647_v59, %v1538_v39  ;;  %v1712_v12 = vpack.c.bf16 %v17645_v50, %v1555_v15  ;;  %v1300_v39 = vadd.f32 %v1299_v62, %v1251_v53  ;;  %v1351_v58 = vpop.f32.mrf.mxu2 }
 0x210   :  { %v1109_v62 = vadd.f32 %v17428_v0, %v17426_v22 }
 0x211   :  { %v1472_v23 = vmul.f32 %v17522_v5, %v1442_v46  ;;  %2494 = vmatmul.bf16.gmra.mxu0 %v1705_v10  ;;  %2401 = vmatmul.bf16.gmra.mxu2 %v1712_v12  ;;  %v1349_v42 = vadd.f32 %v1348_v4, %v1300_v39  ;;  %v15983_v10 = vld [vmem:[#allocation3 + $0x3b8] sm:$0xff]  ;;  %v15982_v4 = vld [vmem:[#allocation3 + $0x3b0] sm:$0xff] }
 0x212   :  { %v1158_v7 = vadd.f32 %v17435_v13, %v1109_v62  ;;  %2569 = vmatpush.bf16.msrb.mxu2 %v15983_v10  ;;  %v15975_v13 = vld [vmem:[#allocation3 + $0x378] sm:$0xff] }
 0x213   :  { %v1492_v34 = vadd.f32 %v17526_v35, %v1472_v23  ;;  %v1400_v41 = vpop.f32.mrf.mxu3  ;;  %v1398_v23 = vadd.f32 %v1397_v32, %v1349_v42  ;;  %2520 = vmatpush.bf16.msrb.mxu1 %v15975_v13  ;;  %v15980_v13 = vld [vmem:[#allocation3 + $0x3a0] sm:$0xff] }
 0x214   :  { %v1207_v32 = vadd.f32 %v17446_v48, %v1158_v7 }
 0x215   :  { %v17657_v9 = vmax.f32 %v1492_v34, 0.0  ;;  %v1304_v39 = vpop.f32.mrf.mxu1 }
 0x216   :  { %v1444_v57 = vpop.f32.mrf.mxu0  ;;  %v1540_v15 = vld [vmem:[#allocation2 + $0xb0] sm:$0xff]  ;;  %2570 = vmatpush.bf16.msrb.mxu2 %v15982_v4 }
 0x217   :  { %v17659_v1 = vld [vmem:[#allocation2 + $0xb2] sm:$0xff]  ;;  %1524 = vst [vmem:[#allocation2 + $0xc1] sm:$0xff] %v17657_v9  ;;  %v1445_v3 = vadd.f32 %v1444_v57, %v1396_v29  ;;  %v1711_v49 = vpack.c.bf16 %v1540_v15, %v17546_v26  ;;  %v1715_v20 = vpack.c.bf16 %v17657_v9, %v17645_v50  ;;  %v1303_v29 = vadd.f32 %v1302_v61, %v17501_v56  ;;  %v1353_v61 = vpop.f32.mrf.mxu2  ;;  %v16005_v50 = vld [vmem:[#allocation3 + $0x468] sm:$0xff] }
 0x218   :  { %v1713_v27 = vpack.c.bf16 %v17659_v1, %v1571_v2  ;;  %v1256_v56 = vadd.f32 %v17508_v52, %v1207_v32 }
 0x219   :  { %v1473_v46 = vmul.f32 %v17522_v5, %v1445_v3  ;;  %2352 = vmatmul.bf16.gmra.mxu1 %v1711_v49  ;;  %v15991_v3 = vld [vmem:[#allocation3 + $0x3f8] sm:$0xff]  ;;  %v1352_v49 = vadd.f32 %v1351_v58, %v1303_v29 }
 0x21a   :  { %2450 = vmatmul.bf16.gmra.mxu3 %v1713_v27  ;;  %v1305_v58 = vadd.f32 %v1304_v39, %v1256_v56  ;;  %v15973_v39 = vld [vmem:[#allocation3 + $0x368] sm:$0xff]  ;;  %v15998_v56 = vld [vmem:[#allocation3 + $0x430] sm:$0xff] }
 0x21b   :  { %v1493_v12 = vadd.f32 %v17526_v35, %v1473_v46  ;;  %2618 = vmatpush.bf16.msrb.mxu3 %v15991_v3  ;;  %v1401_v46 = vadd.f32 %v1400_v41, %v1352_v49  ;;  %v1402_v10 = vpop.f32.mrf.mxu3  ;;  %v15990_v41 = vld [vmem:[#allocation3 + $0x3f0] sm:$0xff] }
 0x21c   :  { %v1354_v3 = vadd.f32 %v1353_v61, %v1305_v58  ;;  %v15972_v58 = vld [vmem:[#allocation3 + $0x360] sm:$0xff] }
 0x21d   :  { %v17671_v53 = vmax.f32 %v1493_v12, 0.0  ;;  %v1307_v32 = vpop.f32.mrf.mxu1 }
 0x21e   :  { %v1446_v34 = vpop.f32.mrf.mxu0  ;;  %v1588_v2 = vld [vmem:[#allocation2 + $0xc0] sm:$0xff] }
 0x21f   :  { %1525 = vst [vmem:[#allocation2 + $0xd1] sm:$0xff] %v17671_v53  ;;  %v1447_v57 = vadd.f32 %v1446_v34, %v1398_v23  ;;  %v1714_v22 = vpack.c.bf16 %v1588_v2, %v1540_v15  ;;  %v17677_v0 = vpack.c.bf16 %v17671_v53, %v17657_v9  ;;  %v15981_v15 = vld [vmem:[#allocation3 + $0x3a8] sm:$0xff]  ;;  %v15974_v34 = vld [vmem:[#allocation3 + $0x370] sm:$0xff]  ;;  %2619 = vmatpush.bf16.msrb.mxu3 %v15990_v41  ;;  %v1356_v61 = vpop.f32.mrf.mxu2 }
 0x220   :  { %2571 = vmatpush.bf16.msrb.mxu2 %v15981_v15  ;;  %v17686_v48 = vld [vmem:[#allocation2 + $0xc2] sm:$0xff]  ;;  %2521 = vmatpush.bf16.msrb.mxu1 %v15974_v34 }
 0x221   :  { %v1474_v27 = vmul.f32 %v17522_v5, %v1447_v57  ;;  %2499 = vmatmul.bf16.gmra.mxu0 %v1714_v22  ;;  %2406 = vmatmul.bf16.gmra.mxu2 %v17677_v0  ;;  %v15999_v22 = vld [vmem:[#allocation3 + $0x438] sm:$0xff]  ;;  %v15997_v41 = vld [vmem:[#allocation3 + $0x428] sm:$0xff] }
 0x222   :  { %2667 = vmatpush.bf16.msra.mxu0 %v15999_v22 }
 0x223   :  { %v1494_v42 = vadd.f32 %v17526_v35, %v1474_v27  ;;  %v15989_v27 = vld [vmem:[#allocation3 + $0x3e8] sm:$0xff] }
 0x224   :  { %2572 = vmatpush.bf16.msrb.mxu2 %v15980_v13  ;;  %2522 = vmatpush.bf16.msrb.mxu1 %v15973_v39 }
 0x225   :  { %v17684_v62 = vmax.f32 %v1494_v42, 0.0  ;;  %v15979_v42 = vld [vmem:[#allocation3 + $0x398] sm:$0xff]  ;;  %2620 = vmatpush.bf16.msrb.mxu3 %v15989_v27  ;;  %v15996_v27 = vld [vmem:[#allocation3 + $0x420] sm:$0xff] }
 0x226   :  { %v1449_v12 = vpop.f32.mrf.mxu0  ;;  %v1542_v7 = vld [vmem:[#allocation2 + $0xd0] sm:$0xff]  ;;  %2668 = vmatpush.bf16.msra.mxu0 %v15998_v56  ;;  %v1309_v56 = vpop.f32.mrf.mxu1 }
 0x227   :  { %v17688_v23 = vld [vmem:[#allocation2 + $0xd2] sm:$0xff]  ;;  %1526 = vst [vmem:[#allocation2 + $0xe1] sm:$0xff] %v17684_v62  ;;  %v1450_v52 = vadd.f32 %v1449_v12, %v1401_v46  ;;  %v17691_v4 = vpack.c.bf16 %v1542_v7, %v1588_v2  ;;  %v1724_v57 = vpack.c.bf16 %v17684_v62, %v17671_v53  ;;  %v1114_v2 = vadd.f32 %v17481_v17, %v17444_v63  ;;  %v15988_v17 = vld [vmem:[#allocation3 + $0x3e0] sm:$0xff]  ;;  %v16001_v53 = vld [vmem:[#allocation3 + $0x448] sm:$0xff] }
 0x228   :  { %v1722_v29 = vpack.c.bf16 %v17688_v23, %v17686_v48  ;;  %v1403_v12 = vadd.f32 %v1402_v10, %v1354_v3  ;;  %2573 = vmatpush.bf16.msrb.mxu2 %v15979_v42  ;;  %v15978_v10 = vld [vmem:[#allocation3 + $0x390] sm:$0xff]  ;;  %v1405_v3 = vpop.f32.mrf.mxu3  ;;  %2523 = vmatpush.bf16.msrb.mxu1 %v15972_v58 }
 0x229   :  { %v1475_v49 = vmul.f32 %v17522_v5, %v1450_v52  ;;  %2357 = vmatmul.bf16.gmra.mxu1 %v17691_v4  ;;  %v1163_v46 = vadd.f32 %v17483_v21, %v1114_v2  ;;  %v1308_v52 = vadd.f32 %v1307_v32, %v17514_v16  ;;  %v15971_v16 = vld [vmem:[#allocation3 + $0x358] sm:$0xff]  ;;  %2621 = vmatpush.bf16.msrb.mxu3 %v15988_v17  ;;  %v15970_v42 = vld [vmem:[#allocation3 + $0x350] sm:$0xff] }
 0x22a   :  { %2455 = vmatmul.bf16.gmra.mxu3 %v1722_v29  ;;  %2669 = vmatpush.bf16.msra.mxu0 %v15997_v41  ;;  %v15995_v41 = vld [vmem:[#allocation3 + $0x418] sm:$0xff] }
 0x22b   :  { %v1495_v15 = vadd.f32 %v17526_v35, %v1475_v49  ;;  %v1212_v39 = vadd.f32 %v17488_v11, %v1163_v46  ;;  %v1357_v32 = vadd.f32 %v1356_v61, %v1308_v52  ;;  %v15977_v11 = vld [vmem:[#allocation3 + $0x388] sm:$0xff] }
 0x22c   :  { %2574 = vmatpush.bf16.msrb.mxu2 %v15978_v10  ;;  %2524 = vmatpush.bf16.msrb.mxu1 %v15971_v16  ;;  %v15969_v16 = vld [vmem:[#allocation3 + $0x348] sm:$0xff] }
 0x22d   :  { %v17703_v34 = vmax.f32 %v1495_v15, 0.0  ;;  %v1261_v2 = vadd.f32 %v17516_v24, %v1212_v39  ;;  %v1406_v46 = vadd.f32 %v1405_v3, %v1357_v32  ;;  %v15976_v3 = vld [vmem:[#allocation3 + $0x380] sm:$0xff] }
 0x22e   :  { %v1451_v29 = vpop.f32.mrf.mxu0  ;;  %v1590_v63 = vld [vmem:[#allocation2 + $0xe0] sm:$0xff]  ;;  %2670 = vmatpush.bf16.msra.mxu0 %v15996_v27  ;;  %v15994_v27 = vld [vmem:[#allocation3 + $0x410] sm:$0xff] }
 0x22f   :  { %1527 = vst [vmem:[#allocation2 + $0xf1] sm:$0xff] %v17703_v34  ;;  %v1452_v22 = vadd.f32 %v1451_v29, %v1403_v12  ;;  %v1723_v13 = vpack.c.bf16 %v1590_v63, %v1542_v7  ;;  %v17709_v21 = vpack.c.bf16 %v17703_v34, %v17684_v62  ;;  %v15987_v7 = vld [vmem:[#allocation3 + $0x3d8] sm:$0xff]  ;;  %v17718_v58 = vld [vmem:[#allocation2 + $0xe2] sm:$0xff]  ;;  %v15986_v12 = vld [vmem:[#allocation3 + $0x3d0] sm:$0xff]  ;;  %v1310_v52 = vadd.f32 %v1309_v56, %v1261_v2  ;;  %v1358_v29 = vpop.f32.mrf.mxu2 }
 0x230   :  { %2622 = vmatpush.bf16.msrb.mxu3 %v15987_v7  ;;  %2575 = vmatpush.bf16.msrb.mxu2 %v15977_v11  ;;  %v1407_v7 = vpop.f32.mrf.mxu3 }
 0x231   :  { %v1476_v49 = vmul.f32 %v17522_v5, %v1452_v22  ;;  %2504 = vmatmul.bf16.gmra.mxu0 %v1723_v13  ;;  %2411 = vmatmul.bf16.gmra.mxu2 %v17709_v21 }
 0x232   :  { %2525 = vmatpush.bf16.msrb.mxu1 %v15970_v42  ;;  %2671 = vmatpush.bf16.msra.mxu0 %v15995_v41 }
 0x233   :  { %v1496_v15 = vadd.f32 %v17526_v35, %v1476_v49  ;;  %v1359_v49 = vadd.f32 %v1358_v29, %v1310_v52  ;;  %v15984_v29 = vld [vmem:[#allocation3 + $0x3c0] sm:$0xff] }
 0x234   :  { %2623 = vmatpush.bf16.msrb.mxu3 %v15986_v12  ;;  %2576 = vmatpush.bf16.msrb.mxu2 %v15976_v3  ;;  %v15992_v3 = vld [vmem:[#allocation3 + $0x400] sm:$0xff] }
 0x235   :  { %v17716_v61 = vmax.f32 %v1496_v15, 0.0  ;;  %v15968_v15 = vld [vmem:[#allocation3 + $0x340] sm:$0xff]  ;;  %v1408_v11 = vadd.f32 %v1407_v7, %v1359_v49 }
 0x236   :  { %v1454_v24 = vpop.f32.mrf.mxu0  ;;  %v1544_v17 = vld [vmem:[#allocation2 + $0xf0] sm:$0xff]  ;;  %2526 = vmatpush.bf16.msrb.mxu1 %v15969_v16  ;;  %2672 = vmatpush.bf16.msra.mxu0 %v15994_v27 }
 0x237   :  { %v17720_v22 = vld [vmem:[#allocation2 + $0xf2] sm:$0xff]  ;;  %1528 = vst [vmem:[#allocation2 + $0x101] sm:$0xff] %v17716_v61  ;;  %v1455_v13 = vadd.f32 %v1454_v24, %v1406_v46  ;;  %v17723_v10 = vpack.c.bf16 %v1544_v17, %v1590_v63  ;;  %v1733_v32 = vpack.c.bf16 %v17716_v61, %v17703_v34  ;;  %v15985_v63 = vld [vmem:[#allocation3 + $0x3c8] sm:$0xff] }
 0x238   :  { %v1731_v39 = vpack.c.bf16 %v17720_v22, %v17718_v58  ;;  %2624 = vmatpush.bf16.msrb.mxu3 %v15985_v63  ;;  %v15993_v24 = vld [vmem:[#allocation3 + $0x408] sm:$0xff] }
 0x239   :  { %v1477_v2 = vmul.f32 %v17522_v5, %v1455_v13  ;;  %2362 = vmatmul.bf16.gmra.mxu1 %v17723_v10 }
 0x23a   :  { %2460 = vmatmul.bf16.gmra.mxu3 %v1731_v39  ;;  %2527 = vmatpush.bf16.msrb.mxu1 %v15968_v15  ;;  %v1680_v15 = vpack.c.bf16 %v17568_v19, %v17543_v60  ;;  %v1689_v60 = vpack.c.bf16 %v17596_v38, %v17570_v55 }
 0x23b   :  { %v1497_v56 = vadd.f32 %v17526_v35, %v1477_v2  ;;  %2673 = vmatpush.bf16.msra.mxu0 %v15993_v24 }
 0x23c   :  { %2625 = vmatpush.bf16.msrb.mxu3 %v15984_v29 }
 0x23d   :  { %v17732_v42 = vmax.f32 %v1497_v56, 0.0 }
 0x23e   :  { %v1456_v46 = vpop.f32.mrf.mxu0  ;;  %v1592_v52 = vld [vmem:[#allocation2 + $0x100] sm:$0xff] }
 0x23f   :  { %1529 = vst [vmem:[#allocation2 + $0x111] sm:$0xff] %v17732_v42  ;;  %v1457_v12 = vadd.f32 %v1456_v46, %v1408_v11  ;;  %v1732_v13 = vpack.c.bf16 %v1592_v52, %v1544_v17  ;;  %v17737_v41 = vpack.c.bf16 %v17732_v42, %v17716_v61  ;;  %v17744_v7 = vld [vmem:[#allocation2 + $0x102] sm:$0xff]  ;;  %2674 = vmatpush.bf16.msra.mxu0 %v15992_v3 }
 0x241   :  { %v1478_v39 = vmul.f32 %v17522_v5, %v1457_v12  ;;  %2509 = vmatmul.bf16.gmra.mxu0 %v1732_v13  ;;  %2416 = vmatmul.bf16.gmra.mxu2 %v17737_v41 }
 0x243   :  { %v1498_v16 = vadd.f32 %v17526_v35, %v1478_v39 }
 0x245   :  { %v17742_v49 = vmax.f32 %v1498_v16, 0.0 }
 0x246   :  { %v1546_v2 = vld [vmem:[#allocation2 + $0x110] sm:$0xff] }
 0x247   :  { %v17746_v17 = vld [vmem:[#allocation2 + $0x112] sm:$0xff]  ;;  %1530 = vst [vmem:[#allocation2 + $0x121] sm:$0xff] %v17742_v49  ;;  %v17749_v63 = vpack.c.bf16 %v1546_v2, %v1592_v52  ;;  %v1742_v27 = vpack.c.bf16 %v17742_v49, %v17732_v42 }
 0x248   :  { %v17753_v5 = vpack.c.bf16 %v17746_v17, %v17744_v7 }
 0x249   :  { %2367 = vmatmul.bf16.gmra.mxu1 %v17749_v63 }
 0x24a   :  { %2465 = vmatmul.bf16.gmra.mxu3 %v17753_v5 }
 0x24e   :  { %v17759_v35 = vld [vmem:[#allocation2 + $0x120] sm:$0xff] }
 0x24f   :  { %v1741_v56 = vpack.c.bf16 %v17759_v35, %v1546_v2 }
 0x251   :  { %2514 = vmatmul.bf16.gmra.mxu0 %v1741_v56  ;;  %2577 = vmatmul.bf16.vlgmr.msrb.gmra.mxu2 %v1680_v15  ;;  %v19422_v15 = vpack.c.bf16 %v17565_v47, %v17554_v8 }
 0x254   :  { %v2382_v11 = vpop.f32.mrf.mxu2 }
 0x256   :  { %v2333_v46 = vpop.f32.mrf.mxu1 }
 0x257   :  { %v2383_v52 = vadd.f32 %v2382_v11, %v2333_v46 }
 0x259   :  { %2528 = vmatmul.bf16.vlgmr.msrb.gmra.mxu1 %v1679_v33 }
 0x25a   :  { %2626 = vmatmul.bf16.vlgmr.msrb.gmra.mxu3 %v17573_v51 }
 0x25c   :  { %v2384_v24 = vpop.f32.mrf.mxu2 }
 0x25d   :  { %v2431_v29 = vpop.f32.mrf.mxu3 }
 0x25e   :  { %v2432_v12 = vadd.f32 %v2431_v29, %v2383_v52  ;;  %v2335_v13 = vpop.f32.mrf.mxu1  ;;  %v2480_v39 = vpop.f32.mrf.mxu0 }
 0x25f   :  { %v2385_v16 = vadd.f32 %v2384_v24, %v2335_v13  ;;  %v1698_v24 = vpack.c.bf16 %v17628_v30, %v17598_v40  ;;  %v17790_v40 = vld [vmem:[#allocation2 + $0x82] sm:$0xff] }
 0x260   :  { %v17768_v3 = vadd.f32 %v2480_v39, %v2432_v12 }
 0x261   :  { %2675 = vmatmul.bf16.vlgmr.msra.gmra.mxu0 %v17560_v37  ;;  %2582 = vmatmul.bf16.gmra.mxu2 %v1689_v60  ;;  %v19423_v60 = vpack.c.bf16 %v17593_v25, %v17582_v44 }
 0x264   :  { %v2387_v2 = vpop.f32.mrf.mxu2 }
 0x265   :  { %v2433_v19 = vpop.f32.mrf.mxu3 }
 0x266   :  { %v2434_v6 = vadd.f32 %v2433_v19, %v2385_v16  ;;  %v2338_v45 = vpop.f32.mrf.mxu1  ;;  %v2482_v33 = vpop.f32.mrf.mxu0 }
 0x267   :  { %v2388_v56 = vadd.f32 %v2387_v2, %v2338_v45 }
 0x268   :  { %v17773_v51 = vadd.f32 %v2482_v33, %v2434_v6 }
 0x269   :  { %2533 = vmatmul.bf16.gmra.mxu1 %v19422_v15 }
 0x26a   :  { %2631 = vmatmul.bf16.gmra.mxu3 %v17601_v28 }
 0x26c   :  { %v2389_v46 = vpop.f32.mrf.mxu2 }
 0x26d   :  { %v2436_v11 = vpop.f32.mrf.mxu3 }
 0x26e   :  { %v2437_v55 = vadd.f32 %v2436_v11, %v2388_v56  ;;  %v2340_v38 = vpop.f32.mrf.mxu1  ;;  %v2485_v37 = vpop.f32.mrf.mxu0  ;;  %v1707_v56 = vpack.c.bf16 %v17790_v40, %v17630_v18 }
 0x26f   :  { %v2390_v29 = vadd.f32 %v2389_v46, %v2340_v38 }
 0x270   :  { %v17779_v52 = vadd.f32 %v2485_v37, %v2437_v55  ;;  %v1708_v55 = vpack.c.bf16 %v17546_v26, %v17647_v59  ;;  %v19424_v37 = vpack.c.bf16 %v17626_v54, %v17613_v36  ;;  %v1716_v59 = vpack.c.bf16 %v17686_v48, %v17659_v1 }
 0x271   :  { %2680 = vmatmul.bf16.gmra.mxu0 %v17588_v14  ;;  %2587 = vmatmul.bf16.gmra.mxu2 %v1698_v24 }
 0x274   :  { %v2392_v13 = vpop.f32.mrf.mxu2 }
 0x275   :  { %v2438_v12 = vpop.f32.mrf.mxu3 }
 0x276   :  { %v2439_v8 = vadd.f32 %v2438_v12, %v2390_v29  ;;  %v2343_v47 = vpop.f32.mrf.mxu1  ;;  %v2487_v39 = vpop.f32.mrf.mxu0  ;;  %v1650_v29 = vld [vmem:[#allocation2 + $0x91] sm:$0xff] }
 0x277   :  { %v2393_v16 = vadd.f32 %v2392_v13, %v2343_v47  ;;  %v1709_v47 = vpack.c.bf16 %v1650_v29, %v17626_v54  ;;  %v16007_v54 = vld [vmem:[#allocation3 + $0x478] sm:$0xff] }
 0x278   :  { %v17784_v28 = vadd.f32 %v2487_v39, %v2439_v8  ;;  %2716 = vmatpush.bf16.msra.mxu1 %v16007_v54 }
 0x279   :  { %2538 = vmatmul.bf16.gmra.mxu1 %v19423_v60 }
 0x27a   :  { %2636 = vmatmul.bf16.gmra.mxu3 %v17633_v43 }
 0x27c   :  { %v2394_v2 = vpop.f32.mrf.mxu2 }
 0x27d   :  { %v2441_v19 = vpop.f32.mrf.mxu3 }
 0x27e   :  { %v2442_v14 = vadd.f32 %v2441_v19, %v2393_v16  ;;  %v2345_v30 = vpop.f32.mrf.mxu1  ;;  %v2490_v6 = vpop.f32.mrf.mxu0 }
 0x27f   :  { %v2395_v33 = vadd.f32 %v2394_v2, %v2345_v30 }
 0x280   :  { %v17792_v45 = vadd.f32 %v2490_v6, %v2442_v14 }
 0x281   :  { %2685 = vmatmul.bf16.gmra.mxu0 %v17619_v31  ;;  %2592 = vmatmul.bf16.gmra.mxu2 %v1707_v56 }
 0x284   :  { %v2397_v25 = vpop.f32.mrf.mxu2 }
 0x285   :  { %v2443_v44 = vpop.f32.mrf.mxu3 }
 0x286   :  { %v2444_v15 = vadd.f32 %v2443_v44, %v2395_v33  ;;  %v2348_v43 = vpop.f32.mrf.mxu1  ;;  %v2492_v11 = vpop.f32.mrf.mxu0 }
 0x287   :  { %v2398_v38 = vadd.f32 %v2397_v25, %v2348_v43  ;;  %v1725_v25 = vpack.c.bf16 %v17718_v58, %v17688_v23 }
 0x288   :  { %v17797_v46 = vadd.f32 %v2492_v11, %v2444_v15  ;;  %v16006_v15 = vld [vmem:[#allocation3 + $0x470] sm:$0xff] }
 0x289   :  { %2543 = vmatmul.bf16.gmra.mxu1 %v19424_v37 }
 0x28a   :  { %2641 = vmatmul.bf16.gmra.mxu3 %v1708_v55  ;;  %2717 = vmatpush.bf16.msra.mxu1 %v16006_v15  ;;  %v16004_v55 = vld [vmem:[#allocation3 + $0x460] sm:$0xff] }
 0x28c   :  { %v2399_v31 = vpop.f32.mrf.mxu2 }
 0x28d   :  { %v2446_v18 = vpop.f32.mrf.mxu3 }
 0x28e   :  { %v2447_v24 = vadd.f32 %v2446_v18, %v2398_v38  ;;  %v2350_v12 = vpop.f32.mrf.mxu1  ;;  %v2495_v13 = vpop.f32.mrf.mxu0  ;;  %2718 = vmatpush.bf16.msra.mxu1 %v16005_v50 }
 0x28f   :  { %v2400_v39 = vadd.f32 %v2399_v31, %v2350_v12  ;;  %v1734_v31 = vpack.c.bf16 %v17744_v7, %v17720_v22  ;;  %v17851_v7 = vld [vmem:[#allocation2 + $0x122] sm:$0xff] }
 0x290   :  { %v17804_v8 = vadd.f32 %v2495_v13, %v2447_v24  ;;  %v16002_v24 = vld [vmem:[#allocation3 + $0x450] sm:$0xff] }
 0x291   :  { %2690 = vmatmul.bf16.gmra.mxu0 %v1709_v47  ;;  %2597 = vmatmul.bf16.gmra.mxu2 %v1716_v59  ;;  %v16000_v47 = vld [vmem:[#allocation3 + $0x440] sm:$0xff] }
 0x292   :  { %2719 = vmatpush.bf16.msra.mxu1 %v16004_v55 }
 0x294   :  { %v2402_v36 = vpop.f32.mrf.mxu2 }
 0x295   :  { %v2448_v16 = vpop.f32.mrf.mxu3 }
 0x296   :  { %v2449_v60 = vadd.f32 %v2448_v16, %v2400_v39  ;;  %v2353_v19 = vpop.f32.mrf.mxu1  ;;  %v2497_v2 = vpop.f32.mrf.mxu0 }
 0x297   :  { %v2403_v30 = vadd.f32 %v2402_v36, %v2353_v19  ;;  %v1744_v19 = vpack.c.bf16 %v17546_v26, %v17759_v35  ;;  %v1659_v26 = vld [vmem:[#allocation2 + $0x22] sm:$0xff] }
 0x298   :  { %v17809_v14 = vadd.f32 %v2497_v2, %v2449_v60  ;;  %v1743_v60 = vpack.c.bf16 %v17851_v7, %v17746_v17  ;;  %v1658_v17 = vld [vmem:[#allocation2 + $0x131] sm:$0xff] }
 0x299   :  { %2548 = vmatmul.bf16.gmra.mxu1 %v1715_v20 }
 0x29a   :  { %2646 = vmatmul.bf16.gmra.mxu3 %v17691_v4 }
 0x29c   :  { %v17815_v1 = vpop.f32.mrf.mxu2 }
 0x29d   :  { %v2451_v6 = vpop.f32.mrf.mxu3 }
 0x29e   :  { %v2452_v48 = vadd.f32 %v2451_v6, %v2403_v30  ;;  %v17817_v33 = vpop.f32.mrf.mxu1  ;;  %v2500_v56 = vpop.f32.mrf.mxu0 }
 0x2a0   :  { %v17819_v44 = vadd.f32 %v2500_v56, %v2452_v48  ;;  %v1745_v56 = vpack.c.bf16 %v1658_v17, %v17742_v49  ;;  %v16023_v17 = vld [vmem:[#allocation3 + $0x4f8] sm:$0xff] }
 0x2a1   :  { %2695 = vmatmul.bf16.gmra.mxu0 %v17677_v0  ;;  %2602 = vmatmul.bf16.gmra.mxu2 %v1725_v25  ;;  %v16003_v0 = vld [vmem:[#allocation3 + $0x458] sm:$0xff] }
 0x2a2   :  { %2720 = vmatpush.bf16.msra.mxu1 %v16003_v0  ;;  %v1660_v25 = vld [vmem:[#allocation2 + $0x32] sm:$0xff]  ;;  %3681 = vmatpush.bf16.msra.mxu3 %v16023_v17  ;;  %v16036_v17 = vld [vmem:[#allocation3 + $0x560] sm:$0xff] }
 0x2a3   :  { %v1683_v42 = vpack.c.bf16 %v1660_v25, %v1659_v26  ;;  %v16030_v26 = vld [vmem:[#allocation3 + $0x530] sm:$0xff] }
 0x2a4   :  { %v2407_v20 = vpop.f32.mrf.mxu2 }
 0x2a5   :  { %v17824_v9 = vpop.f32.mrf.mxu3 }
 0x2a6   :  { %v2358_v4 = vpop.f32.mrf.mxu1  ;;  %v17826_v43 = vpop.f32.mrf.mxu0  ;;  %2721 = vmatpush.bf16.msra.mxu1 %v16002_v24 }
 0x2a7   :  { %v2408_v11 = vadd.f32 %v2407_v20, %v2358_v4  ;;  %v1662_v20 = vld [vmem:[#allocation2 + $0x52] sm:$0xff] }
 0x2a9   :  { %2553 = vmatmul.bf16.gmra.mxu1 %v1724_v57 }
 0x2aa   :  { %2651 = vmatmul.bf16.gmra.mxu3 %v17723_v10  ;;  %2722 = vmatpush.bf16.msra.mxu1 %v16001_v53 }
 0x2ac   :  { %v17832_v58 = vpop.f32.mrf.mxu2 }
 0x2ad   :  { %v2456_v23 = vpop.f32.mrf.mxu3 }
 0x2ae   :  { %v2457_v38 = vadd.f32 %v2456_v23, %v2408_v11  ;;  %v17834_v37 = vpop.f32.mrf.mxu1  ;;  %v2505_v18 = vpop.f32.mrf.mxu0  ;;  %2723 = vmatpush.bf16.msra.mxu1 %v16000_v47  ;;  %v1661_v11 = vld [vmem:[#allocation2 + $0x42] sm:$0xff] }
 0x2af   :  { %v1692_v49 = vpack.c.bf16 %v1662_v20, %v1661_v11  ;;  %v16013_v20 = vld [vmem:[#allocation3 + $0x4a8] sm:$0xff] }
 0x2b0   :  { %v17836_v29 = vadd.f32 %v2505_v18, %v2457_v38  ;;  %v1663_v18 = vld [vmem:[#allocation2 + $0x62] sm:$0xff] }
 0x2b1   :  { %2700 = vmatmul.bf16.gmra.mxu0 %v17709_v21  ;;  %2607 = vmatmul.bf16.gmra.mxu2 %v1734_v31 }
 0x2b4   :  { %v2412_v57 = vpop.f32.mrf.mxu2 }
 0x2b5   :  { %v17841_v62 = vpop.f32.mrf.mxu3 }
 0x2b6   :  { %v2363_v10 = vpop.f32.mrf.mxu1  ;;  %v17843_v12 = vpop.f32.mrf.mxu0 }
 0x2b7   :  { %v2413_v13 = vadd.f32 %v2412_v57, %v2363_v10 }
 0x2b9   :  { %2558 = vmatmul.bf16.gmra.mxu1 %v1733_v32 }
 0x2ba   :  { %2656 = vmatmul.bf16.gmra.mxu3 %v17749_v63 }
 0x2bc   :  { %v17849_v22 = vpop.f32.mrf.mxu2 }
 0x2bd   :  { %v2461_v21 = vpop.f32.mrf.mxu3 }
 0x2be   :  { %v2462_v39 = vadd.f32 %v2461_v21, %v2413_v13  ;;  %v17853_v59 = vpop.f32.mrf.mxu1  ;;  %v2510_v16 = vpop.f32.mrf.mxu0 }
 0x2c0   :  { %v17855_v36 = vadd.f32 %v2510_v16, %v2462_v39  ;;  %v1667_v39 = vld [vmem:[#allocation2 + $0xc2] sm:$0xff] }
 0x2c1   :  { %2705 = vmatmul.bf16.gmra.mxu0 %v17737_v41  ;;  %2612 = vmatmul.bf16.gmra.mxu2 %v1743_v60 }
 0x2c4   :  { %v2417_v61 = vpop.f32.mrf.mxu2 }
 0x2c5   :  { %v17860_v34 = vpop.f32.mrf.mxu3 }
 0x2c6   :  { %v2368_v32 = vpop.f32.mrf.mxu1  ;;  %v17862_v63 = vpop.f32.mrf.mxu0 }
 0x2c7   :  { %v2418_v2 = vadd.f32 %v2417_v61, %v2368_v32  ;;  %v1670_v61 = vld [vmem:[#allocation2 + $0xf2] sm:$0xff] }
 0x2c9   :  { %2563 = vmatmul.bf16.gmra.mxu1 %v1742_v27 }
 0x2ca   :  { %2661 = vmatmul.bf16.gmra.mxu3 %v1744_v19  ;;  %v1669_v19 = vld [vmem:[#allocation2 + $0xe2] sm:$0xff] }
 0x2cd   :  { %v2466_v30 = vpop.f32.mrf.mxu3 }
 0x2ce   :  { %v2467_v54 = vadd.f32 %v2466_v30, %v2418_v2  ;;  %v17869_v41 = vpop.f32.mrf.mxu1  ;;  %v2515_v6 = vpop.f32.mrf.mxu0  ;;  %v1728_v2 = vpack.c.bf16 %v1670_v61, %v1669_v19  ;;  %v16015_v30 = vld [vmem:[#allocation3 + $0x4b8] sm:$0xff] }
 0x2cf   :  { %3632 = vmatpush.bf16.msra.mxu2 %v16015_v30  ;;  %v16026_v30 = vld [vmem:[#allocation3 + $0x510] sm:$0xff] }
 0x2d0   :  { %v17871_v48 = vadd.f32 %v2515_v6, %v2467_v54 }
 0x2d1   :  { %2710 = vmatmul.bf16.gmra.mxu0 %v1745_v56  ;;  %v16022_v56 = vld [vmem:[#allocation3 + $0x4f0] sm:$0xff] }
 0x2d2   :  { %3682 = vmatpush.bf16.msra.mxu3 %v16022_v56 }
 0x2d5   :  { %v17906_v32 = vpop.f32.mrf.mxu3 }
 0x2d6   :  { %v2529_v15 = vpop.f32.mrf.mxu1  ;;  %v17911_v54 = vpop.f32.mrf.mxu0 }
 0x2d7   :  { %v17875_v35 = vadd.f32 %v2529_v15, %v17768_v3  ;;  %v1664_v3 = vld [vmem:[#allocation2 + $0x72] sm:$0xff] }
 0x2d8   :  { %v16014_v15 = vld [vmem:[#allocation3 + $0x4b0] sm:$0xff] }
 0x2d9   :  { %2724 = vmatmul.bf16.vlgmr.msra.gmra.mxu1 %v1683_v42  ;;  %3633 = vmatpush.bf16.msra.mxu2 %v16014_v15 }
 0x2dd   :  { %v17917_v42 = vpop.f32.mrf.mxu3  ;;  %3634 = vmatpush.bf16.msra.mxu2 %v16013_v20  ;;  %v16035_v20 = vld [vmem:[#allocation3 + $0x558] sm:$0xff] }
 0x2de   :  { %v2531_v27 = vpop.f32.mrf.mxu1  ;;  %v17919_v11 = vpop.f32.mrf.mxu0 }
 0x2df   :  { %v17878_v50 = vadd.f32 %v2531_v27, %v17773_v51  ;;  %v1701_v51 = vpack.c.bf16 %v1664_v3, %v1663_v18  ;;  %v16039_v27 = vld [vmem:[#allocation3 + $0x578] sm:$0xff] }
 0x2e0   :  { %3779 = vmatpush.bf16.msrb.mxu1 %v16039_v27  ;;  %v16016_v27 = vld [vmem:[#allocation3 + $0x4c0] sm:$0xff] }
 0x2e5   :  { %v17927_v18 = vpop.f32.mrf.mxu3 }
 0x2e6   :  { %v2534_v4 = vpop.f32.mrf.mxu1 }
 0x2e7   :  { %v17881_v55 = vadd.f32 %v2534_v4, %v17779_v52  ;;  %v1666_v52 = vld [vmem:[#allocation2 + $0x92] sm:$0xff]  ;;  %v16029_v4 = vld [vmem:[#allocation3 + $0x528] sm:$0xff] }
 0x2e9   :  { %2729 = vmatmul.bf16.gmra.mxu1 %v1692_v49 }
 0x2ed   :  { %v2632_v61 = vpop.f32.mrf.mxu3 }
 0x2ee   :  { %v2536_v0 = vpop.f32.mrf.mxu1 }
 0x2ef   :  { %v17884_v23 = vadd.f32 %v2536_v0, %v17784_v28  ;;  %v1710_v28 = vpack.c.bf16 %v1666_v52, %v17790_v40  ;;  %v16020_v0 = vld [vmem:[#allocation3 + $0x4e0] sm:$0xff] }
 0x2f6   :  { %v2539_v38 = vpop.f32.mrf.mxu1 }
 0x2f7   :  { %v17887_v31 = vadd.f32 %v2539_v38, %v17792_v45  ;;  %v1668_v45 = vld [vmem:[#allocation2 + $0xd2] sm:$0xff] }
 0x2f9   :  { %2734 = vmatmul.bf16.gmra.mxu1 %v1701_v51  ;;  %v16019_v51 = vld [vmem:[#allocation3 + $0x4d8] sm:$0xff] }
 0x2fe   :  { %v2541_v24 = vpop.f32.mrf.mxu1 }
 0x2ff   :  { %v17890_v53 = vadd.f32 %v2541_v24, %v17797_v46  ;;  %v1719_v46 = vpack.c.bf16 %v1668_v45, %v1667_v39  ;;  %v17929_v24 = vpop.f32.mrf.mxu0  ;;  %v16027_v45 = vld [vmem:[#allocation3 + $0x518] sm:$0xff]  ;;  %v16037_v39 = vld [vmem:[#allocation3 + $0x568] sm:$0xff] }
 0x306   :  { %v2544_v57 = vpop.f32.mrf.mxu1 }
 0x307   :  { %v17893_v10 = vadd.f32 %v2544_v57, %v17804_v8  ;;  %v17904_v8 = vpop.f32.mrf.mxu2  ;;  %v16012_v57 = vld [vmem:[#allocation3 + $0x4a0] sm:$0xff]  ;;  %v2681_v15 = vpop.f32.mrf.mxu0 }
 0x308   :  { %3635 = vmatpush.bf16.msra.mxu2 %v16012_v57 }
 0x309   :  { %2739 = vmatmul.bf16.gmra.mxu1 %v1710_v28  ;;  %v16028_v28 = vld [vmem:[#allocation3 + $0x520] sm:$0xff] }
 0x30e   :  { %v2546_v13 = vpop.f32.mrf.mxu1 }
 0x30f   :  { %v17897_v47 = vadd.f32 %v2546_v13, %v17809_v14  ;;  %v17915_v25 = vpop.f32.mrf.mxu2  ;;  %v16038_v13 = vld [vmem:[#allocation3 + $0x570] sm:$0xff] }
 0x310   :  { %3780 = vmatpush.bf16.msrb.mxu1 %v16038_v13  ;;  %v2579_v57 = vadd.f32 %v17915_v25, %v17875_v35  ;;  %v2683_v13 = vpop.f32.mrf.mxu0  ;;  %v17947_v35 = vld [vmem:[#allocation8 + $0x1] ss:$0 sm:$0xff] }
 0x314   :  { %3781 = vmatpush.bf16.msrb.mxu1 %v16037_v39 }
 0x316   :  { %v2549_v21 = vpop.f32.mrf.mxu1 }
 0x317   :  { %v17900_v16 = vadd.f32 %v2549_v21, %v17819_v44  ;;  %v16031_v44 = vld [vmem:[#allocation3 + $0x538] sm:$0xff]  ;;  %v17924_v38 = vpop.f32.mrf.mxu2  ;;  %v16018_v21 = vld [vmem:[#allocation3 + $0x4d0] sm:$0xff] }
 0x318   :  { %3730 = vmatpush.bf16.msrb.mxu0 %v16031_v44  ;;  %3782 = vmatpush.bf16.msrb.mxu1 %v16036_v17  ;;  %v2686_v17 = vpop.f32.mrf.mxu0 }
 0x319   :  { %2744 = vmatmul.bf16.gmra.mxu1 %v1719_v46 }
 0x31c   :  { %3731 = vmatpush.bf16.msrb.mxu0 %v16030_v26  ;;  %v16009_v26 = vld [vmem:[#allocation3 + $0x488] sm:$0xff]  ;;  %3783 = vmatpush.bf16.msrb.mxu1 %v16035_v20 }
 0x31e   :  { %v17902_v60 = vpop.f32.mrf.mxu1 }
 0x31f   :  { %v2583_v46 = vpop.f32.mrf.mxu2 }
 0x320   :  { %3732 = vmatpush.bf16.msrb.mxu0 %v16029_v4 }
 0x324   :  { %3733 = vmatpush.bf16.msrb.mxu0 %v16028_v28  ;;  %v2628_v28 = vadd.f32 %v17917_v42, %v2579_v57 }
 0x326   :  { %v2554_v40 = vpop.f32.mrf.mxu1 }
 0x327   :  { %v17909_v14 = vadd.f32 %v2554_v40, %v17836_v29  ;;  %v16021_v29 = vld [vmem:[#allocation3 + $0x4e8] sm:$0xff]  ;;  %v1674_v40 = vld [vmem:[#allocation2 + $0x132] sm:$0xff]  ;;  %v2585_v4 = vpop.f32.mrf.mxu2 }
 0x328   :  { %3683 = vmatpush.bf16.msra.mxu3 %v16021_v29  ;;  %3734 = vmatpush.bf16.msrb.mxu0 %v16027_v45  ;;  %v1746_v56 = vpack.c.bf16 %v1674_v40, %v17851_v7  ;;  %v16025_v29 = vld [vmem:[#allocation3 + $0x508] sm:$0xff]  ;;  %v16034_v7 = vld [vmem:[#allocation3 + $0x550] sm:$0xff]  ;;  %v2677_v45 = vadd.f32 %v17919_v11, %v2628_v28  ;;  %v2581_v40 = vadd.f32 %v17924_v38, %v17878_v50 }
 0x329   :  { %2749 = vmatmul.bf16.gmra.mxu1 %v1728_v2  ;;  %v16010_v2 = vld [vmem:[#allocation3 + $0x490] sm:$0xff]  ;;  %v2584_v50 = vadd.f32 %v2583_v46, %v17881_v55  ;;  %v2871_v28 = vld [vmem:[#allocation2 + $0x2] sm:$0xff]  ;;  %v2688_v55 = vpop.f32.mrf.mxu0 }
 0x32a   :  { %3784 = vmatpush.bf16.msrb.mxu1 %v16034_v7  ;;  %v2630_v42 = vadd.f32 %v17927_v18, %v2581_v40  ;;  %v17966_v40 = vld [vmem:[#allocation2] sm:$0xff] }
 0x32b   :  { %v2633_v18 = vadd.f32 %v2632_v61, %v2584_v50 }
 0x32c   :  { %3684 = vmatpush.bf16.msra.mxu3 %v16020_v0  ;;  %3735 = vmatpush.bf16.msrb.mxu0 %v16026_v30 }
 0x32e   :  { %v17913_v6 = vpop.f32.mrf.mxu1 }
 0x330   :  { %3685 = vmatpush.bf16.msra.mxu3 %v16019_v51  ;;  %3736 = vmatpush.bf16.msrb.mxu0 %v16025_v29  ;;  %v16024_v51 = vld [vmem:[#allocation3 + $0x500] sm:$0xff] }
 0x334   :  { %3686 = vmatpush.bf16.msra.mxu3 %v16018_v21  ;;  %3737 = vmatpush.bf16.msrb.mxu0 %v16024_v51  ;;  %v17943_v21 = vld [vmem:[#allocation6 + $0x1] ss:$0 sm:$0xff] }
 0x336   :  { %v2559_v49 = vpop.f32.mrf.mxu1 }
 0x337   :  { %v17922_v3 = vadd.f32 %v2559_v49, %v17855_v36  ;;  %v16011_v36 = vld [vmem:[#allocation3 + $0x498] sm:$0xff]  ;;  %v2634_v49 = vpop.f32.mrf.mxu3 }
 0x338   :  { %3636 = vmatpush.bf16.msra.mxu2 %v16011_v36  ;;  %v16033_v36 = vld [vmem:[#allocation3 + $0x548] sm:$0xff] }
 0x339   :  { %2754 = vmatmul.bf16.gmra.mxu1 %v17753_v5  ;;  %v16017_v5 = vld [vmem:[#allocation3 + $0x4c8] sm:$0xff] }
 0x33a   :  { %3687 = vmatpush.bf16.msra.mxu3 %v16017_v5  ;;  %3785 = vmatpush.bf16.msrb.mxu1 %v16033_v36  ;;  %v16032_v5 = vld [vmem:[#allocation3 + $0x540] sm:$0xff] }
 0x33c   :  { %3637 = vmatpush.bf16.msra.mxu2 %v16010_v2 }
 0x33e   :  { %v17931_v52 = vpop.f32.mrf.mxu1  ;;  %3688 = vmatpush.bf16.msra.mxu3 %v16016_v27  ;;  %3786 = vmatpush.bf16.msrb.mxu1 %v16032_v5 }
 0x33f   :  { %v2637_v25 = vpop.f32.mrf.mxu3 }
 0x340   :  { %3638 = vmatpush.bf16.msra.mxu2 %v16009_v26  ;;  %v2679_v26 = vadd.f32 %v17929_v24, %v2630_v42  ;;  %v2682_v24 = vadd.f32 %v2681_v15, %v2633_v18 }
 0x346   :  { %v2564_v19 = vpop.f32.mrf.mxu1 }
 0x347   :  { %v17934_v44 = vadd.f32 %v2564_v19, %v17871_v48  ;;  %v16008_v48 = vld [vmem:[#allocation3 + $0x480] sm:$0xff]  ;;  %v2588_v19 = vpop.f32.mrf.mxu2  ;;  %v2639_v7 = vpop.f32.mrf.mxu3 }
 0x348   :  { %3639 = vmatpush.bf16.msra.mxu2 %v16008_v48 }
 0x349   :  { %2759 = vmatmul.bf16.gmra.mxu1 %v1746_v56  ;;  %v2855_v56 = vld [vmem:[#allocation2 + $0x1] sm:$0xff] }
 0x34e   :  { %v17937_v0 = vpop.f32.mrf.mxu1 }
 0x34f   :  { %v2590_v48 = vpop.f32.mrf.mxu2 }
 0x356   :  { %v2725_v39 = vpop.f32.mrf.mxu1 }
 0x357   :  { %v2726_v2 = vadd.f32 %v2725_v39, %v2677_v45  ;;  %v2586_v45 = vadd.f32 %v2585_v4, %v17884_v23  ;;  %v2593_v4 = vpop.f32.mrf.mxu2 }
 0x359   :  { %v2770_v30 = vmul.f32 %v17943_v21, %v2726_v2 }
 0x35b   :  { %v2791_v11 = vadd.f32 %v17947_v35, %v2770_v30  ;;  %v2635_v30 = vadd.f32 %v2634_v49, %v2586_v45 }
 0x35d   :  { %v17953_v29 = vmax.f32 %v2791_v11, 0.0 }
 0x35e   :  { %v2727_v27 = vpop.f32.mrf.mxu1 }
 0x35f   :  { %2823 = vst [vmem:[#allocation2 + $0x11] sm:$0xff] %v17953_v29  ;;  %v2728_v38 = vadd.f32 %v2727_v27, %v2679_v26  ;;  %v2984_v20 = vpack.c.bf16 %v17953_v29, %v2855_v56  ;;  %v2642_v56 = vpop.f32.mrf.mxu3  ;;  %v2684_v26 = vadd.f32 %v2683_v13, %v2635_v30 }
 0x361   :  { %v2771_v51 = vmul.f32 %v17943_v21, %v2728_v38  ;;  %3689 = vmatmul.bf16.vlgmr.msra.gmra.mxu3 %v2984_v20  ;;  %v2589_v20 = vadd.f32 %v2588_v19, %v17887_v31  ;;  %v2591_v19 = vadd.f32 %v2590_v48, %v17890_v53 }
 0x363   :  { %v2792_v57 = vadd.f32 %v17947_v35, %v2771_v51 }
 0x365   :  { %v17960_v36 = vmax.f32 %v2792_v57, 0.0  ;;  %v2691_v57 = vpop.f32.mrf.mxu0 }
 0x366   :  { %v2730_v46 = vpop.f32.mrf.mxu1  ;;  %v2840_v39 = vld [vmem:[#allocation2 + $0x10] sm:$0xff] }
 0x367   :  { %v17963_v5 = vld [vmem:[#allocation2 + $0x12] sm:$0xff]  ;;  %2824 = vst [vmem:[#allocation2 + $0x21] sm:$0xff] %v17960_v36  ;;  %v2731_v61 = vadd.f32 %v2730_v46, %v2682_v24  ;;  %v2983_v2 = vpack.c.bf16 %v2840_v39, %v17966_v40  ;;  %v2987_v15 = vpack.c.bf16 %v17960_v36, %v17953_v29  ;;  %v2595_v46 = vpop.f32.mrf.mxu2 }
 0x368   :  { %v2985_v42 = vpack.c.bf16 %v17963_v5, %v2871_v28  ;;  %v2638_v28 = vadd.f32 %v2637_v25, %v2589_v20 }
 0x369   :  { %v2772_v23 = vmul.f32 %v17943_v21, %v2731_v61  ;;  %3640 = vmatmul.bf16.vlgmr.msra.gmra.mxu2 %v2983_v2 }
 0x36a   :  { %3738 = vmatmul.bf16.vlgmr.msrb.gmra.mxu0 %v2985_v42  ;;  %v2687_v45 = vadd.f32 %v2686_v17, %v2638_v28  ;;  %v2594_v28 = vadd.f32 %v2593_v4, %v17893_v10 }
 0x36b   :  { %v2793_v11 = vadd.f32 %v17947_v35, %v2772_v23 }
 0x36d   :  { %v17974_v27 = vmax.f32 %v2793_v11, 0.0  ;;  %v2693_v48 = vpop.f32.mrf.mxu0 }
 0x36e   :  { %v2732_v50 = vpop.f32.mrf.mxu1  ;;  %v2888_v38 = vld [vmem:[#allocation2 + $0x20] sm:$0xff] }
 0x36f   :  { %2825 = vst [vmem:[#allocation2 + $0x31] sm:$0xff] %v17974_v27  ;;  %v2733_v18 = vadd.f32 %v2732_v50, %v2684_v26  ;;  %v2986_v51 = vpack.c.bf16 %v2888_v38, %v2840_v39  ;;  %v17980_v49 = vpack.c.bf16 %v17974_v27, %v17960_v36  ;;  %v2644_v39 = vpop.f32.mrf.mxu3  ;;  %v17988_v42 = vld [vmem:[#allocation2 + $0x22] sm:$0xff]  ;;  %v2640_v26 = vadd.f32 %v2639_v7, %v2591_v19 }
 0x371   :  { %v2773_v24 = vmul.f32 %v17943_v21, %v2733_v18  ;;  %3787 = vmatmul.bf16.vlgmr.msrb.gmra.mxu1 %v2986_v51  ;;  %3694 = vmatmul.bf16.gmra.mxu3 %v17980_v49  ;;  %v2689_v20 = vadd.f32 %v2688_v55, %v2640_v26  ;;  %v2596_v26 = vadd.f32 %v2595_v46, %v17897_v47 }
 0x372   :  { %v2405_v46 = vadd.f32 %v17815_v1, %v17817_v33 }
 0x373   :  { %v2794_v13 = vadd.f32 %v17947_v35, %v2773_v24  ;;  %v2598_v24 = vpop.f32.mrf.mxu2 }
 0x375   :  { %v17985_v31 = vmax.f32 %v2794_v13, 0.0 }
 0x376   :  { %v2735_v61 = vpop.f32.mrf.mxu1  ;;  %v2842_v2 = vld [vmem:[#allocation2 + $0x30] sm:$0xff] }
 0x377   :  { %v17990_v30 = vld [vmem:[#allocation2 + $0x32] sm:$0xff]  ;;  %2826 = vst [vmem:[#allocation2 + $0x41] sm:$0xff] %v17985_v31  ;;  %v2736_v25 = vadd.f32 %v2735_v61, %v2687_v45  ;;  %v17993_v23 = vpack.c.bf16 %v2842_v2, %v2888_v38  ;;  %v2647_v19 = vpop.f32.mrf.mxu3  ;;  %v2643_v61 = vadd.f32 %v2642_v56, %v2594_v28 }
 0x378   :  { %v2994_v17 = vpack.c.bf16 %v17990_v30, %v17988_v42 }
 0x379   :  { %v2774_v53 = vmul.f32 %v17943_v21, %v2736_v25  ;;  %3645 = vmatmul.bf16.gmra.mxu2 %v17993_v23  ;;  %v2692_v10 = vadd.f32 %v2691_v57, %v2643_v61 }
 0x37a   :  { %3743 = vmatmul.bf16.gmra.mxu0 %v2994_v17  ;;  %v2696_v17 = vpop.f32.mrf.mxu0 }
 0x37b   :  { %v2795_v50 = vadd.f32 %v17947_v35, %v2774_v53 }
 0x37d   :  { %v18002_v18 = vmax.f32 %v2795_v50, 0.0 }
 0x37e   :  { %v2737_v38 = vpop.f32.mrf.mxu1  ;;  %v2890_v51 = vld [vmem:[#allocation2 + $0x40] sm:$0xff] }
 0x37f   :  { %2827 = vst [vmem:[#allocation2 + $0x51] sm:$0xff] %v18002_v18  ;;  %v2738_v13 = vadd.f32 %v2737_v38, %v2689_v20  ;;  %v2995_v7 = vpack.c.bf16 %v2890_v51, %v2842_v2  ;;  %v18008_v45 = vpack.c.bf16 %v18002_v18, %v17985_v31  ;;  %v18016_v50 = vld [vmem:[#allocation2 + $0x42] sm:$0xff]  ;;  %v2649_v61 = vpop.f32.mrf.mxu3 }
 0x381   :  { %v2775_v25 = vmul.f32 %v17943_v21, %v2738_v13  ;;  %3792 = vmatmul.bf16.gmra.mxu1 %v2995_v7  ;;  %3699 = vmatmul.bf16.gmra.mxu3 %v18008_v45  ;;  %v2645_v13 = vadd.f32 %v2644_v39, %v2596_v26  ;;  %v2600_v7 = vpop.f32.mrf.mxu2  ;;  %v2599_v26 = vadd.f32 %v2598_v24, %v17900_v16 }
 0x383   :  { %v2796_v55 = vadd.f32 %v17947_v35, %v2775_v25  ;;  %v2454_v25 = vadd.f32 %v17824_v9, %v2405_v46 }
 0x385   :  { %v18013_v4 = vmax.f32 %v2796_v55, 0.0  ;;  %v2694_v55 = vadd.f32 %v2693_v48, %v2645_v13  ;;  %v2503_v33 = vadd.f32 %v17826_v43, %v2454_v25 }
 0x386   :  { %v2740_v2 = vpop.f32.mrf.mxu1  ;;  %v2844_v53 = vld [vmem:[#allocation2 + $0x50] sm:$0xff] }
 0x387   :  { %v18018_v20 = vld [vmem:[#allocation2 + $0x52] sm:$0xff]  ;;  %2828 = vst [vmem:[#allocation2 + $0x61] sm:$0xff] %v18013_v4  ;;  %v2741_v56 = vadd.f32 %v2740_v2, %v2692_v10  ;;  %v18021_v38 = vpack.c.bf16 %v2844_v53, %v2890_v51  ;;  %v2698_v2 = vpop.f32.mrf.mxu0  ;;  %v2552_v48 = vadd.f32 %v17902_v60, %v2503_v33  ;;  %v2652_v24 = vpop.f32.mrf.mxu3 }
 0x388   :  { %v3003_v28 = vpack.c.bf16 %v18018_v20, %v18016_v50 }
 0x389   :  { %v2776_v47 = vmul.f32 %v17943_v21, %v2741_v56  ;;  %3650 = vmatmul.bf16.gmra.mxu2 %v18021_v38  ;;  %v2603_v13 = vpop.f32.mrf.mxu2  ;;  %v2601_v46 = vadd.f32 %v2600_v7, %v2552_v48 }
 0x38a   :  { %3748 = vmatmul.bf16.gmra.mxu0 %v3003_v28 }
 0x38b   :  { %v2797_v51 = vadd.f32 %v17947_v35, %v2776_v47  ;;  %v2648_v47 = vadd.f32 %v2647_v19, %v2599_v26 }
 0x38d   :  { %v18033_v10 = vmax.f32 %v2797_v51, 0.0 }
 0x38e   :  { %v2742_v57 = vpop.f32.mrf.mxu1  ;;  %v2892_v39 = vld [vmem:[#allocation2 + $0x60] sm:$0xff] }
 0x38f   :  { %2829 = vst [vmem:[#allocation2 + $0x71] sm:$0xff] %v18033_v10  ;;  %v2743_v56 = vadd.f32 %v2742_v57, %v2694_v55  ;;  %v3004_v28 = vpack.c.bf16 %v2892_v39, %v2844_v53  ;;  %v18039_v1 = vpack.c.bf16 %v18033_v10, %v18013_v4  ;;  %v2697_v57 = vadd.f32 %v2696_v17, %v2648_v47  ;;  %v18048_v11 = vld [vmem:[#allocation2 + $0x62] sm:$0xff]  ;;  %v2701_v26 = vpop.f32.mrf.mxu0 }
 0x390   :  { %v2863_v47 = vld [vmem:[#allocation2 + $0xa1] sm:$0xff] }
 0x391   :  { %v2777_v9 = vmul.f32 %v17943_v21, %v2743_v56  ;;  %3797 = vmatmul.bf16.gmra.mxu1 %v3004_v28  ;;  %3704 = vmatmul.bf16.gmra.mxu3 %v18039_v1  ;;  %v2650_v56 = vadd.f32 %v2649_v61, %v2601_v46  ;;  %v2410_v28 = vadd.f32 %v17832_v58, %v17834_v37  ;;  %v2605_v48 = vpop.f32.mrf.mxu2 }
 0x392   :  { %v2604_v46 = vadd.f32 %v2603_v13, %v17909_v14  ;;  %v2879_v14 = vld [vmem:[#allocation2 + $0xa2] sm:$0xff] }
 0x393   :  { %v2798_v16 = vadd.f32 %v17947_v35, %v2777_v9  ;;  %v2699_v9 = vadd.f32 %v2698_v2, %v2650_v56 }
 0x395   :  { %v18046_v53 = vmax.f32 %v2798_v16, 0.0 }
 0x396   :  { %v2745_v51 = vpop.f32.mrf.mxu1  ;;  %v2846_v55 = vld [vmem:[#allocation2 + $0x70] sm:$0xff] }
 0x397   :  { %v18050_v43 = vld [vmem:[#allocation2 + $0x72] sm:$0xff]  ;;  %2830 = vst [vmem:[#allocation2 + $0x81] sm:$0xff] %v18046_v53  ;;  %v2746_v19 = vadd.f32 %v2745_v51, %v2697_v57  ;;  %v18053_v25 = vpack.c.bf16 %v2846_v55, %v2892_v39  ;;  %v3014_v17 = vpack.c.bf16 %v18046_v53, %v18033_v10  ;;  %v2459_v39 = vadd.f32 %v17841_v62, %v2410_v28  ;;  %v2654_v57 = vpop.f32.mrf.mxu3 }
 0x398   :  { %v3012_v60 = vpack.c.bf16 %v18050_v43, %v18048_v11 }
 0x399   :  { %v2778_v7 = vmul.f32 %v17943_v21, %v2746_v19  ;;  %3655 = vmatmul.bf16.gmra.mxu2 %v18053_v25  ;;  %v2508_v62 = vadd.f32 %v17843_v12, %v2459_v39  ;;  %v2608_v12 = vpop.f32.mrf.mxu2 }
 0x39a   :  { %3753 = vmatmul.bf16.gmra.mxu0 %v3012_v60  ;;  %v2653_v60 = vadd.f32 %v2652_v24, %v2604_v46 }
 0x39b   :  { %v2799_v33 = vadd.f32 %v17947_v35, %v2778_v7  ;;  %v2557_v56 = vadd.f32 %v17913_v6, %v2508_v62  ;;  %v2703_v7 = vpop.f32.mrf.mxu0 }
 0x39c   :  { %v2702_v13 = vadd.f32 %v2701_v26, %v2653_v60 }
 0x39d   :  { %v18065_v16 = vmax.f32 %v2799_v33, 0.0 }
 0x39e   :  { %v2747_v51 = vpop.f32.mrf.mxu1  ;;  %v18067_v61 = vld [vmem:[#allocation2 + $0x80] sm:$0xff] }
 0x39f   :  { %2831 = vst [vmem:[#allocation2 + $0xb1] sm:$0xff] %v18065_v16  ;;  %v2748_v19 = vadd.f32 %v2747_v51, %v2699_v9  ;;  %v3013_v58 = vpack.c.bf16 %v18067_v61, %v2846_v55  ;;  %v3020_v37 = vpack.c.bf16 %v18065_v16, %v2863_v47  ;;  %v2606_v9 = vadd.f32 %v2605_v48, %v2557_v56 }
 0x3a0   :  { %v2415_v48 = vadd.f32 %v17849_v22, %v17853_v59  ;;  %v16047_v59 = vld [vmem:[#allocation3 + $0x5b8] sm:$0xff] }
 0x3a1   :  { %v2779_v2 = vmul.f32 %v17943_v21, %v2748_v19  ;;  %3802 = vmatmul.bf16.gmra.mxu1 %v3013_v58  ;;  %3709 = vmatmul.bf16.gmra.mxu3 %v3020_v37  ;;  %v2657_v19 = vpop.f32.mrf.mxu3  ;;  %v2655_v26 = vadd.f32 %v2654_v57, %v2606_v9  ;;  %v16055_v37 = vld [vmem:[#allocation3 + $0x5f8] sm:$0xff]  ;;  %v16054_v57 = vld [vmem:[#allocation3 + $0x5f0] sm:$0xff]  ;;  %v2609_v9 = vadd.f32 %v2608_v12, %v17922_v3 }
 0x3a2   :  { %v2464_v60 = vadd.f32 %v17860_v34, %v2415_v48  ;;  %3877 = vmatpush.bf16.msrb.mxu3 %v16055_v37  ;;  %v16063_v34 = vld [vmem:[#allocation3 + $0x638] sm:$0xff]  ;;  %3828 = vmatpush.bf16.msrb.mxu2 %v16047_v59  ;;  %v16045_v59 = vld [vmem:[#allocation3 + $0x5a8] sm:$0xff] }
 0x3a3   :  { %v2800_v28 = vadd.f32 %v17947_v35, %v2779_v2  ;;  %v2706_v2 = vpop.f32.mrf.mxu0  ;;  %v2704_v56 = vadd.f32 %v2703_v7, %v2655_v26  ;;  %v2658_v7 = vadd.f32 %v2657_v19, %v2609_v9  ;;  %3926 = vmatpush.bf16.msra.mxu0 %v16063_v34  ;;  %v16071_v34 = vld [vmem:[#allocation3 + $0x678] sm:$0xff] }
 0x3a4   :  { %3975 = vmatpush.bf16.msra.mxu1 %v16071_v34  ;;  %v16069_v34 = vld [vmem:[#allocation3 + $0x668] sm:$0xff] }
 0x3a5   :  { %v18077_v33 = vmax.f32 %v2800_v28, 0.0  ;;  %v2707_v48 = vadd.f32 %v2706_v2, %v2658_v7  ;;  %v16062_v2 = vld [vmem:[#allocation3 + $0x630] sm:$0xff] }
 0x3a6   :  { %v2750_v55 = vpop.f32.mrf.mxu1  ;;  %v2848_v51 = vld [vmem:[#allocation2 + $0xb0] sm:$0xff]  ;;  %3878 = vmatpush.bf16.msrb.mxu3 %v16054_v57 }
 0x3a7   :  { %v18079_v47 = vld [vmem:[#allocation2 + $0xb2] sm:$0xff]  ;;  %2832 = vst [vmem:[#allocation2 + $0xc1] sm:$0xff] %v18077_v33  ;;  %v2751_v24 = vadd.f32 %v2750_v55, %v2702_v13  ;;  %v3019_v39 = vpack.c.bf16 %v2848_v51, %v17966_v40  ;;  %v3023_v46 = vpack.c.bf16 %v18077_v33, %v18065_v16  ;;  %3927 = vmatpush.bf16.msra.mxu0 %v16062_v2  ;;  %v16060_v2 = vld [vmem:[#allocation3 + $0x620] sm:$0xff] }
 0x3a8   :  { %v3021_v6 = vpack.c.bf16 %v18079_v47, %v2879_v14  ;;  %v16046_v57 = vld [vmem:[#allocation3 + $0x5b0] sm:$0xff] }
 0x3a9   :  { %v2780_v58 = vmul.f32 %v17943_v21, %v2751_v24  ;;  %3660 = vmatmul.bf16.gmra.mxu2 %v3019_v39  ;;  %v2513_v39 = vadd.f32 %v17862_v63, %v2464_v60  ;;  %v2659_v12 = vpop.f32.mrf.mxu3  ;;  %v16078_v16 = vld [vmem:[#allocation3 + $0x6b0] sm:$0xff] }
 0x3aa   :  { %3758 = vmatmul.bf16.gmra.mxu0 %v3021_v6  ;;  %v2610_v6 = vpop.f32.mrf.mxu2  ;;  %3829 = vmatpush.bf16.msrb.mxu2 %v16046_v57 }
 0x3ab   :  { %v2801_v62 = vadd.f32 %v17947_v35, %v2780_v58  ;;  %v2562_v3 = vadd.f32 %v17931_v52, %v2513_v39  ;;  %v16052_v39 = vld [vmem:[#allocation3 + $0x5e0] sm:$0xff] }
 0x3ad   :  { %v18091_v28 = vmax.f32 %v2801_v62, 0.0  ;;  %v2611_v19 = vadd.f32 %v2610_v6, %v2562_v3  ;;  %v2708_v62 = vpop.f32.mrf.mxu0  ;;  %v16070_v3 = vld [vmem:[#allocation3 + $0x670] sm:$0xff] }
 0x3ae   :  { %v2752_v14 = vpop.f32.mrf.mxu1  ;;  %v2896_v13 = vld [vmem:[#allocation2 + $0xc0] sm:$0xff]  ;;  %3830 = vmatpush.bf16.msrb.mxu2 %v16045_v59  ;;  %3976 = vmatpush.bf16.msra.mxu1 %v16070_v3 }
 0x3af   :  { %2833 = vst [vmem:[#allocation2 + $0xd1] sm:$0xff] %v18091_v28  ;;  %v2753_v55 = vadd.f32 %v2752_v14, %v2704_v56  ;;  %v3022_v24 = vpack.c.bf16 %v2896_v13, %v2848_v51  ;;  %v18097_v22 = vpack.c.bf16 %v18091_v28, %v18077_v33  ;;  %v16053_v51 = vld [vmem:[#allocation3 + $0x5e8] sm:$0xff]  ;;  %v2660_v7 = vadd.f32 %v2659_v12, %v2611_v19  ;;  %v16044_v19 = vld [vmem:[#allocation3 + $0x5a0] sm:$0xff] }
 0x3b0   :  { %3879 = vmatpush.bf16.msrb.mxu3 %v16053_v51  ;;  %v18106_v63 = vld [vmem:[#allocation2 + $0xc2] sm:$0xff] }
 0x3b1   :  { %v2781_v26 = vmul.f32 %v17943_v21, %v2753_v55  ;;  %3807 = vmatmul.bf16.gmra.mxu1 %v3022_v24  ;;  %3714 = vmatmul.bf16.gmra.mxu3 %v18097_v22  ;;  %v2662_v12 = vpop.f32.mrf.mxu3  ;;  %v2709_v57 = vadd.f32 %v2708_v62, %v2660_v7  ;;  %v16050_v62 = vld [vmem:[#allocation3 + $0x5d0] sm:$0xff]  ;;  %v16077_v33 = vld [vmem:[#allocation3 + $0x6a8] sm:$0xff] }
 0x3b2   :  { %v2613_v51 = vpop.f32.mrf.mxu2  ;;  %3831 = vmatpush.bf16.msrb.mxu2 %v16044_v19  ;;  %3977 = vmatpush.bf16.msra.mxu1 %v16069_v34  ;;  %v16067_v34 = vld [vmem:[#allocation3 + $0x658] sm:$0xff] }
 0x3b3   :  { %v2802_v58 = vadd.f32 %v17947_v35, %v2781_v26  ;;  %v16061_v26 = vld [vmem:[#allocation3 + $0x628] sm:$0xff] }
 0x3b4   :  { %3880 = vmatpush.bf16.msrb.mxu3 %v16052_v39  ;;  %3928 = vmatpush.bf16.msra.mxu0 %v16061_v26 }
 0x3b5   :  { %v18104_v37 = vmax.f32 %v2802_v58, 0.0  ;;  %v2711_v7 = vpop.f32.mrf.mxu0 }
 0x3b6   :  { %v2755_v60 = vpop.f32.mrf.mxu1  ;;  %v2850_v56 = vld [vmem:[#allocation2 + $0xd0] sm:$0xff] }
 0x3b7   :  { %v18108_v14 = vld [vmem:[#allocation2 + $0xd2] sm:$0xff]  ;;  %2834 = vst [vmem:[#allocation2 + $0xe1] sm:$0xff] %v18104_v37  ;;  %v2756_v52 = vadd.f32 %v2755_v60, %v2707_v48  ;;  %v18111_v9 = vpack.c.bf16 %v2850_v56, %v2896_v13  ;;  %v3032_v24 = vpack.c.bf16 %v18104_v37, %v18091_v28  ;;  %v2420_v13 = vadd.f32 %v17904_v8, %v17869_v41 }
 0x3b8   :  { %v3030_v55 = vpack.c.bf16 %v18108_v14, %v18106_v63  ;;  %v16051_v48 = vld [vmem:[#allocation3 + $0x5d8] sm:$0xff]  ;;  %3929 = vmatpush.bf16.msra.mxu0 %v16060_v2  ;;  %v16074_v28 = vld [vmem:[#allocation3 + $0x690] sm:$0xff] }
 0x3b9   :  { %v2782_v6 = vmul.f32 %v17943_v21, %v2756_v52  ;;  %3665 = vmatmul.bf16.gmra.mxu2 %v18111_v9  ;;  %v2469_v60 = vadd.f32 %v17906_v32, %v2420_v13  ;;  %3881 = vmatpush.bf16.msrb.mxu3 %v16051_v48  ;;  %v16049_v48 = vld [vmem:[#allocation3 + $0x5c8] sm:$0xff] }
 0x3ba   :  { %3763 = vmatmul.bf16.gmra.mxu0 %v3030_v55  ;;  %v2614_v55 = vadd.f32 %v2613_v51, %v17934_v44  ;;  %v16043_v44 = vld [vmem:[#allocation3 + $0x598] sm:$0xff]  ;;  %v16068_v51 = vld [vmem:[#allocation3 + $0x660] sm:$0xff]  ;;  %v2615_v19 = vpop.f32.mrf.mxu2 }
 0x3bb   :  { %v2803_v58 = vadd.f32 %v17947_v35, %v2782_v6  ;;  %v2518_v59 = vadd.f32 %v17911_v54, %v2469_v60  ;;  %3832 = vmatpush.bf16.msrb.mxu2 %v16043_v44  ;;  %v16042_v54 = vld [vmem:[#allocation3 + $0x590] sm:$0xff]  ;;  %3978 = vmatpush.bf16.msra.mxu1 %v16068_v51  ;;  %v16048_v44 = vld [vmem:[#allocation3 + $0x5c0] sm:$0xff] }
 0x3bc   :  { %v2663_v13 = vadd.f32 %v2662_v12, %v2614_v55  ;;  %v16058_v55 = vld [vmem:[#allocation3 + $0x610] sm:$0xff] }
 0x3bd   :  { %v18123_v52 = vmax.f32 %v2803_v58, 0.0  ;;  %v2567_v3 = vadd.f32 %v17937_v0, %v2518_v59  ;;  %3882 = vmatpush.bf16.msrb.mxu3 %v16050_v62  ;;  %v2713_v51 = vpop.f32.mrf.mxu0 }
 0x3be   :  { %v2757_v41 = vpop.f32.mrf.mxu1  ;;  %v2898_v8 = vld [vmem:[#allocation2 + $0xe0] sm:$0xff]  ;;  %v2712_v60 = vadd.f32 %v2711_v7, %v2663_v13  ;;  %v16041_v13 = vld [vmem:[#allocation3 + $0x588] sm:$0xff] }
 0x3bf   :  { %2835 = vst [vmem:[#allocation2 + $0xf1] sm:$0xff] %v18123_v52  ;;  %v2758_v39 = vadd.f32 %v2757_v41, %v2709_v57  ;;  %v3031_v6 = vpack.c.bf16 %v2898_v8, %v2850_v56  ;;  %v18129_v32 = vpack.c.bf16 %v18123_v52, %v18104_v37  ;;  %v16059_v56 = vld [vmem:[#allocation3 + $0x618] sm:$0xff]  ;;  %v18138_v57 = vld [vmem:[#allocation2 + $0xe2] sm:$0xff]  ;;  %v2616_v41 = vadd.f32 %v2615_v19, %v2567_v3 }
 0x3c0   :  { %3930 = vmatpush.bf16.msra.mxu0 %v16059_v56  ;;  %3833 = vmatpush.bf16.msrb.mxu2 %v16042_v54  ;;  %v16073_v37 = vld [vmem:[#allocation3 + $0x688] sm:$0xff] }
 0x3c1   :  { %v2783_v26 = vmul.f32 %v17943_v21, %v2758_v39  ;;  %3812 = vmatmul.bf16.gmra.mxu1 %v3031_v6  ;;  %3719 = vmatmul.bf16.gmra.mxu3 %v18129_v32  ;;  %v2664_v39 = vpop.f32.mrf.mxu3 }
 0x3c2   :  { %3883 = vmatpush.bf16.msrb.mxu3 %v16049_v48  ;;  %v2665_v3 = vadd.f32 %v2664_v39, %v2616_v41  ;;  %3979 = vmatpush.bf16.msra.mxu1 %v16067_v34  ;;  %v16040_v48 = vld [vmem:[#allocation3 + $0x580] sm:$0xff] }
 0x3c3   :  { %v2804_v58 = vadd.f32 %v17947_v35, %v2783_v26  ;;  %v16056_v39 = vld [vmem:[#allocation3 + $0x600] sm:$0xff] }
 0x3c4   :  { %3931 = vmatpush.bf16.msra.mxu0 %v16058_v55  ;;  %3834 = vmatpush.bf16.msrb.mxu2 %v16041_v13  ;;  %v2714_v54 = vadd.f32 %v2713_v51, %v2665_v3  ;;  %v16064_v13 = vld [vmem:[#allocation3 + $0x640] sm:$0xff] }
 0x3c5   :  { %v18136_v12 = vmax.f32 %v2804_v58, 0.0  ;;  %v16066_v58 = vld [vmem:[#allocation3 + $0x650] sm:$0xff] }
 0x3c6   :  { %v2760_v0 = vpop.f32.mrf.mxu1  ;;  %v2852_v2 = vld [vmem:[#allocation2 + $0xf0] sm:$0xff]  ;;  %3884 = vmatpush.bf16.msrb.mxu3 %v16048_v44  ;;  %3980 = vmatpush.bf16.msra.mxu1 %v16066_v58 }
 0x3c7   :  { %v18140_v6 = vld [vmem:[#allocation2 + $0xf2] sm:$0xff]  ;;  %2836 = vst [vmem:[#allocation2 + $0x101] sm:$0xff] %v18136_v12  ;;  %v2761_v62 = vadd.f32 %v2760_v0, %v2712_v60  ;;  %v18143_v59 = vpack.c.bf16 %v2852_v2, %v2898_v8  ;;  %v3041_v26 = vpack.c.bf16 %v18136_v12, %v18123_v52  ;;  %v16057_v8 = vld [vmem:[#allocation3 + $0x608] sm:$0xff] }
 0x3c8   :  { %v3039_v7 = vpack.c.bf16 %v18140_v6, %v18138_v57  ;;  %3932 = vmatpush.bf16.msra.mxu0 %v16057_v8  ;;  %3835 = vmatpush.bf16.msrb.mxu2 %v16040_v48 }
 0x3c9   :  { %v2784_v56 = vmul.f32 %v17943_v21, %v2761_v62  ;;  %3670 = vmatmul.bf16.gmra.mxu2 %v18143_v59  ;;  %v16065_v62 = vld [vmem:[#allocation3 + $0x648] sm:$0xff] }
 0x3ca   :  { %3768 = vmatmul.bf16.gmra.mxu0 %v3039_v7  ;;  %3981 = vmatpush.bf16.msra.mxu1 %v16065_v62 }
 0x3cb   :  { %v2805_v60 = vadd.f32 %v17947_v35, %v2784_v56 }
 0x3cc   :  { %3933 = vmatpush.bf16.msra.mxu0 %v16056_v39 }
 0x3cd   :  { %v18152_v19 = vmax.f32 %v2805_v60, 0.0 }
 0x3ce   :  { %v2762_v0 = vpop.f32.mrf.mxu1  ;;  %v2900_v41 = vld [vmem:[#allocation2 + $0x100] sm:$0xff]  ;;  %3982 = vmatpush.bf16.msra.mxu1 %v16064_v13 }
 0x3cf   :  { %2837 = vst [vmem:[#allocation2 + $0x111] sm:$0xff] %v18152_v19  ;;  %v2763_v55 = vadd.f32 %v2762_v0, %v2714_v54  ;;  %v3040_v7 = vpack.c.bf16 %v2900_v41, %v2852_v2  ;;  %v18157_v34 = vpack.c.bf16 %v18152_v19, %v18136_v12  ;;  %v18164_v8 = vld [vmem:[#allocation2 + $0x102] sm:$0xff]  ;;  %v2988_v54 = vpack.c.bf16 %v17988_v42, %v17963_v5 }
 0x3d1   :  { %v2785_v44 = vmul.f32 %v17943_v21, %v2763_v55  ;;  %3817 = vmatmul.bf16.gmra.mxu1 %v3040_v7  ;;  %3724 = vmatmul.bf16.gmra.mxu3 %v18157_v34 }
 0x3d3   :  { %v2806_v3 = vadd.f32 %v17947_v35, %v2785_v44 }
 0x3d5   :  { %v18162_v56 = vmax.f32 %v2806_v3, 0.0  ;;  %v2997_v3 = vpack.c.bf16 %v18016_v50, %v17990_v30 }
 0x3d6   :  { %v2854_v51 = vld [vmem:[#allocation2 + $0x110] sm:$0xff] }
 0x3d7   :  { %v18166_v2 = vld [vmem:[#allocation2 + $0x112] sm:$0xff]  ;;  %2838 = vst [vmem:[#allocation2 + $0x121] sm:$0xff] %v18162_v56  ;;  %v18169_v58 = vpack.c.bf16 %v2854_v51, %v2900_v41  ;;  %v3050_v60 = vpack.c.bf16 %v18162_v56, %v18152_v19 }
 0x3d8   :  { %v18173_v21 = vpack.c.bf16 %v18166_v2, %v18164_v8 }
 0x3d9   :  { %3675 = vmatmul.bf16.gmra.mxu2 %v18169_v58 }
 0x3da   :  { %3773 = vmatmul.bf16.gmra.mxu0 %v18173_v21 }
 0x3de   :  { %v18179_v35 = vld [vmem:[#allocation2 + $0x120] sm:$0xff] }
 0x3df   :  { %v3049_v48 = vpack.c.bf16 %v18179_v35, %v2854_v51 }
 0x3e1   :  { %3822 = vmatmul.bf16.gmra.mxu1 %v3049_v48  ;;  %3885 = vmatmul.bf16.vlgmr.msrb.gmra.mxu3 %v2988_v54  ;;  %v19425_v54 = vpack.c.bf16 %v17985_v31, %v17974_v27 }
 0x3e4   :  { %v3690_v0 = vpop.f32.mrf.mxu3 }
 0x3e7   :  { %v3739_v41 = vpop.f32.mrf.mxu0 }
 0x3e9   :  { %3836 = vmatmul.bf16.vlgmr.msrb.gmra.mxu2 %v2987_v15 }
 0x3ea   :  { %3934 = vmatmul.bf16.vlgmr.msra.gmra.mxu0 %v17993_v23 }
 0x3ec   :  { %v3641_v39 = vpop.f32.mrf.mxu2  ;;  %v3692_v62 = vpop.f32.mrf.mxu3 }
 0x3ed   :  { %v3691_v55 = vadd.f32 %v3690_v0, %v3641_v39 }
 0x3ee   :  { %v3788_v44 = vpop.f32.mrf.mxu1 }
 0x3ef   :  { %v3741_v7 = vpop.f32.mrf.mxu0  ;;  %v3740_v13 = vadd.f32 %v3739_v41, %v3691_v55 }
 0x3f1   :  { %v18190_v5 = vadd.f32 %v3788_v44, %v3740_v13  ;;  %3983 = vmatmul.bf16.vlgmr.msra.gmra.mxu1 %v17980_v49  ;;  %3890 = vmatmul.bf16.gmra.mxu3 %v2997_v3 }
 0x3f4   :  { %v3643_v42 = vpop.f32.mrf.mxu2  ;;  %v3695_v51 = vpop.f32.mrf.mxu3 }
 0x3f5   :  { %v3693_v29 = vadd.f32 %v3692_v62, %v3643_v42  ;;  %v3006_v62 = vpack.c.bf16 %v18048_v11, %v18018_v20  ;;  %v19426_v42 = vpack.c.bf16 %v18013_v4, %v18002_v18 }
 0x3f6   :  { %v3790_v15 = vpop.f32.mrf.mxu1 }
 0x3f7   :  { %v3744_v36 = vpop.f32.mrf.mxu0  ;;  %v3742_v23 = vadd.f32 %v3741_v7, %v3693_v29 }
 0x3f9   :  { %v18193_v48 = vadd.f32 %v3790_v15, %v3742_v23  ;;  %3841 = vmatmul.bf16.gmra.mxu2 %v19425_v54 }
 0x3fa   :  { %3939 = vmatmul.bf16.gmra.mxu0 %v18021_v38 }
 0x3fc   :  { %v3646_v30 = vpop.f32.mrf.mxu2  ;;  %v3697_v50 = vpop.f32.mrf.mxu3 }
 0x3fd   :  { %v3696_v0 = vadd.f32 %v3695_v51, %v3646_v30  ;;  %v18210_v51 = vld [vmem:[#allocation2 + $0x82] sm:$0xff] }
 0x3fe   :  { %v3793_v49 = vpop.f32.mrf.mxu1  ;;  %v3015_v23 = vpack.c.bf16 %v18210_v51, %v18050_v43 }
 0x3ff   :  { %v3746_v41 = vpop.f32.mrf.mxu0  ;;  %v3745_v39 = vadd.f32 %v3744_v36, %v3696_v0 }
 0x401   :  { %v18201_v55 = vadd.f32 %v3793_v49, %v3745_v39  ;;  %3988 = vmatmul.bf16.gmra.mxu1 %v18008_v45  ;;  %3895 = vmatmul.bf16.gmra.mxu3 %v3006_v62  ;;  %v2958_v39 = vld [vmem:[#allocation2 + $0x91] sm:$0xff] }
 0x404   :  { %v3648_v7 = vpop.f32.mrf.mxu2  ;;  %v3700_v44 = vpop.f32.mrf.mxu3 }
 0x405   :  { %v3698_v27 = vadd.f32 %v3697_v50, %v3648_v7 }
 0x406   :  { %v3795_v13 = vpop.f32.mrf.mxu1 }
 0x407   :  { %v3749_v31 = vpop.f32.mrf.mxu0  ;;  %v3747_v38 = vadd.f32 %v3746_v41, %v3698_v27  ;;  %v3016_v41 = vpack.c.bf16 %v17966_v40, %v18067_v61 }
 0x409   :  { %v18204_v3 = vadd.f32 %v3795_v13, %v3747_v38  ;;  %3846 = vmatmul.bf16.gmra.mxu2 %v19426_v42  ;;  %v3024_v13 = vpack.c.bf16 %v18106_v63, %v18079_v47 }
 0x40a   :  { %3944 = vmatmul.bf16.gmra.mxu0 %v18053_v25 }
 0x40c   :  { %v3651_v11 = vpop.f32.mrf.mxu2  ;;  %v3702_v20 = vpop.f32.mrf.mxu3 }
 0x40d   :  { %v3701_v45 = vadd.f32 %v3700_v44, %v3651_v11 }
 0x40e   :  { %v3798_v36 = vpop.f32.mrf.mxu1 }
 0x40f   :  { %v3751_v29 = vpop.f32.mrf.mxu0  ;;  %v3750_v15 = vadd.f32 %v3749_v31, %v3701_v45  ;;  %v3017_v31 = vpack.c.bf16 %v2958_v39, %v18046_v53  ;;  %v16079_v53 = vld [vmem:[#allocation3 + $0x6b8] sm:$0xff]  ;;  %v3042_v39 = vpack.c.bf16 %v18164_v8, %v18140_v6  ;;  %v16072_v6 = vld [vmem:[#allocation3 + $0x680] sm:$0xff] }
 0x410   :  { %4024 = vmatpush.bf16.msra.mxu2 %v16079_v53 }
 0x411   :  { %v18214_v54 = vadd.f32 %v3798_v36, %v3750_v15  ;;  %3993 = vmatmul.bf16.gmra.mxu1 %v18039_v1  ;;  %3900 = vmatmul.bf16.gmra.mxu3 %v3015_v23 }
 0x414   :  { %v3653_v18 = vpop.f32.mrf.mxu2  ;;  %v3705_v4 = vpop.f32.mrf.mxu3  ;;  %4025 = vmatpush.bf16.msra.mxu2 %v16078_v16 }
 0x415   :  { %v3703_v30 = vadd.f32 %v3702_v20, %v3653_v18  ;;  %v3033_v18 = vpack.c.bf16 %v18138_v57, %v18108_v14  ;;  %v16076_v14 = vld [vmem:[#allocation3 + $0x6a0] sm:$0xff] }
 0x416   :  { %v3800_v50 = vpop.f32.mrf.mxu1 }
 0x417   :  { %v3754_v25 = vpop.f32.mrf.mxu0  ;;  %v3752_v0 = vadd.f32 %v3751_v29, %v3703_v30 }
 0x418   :  { %4026 = vmatpush.bf16.msra.mxu2 %v16077_v33  ;;  %v2970_v33 = vld [vmem:[#allocation2 + $0x52] sm:$0xff] }
 0x419   :  { %v18219_v49 = vadd.f32 %v3800_v50, %v3752_v0  ;;  %3851 = vmatmul.bf16.gmra.mxu2 %v3014_v17 }
 0x41a   :  { %3949 = vmatmul.bf16.gmra.mxu0 %v3016_v41 }
 0x41c   :  { %v3656_v43 = vpop.f32.mrf.mxu2  ;;  %v3707_v1 = vpop.f32.mrf.mxu3  ;;  %4027 = vmatpush.bf16.msra.mxu2 %v16076_v14 }
 0x41d   :  { %v3706_v62 = vadd.f32 %v3705_v4, %v3656_v43 }
 0x41e   :  { %v3803_v44 = vpop.f32.mrf.mxu1 }
 0x41f   :  { %v3756_v7 = vpop.f32.mrf.mxu0  ;;  %v3755_v27 = vadd.f32 %v3754_v25, %v3706_v62 }
 0x421   :  { %v18227_v61 = vadd.f32 %v3803_v44, %v3755_v27  ;;  %3998 = vmatmul.bf16.gmra.mxu1 %v3017_v31  ;;  %3905 = vmatmul.bf16.gmra.mxu3 %v3024_v13  ;;  %v18269_v44 = vld [vmem:[#allocation2 + $0x122] sm:$0xff] }
 0x424   :  { %v3658_v38 = vpop.f32.mrf.mxu2  ;;  %v3710_v10 = vpop.f32.mrf.mxu3 }
 0x425   :  { %v3708_v17 = vadd.f32 %v3707_v1, %v3658_v38  ;;  %v3051_v38 = vpack.c.bf16 %v18269_v44, %v18166_v2 }
 0x426   :  { %v3805_v11 = vpop.f32.mrf.mxu1 }
 0x427   :  { %v3759_v42 = vpop.f32.mrf.mxu0  ;;  %v3757_v20 = vadd.f32 %v3756_v7, %v3708_v17  ;;  %v3052_v17 = vpack.c.bf16 %v17966_v40, %v18179_v35  ;;  %v2968_v40 = vld [vmem:[#allocation2 + $0x32] sm:$0xff]  ;;  %v2967_v35 = vld [vmem:[#allocation2 + $0x22] sm:$0xff] }
 0x429   :  { %v18229_v45 = vadd.f32 %v3805_v11, %v3757_v20  ;;  %3856 = vmatmul.bf16.gmra.mxu2 %v3023_v46 }
 0x42a   :  { %3954 = vmatmul.bf16.gmra.mxu0 %v18111_v9 }
 0x42c   :  { %v3661_v47 = vpop.f32.mrf.mxu2  ;;  %v18235_v63 = vpop.f32.mrf.mxu3 }
 0x42d   :  { %v3711_v29 = vadd.f32 %v3710_v10, %v3661_v47 }
 0x42e   :  { %v3808_v15 = vpop.f32.mrf.mxu1 }
 0x42f   :  { %v18237_v36 = vpop.f32.mrf.mxu0  ;;  %v3760_v23 = vadd.f32 %v3759_v42, %v3711_v29 }
 0x431   :  { %v18241_v4 = vadd.f32 %v3808_v15, %v3760_v23  ;;  %4003 = vmatmul.bf16.gmra.mxu1 %v18097_v22  ;;  %3910 = vmatmul.bf16.gmra.mxu3 %v3033_v18  ;;  %v16075_v22 = vld [vmem:[#allocation3 + $0x698] sm:$0xff]  ;;  %v2991_v18 = vpack.c.bf16 %v2968_v40, %v2967_v35  ;;  %v16094_v40 = vld [vmem:[#allocation3 + $0x730] sm:$0xff] }
 0x432   :  { %4028 = vmatpush.bf16.msra.mxu2 %v16075_v22  ;;  %v16086_v35 = vld [vmem:[#allocation3 + $0x6f0] sm:$0xff] }
 0x434   :  { %v18244_v46 = vpop.f32.mrf.mxu2  ;;  %v3715_v9 = vpop.f32.mrf.mxu3 }
 0x436   :  { %v18246_v25 = vpop.f32.mrf.mxu1  ;;  %4029 = vmatpush.bf16.msra.mxu2 %v16074_v28 }
 0x437   :  { %v3764_v30 = vpop.f32.mrf.mxu0 }
 0x439   :  { %3861 = vmatmul.bf16.gmra.mxu2 %v3032_v24 }
 0x43a   :  { %3959 = vmatmul.bf16.gmra.mxu0 %v18143_v59  ;;  %4030 = vmatpush.bf16.msra.mxu2 %v16073_v37  ;;  %v2974_v37 = vld [vmem:[#allocation2 + $0x92] sm:$0xff] }
 0x43c   :  { %v3666_v57 = vpop.f32.mrf.mxu2  ;;  %v18252_v41 = vpop.f32.mrf.mxu3 }
 0x43d   :  { %v3716_v50 = vadd.f32 %v3715_v9, %v3666_v57 }
 0x43e   :  { %v3813_v0 = vpop.f32.mrf.mxu1  ;;  %4031 = vmatpush.bf16.msra.mxu2 %v16072_v6 }
 0x43f   :  { %v3765_v43 = vadd.f32 %v3764_v30, %v3716_v50  ;;  %v18256_v1 = vpop.f32.mrf.mxu0  ;;  %v2972_v50 = vld [vmem:[#allocation2 + $0x72] sm:$0xff] }
 0x441   :  { %v18258_v62 = vadd.f32 %v3813_v0, %v3765_v43  ;;  %4008 = vmatmul.bf16.gmra.mxu1 %v18129_v32  ;;  %3915 = vmatmul.bf16.gmra.mxu3 %v3042_v39  ;;  %v2971_v43 = vld [vmem:[#allocation2 + $0x62] sm:$0xff] }
 0x444   :  { %v18261_v24 = vpop.f32.mrf.mxu2  ;;  %v3720_v7 = vpop.f32.mrf.mxu3 }
 0x446   :  { %v18263_v59 = vpop.f32.mrf.mxu1 }
 0x447   :  { %v3769_v8 = vpop.f32.mrf.mxu0 }
 0x449   :  { %3866 = vmatmul.bf16.gmra.mxu2 %v3041_v26 }
 0x44a   :  { %3964 = vmatmul.bf16.gmra.mxu0 %v18169_v58 }
 0x44c   :  { %v3671_v32 = vpop.f32.mrf.mxu2  ;;  %v18276_v52 = vpop.f32.mrf.mxu3 }
 0x44d   :  { %v3721_v27 = vadd.f32 %v3720_v7, %v3671_v32  ;;  %v2976_v32 = vld [vmem:[#allocation2 + $0xd2] sm:$0xff] }
 0x44e   :  { %v3818_v31 = vpop.f32.mrf.mxu1 }
 0x44f   :  { %v3770_v13 = vadd.f32 %v3769_v8, %v3721_v27  ;;  %v18278_v12 = vpop.f32.mrf.mxu0 }
 0x451   :  { %v18273_v10 = vadd.f32 %v3818_v31, %v3770_v13  ;;  %4013 = vmatmul.bf16.gmra.mxu1 %v18157_v34  ;;  %3920 = vmatmul.bf16.gmra.mxu3 %v3051_v38  ;;  %v2966_v34 = vld [vmem:[#allocation2 + $0x131] sm:$0xff]  ;;  %v2975_v31 = vld [vmem:[#allocation2 + $0xc2] sm:$0xff] }
 0x452   :  { %v3053_v47 = vpack.c.bf16 %v2966_v34, %v18162_v56  ;;  %v2969_v56 = vld [vmem:[#allocation2 + $0x42] sm:$0xff] }
 0x453   :  { %v3000_v30 = vpack.c.bf16 %v2970_v33, %v2969_v56  ;;  %v16101_v33 = vld [vmem:[#allocation3 + $0x768] sm:$0xff]  ;;  %v16111_v56 = vld [vmem:[#allocation3 + $0x7b8] sm:$0xff] }
 0x454   :  { %v18280_v26 = vpop.f32.mrf.mxu2  ;;  %v3725_v42 = vpop.f32.mrf.mxu3  ;;  %5087 = vmatpush.bf16.msrb.mxu2 %v16111_v56 }
 0x456   :  { %v18282_v58 = vpop.f32.mrf.mxu1 }
 0x457   :  { %v3774_v20 = vpop.f32.mrf.mxu0 }
 0x459   :  { %3871 = vmatmul.bf16.gmra.mxu2 %v3050_v60 }
 0x45a   :  { %3969 = vmatmul.bf16.gmra.mxu0 %v3052_v17  ;;  %v2977_v17 = vld [vmem:[#allocation2 + $0xe2] sm:$0xff] }
 0x45c   :  { %v3676_v2 = vpop.f32.mrf.mxu2 }
 0x45d   :  { %v3726_v11 = vadd.f32 %v3725_v42, %v3676_v2 }
 0x45e   :  { %v3823_v29 = vpop.f32.mrf.mxu1 }
 0x45f   :  { %v3775_v53 = vadd.f32 %v3774_v20, %v3726_v11  ;;  %v16095_v11 = vld [vmem:[#allocation3 + $0x738] sm:$0xff] }
 0x460   :  { %4989 = vmatpush.bf16.msrb.mxu0 %v16095_v11  ;;  %v16082_v11 = vld [vmem:[#allocation3 + $0x6d0] sm:$0xff] }
 0x461   :  { %v18290_v15 = vadd.f32 %v3823_v29, %v3775_v53  ;;  %4018 = vmatmul.bf16.gmra.mxu1 %v3053_v47  ;;  %v16103_v53 = vld [vmem:[#allocation3 + $0x778] sm:$0xff] }
 0x462   :  { %5038 = vmatpush.bf16.msrb.mxu1 %v16103_v53  ;;  %v16108_v53 = vld [vmem:[#allocation3 + $0x7a0] sm:$0xff] }
 0x464   :  { %v18292_v23 = vpop.f32.mrf.mxu2  ;;  %4990 = vmatpush.bf16.msrb.mxu0 %v16094_v40 }
 0x466   :  { %v18331_v20 = vpop.f32.mrf.mxu1 }
 0x469   :  { %4032 = vmatmul.bf16.vlgmr.msra.gmra.mxu2 %v2991_v18  ;;  %v16102_v18 = vld [vmem:[#allocation3 + $0x770] sm:$0xff] }
 0x46a   :  { %5039 = vmatpush.bf16.msrb.mxu1 %v16102_v18  ;;  %v16088_v18 = vld [vmem:[#allocation3 + $0x700] sm:$0xff] }
 0x46c   :  { %v3837_v19 = vpop.f32.mrf.mxu2 }
 0x46d   :  { %v18295_v60 = vadd.f32 %v3837_v19, %v18190_v5  ;;  %v3009_v5 = vpack.c.bf16 %v2972_v50, %v2971_v43  ;;  %v16093_v19 = vld [vmem:[#allocation3 + $0x728] sm:$0xff] }
 0x46e   :  { %4991 = vmatpush.bf16.msrb.mxu0 %v16093_v19  ;;  %5040 = vmatpush.bf16.msrb.mxu1 %v16101_v33  ;;  %v16107_v19 = vld [vmem:[#allocation3 + $0x798] sm:$0xff] }
 0x474   :  { %v3839_v16 = vpop.f32.mrf.mxu2 }
 0x475   :  { %v18298_v9 = vadd.f32 %v3839_v16, %v18193_v48  ;;  %v16085_v16 = vld [vmem:[#allocation3 + $0x6e8] sm:$0xff] }
 0x479   :  { %4037 = vmatmul.bf16.gmra.mxu2 %v3000_v30  ;;  %v18340_v30 = vpop.f32.mrf.mxu1 }
 0x47c   :  { %v3842_v14 = vpop.f32.mrf.mxu2 }
 0x47d   :  { %v18301_v22 = vadd.f32 %v3842_v14, %v18201_v55  ;;  %v3018_v55 = vpack.c.bf16 %v2974_v37, %v18210_v51  ;;  %v2978_v51 = vld [vmem:[#allocation2 + $0xf2] sm:$0xff]  ;;  %v16084_v37 = vld [vmem:[#allocation3 + $0x6e0] sm:$0xff] }
 0x47e   :  { %v3036_v2 = vpack.c.bf16 %v2978_v51, %v2977_v17  ;;  %v16089_v17 = vld [vmem:[#allocation3 + $0x708] sm:$0xff] }
 0x484   :  { %v3844_v57 = vpop.f32.mrf.mxu2 }
 0x485   :  { %v18304_v0 = vadd.f32 %v3844_v57, %v18204_v3  ;;  %v16092_v57 = vld [vmem:[#allocation3 + $0x720] sm:$0xff] }
 0x486   :  { %4992 = vmatpush.bf16.msrb.mxu0 %v16092_v57  ;;  %v16096_v57 = vld [vmem:[#allocation3 + $0x740] sm:$0xff] }
 0x489   :  { %4042 = vmatmul.bf16.gmra.mxu2 %v3009_v5  ;;  %v16091_v5 = vld [vmem:[#allocation3 + $0x718] sm:$0xff] }
 0x48a   :  { %4993 = vmatpush.bf16.msrb.mxu0 %v16091_v5  ;;  %v16106_v5 = vld [vmem:[#allocation3 + $0x790] sm:$0xff] }
 0x48c   :  { %v3847_v39 = vpop.f32.mrf.mxu2 }
 0x48d   :  { %v18307_v28 = vadd.f32 %v3847_v39, %v18214_v54  ;;  %v3027_v54 = vpack.c.bf16 %v2976_v32, %v2975_v31  ;;  %v2982_v39 = vld [vmem:[#allocation2 + $0x132] sm:$0xff] }
 0x48e   :  { %v16099_v32 = vld [vmem:[#allocation3 + $0x758] sm:$0xff]  ;;  %v16090_v31 = vld [vmem:[#allocation3 + $0x710] sm:$0xff] }
 0x48f   :  { %4994 = vmatpush.bf16.msrb.mxu0 %v16090_v31  ;;  %v18362_v31 = vld [vmem:[#allocation6 + $0x2] ss:$0 sm:$0xff] }
 0x493   :  { %4995 = vmatpush.bf16.msrb.mxu0 %v16089_v17  ;;  %v18364_v17 = vld [vmem:[#allocation8 + $0x2] ss:$0 sm:$0xff] }
 0x494   :  { %v3849_v48 = vpop.f32.mrf.mxu2 }
 0x495   :  { %v18310_v7 = vadd.f32 %v3849_v48, %v18219_v49 }
 0x497   :  { %4996 = vmatpush.bf16.msrb.mxu0 %v16088_v18 }
 0x499   :  { %4047 = vmatmul.bf16.gmra.mxu2 %v3018_v55  ;;  %v16100_v55 = vld [vmem:[#allocation3 + $0x760] sm:$0xff] }
 0x49a   :  { %5041 = vmatpush.bf16.msrb.mxu1 %v16100_v55  ;;  %v16105_v55 = vld [vmem:[#allocation3 + $0x788] sm:$0xff] }
 0x49c   :  { %v3852_v6 = vpop.f32.mrf.mxu2 }
 0x49d   :  { %v18314_v8 = vadd.f32 %v3852_v6, %v18227_v61  ;;  %v18324_v61 = vpop.f32.mrf.mxu3  ;;  %v16110_v6 = vld [vmem:[#allocation3 + $0x7b0] sm:$0xff] }
 0x49e   :  { %5088 = vmatpush.bf16.msrb.mxu2 %v16110_v6  ;;  %5042 = vmatpush.bf16.msrb.mxu1 %v16099_v32 }
 0x4a4   :  { %v3854_v3 = vpop.f32.mrf.mxu2 }
 0x4a5   :  { %v18317_v27 = vadd.f32 %v3854_v3, %v18229_v45  ;;  %v18329_v45 = vpop.f32.mrf.mxu0  ;;  %v18333_v47 = vpop.f32.mrf.mxu3 }
 0x4a6   :  { %v18349_v3 = vpop.f32.mrf.mxu1  ;;  %v3887_v56 = vadd.f32 %v18333_v47, %v18295_v60 }
 0x4a9   :  { %4052 = vmatmul.bf16.gmra.mxu2 %v3027_v54  ;;  %v3054_v54 = vpack.c.bf16 %v2982_v39, %v18269_v44  ;;  %v16081_v44 = vld [vmem:[#allocation3 + $0x6c8] sm:$0xff] }
 0x4ac   :  { %v3857_v13 = vpop.f32.mrf.mxu2 }
 0x4ad   :  { %v18320_v38 = vadd.f32 %v3857_v13, %v18241_v4  ;;  %v16087_v4 = vld [vmem:[#allocation3 + $0x6f8] sm:$0xff]  ;;  %v3888_v43 = vpop.f32.mrf.mxu3  ;;  %v16109_v13 = vld [vmem:[#allocation3 + $0x7a8] sm:$0xff] }
 0x4ae   :  { %4940 = vmatpush.bf16.msra.mxu3 %v16087_v4  ;;  %5089 = vmatpush.bf16.msrb.mxu2 %v16109_v13  ;;  %v16098_v4 = vld [vmem:[#allocation3 + $0x750] sm:$0xff]  ;;  %v3889_v32 = vadd.f32 %v3888_v43, %v18298_v9 }
 0x4af   :  { %5043 = vmatpush.bf16.msrb.mxu1 %v16098_v4 }
 0x4b2   :  { %4941 = vmatpush.bf16.msra.mxu3 %v16086_v35  ;;  %v16097_v35 = vld [vmem:[#allocation3 + $0x748] sm:$0xff]  ;;  %5090 = vmatpush.bf16.msrb.mxu2 %v16108_v53 }
 0x4b3   :  { %5044 = vmatpush.bf16.msrb.mxu1 %v16097_v35 }
 0x4b4   :  { %v18322_v49 = vpop.f32.mrf.mxu2 }
 0x4b5   :  { %v3891_v51 = vpop.f32.mrf.mxu3 }
 0x4b6   :  { %4942 = vmatpush.bf16.msra.mxu3 %v16085_v16  ;;  %v3989_v16 = vpop.f32.mrf.mxu1  ;;  %5091 = vmatpush.bf16.msrb.mxu2 %v16107_v19  ;;  %v3892_v43 = vadd.f32 %v3891_v51, %v18301_v22 }
 0x4b7   :  { %5045 = vmatpush.bf16.msrb.mxu1 %v16096_v57 }
 0x4b9   :  { %4057 = vmatmul.bf16.gmra.mxu2 %v3036_v2 }
 0x4ba   :  { %4943 = vmatpush.bf16.msra.mxu3 %v16084_v37  ;;  %5092 = vmatpush.bf16.msrb.mxu2 %v16106_v5 }
 0x4bc   :  { %v3862_v42 = vpop.f32.mrf.mxu2 }
 0x4bd   :  { %v18327_v34 = vadd.f32 %v3862_v42, %v18258_v62  ;;  %v18337_v62 = vpop.f32.mrf.mxu0  ;;  %v3893_v33 = vpop.f32.mrf.mxu3 }
 0x4be   :  { %v3936_v37 = vadd.f32 %v18337_v62, %v3887_v56  ;;  %v3991_v6 = vpop.f32.mrf.mxu1  ;;  %5093 = vmatpush.bf16.msrb.mxu2 %v16105_v55  ;;  %v3894_v22 = vadd.f32 %v3893_v33, %v18304_v0 }
 0x4c4   :  { %v18335_v29 = vpop.f32.mrf.mxu2 }
 0x4c5   :  { %v3896_v60 = vpop.f32.mrf.mxu3 }
 0x4c9   :  { %4062 = vmatmul.bf16.gmra.mxu2 %v18173_v21  ;;  %v18345_v21 = vpop.f32.mrf.mxu0 }
 0x4cc   :  { %v3867_v14 = vpop.f32.mrf.mxu2 }
 0x4cd   :  { %v18343_v50 = vadd.f32 %v3867_v14, %v18273_v10  ;;  %v16083_v10 = vld [vmem:[#allocation3 + $0x6d8] sm:$0xff]  ;;  %v3898_v19 = vpop.f32.mrf.mxu3 }
 0x4ce   :  { %4944 = vmatpush.bf16.msra.mxu3 %v16083_v10  ;;  %v3985_v10 = vadd.f32 %v18340_v30, %v3936_v37  ;;  %v4163_v30 = vld [vmem:[#allocation2 + $0x1] sm:$0xff] }
 0x4d1   :  { %v3940_v2 = vpop.f32.mrf.mxu0 }
 0x4d2   :  { %4945 = vmatpush.bf16.msra.mxu3 %v16082_v11  ;;  %v3941_v56 = vadd.f32 %v3940_v2, %v3892_v43  ;;  %v18383_v2 = vld [vmem:[#allocation2] sm:$0xff] }
 0x4d4   :  { %v18347_v48 = vpop.f32.mrf.mxu2  ;;  %v3990_v37 = vadd.f32 %v3989_v16, %v3941_v56 }
 0x4d6   :  { %4946 = vmatpush.bf16.msra.mxu3 %v16081_v44  ;;  %v3994_v44 = vpop.f32.mrf.mxu1 }
 0x4d9   :  { %4067 = vmatmul.bf16.gmra.mxu2 %v3054_v54  ;;  %v3942_v39 = vpop.f32.mrf.mxu0  ;;  %v16104_v54 = vld [vmem:[#allocation3 + $0x780] sm:$0xff] }
 0x4da   :  { %5094 = vmatpush.bf16.msrb.mxu2 %v16104_v54  ;;  %v3943_v0 = vadd.f32 %v3942_v39, %v3894_v22  ;;  %v3899_v22 = vadd.f32 %v3898_v19, %v18310_v7 }
 0x4dc   :  { %v3872_v42 = vpop.f32.mrf.mxu2 }
 0x4dd   :  { %v18353_v40 = vadd.f32 %v3872_v42, %v18290_v15  ;;  %v16080_v15 = vld [vmem:[#allocation3 + $0x6c0] sm:$0xff]  ;;  %v3938_v42 = vadd.f32 %v18345_v21, %v3889_v32 }
 0x4de   :  { %4947 = vmatpush.bf16.msra.mxu3 %v16080_v15 }
 0x4df   :  { %v3987_v9 = vadd.f32 %v18349_v3, %v3938_v42  ;;  %v4179_v3 = vld [vmem:[#allocation2 + $0x2] sm:$0xff]  ;;  %v3996_v42 = vpop.f32.mrf.mxu1 }
 0x4e1   :  { %v3945_v11 = vpop.f32.mrf.mxu0 }
 0x4e4   :  { %v18357_v14 = vpop.f32.mrf.mxu2 }
 0x4e9   :  { %v3947_v5 = vpop.f32.mrf.mxu0 }
 0x4ea   :  { %v3948_v19 = vadd.f32 %v3947_v5, %v3899_v22 }
 0x4ec   :  { %v4033_v47 = vpop.f32.mrf.mxu2 }
 0x4ed   :  { %v4034_v13 = vadd.f32 %v4033_v47, %v3985_v10 }
 0x4ef   :  { %v4078_v62 = vmul.f32 %v18362_v31, %v4034_v13 }
 0x4f1   :  { %v4099_v4 = vadd.f32 %v18364_v17, %v4078_v62  ;;  %v3901_v62 = vpop.f32.mrf.mxu3 }
 0x4f3   :  { %v18371_v53 = vmax.f32 %v4099_v4, 0.0 }
 0x4f4   :  { %v4035_v35 = vpop.f32.mrf.mxu2 }
 0x4f5   :  { %4131 = vst [vmem:[#allocation2 + $0x11] sm:$0xff] %v18371_v53  ;;  %v4036_v18 = vadd.f32 %v4035_v35, %v3987_v9  ;;  %v4292_v21 = vpack.c.bf16 %v18371_v53, %v4163_v30  ;;  %v3992_v30 = vadd.f32 %v3991_v6, %v3943_v0  ;;  %v3897_v9 = vadd.f32 %v3896_v60, %v18307_v28  ;;  %v3950_v35 = vpop.f32.mrf.mxu0  ;;  %v3999_v28 = vpop.f32.mrf.mxu1 }
 0x4f7   :  { %v4079_v15 = vmul.f32 %v18362_v31, %v4036_v18  ;;  %4997 = vmatmul.bf16.vlgmr.msrb.gmra.mxu0 %v4292_v21 }
 0x4f9   :  { %v4100_v57 = vadd.f32 %v18364_v17, %v4079_v15  ;;  %v3903_v60 = vpop.f32.mrf.mxu3 }
 0x4fb   :  { %v18378_v51 = vmax.f32 %v4100_v57, 0.0  ;;  %v3946_v57 = vadd.f32 %v3945_v11, %v3897_v9 }
 0x4fc   :  { %v4038_v55 = vpop.f32.mrf.mxu2  ;;  %v4148_v10 = vld [vmem:[#allocation2 + $0x10] sm:$0xff] }
 0x4fd   :  { %v18380_v32 = vld [vmem:[#allocation2 + $0x12] sm:$0xff]  ;;  %4132 = vst [vmem:[#allocation2 + $0x21] sm:$0xff] %v18378_v51  ;;  %v4039_v47 = vadd.f32 %v4038_v55, %v3990_v37  ;;  %v4291_v54 = vpack.c.bf16 %v4148_v10, %v18383_v2  ;;  %v4295_v16 = vpack.c.bf16 %v18378_v51, %v18371_v53  ;;  %v3995_v37 = vadd.f32 %v3994_v44, %v3946_v57  ;;  %v3952_v7 = vpop.f32.mrf.mxu0  ;;  %v4001_v9 = vpop.f32.mrf.mxu1 }
 0x4fe   :  { %v4293_v13 = vpack.c.bf16 %v18380_v32, %v4179_v3 }
 0x4ff   :  { %v4080_v33 = vmul.f32 %v18362_v31, %v4039_v47  ;;  %4948 = vmatmul.bf16.vlgmr.msra.gmra.mxu3 %v4291_v54 }
 0x500   :  { %5046 = vmatmul.bf16.vlgmr.msrb.gmra.mxu1 %v4293_v13 }
 0x501   :  { %v4101_v4 = vadd.f32 %v18364_v17, %v4080_v33 }
 0x503   :  { %v18392_v43 = vmax.f32 %v4101_v4, 0.0 }
 0x504   :  { %v4040_v18 = vpop.f32.mrf.mxu2  ;;  %v4196_v21 = vld [vmem:[#allocation2 + $0x20] sm:$0xff] }
 0x505   :  { %4133 = vst [vmem:[#allocation2 + $0x31] sm:$0xff] %v18392_v43  ;;  %v4041_v56 = vadd.f32 %v4040_v18, %v3992_v30  ;;  %v4294_v15 = vpack.c.bf16 %v4196_v21, %v4148_v10  ;;  %v18397_v39 = vpack.c.bf16 %v18392_v43, %v18378_v51  ;;  %v18405_v54 = vld [vmem:[#allocation2 + $0x22] sm:$0xff]  ;;  %v3997_v18 = vadd.f32 %v3996_v42, %v3948_v19  ;;  %v4004_v19 = vpop.f32.mrf.mxu1 }
 0x507   :  { %v4081_v3 = vmul.f32 %v18362_v31, %v4041_v56  ;;  %5095 = vmatmul.bf16.vlgmr.msrb.gmra.mxu2 %v4294_v15  ;;  %5002 = vmatmul.bf16.gmra.mxu0 %v18397_v39  ;;  %v3906_v15 = vpop.f32.mrf.mxu3 }
 0x509   :  { %v4102_v6 = vadd.f32 %v18364_v17, %v4081_v3 }
 0x50b   :  { %v18403_v55 = vmax.f32 %v4102_v6, 0.0 }
 0x50c   :  { %v4043_v10 = vpop.f32.mrf.mxu2  ;;  %v4150_v47 = vld [vmem:[#allocation2 + $0x30] sm:$0xff] }
 0x50d   :  { %v18407_v13 = vld [vmem:[#allocation2 + $0x32] sm:$0xff]  ;;  %4134 = vst [vmem:[#allocation2 + $0x41] sm:$0xff] %v18403_v55  ;;  %v4044_v11 = vadd.f32 %v4043_v10, %v3995_v37  ;;  %v18410_v0 = vpack.c.bf16 %v4150_v47, %v4196_v21  ;;  %v4304_v44 = vpack.c.bf16 %v18403_v55, %v18392_v43  ;;  %v3902_v21 = vadd.f32 %v3901_v62, %v18314_v8  ;;  %v3955_v8 = vpop.f32.mrf.mxu0 }
 0x50e   :  { %v4302_v33 = vpack.c.bf16 %v18407_v13, %v18405_v54 }
 0x50f   :  { %v4082_v4 = vmul.f32 %v18362_v31, %v4044_v11  ;;  %4953 = vmatmul.bf16.gmra.mxu3 %v18410_v0  ;;  %v3951_v22 = vadd.f32 %v3950_v35, %v3902_v21  ;;  %v3904_v11 = vadd.f32 %v3903_v60, %v18317_v27  ;;  %v3908_v60 = vpop.f32.mrf.mxu3 }
 0x510   :  { %5051 = vmatmul.bf16.gmra.mxu1 %v4302_v33 }
 0x511   :  { %v4103_v30 = vadd.f32 %v18364_v17, %v4082_v4  ;;  %v4000_v62 = vadd.f32 %v3999_v28, %v3951_v22 }
 0x513   :  { %v18420_v56 = vmax.f32 %v4103_v30, 0.0 }
 0x514   :  { %v4045_v57 = vpop.f32.mrf.mxu2  ;;  %v4198_v3 = vld [vmem:[#allocation2 + $0x40] sm:$0xff] }
 0x515   :  { %4135 = vst [vmem:[#allocation2 + $0x51] sm:$0xff] %v18420_v56  ;;  %v4046_v6 = vadd.f32 %v4045_v57, %v3997_v18  ;;  %v4303_v5 = vpack.c.bf16 %v4198_v3, %v4150_v47  ;;  %v18425_v37 = vpack.c.bf16 %v18420_v56, %v18403_v55  ;;  %v3713_v47 = vadd.f32 %v18235_v63, %v18244_v46  ;;  %v18435_v35 = vld [vmem:[#allocation2 + $0x42] sm:$0xff]  ;;  %v3957_v22 = vpop.f32.mrf.mxu0 }
 0x516   :  { %v3953_v63 = vadd.f32 %v3952_v7, %v3904_v11 }
 0x517   :  { %v4083_v10 = vmul.f32 %v18362_v31, %v4046_v6  ;;  %5100 = vmatmul.bf16.gmra.mxu2 %v4303_v5  ;;  %5007 = vmatmul.bf16.gmra.mxu0 %v18425_v37  ;;  %v3762_v6 = vadd.f32 %v18237_v36, %v3713_v47  ;;  %v4006_v36 = vpop.f32.mrf.mxu1 }
 0x519   :  { %v4104_v42 = vadd.f32 %v18364_v17, %v4083_v10  ;;  %v3907_v10 = vadd.f32 %v3906_v15, %v18320_v38  ;;  %v3811_v28 = vadd.f32 %v18246_v25, %v3762_v6  ;;  %v3911_v15 = vpop.f32.mrf.mxu3 }
 0x51b   :  { %v18431_v33 = vmax.f32 %v4104_v42, 0.0  ;;  %v3956_v47 = vadd.f32 %v3955_v8, %v3907_v10 }
 0x51c   :  { %v4048_v4 = vpop.f32.mrf.mxu2  ;;  %v4152_v30 = vld [vmem:[#allocation2 + $0x50] sm:$0xff] }
 0x51d   :  { %v18437_v18 = vld [vmem:[#allocation2 + $0x52] sm:$0xff]  ;;  %4136 = vst [vmem:[#allocation2 + $0x61] sm:$0xff] %v18431_v33  ;;  %v4049_v21 = vadd.f32 %v4048_v4, %v4000_v62  ;;  %v18440_v57 = vpack.c.bf16 %v4152_v30, %v4198_v3  ;;  %v4002_v3 = vadd.f32 %v4001_v9, %v3953_v63  ;;  %v3860_v9 = vadd.f32 %v18322_v49, %v3811_v28  ;;  %v3960_v6 = vpop.f32.mrf.mxu0 }
 0x51e   :  { %v4311_v27 = vpack.c.bf16 %v18437_v18, %v18435_v35 }
 0x51f   :  { %v4084_v46 = vmul.f32 %v18362_v31, %v4049_v21  ;;  %4958 = vmatmul.bf16.gmra.mxu3 %v18440_v57  ;;  %v3909_v63 = vadd.f32 %v3908_v60, %v3860_v9 }
 0x520   :  { %5056 = vmatmul.bf16.gmra.mxu1 %v4311_v27  ;;  %v4005_v27 = vadd.f32 %v4004_v19, %v3956_v47 }
 0x521   :  { %v4105_v5 = vadd.f32 %v18364_v17, %v4084_v46  ;;  %v3913_v47 = vpop.f32.mrf.mxu3 }
 0x523   :  { %v18451_v42 = vmax.f32 %v4105_v5, 0.0 }
 0x524   :  { %v4050_v62 = vpop.f32.mrf.mxu2  ;;  %v4200_v4 = vld [vmem:[#allocation2 + $0x60] sm:$0xff] }
 0x525   :  { %4137 = vst [vmem:[#allocation2 + $0x71] sm:$0xff] %v18451_v42  ;;  %v4051_v7 = vadd.f32 %v4050_v62, %v4002_v3  ;;  %v4312_v11 = vpack.c.bf16 %v4200_v4, %v4152_v30  ;;  %v18457_v21 = vpack.c.bf16 %v18451_v42, %v18431_v33  ;;  %v3718_v30 = vadd.f32 %v18252_v41, %v18261_v24  ;;  %v18467_v3 = vld [vmem:[#allocation2 + $0x62] sm:$0xff]  ;;  %v4009_v24 = vpop.f32.mrf.mxu1 }
 0x526   :  { %v3958_v62 = vadd.f32 %v3957_v22, %v3909_v63 }
 0x527   :  { %v4085_v38 = vmul.f32 %v18362_v31, %v4051_v7  ;;  %5105 = vmatmul.bf16.gmra.mxu2 %v4312_v11  ;;  %5012 = vmatmul.bf16.gmra.mxu0 %v18457_v21  ;;  %v3767_v7 = vadd.f32 %v18256_v1, %v3718_v30  ;;  %v3962_v30 = vpop.f32.mrf.mxu0 }
 0x528   :  { %v4007_v9 = vadd.f32 %v4006_v36, %v3958_v62 }
 0x529   :  { %v4106_v25 = vadd.f32 %v18364_v17, %v4085_v38  ;;  %v3912_v38 = vadd.f32 %v3911_v15, %v18327_v34  ;;  %v3816_v22 = vadd.f32 %v18263_v59, %v3767_v7 }
 0x52b   :  { %v18463_v46 = vmax.f32 %v4106_v25, 0.0  ;;  %v3865_v36 = vadd.f32 %v18335_v29, %v3816_v22 }
 0x52c   :  { %v4053_v5 = vpop.f32.mrf.mxu2  ;;  %v4154_v8 = vld [vmem:[#allocation2 + $0x70] sm:$0xff] }
 0x52d   :  { %v18469_v49 = vld [vmem:[#allocation2 + $0x72] sm:$0xff]  ;;  %4138 = vst [vmem:[#allocation2 + $0x81] sm:$0xff] %v18463_v46  ;;  %v4054_v28 = vadd.f32 %v4053_v5, %v4005_v27  ;;  %v18472_v10 = vpack.c.bf16 %v4154_v8, %v4200_v4  ;;  %v4322_v60 = vpack.c.bf16 %v18463_v46, %v18451_v42  ;;  %v4171_v4 = vld [vmem:[#allocation2 + $0xa1] sm:$0xff]  ;;  %v4011_v62 = vpop.f32.mrf.mxu1  ;;  %v3914_v7 = vadd.f32 %v3913_v47, %v3865_v36 }
 0x52e   :  { %v4320_v19 = vpack.c.bf16 %v18469_v49, %v18467_v3 }
 0x52f   :  { %v4086_v41 = vmul.f32 %v18362_v31, %v4054_v28  ;;  %4963 = vmatmul.bf16.gmra.mxu3 %v18472_v10  ;;  %v3963_v47 = vadd.f32 %v3962_v30, %v3914_v7  ;;  %v16126_v30 = vld [vmem:[#allocation3 + $0x830] sm:$0xff] }
 0x530   :  { %5061 = vmatmul.bf16.gmra.mxu1 %v4320_v19  ;;  %v3961_v19 = vadd.f32 %v3960_v6, %v3912_v38 }
 0x531   :  { %v4107_v11 = vadd.f32 %v18364_v17, %v4086_v41  ;;  %v4187_v41 = vld [vmem:[#allocation2 + $0xa2] sm:$0xff] }
 0x532   :  { %v4010_v59 = vadd.f32 %v4009_v24, %v3961_v19  ;;  %v4012_v19 = vadd.f32 %v4011_v62, %v3963_v47  ;;  %v16135_v62 = vld [vmem:[#allocation3 + $0x878] sm:$0xff] }
 0x533   :  { %v18483_v25 = vmax.f32 %v4107_v11, 0.0  ;;  %5234 = vmatpush.bf16.msra.mxu1 %v16135_v62  ;;  %v16124_v62 = vld [vmem:[#allocation3 + $0x820] sm:$0xff] }
 0x534   :  { %v4055_v27 = vpop.f32.mrf.mxu2  ;;  %v18485_v5 = vld [vmem:[#allocation2 + $0x80] sm:$0xff] }
 0x535   :  { %4139 = vst [vmem:[#allocation2 + $0xb1] sm:$0xff] %v18483_v25  ;;  %v4056_v63 = vadd.f32 %v4055_v27, %v4007_v9  ;;  %v4321_v28 = vpack.c.bf16 %v18485_v5, %v4154_v8  ;;  %v4328_v1 = vpack.c.bf16 %v18483_v25, %v4171_v4  ;;  %v3723_v8 = vadd.f32 %v18276_v52, %v18280_v26  ;;  %v3916_v4 = vpop.f32.mrf.mxu3  ;;  %v3965_v52 = vpop.f32.mrf.mxu0  ;;  %v16127_v26 = vld [vmem:[#allocation3 + $0x838] sm:$0xff] }
 0x536   :  { %5185 = vmatpush.bf16.msra.mxu0 %v16127_v26  ;;  %v3917_v36 = vadd.f32 %v3916_v4, %v18343_v50 }
 0x537   :  { %v4087_v34 = vmul.f32 %v18362_v31, %v4056_v63  ;;  %5110 = vmatmul.bf16.gmra.mxu2 %v4321_v28  ;;  %5017 = vmatmul.bf16.gmra.mxu0 %v4328_v1  ;;  %v3772_v28 = vadd.f32 %v18278_v12, %v3723_v8  ;;  %v16119_v8 = vld [vmem:[#allocation3 + $0x7f8] sm:$0xff] }
 0x538   :  { %v3966_v50 = vadd.f32 %v3965_v52, %v3917_v36  ;;  %5136 = vmatpush.bf16.msrb.mxu3 %v16119_v8 }
 0x539   :  { %v4108_v15 = vadd.f32 %v18364_v17, %v4087_v34  ;;  %v3821_v7 = vadd.f32 %v18282_v58, %v3772_v28  ;;  %v16125_v58 = vld [vmem:[#allocation3 + $0x828] sm:$0xff] }
 0x53a   :  { %5186 = vmatpush.bf16.msra.mxu0 %v16126_v30 }
 0x53b   :  { %v18494_v11 = vmax.f32 %v4108_v15, 0.0  ;;  %v4014_v15 = vpop.f32.mrf.mxu1  ;;  %v3870_v4 = vadd.f32 %v18347_v48, %v3821_v7  ;;  %v3728_v48 = vadd.f32 %v18324_v61, %v18292_v23  ;;  %v16117_v23 = vld [vmem:[#allocation3 + $0x7e8] sm:$0xff]  ;;  %v16143_v61 = vld [vmem:[#allocation3 + $0x8b8] sm:$0xff] }
 0x53c   :  { %v4058_v9 = vpop.f32.mrf.mxu2  ;;  %v4156_v6 = vld [vmem:[#allocation2 + $0xb0] sm:$0xff]  ;;  %5283 = vmatpush.bf16.msra.mxu2 %v16143_v61  ;;  %v16141_v61 = vld [vmem:[#allocation3 + $0x8a8] sm:$0xff] }
 0x53d   :  { %v18498_v38 = vld [vmem:[#allocation2 + $0xb2] sm:$0xff]  ;;  %4140 = vst [vmem:[#allocation2 + $0xc1] sm:$0xff] %v18494_v11  ;;  %v4059_v29 = vadd.f32 %v4058_v9, %v4010_v59  ;;  %v4327_v27 = vpack.c.bf16 %v4156_v6, %v18383_v2  ;;  %v4331_v24 = vpack.c.bf16 %v18494_v11, %v18483_v25  ;;  %v3967_v47 = vpop.f32.mrf.mxu0  ;;  %v16149_v25 = vld [vmem:[#allocation3 + $0x8e8] sm:$0xff] }
 0x53e   :  { %v4329_v22 = vpack.c.bf16 %v18498_v38, %v4187_v41  ;;  %5187 = vmatpush.bf16.msra.mxu0 %v16125_v58  ;;  %v16142_v58 = vld [vmem:[#allocation3 + $0x8b0] sm:$0xff] }
 0x53f   :  { %v4088_v63 = vmul.f32 %v18362_v31, %v4059_v29  ;;  %4968 = vmatmul.bf16.gmra.mxu3 %v4327_v27  ;;  %v3918_v27 = vpop.f32.mrf.mxu3 }
 0x540   :  { %5066 = vmatmul.bf16.gmra.mxu1 %v4329_v22  ;;  %v3919_v26 = vadd.f32 %v3918_v27, %v3870_v4  ;;  %5284 = vmatpush.bf16.msra.mxu2 %v16142_v58 }
 0x541   :  { %v4109_v1 = vadd.f32 %v18364_v17, %v4088_v63  ;;  %v4015_v63 = vadd.f32 %v4014_v15, %v3966_v50 }
 0x542   :  { %v3968_v27 = vadd.f32 %v3967_v47, %v3919_v26  ;;  %5188 = vmatpush.bf16.msra.mxu0 %v16124_v62 }
 0x543   :  { %v18509_v34 = vmax.f32 %v4109_v1, 0.0  ;;  %v4016_v8 = vpop.f32.mrf.mxu1 }
 0x544   :  { %v4060_v41 = vpop.f32.mrf.mxu2  ;;  %v4204_v59 = vld [vmem:[#allocation2 + $0xc0] sm:$0xff]  ;;  %5285 = vmatpush.bf16.msra.mxu2 %v16141_v61  ;;  %v16139_v61 = vld [vmem:[#allocation3 + $0x898] sm:$0xff] }
 0x545   :  { %4141 = vst [vmem:[#allocation2 + $0xd1] sm:$0xff] %v18509_v34  ;;  %v4061_v9 = vadd.f32 %v4060_v41, %v4012_v19  ;;  %v4330_v29 = vpack.c.bf16 %v4204_v59, %v4156_v6  ;;  %v18515_v12 = vpack.c.bf16 %v18509_v34, %v18494_v11  ;;  %v18523_v1 = vld [vmem:[#allocation2 + $0xc2] sm:$0xff]  ;;  %v16118_v41 = vld [vmem:[#allocation3 + $0x7f0] sm:$0xff] }
 0x546   :  { %5137 = vmatpush.bf16.msrb.mxu3 %v16118_v41  ;;  %v4017_v41 = vadd.f32 %v4016_v8, %v3968_v27 }
 0x547   :  { %v4089_v22 = vmul.f32 %v18362_v31, %v4061_v9  ;;  %5115 = vmatmul.bf16.gmra.mxu2 %v4330_v29  ;;  %5022 = vmatmul.bf16.gmra.mxu0 %v18515_v12  ;;  %v16134_v9 = vld [vmem:[#allocation3 + $0x870] sm:$0xff]  ;;  %v3921_v4 = vpop.f32.mrf.mxu3 }
 0x548   :  { %5235 = vmatpush.bf16.msra.mxu1 %v16134_v9  ;;  %v3922_v47 = vadd.f32 %v3921_v4, %v18353_v40  ;;  %v16132_v9 = vld [vmem:[#allocation3 + $0x860] sm:$0xff]  ;;  %v16122_v40 = vld [vmem:[#allocation3 + $0x810] sm:$0xff] }
 0x549   :  { %v4110_v6 = vadd.f32 %v18364_v17, %v4089_v22  ;;  %v16133_v22 = vld [vmem:[#allocation3 + $0x868] sm:$0xff] }
 0x54a   :  { %5138 = vmatpush.bf16.msrb.mxu3 %v16117_v23  ;;  %v16115_v23 = vld [vmem:[#allocation3 + $0x7d8] sm:$0xff] }
 0x54b   :  { %v18521_v28 = vmax.f32 %v4110_v6, 0.0  ;;  %v4019_v4 = vpop.f32.mrf.mxu1 }
 0x54c   :  { %v4063_v52 = vpop.f32.mrf.mxu2  ;;  %v4158_v19 = vld [vmem:[#allocation2 + $0xd0] sm:$0xff]  ;;  %5236 = vmatpush.bf16.msra.mxu1 %v16133_v22  ;;  %v16131_v22 = vld [vmem:[#allocation3 + $0x858] sm:$0xff] }
 0x54d   :  { %v18527_v36 = vld [vmem:[#allocation2 + $0xd2] sm:$0xff]  ;;  %4142 = vst [vmem:[#allocation2 + $0xe1] sm:$0xff] %v18521_v28  ;;  %v4064_v30 = vadd.f32 %v4063_v52, %v4015_v63  ;;  %v18530_v7 = vpack.c.bf16 %v4158_v19, %v4204_v59  ;;  %v4340_v29 = vpack.c.bf16 %v18521_v28, %v18509_v34  ;;  %v3777_v59 = vadd.f32 %v18329_v45, %v3728_v48  ;;  %v16116_v52 = vld [vmem:[#allocation3 + $0x7e0] sm:$0xff]  ;;  %v16145_v34 = vld [vmem:[#allocation3 + $0x8c8] sm:$0xff] }
 0x54e   :  { %v4338_v15 = vpack.c.bf16 %v18527_v36, %v18523_v1  ;;  %v16123_v63 = vld [vmem:[#allocation3 + $0x818] sm:$0xff]  ;;  %5139 = vmatpush.bf16.msrb.mxu3 %v16116_v52  ;;  %v16114_v52 = vld [vmem:[#allocation3 + $0x7d0] sm:$0xff] }
 0x54f   :  { %v4090_v50 = vmul.f32 %v18362_v31, %v4064_v30  ;;  %4973 = vmatmul.bf16.gmra.mxu3 %v18530_v7  ;;  %v3826_v30 = vadd.f32 %v18331_v20, %v3777_v59  ;;  %5189 = vmatpush.bf16.msra.mxu0 %v16123_v63  ;;  %v3923_v63 = vpop.f32.mrf.mxu3 }
 0x550   :  { %5071 = vmatmul.bf16.gmra.mxu1 %v4338_v15  ;;  %v3970_v15 = vpop.f32.mrf.mxu0 }
 0x551   :  { %v4111_v6 = vadd.f32 %v18364_v17, %v4090_v50  ;;  %v3971_v20 = vadd.f32 %v3970_v15, %v3922_v47  ;;  %v3875_v27 = vadd.f32 %v18357_v14, %v3826_v30  ;;  %5237 = vmatpush.bf16.msra.mxu1 %v16132_v9  ;;  %v16130_v15 = vld [vmem:[#allocation3 + $0x850] sm:$0xff] }
 0x552   :  { %5140 = vmatpush.bf16.msrb.mxu3 %v16115_v23 }
 0x553   :  { %v18541_v26 = vmax.f32 %v4111_v6, 0.0  ;;  %5190 = vmatpush.bf16.msra.mxu0 %v16122_v40  ;;  %v16121_v6 = vld [vmem:[#allocation3 + $0x808] sm:$0xff]  ;;  %v3924_v47 = vadd.f32 %v3923_v63, %v3875_v27 }
 0x554   :  { %v4065_v45 = vpop.f32.mrf.mxu2  ;;  %v4206_v48 = vld [vmem:[#allocation2 + $0xe0] sm:$0xff] }
 0x555   :  { %4143 = vst [vmem:[#allocation2 + $0xf1] sm:$0xff] %v18541_v26  ;;  %v4066_v62 = vadd.f32 %v4065_v45, %v4017_v41  ;;  %v4339_v50 = vpack.c.bf16 %v4206_v48, %v4158_v19  ;;  %v18547_v8 = vpack.c.bf16 %v18541_v26, %v18521_v28  ;;  %v16140_v19 = vld [vmem:[#allocation3 + $0x8a0] sm:$0xff]  ;;  %v4020_v41 = vadd.f32 %v4019_v4, %v3971_v20 }
 0x556   :  { %v18555_v30 = vld [vmem:[#allocation2 + $0xe2] sm:$0xff]  ;;  %5238 = vmatpush.bf16.msra.mxu1 %v16131_v22  ;;  %5286 = vmatpush.bf16.msra.mxu2 %v16140_v19  ;;  %v16138_v19 = vld [vmem:[#allocation3 + $0x890] sm:$0xff] }
 0x557   :  { %v4091_v59 = vmul.f32 %v18362_v31, %v4066_v62  ;;  %5120 = vmatmul.bf16.gmra.mxu2 %v4339_v50  ;;  %5027 = vmatmul.bf16.gmra.mxu0 %v18547_v8  ;;  %v16120_v20 = vld [vmem:[#allocation3 + $0x800] sm:$0xff] }
 0x558   :  { %5191 = vmatpush.bf16.msra.mxu0 %v16121_v6  ;;  %v3972_v27 = vpop.f32.mrf.mxu0  ;;  %5141 = vmatpush.bf16.msrb.mxu3 %v16114_v52  ;;  %v4021_v6 = vpop.f32.mrf.mxu1  ;;  %v16112_v52 = vld [vmem:[#allocation3 + $0x7c0] sm:$0xff] }
 0x559   :  { %v4112_v58 = vadd.f32 %v18364_v17, %v4091_v59  ;;  %v16113_v59 = vld [vmem:[#allocation3 + $0x7c8] sm:$0xff] }
 0x55a   :  { %5239 = vmatpush.bf16.msra.mxu1 %v16130_v15  ;;  %5287 = vmatpush.bf16.msra.mxu2 %v16139_v61 }
 0x55b   :  { %v18553_v14 = vmax.f32 %v4112_v58, 0.0  ;;  %v3973_v58 = vadd.f32 %v3972_v27, %v3924_v47  ;;  %v16137_v27 = vld [vmem:[#allocation3 + $0x888] sm:$0xff] }
 0x55c   :  { %v4068_v45 = vpop.f32.mrf.mxu2  ;;  %v4160_v62 = vld [vmem:[#allocation2 + $0xf0] sm:$0xff]  ;;  %5192 = vmatpush.bf16.msra.mxu0 %v16120_v20  ;;  %5142 = vmatpush.bf16.msrb.mxu3 %v16113_v59  ;;  %v16136_v59 = vld [vmem:[#allocation3 + $0x880] sm:$0xff] }
 0x55d   :  { %v18557_v9 = vld [vmem:[#allocation2 + $0xf2] sm:$0xff]  ;;  %4144 = vst [vmem:[#allocation2 + $0x101] sm:$0xff] %v18553_v14  ;;  %v4069_v50 = vadd.f32 %v4068_v45, %v4020_v41  ;;  %v18560_v40 = vpack.c.bf16 %v4160_v62, %v4206_v48  ;;  %v16129_v48 = vld [vmem:[#allocation3 + $0x848] sm:$0xff]  ;;  %v4022_v41 = vadd.f32 %v4021_v6, %v3973_v58 }
 0x55e   :  { %v4347_v23 = vpack.c.bf16 %v18557_v9, %v18555_v30  ;;  %5240 = vmatpush.bf16.msra.mxu1 %v16129_v48  ;;  %5288 = vmatpush.bf16.msra.mxu2 %v16138_v19 }
 0x55f   :  { %v4092_v22 = vmul.f32 %v18362_v31, %v4069_v50  ;;  %4978 = vmatmul.bf16.gmra.mxu3 %v18560_v40  ;;  %v16128_v50 = vld [vmem:[#allocation3 + $0x840] sm:$0xff] }
 0x560   :  { %5076 = vmatmul.bf16.gmra.mxu1 %v4347_v23  ;;  %5143 = vmatpush.bf16.msrb.mxu3 %v16112_v52 }
 0x561   :  { %v4113_v63 = vadd.f32 %v18364_v17, %v4092_v22 }
 0x562   :  { %5241 = vmatpush.bf16.msra.mxu1 %v16128_v50  ;;  %5289 = vmatpush.bf16.msra.mxu2 %v16137_v27 }
 0x563   :  { %v18569_v45 = vmax.f32 %v4113_v63, 0.0 }
 0x564   :  { %v4070_v4 = vpop.f32.mrf.mxu2  ;;  %v4208_v47 = vld [vmem:[#allocation2 + $0x100] sm:$0xff] }
 0x565   :  { %4145 = vst [vmem:[#allocation2 + $0x111] sm:$0xff] %v18569_v45  ;;  %v4071_v15 = vadd.f32 %v4070_v4, %v4022_v41  ;;  %v4348_v61 = vpack.c.bf16 %v4208_v47, %v4160_v62  ;;  %v18574_v23 = vpack.c.bf16 %v18569_v45, %v18553_v14  ;;  %v18581_v4 = vld [vmem:[#allocation2 + $0x102] sm:$0xff]  ;;  %v4296_v41 = vpack.c.bf16 %v18405_v54, %v18380_v32 }
 0x566   :  { %5290 = vmatpush.bf16.msra.mxu2 %v16136_v59 }
 0x567   :  { %v4093_v20 = vmul.f32 %v18362_v31, %v4071_v15  ;;  %5125 = vmatmul.bf16.gmra.mxu2 %v4348_v61  ;;  %5032 = vmatmul.bf16.gmra.mxu0 %v18574_v23 }
 0x569   :  { %v4114_v58 = vadd.f32 %v18364_v17, %v4093_v20 }
 0x56b   :  { %v18579_v22 = vmax.f32 %v4114_v58, 0.0  ;;  %v4305_v58 = vpack.c.bf16 %v18435_v35, %v18407_v13 }
 0x56c   :  { %v4162_v48 = vld [vmem:[#allocation2 + $0x110] sm:$0xff] }
 0x56d   :  { %v18583_v62 = vld [vmem:[#allocation2 + $0x112] sm:$0xff]  ;;  %4146 = vst [vmem:[#allocation2 + $0x121] sm:$0xff] %v18579_v22  ;;  %v18586_v19 = vpack.c.bf16 %v4162_v48, %v4208_v47  ;;  %v4358_v63 = vpack.c.bf16 %v18579_v22, %v18569_v45  ;;  %v4275_v45 = vld [vmem:[#allocation2 + $0x22] sm:$0xff] }
 0x56e   :  { %v18590_v31 = vpack.c.bf16 %v18583_v62, %v18581_v4 }
 0x56f   :  { %4983 = vmatmul.bf16.gmra.mxu3 %v18586_v19 }
 0x570   :  { %5081 = vmatmul.bf16.gmra.mxu1 %v18590_v31 }
 0x574   :  { %v18596_v17 = vld [vmem:[#allocation2 + $0x120] sm:$0xff]  ;;  %v4998_v6 = vpop.f32.mrf.mxu0 }
 0x575   :  { %v4357_v52 = vpack.c.bf16 %v18596_v17, %v4162_v48 }
 0x577   :  { %5130 = vmatmul.bf16.gmra.mxu2 %v4357_v52  ;;  %5193 = vmatmul.bf16.vlgmr.msra.gmra.mxu0 %v4296_v41 }
 0x57c   :  { %v5000_v50 = vpop.f32.mrf.mxu0 }
 0x57d   :  { %v5047_v47 = vpop.f32.mrf.mxu1 }
 0x57f   :  { %5144 = vmatmul.bf16.vlgmr.msrb.gmra.mxu3 %v4295_v16 }
 0x580   :  { %5242 = vmatmul.bf16.vlgmr.msra.gmra.mxu1 %v18410_v0 }
 0x582   :  { %v4949_v27 = vpop.f32.mrf.mxu3 }
 0x583   :  { %v4999_v15 = vadd.f32 %v4998_v6, %v4949_v27 }
 0x584   :  { %v5003_v20 = vpop.f32.mrf.mxu0 }
 0x585   :  { %v5049_v61 = vpop.f32.mrf.mxu1  ;;  %v5048_v59 = vadd.f32 %v5047_v47, %v4999_v15 }
 0x587   :  { %5291 = vmatmul.bf16.vlgmr.msra.gmra.mxu2 %v18397_v39  ;;  %5198 = vmatmul.bf16.gmra.mxu0 %v4305_v58 }
 0x58a   :  { %v4951_v32 = vpop.f32.mrf.mxu3  ;;  %v5096_v54 = vpop.f32.mrf.mxu2 }
 0x58b   :  { %v5001_v48 = vadd.f32 %v5000_v50, %v4951_v32  ;;  %v18608_v52 = vadd.f32 %v5096_v54, %v5048_v59  ;;  %v4314_v50 = vpack.c.bf16 %v18467_v3, %v18437_v18  ;;  %v18625_v18 = vld [vmem:[#allocation2 + $0x82] sm:$0xff] }
 0x58c   :  { %v5005_v51 = vpop.f32.mrf.mxu0 }
 0x58d   :  { %v5052_v53 = vpop.f32.mrf.mxu1  ;;  %v5050_v16 = vadd.f32 %v5049_v61, %v5001_v48 }
 0x58f   :  { %5149 = vmatmul.bf16.gmra.mxu3 %v4304_v44 }
 0x590   :  { %5247 = vmatmul.bf16.gmra.mxu1 %v18440_v57 }
 0x592   :  { %v4954_v0 = vpop.f32.mrf.mxu3  ;;  %v5098_v6 = vpop.f32.mrf.mxu2 }
 0x593   :  { %v5004_v13 = vadd.f32 %v5003_v20, %v4954_v0  ;;  %v18614_v35 = vadd.f32 %v5098_v6, %v5050_v16  ;;  %v19427_v20 = vpack.c.bf16 %v18431_v33, %v18420_v56  ;;  %v4324_v6 = vpack.c.bf16 %v18383_v2, %v18485_v5 }
 0x594   :  { %v5008_v41 = vpop.f32.mrf.mxu0  ;;  %v4332_v5 = vpack.c.bf16 %v18523_v1, %v18498_v38 }
 0x595   :  { %v5054_v39 = vpop.f32.mrf.mxu1  ;;  %v5053_v47 = vadd.f32 %v5052_v53, %v5004_v13  ;;  %v4323_v53 = vpack.c.bf16 %v18625_v18, %v18469_v49 }
 0x597   :  { %5296 = vmatmul.bf16.gmra.mxu2 %v18425_v37  ;;  %5203 = vmatmul.bf16.gmra.mxu0 %v4314_v50 }
 0x59a   :  { %v4956_v27 = vpop.f32.mrf.mxu3  ;;  %v5101_v15 = vpop.f32.mrf.mxu2 }
 0x59b   :  { %v5006_v43 = vadd.f32 %v5005_v51, %v4956_v27  ;;  %v18619_v55 = vadd.f32 %v5101_v15, %v5053_v47 }
 0x59c   :  { %v5010_v57 = vpop.f32.mrf.mxu0 }
 0x59d   :  { %v5057_v44 = vpop.f32.mrf.mxu1  ;;  %v5055_v61 = vadd.f32 %v5054_v39, %v5006_v43 }
 0x59f   :  { %5154 = vmatmul.bf16.gmra.mxu3 %v19427_v20 }
 0x5a0   :  { %5252 = vmatmul.bf16.gmra.mxu1 %v18472_v10 }
 0x5a2   :  { %v4959_v59 = vpop.f32.mrf.mxu3  ;;  %v5103_v58 = vpop.f32.mrf.mxu2 }
 0x5a3   :  { %v5009_v37 = vadd.f32 %v5008_v41, %v4959_v59  ;;  %v18627_v3 = vadd.f32 %v5103_v58, %v5055_v61  ;;  %v16151_v59 = vld [vmem:[#allocation3 + $0x8f8] sm:$0xff] }
 0x5a4   :  { %v5013_v54 = vpop.f32.mrf.mxu0  ;;  %5332 = vmatpush.bf16.msra.mxu3 %v16151_v59 }
 0x5a5   :  { %v5059_v32 = vpop.f32.mrf.mxu1  ;;  %v5058_v48 = vadd.f32 %v5057_v44, %v5009_v37 }
 0x5a7   :  { %5301 = vmatmul.bf16.gmra.mxu2 %v18457_v21  ;;  %5208 = vmatmul.bf16.gmra.mxu0 %v4323_v53  ;;  %v4266_v21 = vld [vmem:[#allocation2 + $0x91] sm:$0xff]  ;;  %v4341_v53 = vpack.c.bf16 %v18555_v30, %v18527_v36 }
 0x5a8   :  { %v4325_v27 = vpack.c.bf16 %v4266_v21, %v18463_v46  ;;  %v16147_v36 = vld [vmem:[#allocation3 + $0x8d8] sm:$0xff]  ;;  %v16144_v21 = vld [vmem:[#allocation3 + $0x8c0] sm:$0xff] }
 0x5aa   :  { %v4961_v56 = vpop.f32.mrf.mxu3  ;;  %v5106_v33 = vpop.f32.mrf.mxu2 }
 0x5ab   :  { %v5011_v51 = vadd.f32 %v5010_v57, %v4961_v56  ;;  %v18632_v10 = vadd.f32 %v5106_v33, %v5058_v48 }
 0x5ac   :  { %v5015_v0 = vpop.f32.mrf.mxu0 }
 0x5ad   :  { %v5062_v16 = vpop.f32.mrf.mxu1  ;;  %v5060_v13 = vadd.f32 %v5059_v32, %v5011_v51  ;;  %v16148_v51 = vld [vmem:[#allocation3 + $0x8e0] sm:$0xff] }
 0x5af   :  { %5159 = vmatmul.bf16.gmra.mxu3 %v4322_v60 }
 0x5b0   :  { %5257 = vmatmul.bf16.gmra.mxu1 %v4324_v6  ;;  %v16146_v6 = vld [vmem:[#allocation3 + $0x8d0] sm:$0xff] }
 0x5b2   :  { %v4964_v49 = vpop.f32.mrf.mxu3  ;;  %v5108_v39 = vpop.f32.mrf.mxu2 }
 0x5b3   :  { %v5014_v41 = vadd.f32 %v5013_v54, %v4964_v49  ;;  %v18639_v47 = vadd.f32 %v5108_v39, %v5060_v13  ;;  %v16150_v54 = vld [vmem:[#allocation3 + $0x8f0] sm:$0xff]  ;;  %v4350_v39 = vpack.c.bf16 %v18581_v4, %v18557_v9  ;;  %v18686_v4 = vld [vmem:[#allocation2 + $0x122] sm:$0xff] }
 0x5b4   :  { %v5018_v43 = vpop.f32.mrf.mxu0  ;;  %5333 = vmatpush.bf16.msra.mxu3 %v16150_v54 }
 0x5b5   :  { %v5064_v50 = vpop.f32.mrf.mxu1  ;;  %v5063_v15 = vadd.f32 %v5062_v16, %v5014_v41 }
 0x5b7   :  { %5306 = vmatmul.bf16.gmra.mxu2 %v4325_v27  ;;  %5213 = vmatmul.bf16.gmra.mxu0 %v4332_v5  ;;  %v19428_v27 = vpack.c.bf16 %v18553_v14, %v18541_v26  ;;  %v4359_v5 = vpack.c.bf16 %v18686_v4, %v18583_v62 }
 0x5b8   :  { %5334 = vmatpush.bf16.msra.mxu3 %v16149_v25 }
 0x5ba   :  { %v4966_v44 = vpop.f32.mrf.mxu3  ;;  %v5111_v42 = vpop.f32.mrf.mxu2 }
 0x5bb   :  { %v5016_v60 = vadd.f32 %v5015_v0, %v4966_v44  ;;  %v18644_v57 = vadd.f32 %v5111_v42, %v5063_v15 }
 0x5bc   :  { %v18650_v46 = vpop.f32.mrf.mxu0  ;;  %5335 = vmatpush.bf16.msra.mxu3 %v16148_v51 }
 0x5bd   :  { %v5067_v61 = vpop.f32.mrf.mxu1  ;;  %v5065_v20 = vadd.f32 %v5064_v50, %v5016_v60  ;;  %v4360_v60 = vpack.c.bf16 %v18383_v2, %v18596_v17  ;;  %v4276_v2 = vld [vmem:[#allocation2 + $0x32] sm:$0xff] }
 0x5bf   :  { %5164 = vmatmul.bf16.gmra.mxu3 %v4331_v24 }
 0x5c0   :  { %5262 = vmatmul.bf16.gmra.mxu1 %v18530_v7  ;;  %5336 = vmatpush.bf16.msra.mxu3 %v16147_v36 }
 0x5c2   :  { %v4969_v38 = vpop.f32.mrf.mxu3  ;;  %v5113_v1 = vpop.f32.mrf.mxu2 }
 0x5c3   :  { %v5019_v58 = vadd.f32 %v5018_v43, %v4969_v38  ;;  %v18652_v37 = vadd.f32 %v5113_v1, %v5065_v20 }
 0x5c4   :  { %v5023_v11 = vpop.f32.mrf.mxu0  ;;  %5337 = vmatpush.bf16.msra.mxu3 %v16146_v6  ;;  %v4280_v6 = vld [vmem:[#allocation2 + $0x72] sm:$0xff] }
 0x5c5   :  { %v18654_v32 = vpop.f32.mrf.mxu1  ;;  %v5068_v48 = vadd.f32 %v5067_v61, %v5019_v58 }
 0x5c7   :  { %5311 = vmatmul.bf16.gmra.mxu2 %v18515_v12  ;;  %5218 = vmatmul.bf16.gmra.mxu0 %v4341_v53 }
 0x5c8   :  { %5338 = vmatpush.bf16.msra.mxu3 %v16145_v34 }
 0x5ca   :  { %v18659_v24 = vpop.f32.mrf.mxu3  ;;  %v5116_v7 = vpop.f32.mrf.mxu2 }
 0x5cb   :  { %v18661_v56 = vadd.f32 %v5116_v7, %v5068_v48  ;;  %v4278_v7 = vld [vmem:[#allocation2 + $0x52] sm:$0xff] }
 0x5cc   :  { %v18669_v0 = vpop.f32.mrf.mxu0  ;;  %5339 = vmatpush.bf16.msra.mxu3 %v16144_v21  ;;  %v4282_v21 = vld [vmem:[#allocation2 + $0x92] sm:$0xff] }
 0x5cd   :  { %v5072_v33 = vpop.f32.mrf.mxu1 }
 0x5cf   :  { %5169 = vmatmul.bf16.gmra.mxu3 %v4340_v29 }
 0x5d0   :  { %5267 = vmatmul.bf16.gmra.mxu1 %v18560_v40 }
 0x5d2   :  { %v4974_v12 = vpop.f32.mrf.mxu3  ;;  %v18667_v30 = vpop.f32.mrf.mxu2 }
 0x5d3   :  { %v5024_v16 = vadd.f32 %v5023_v11, %v4974_v12 }
 0x5d4   :  { %v5028_v41 = vpop.f32.mrf.mxu0 }
 0x5d5   :  { %v18671_v13 = vpop.f32.mrf.mxu1  ;;  %v5073_v49 = vadd.f32 %v5072_v33, %v5024_v16 }
 0x5d7   :  { %5316 = vmatmul.bf16.gmra.mxu2 %v18547_v8  ;;  %5223 = vmatmul.bf16.gmra.mxu0 %v4350_v39  ;;  %v4279_v39 = vld [vmem:[#allocation2 + $0x62] sm:$0xff] }
 0x5da   :  { %v18676_v28 = vpop.f32.mrf.mxu3  ;;  %v5121_v29 = vpop.f32.mrf.mxu2 }
 0x5db   :  { %v18678_v40 = vadd.f32 %v5121_v29, %v5073_v49 }
 0x5dc   :  { %v18690_v44 = vpop.f32.mrf.mxu0 }
 0x5dd   :  { %v5077_v50 = vpop.f32.mrf.mxu1 }
 0x5df   :  { %5174 = vmatmul.bf16.gmra.mxu3 %v19428_v27 }
 0x5e0   :  { %5272 = vmatmul.bf16.gmra.mxu1 %v18586_v19 }
 0x5e2   :  { %v4979_v9 = vpop.f32.mrf.mxu3  ;;  %v18684_v8 = vpop.f32.mrf.mxu2 }
 0x5e3   :  { %v5029_v15 = vadd.f32 %v5028_v41, %v4979_v9  ;;  %v4284_v9 = vld [vmem:[#allocation2 + $0xd2] sm:$0xff] }
 0x5e4   :  { %v5033_v62 = vpop.f32.mrf.mxu0 }
 0x5e5   :  { %v5078_v43 = vadd.f32 %v5077_v50, %v5029_v15  ;;  %v18693_v42 = vpop.f32.mrf.mxu1 }
 0x5e7   :  { %5321 = vmatmul.bf16.gmra.mxu2 %v18574_v23  ;;  %5228 = vmatmul.bf16.gmra.mxu0 %v4359_v5  ;;  %v4274_v23 = vld [vmem:[#allocation2 + $0x131] sm:$0xff] }
 0x5e8   :  { %v4361_v1 = vpack.c.bf16 %v4274_v23, %v18579_v22  ;;  %v4277_v22 = vld [vmem:[#allocation2 + $0x42] sm:$0xff] }
 0x5e9   :  { %v4308_v51 = vpack.c.bf16 %v4278_v7, %v4277_v22  ;;  %v16157_v7 = vld [vmem:[#allocation3 + $0x928] sm:$0xff] }
 0x5ea   :  { %v18695_v26 = vpop.f32.mrf.mxu3  ;;  %v5126_v14 = vpop.f32.mrf.mxu2 }
 0x5eb   :  { %v18697_v19 = vadd.f32 %v5126_v14, %v5078_v43  ;;  %v4283_v43 = vld [vmem:[#allocation2 + $0xc2] sm:$0xff] }
 0x5ed   :  { %v5082_v38 = vpop.f32.mrf.mxu1 }
 0x5ef   :  { %5179 = vmatmul.bf16.gmra.mxu3 %v4358_v63  ;;  %v4299_v63 = vpack.c.bf16 %v4276_v2, %v4275_v45  ;;  %v16158_v45 = vld [vmem:[#allocation3 + $0x930] sm:$0xff] }
 0x5f0   :  { %5277 = vmatmul.bf16.gmra.mxu1 %v4360_v60  ;;  %v4285_v60 = vld [vmem:[#allocation2 + $0xe2] sm:$0xff] }
 0x5f2   :  { %v4984_v61 = vpop.f32.mrf.mxu3  ;;  %v18704_v20 = vpop.f32.mrf.mxu2 }
 0x5f3   :  { %v5034_v59 = vadd.f32 %v5033_v62, %v4984_v61 }
 0x5f5   :  { %v5083_v58 = vadd.f32 %v5082_v38, %v5034_v59  ;;  %v16159_v59 = vld [vmem:[#allocation3 + $0x938] sm:$0xff] }
 0x5f6   :  { %v16167_v38 = vld [vmem:[#allocation3 + $0x978] sm:$0xff]  ;;  %6248 = vmatpush.bf16.msrb.mxu0 %v16159_v59  ;;  %v16170_v59 = vld [vmem:[#allocation3 + $0x990] sm:$0xff] }
 0x5f7   :  { %5326 = vmatmul.bf16.gmra.mxu2 %v4361_v1  ;;  %v16175_v1 = vld [vmem:[#allocation3 + $0x9b8] sm:$0xff]  ;;  %6297 = vmatpush.bf16.msrb.mxu1 %v16167_v38  ;;  %v16180_v38 = vld [vmem:[#allocation3 + $0x9e0] sm:$0xff] }
 0x5f8   :  { %6346 = vmatpush.bf16.msrb.mxu2 %v16175_v1 }
 0x5fa   :  { %v18707_v54 = vpop.f32.mrf.mxu3  ;;  %v5131_v48 = vpop.f32.mrf.mxu2  ;;  %6249 = vmatpush.bf16.msrb.mxu0 %v16158_v45 }
 0x5fb   :  { %v18709_v17 = vadd.f32 %v5131_v48, %v5083_v58  ;;  %v16166_v48 = vld [vmem:[#allocation3 + $0x970] sm:$0xff] }
 0x5fc   :  { %6298 = vmatpush.bf16.msrb.mxu1 %v16166_v48 }
 0x5fe   :  { %6250 = vmatpush.bf16.msrb.mxu0 %v16157_v7 }
 0x5ff   :  { %5340 = vmatmul.bf16.vlgmr.msra.gmra.mxu3 %v4299_v63  ;;  %v16174_v63 = vld [vmem:[#allocation3 + $0x9b0] sm:$0xff] }
 0x600   :  { %6347 = vmatpush.bf16.msrb.mxu2 %v16174_v63  ;;  %v16169_v63 = vld [vmem:[#allocation3 + $0x988] sm:$0xff] }
 0x602   :  { %v5145_v53 = vpop.f32.mrf.mxu3  ;;  %v18748_v58 = vpop.f32.mrf.mxu2 }
 0x603   :  { %v18712_v25 = vadd.f32 %v5145_v53, %v18608_v52  ;;  %v4317_v52 = vpack.c.bf16 %v4280_v6, %v4279_v39  ;;  %v16183_v53 = vld [vmem:[#allocation3 + $0x9f8] sm:$0xff] }
 0x604   :  { %6395 = vmatpush.bf16.msrb.mxu3 %v16183_v53  ;;  %v16179_v53 = vld [vmem:[#allocation3 + $0x9d8] sm:$0xff] }
 0x60a   :  { %v5147_v11 = vpop.f32.mrf.mxu3  ;;  %v18757_v22 = vpop.f32.mrf.mxu2 }
 0x60b   :  { %v18715_v33 = vadd.f32 %v5147_v11, %v18614_v35 }
 0x60f   :  { %5345 = vmatmul.bf16.gmra.mxu3 %v4308_v51  ;;  %v16173_v51 = vld [vmem:[#allocation3 + $0x9a8] sm:$0xff] }
 0x610   :  { %6348 = vmatpush.bf16.msrb.mxu2 %v16173_v51 }
 0x612   :  { %v5150_v36 = vpop.f32.mrf.mxu3 }
 0x613   :  { %v18718_v12 = vadd.f32 %v5150_v36, %v18619_v55  ;;  %v4326_v55 = vpack.c.bf16 %v4282_v21, %v18625_v18  ;;  %v4286_v18 = vld [vmem:[#allocation2 + $0xf2] sm:$0xff] }
 0x614   :  { %v4344_v62 = vpack.c.bf16 %v4286_v18, %v4285_v60  ;;  %v16161_v18 = vld [vmem:[#allocation3 + $0x948] sm:$0xff] }
 0x61a   :  { %v5152_v16 = vpop.f32.mrf.mxu3 }
 0x61b   :  { %v18721_v49 = vadd.f32 %v5152_v16, %v18627_v3  ;;  %v16164_v16 = vld [vmem:[#allocation3 + $0x960] sm:$0xff] }
 0x61f   :  { %5350 = vmatmul.bf16.gmra.mxu3 %v4317_v52  ;;  %v16163_v52 = vld [vmem:[#allocation3 + $0x958] sm:$0xff] }
 0x622   :  { %v5155_v34 = vpop.f32.mrf.mxu3 }
 0x623   :  { %v18724_v29 = vadd.f32 %v5155_v34, %v18632_v10  ;;  %v4335_v10 = vpack.c.bf16 %v4284_v9, %v4283_v43  ;;  %v4290_v34 = vld [vmem:[#allocation2 + $0x132] sm:$0xff] }
 0x624   :  { %v16171_v9 = vld [vmem:[#allocation3 + $0x998] sm:$0xff]  ;;  %v16162_v43 = vld [vmem:[#allocation3 + $0x950] sm:$0xff] }
 0x62a   :  { %v5157_v35 = vpop.f32.mrf.mxu3 }
 0x62b   :  { %v18727_v41 = vadd.f32 %v5157_v35, %v18639_v47  ;;  %v18764_v35 = vpop.f32.mrf.mxu2 }
 0x62f   :  { %5355 = vmatmul.bf16.gmra.mxu3 %v4326_v55  ;;  %v16156_v55 = vld [vmem:[#allocation3 + $0x920] sm:$0xff] }
 0x630   :  { %6251 = vmatpush.bf16.msrb.mxu0 %v16156_v55  ;;  %v16177_v55 = vld [vmem:[#allocation3 + $0x9c8] sm:$0xff] }
 0x632   :  { %v5160_v50 = vpop.f32.mrf.mxu3 }
 0x633   :  { %v18731_v27 = vadd.f32 %v5160_v50, %v18644_v57  ;;  %v18741_v57 = vpop.f32.mrf.mxu0  ;;  %v16172_v50 = vld [vmem:[#allocation3 + $0x9a0] sm:$0xff]  ;;  %v5297_v45 = vpop.f32.mrf.mxu2 }
 0x634   :  { %6349 = vmatpush.bf16.msrb.mxu2 %v16172_v50 }
 0x638   :  { %6350 = vmatpush.bf16.msrb.mxu2 %v16171_v9  ;;  %v18778_v9 = vld [vmem:[#allocation6 + $0x3] ss:$0 sm:$0xff] }
 0x63a   :  { %v5162_v3 = vpop.f32.mrf.mxu3 }
 0x63b   :  { %v18734_v15 = vadd.f32 %v5162_v3, %v18652_v37  ;;  %v18746_v37 = vpop.f32.mrf.mxu1  ;;  %v18752_v2 = vpop.f32.mrf.mxu0  ;;  %v16182_v3 = vld [vmem:[#allocation3 + $0x9f0] sm:$0xff] }
 0x63c   :  { %6396 = vmatpush.bf16.msrb.mxu3 %v16182_v3  ;;  %6351 = vmatpush.bf16.msrb.mxu2 %v16170_v59  ;;  %v5299_v50 = vpop.f32.mrf.mxu2 }
 0x63f   :  { %5360 = vmatmul.bf16.gmra.mxu3 %v4335_v10  ;;  %v4362_v10 = vpack.c.bf16 %v4290_v34, %v18686_v4  ;;  %v16153_v4 = vld [vmem:[#allocation3 + $0x908] sm:$0xff] }
 0x640   :  { %6352 = vmatpush.bf16.msrb.mxu2 %v16169_v63 }
 0x642   :  { %v5165_v5 = vpop.f32.mrf.mxu3 }
 0x643   :  { %v18737_v14 = vadd.f32 %v5165_v5, %v18661_v56  ;;  %v18754_v11 = vpop.f32.mrf.mxu1  ;;  %v5196_v39 = vpop.f32.mrf.mxu0  ;;  %v16181_v5 = vld [vmem:[#allocation3 + $0x9e8] sm:$0xff] }
 0x644   :  { %6397 = vmatpush.bf16.msrb.mxu3 %v16181_v5  ;;  %v5197_v5 = vadd.f32 %v5196_v39, %v18715_v33 }
 0x648   :  { %6398 = vmatpush.bf16.msrb.mxu3 %v16180_v38  ;;  %v5471_v38 = vld [vmem:[#allocation2 + $0x1] sm:$0xff] }
 0x64a   :  { %v18739_v47 = vpop.f32.mrf.mxu3 }
 0x64b   :  { %v5199_v60 = vpop.f32.mrf.mxu0 }
 0x64c   :  { %6399 = vmatpush.bf16.msrb.mxu3 %v16179_v53  ;;  %v5200_v33 = vadd.f32 %v5199_v60, %v18718_v12 }
 0x64f   :  { %5365 = vmatmul.bf16.gmra.mxu3 %v4344_v62 }
 0x652   :  { %v5170_v61 = vpop.f32.mrf.mxu3 }
 0x653   :  { %v18744_v23 = vadd.f32 %v5170_v61, %v18678_v40  ;;  %v16165_v40 = vld [vmem:[#allocation3 + $0x968] sm:$0xff]  ;;  %v16154_v61 = vld [vmem:[#allocation3 + $0x910] sm:$0xff]  ;;  %v5201_v7 = vpop.f32.mrf.mxu0 }
 0x654   :  { %6299 = vmatpush.bf16.msrb.mxu1 %v16165_v40  ;;  %v16160_v40 = vld [vmem:[#allocation3 + $0x940] sm:$0xff] }
 0x658   :  { %6300 = vmatpush.bf16.msrb.mxu1 %v16164_v16  ;;  %v16168_v16 = vld [vmem:[#allocation3 + $0x980] sm:$0xff] }
 0x659   :  { %6353 = vmatpush.bf16.msrb.mxu2 %v16168_v16 }
 0x65a   :  { %v18750_v56 = vpop.f32.mrf.mxu3 }
 0x65c   :  { %6301 = vmatpush.bf16.msrb.mxu1 %v16163_v52  ;;  %v16178_v52 = vld [vmem:[#allocation3 + $0x9d0] sm:$0xff] }
 0x65d   :  { %6400 = vmatpush.bf16.msrb.mxu3 %v16178_v52 }
 0x65f   :  { %5370 = vmatmul.bf16.gmra.mxu3 %v18590_v31  ;;  %v18762_v31 = vpop.f32.mrf.mxu1 }
 0x660   :  { %6302 = vmatpush.bf16.msrb.mxu1 %v16162_v43 }
 0x661   :  { %6401 = vmatpush.bf16.msrb.mxu3 %v16177_v55 }
 0x662   :  { %v5175_v36 = vpop.f32.mrf.mxu3 }
 0x663   :  { %v18760_v6 = vadd.f32 %v5175_v36, %v18697_v19  ;;  %v16155_v19 = vld [vmem:[#allocation3 + $0x918] sm:$0xff]  ;;  %v16152_v36 = vld [vmem:[#allocation3 + $0x900] sm:$0xff] }
 0x664   :  { %6252 = vmatpush.bf16.msrb.mxu0 %v16155_v19  ;;  %6303 = vmatpush.bf16.msrb.mxu1 %v16161_v18  ;;  %v5204_v18 = vpop.f32.mrf.mxu0 }
 0x667   :  { %v5248_v1 = vpop.f32.mrf.mxu1 }
 0x668   :  { %6253 = vmatpush.bf16.msrb.mxu0 %v16154_v61  ;;  %6304 = vmatpush.bf16.msrb.mxu1 %v16160_v40  ;;  %v5246_v61 = vadd.f32 %v18762_v31, %v5197_v5  ;;  %v5249_v16 = vadd.f32 %v5248_v1, %v5200_v33 }
 0x66a   :  { %v18766_v21 = vpop.f32.mrf.mxu3  ;;  %v5298_v55 = vadd.f32 %v5297_v45, %v5249_v16 }
 0x66c   :  { %6254 = vmatpush.bf16.msrb.mxu0 %v16153_v4  ;;  %v5295_v4 = vadd.f32 %v18764_v35, %v5246_v61 }
 0x66f   :  { %5375 = vmatmul.bf16.gmra.mxu3 %v4362_v10  ;;  %v5250_v34 = vpop.f32.mrf.mxu1  ;;  %v16176_v10 = vld [vmem:[#allocation3 + $0x9c0] sm:$0xff] }
 0x670   :  { %6255 = vmatpush.bf16.msrb.mxu0 %v16152_v36  ;;  %6402 = vmatpush.bf16.msrb.mxu3 %v16176_v10  ;;  %v5206_v36 = vpop.f32.mrf.mxu0 }
 0x672   :  { %v5180_v62 = vpop.f32.mrf.mxu3 }
 0x673   :  { %v18770_v48 = vadd.f32 %v5180_v62, %v18709_v17  ;;  %v5195_v17 = vadd.f32 %v18752_v2, %v18712_v25  ;;  %v18781_v25 = vld [vmem:[#allocation8 + $0x3] ss:$0 sm:$0xff] }
 0x675   :  { %v5244_v3 = vadd.f32 %v18754_v11, %v5195_v17  ;;  %v5487_v17 = vld [vmem:[#allocation2 + $0x2] sm:$0xff] }
 0x677   :  { %v5293_v19 = vadd.f32 %v18757_v22, %v5244_v3  ;;  %v5253_v59 = vpop.f32.mrf.mxu1  ;;  %v5302_v22 = vpop.f32.mrf.mxu2 }
 0x67a   :  { %v18772_v51 = vpop.f32.mrf.mxu3 }
 0x67f   :  { %v5255_v35 = vpop.f32.mrf.mxu1  ;;  %v5304_v12 = vpop.f32.mrf.mxu2 }
 0x682   :  { %v5341_v43 = vpop.f32.mrf.mxu3 }
 0x683   :  { %v5342_v62 = vadd.f32 %v5341_v43, %v5293_v19  ;;  %v5202_v19 = vadd.f32 %v5201_v7, %v18721_v49  ;;  %v5209_v7 = vpop.f32.mrf.mxu0 }
 0x685   :  { %v5386_v2 = vmul.f32 %v18778_v9, %v5342_v62  ;;  %v18800_v62 = vld [vmem:[#allocation2] sm:$0xff]  ;;  %v5251_v49 = vadd.f32 %v5250_v34, %v5202_v19 }
 0x687   :  { %v5407_v11 = vadd.f32 %v18781_v25, %v5386_v2  ;;  %v5307_v34 = vpop.f32.mrf.mxu2 }
 0x689   :  { %v18787_v63 = vmax.f32 %v5407_v11, 0.0 }
 0x68a   :  { %v5343_v40 = vpop.f32.mrf.mxu3 }
 0x68b   :  { %5439 = vst [vmem:[#allocation2 + $0x11] sm:$0xff] %v18787_v63  ;;  %v5344_v39 = vadd.f32 %v5343_v40, %v5295_v4  ;;  %v5600_v53 = vpack.c.bf16 %v18787_v63, %v5471_v38  ;;  %v5300_v38 = vadd.f32 %v5299_v50, %v5251_v49 }
 0x68d   :  { %v5387_v31 = vmul.f32 %v18778_v9, %v5344_v39  ;;  %6305 = vmatmul.bf16.vlgmr.msrb.gmra.mxu1 %v5600_v53  ;;  %v5205_v39 = vadd.f32 %v5204_v18, %v18724_v29  ;;  %v5258_v53 = vpop.f32.mrf.mxu1  ;;  %v5211_v29 = vpop.f32.mrf.mxu0 }
 0x68f   :  { %v5408_v52 = vadd.f32 %v18781_v25, %v5387_v31  ;;  %v5254_v50 = vadd.f32 %v5253_v59, %v5205_v39 }
 0x691   :  { %v18794_v3 = vmax.f32 %v5408_v52, 0.0  ;;  %v5303_v19 = vadd.f32 %v5302_v22, %v5254_v50 }
 0x692   :  { %v5346_v60 = vpop.f32.mrf.mxu3  ;;  %v5456_v43 = vld [vmem:[#allocation2 + $0x10] sm:$0xff] }
 0x693   :  { %v18797_v10 = vld [vmem:[#allocation2 + $0x12] sm:$0xff]  ;;  %5440 = vst [vmem:[#allocation2 + $0x21] sm:$0xff] %v18794_v3  ;;  %v5347_v5 = vadd.f32 %v5346_v60, %v5298_v55  ;;  %v5599_v1 = vpack.c.bf16 %v5456_v43, %v18800_v62  ;;  %v5207_v60 = vadd.f32 %v5206_v36, %v18727_v41  ;;  %v5309_v36 = vpop.f32.mrf.mxu2 }
 0x694   :  { %v5601_v2 = vpack.c.bf16 %v18797_v10, %v5487_v17 }
 0x695   :  { %v5388_v61 = vmul.f32 %v18778_v9, %v5347_v5  ;;  %6256 = vmatmul.bf16.vlgmr.msrb.gmra.mxu0 %v5599_v1  ;;  %v5214_v50 = vpop.f32.mrf.mxu0 }
 0x696   :  { %6354 = vmatmul.bf16.vlgmr.msrb.gmra.mxu2 %v5601_v2 }
 0x697   :  { %v5409_v11 = vadd.f32 %v18781_v25, %v5388_v61 }
 0x699   :  { %v18808_v4 = vmax.f32 %v5409_v11, 0.0  ;;  %v5260_v11 = vpop.f32.mrf.mxu1 }
 0x69a   :  { %v5348_v40 = vpop.f32.mrf.mxu3  ;;  %v5504_v33 = vld [vmem:[#allocation2 + $0x20] sm:$0xff] }
 0x69b   :  { %5441 = vst [vmem:[#allocation2 + $0x31] sm:$0xff] %v18808_v4  ;;  %v5349_v31 = vadd.f32 %v5348_v40, %v5300_v38  ;;  %v5602_v16 = vpack.c.bf16 %v5504_v33, %v5456_v43  ;;  %v18814_v52 = vpack.c.bf16 %v18808_v4, %v18794_v3  ;;  %v18822_v1 = vld [vmem:[#allocation2 + $0x22] sm:$0xff]  ;;  %v5256_v38 = vadd.f32 %v5255_v35, %v5207_v60 }
 0x69d   :  { %v5389_v17 = vmul.f32 %v18778_v9, %v5349_v31  ;;  %6403 = vmatmul.bf16.vlgmr.msrb.gmra.mxu3 %v5602_v16  ;;  %6310 = vmatmul.bf16.gmra.mxu1 %v18814_v52  ;;  %v5305_v39 = vadd.f32 %v5304_v12, %v5256_v38 }
 0x69f   :  { %v5410_v55 = vadd.f32 %v18781_v25, %v5389_v17  ;;  %v5210_v17 = vadd.f32 %v5209_v7, %v18731_v27 }
 0x6a1   :  { %v18819_v18 = vmax.f32 %v5410_v55, 0.0  ;;  %v5259_v12 = vadd.f32 %v5258_v53, %v5210_v17  ;;  %v5263_v60 = vpop.f32.mrf.mxu1  ;;  %v5216_v17 = vpop.f32.mrf.mxu0 }
 0x6a2   :  { %v5351_v43 = vpop.f32.mrf.mxu3  ;;  %v5458_v5 = vld [vmem:[#allocation2 + $0x30] sm:$0xff] }
 0x6a3   :  { %v18824_v2 = vld [vmem:[#allocation2 + $0x32] sm:$0xff]  ;;  %5442 = vst [vmem:[#allocation2 + $0x41] sm:$0xff] %v18819_v18  ;;  %v5352_v61 = vadd.f32 %v5351_v43, %v5303_v19  ;;  %v18827_v49 = vpack.c.bf16 %v5458_v5, %v5504_v33  ;;  %v5308_v27 = vadd.f32 %v5307_v34, %v5259_v12 }
 0x6a4   :  { %v5610_v59 = vpack.c.bf16 %v18824_v2, %v18822_v1 }
 0x6a5   :  { %v5390_v41 = vmul.f32 %v18778_v9, %v5352_v61  ;;  %6261 = vmatmul.bf16.gmra.mxu0 %v18827_v49 }
 0x6a6   :  { %6359 = vmatmul.bf16.gmra.mxu2 %v5610_v59  ;;  %v5312_v59 = vpop.f32.mrf.mxu2 }
 0x6a7   :  { %v5411_v40 = vadd.f32 %v18781_v25, %v5390_v41  ;;  %v5212_v41 = vadd.f32 %v5211_v29, %v18734_v15  ;;  %v5021_v29 = vadd.f32 %v18650_v46, %v18659_v24 }
 0x6a9   :  { %v18836_v31 = vmax.f32 %v5411_v40, 0.0  ;;  %v5265_v12 = vpop.f32.mrf.mxu1 }
 0x6aa   :  { %v5353_v33 = vpop.f32.mrf.mxu3  ;;  %v5506_v16 = vld [vmem:[#allocation2 + $0x40] sm:$0xff] }
 0x6ab   :  { %5443 = vst [vmem:[#allocation2 + $0x51] sm:$0xff] %v18836_v31  ;;  %v5354_v55 = vadd.f32 %v5353_v33, %v5305_v39  ;;  %v5611_v19 = vpack.c.bf16 %v5506_v16, %v5458_v5  ;;  %v18842_v43 = vpack.c.bf16 %v18836_v31, %v18819_v18  ;;  %v18850_v40 = vld [vmem:[#allocation2 + $0x42] sm:$0xff] }
 0x6ad   :  { %v5391_v35 = vmul.f32 %v18778_v9, %v5354_v55  ;;  %6408 = vmatmul.bf16.gmra.mxu3 %v5611_v19  ;;  %6315 = vmatmul.bf16.gmra.mxu1 %v18842_v43  ;;  %v5261_v19 = vadd.f32 %v5260_v11, %v5212_v41  ;;  %v5219_v41 = vpop.f32.mrf.mxu0 }
 0x6af   :  { %v5412_v61 = vadd.f32 %v18781_v25, %v5391_v35 }
 0x6b1   :  { %v18847_v7 = vmax.f32 %v5412_v61, 0.0 }
 0x6b2   :  { %v5356_v5 = vpop.f32.mrf.mxu3  ;;  %v5460_v38 = vld [vmem:[#allocation2 + $0x50] sm:$0xff] }
 0x6b3   :  { %v18852_v39 = vld [vmem:[#allocation2 + $0x52] sm:$0xff]  ;;  %5444 = vst [vmem:[#allocation2 + $0x61] sm:$0xff] %v18847_v7  ;;  %v5357_v33 = vadd.f32 %v5356_v5, %v5308_v27  ;;  %v18855_v55 = vpack.c.bf16 %v5460_v38, %v5506_v16  ;;  %v5310_v16 = vadd.f32 %v5309_v36, %v5261_v19  ;;  %v5070_v27 = vadd.f32 %v18654_v32, %v5021_v29  ;;  %v5314_v5 = vpop.f32.mrf.mxu2 }
 0x6b4   :  { %v5619_v53 = vpack.c.bf16 %v18852_v39, %v18850_v40 }
 0x6b5   :  { %v5392_v15 = vmul.f32 %v18778_v9, %v5357_v33  ;;  %6266 = vmatmul.bf16.gmra.mxu0 %v18855_v55  ;;  %v5215_v33 = vadd.f32 %v5214_v50, %v18737_v14  ;;  %v5119_v24 = vadd.f32 %v18667_v30, %v5070_v27  ;;  %v5026_v27 = vadd.f32 %v18669_v0, %v18676_v28 }
 0x6b6   :  { %6364 = vmatmul.bf16.gmra.mxu2 %v5619_v53 }
 0x6b7   :  { %v5413_v35 = vadd.f32 %v18781_v25, %v5392_v15  ;;  %v5168_v32 = vadd.f32 %v18739_v47, %v5119_v24  ;;  %v5264_v36 = vadd.f32 %v5263_v60, %v5215_v33 }
 0x6b9   :  { %v18866_v61 = vmax.f32 %v5413_v35, 0.0  ;;  %v5313_v50 = vadd.f32 %v5312_v59, %v5264_v36  ;;  %v5268_v35 = vpop.f32.mrf.mxu1  ;;  %v5075_v36 = vadd.f32 %v18671_v13, %v5026_v27 }
 0x6ba   :  { %v5358_v34 = vpop.f32.mrf.mxu3  ;;  %v5508_v22 = vld [vmem:[#allocation2 + $0x60] sm:$0xff] }
 0x6bb   :  { %5445 = vst [vmem:[#allocation2 + $0x71] sm:$0xff] %v18866_v61  ;;  %v5359_v53 = vadd.f32 %v5358_v34, %v5310_v16  ;;  %v5620_v45 = vpack.c.bf16 %v5508_v22, %v5460_v38  ;;  %v18873_v46 = vpack.c.bf16 %v18866_v61, %v18847_v7  ;;  %v5217_v38 = vadd.f32 %v5216_v17, %v5168_v32  ;;  %v18882_v19 = vld [vmem:[#allocation2 + $0x62] sm:$0xff]  ;;  %v5317_v59 = vpop.f32.mrf.mxu2 }
 0x6bd   :  { %v5393_v11 = vmul.f32 %v18778_v9, %v5359_v53  ;;  %6413 = vmatmul.bf16.gmra.mxu3 %v5620_v45  ;;  %6320 = vmatmul.bf16.gmra.mxu1 %v18873_v46  ;;  %v5266_v33 = vadd.f32 %v5265_v12, %v5217_v38  ;;  %v5124_v12 = vadd.f32 %v18684_v8, %v5075_v36 }
 0x6bf   :  { %v5414_v14 = vadd.f32 %v18781_v25, %v5393_v11  ;;  %v5315_v24 = vadd.f32 %v5314_v5, %v5266_v33  ;;  %v5221_v11 = vpop.f32.mrf.mxu0  ;;  %v5173_v13 = vadd.f32 %v18750_v56, %v5124_v12 }
 0x6c1   :  { %v18880_v34 = vmax.f32 %v5414_v14, 0.0  ;;  %v5270_v5 = vpop.f32.mrf.mxu1 }
 0x6c2   :  { %v5361_v15 = vpop.f32.mrf.mxu3  ;;  %v5462_v29 = vld [vmem:[#allocation2 + $0x70] sm:$0xff] }
 0x6c3   :  { %v18884_v30 = vld [vmem:[#allocation2 + $0x72] sm:$0xff]  ;;  %5446 = vst [vmem:[#allocation2 + $0x81] sm:$0xff] %v18880_v34  ;;  %v5362_v45 = vadd.f32 %v5361_v15, %v5313_v50  ;;  %v18887_v16 = vpack.c.bf16 %v5462_v29, %v5508_v22  ;;  %v5630_v60 = vpack.c.bf16 %v18880_v34, %v18866_v61  ;;  %v5479_v22 = vld [vmem:[#allocation2 + $0xa1] sm:$0xff]  ;;  %v5220_v15 = vadd.f32 %v5219_v41, %v18744_v23 }
 0x6c4   :  { %v5628_v47 = vpack.c.bf16 %v18884_v30, %v18882_v19  ;;  %v5495_v41 = vld [vmem:[#allocation2 + $0xa2] sm:$0xff] }
 0x6c5   :  { %v5394_v17 = vmul.f32 %v18778_v9, %v5362_v45  ;;  %6271 = vmatmul.bf16.gmra.mxu0 %v18887_v16 }
 0x6c6   :  { %6369 = vmatmul.bf16.gmra.mxu2 %v5628_v47  ;;  %v5319_v47 = vpop.f32.mrf.mxu2 }
 0x6c7   :  { %v5415_v53 = vadd.f32 %v18781_v25, %v5394_v17  ;;  %v5269_v17 = vadd.f32 %v5268_v35, %v5220_v15  ;;  %v5224_v8 = vpop.f32.mrf.mxu0  ;;  %v16199_v15 = vld [vmem:[#allocation3 + $0xa78] sm:$0xff] }
 0x6c8   :  { %6493 = vmatpush.bf16.msra.mxu1 %v16199_v15 }
 0x6c9   :  { %v18898_v32 = vmax.f32 %v5415_v53, 0.0  ;;  %v5318_v27 = vadd.f32 %v5317_v59, %v5269_v17 }
 0x6ca   :  { %v5363_v14 = vpop.f32.mrf.mxu3  ;;  %v18901_v50 = vld [vmem:[#allocation2 + $0x80] sm:$0xff] }
 0x6cb   :  { %5447 = vst [vmem:[#allocation2 + $0xb1] sm:$0xff] %v18898_v32  ;;  %v5364_v45 = vadd.f32 %v5363_v14, %v5315_v24  ;;  %v5629_v0 = vpack.c.bf16 %v18901_v50, %v5462_v29  ;;  %v5636_v28 = vpack.c.bf16 %v18898_v32, %v5479_v22  ;;  %v5222_v29 = vadd.f32 %v5221_v11, %v5173_v13 }
 0x6cc   :  { %v5031_v11 = vadd.f32 %v18690_v44, %v18695_v26 }
 0x6cd   :  { %v5395_v38 = vmul.f32 %v18778_v9, %v5364_v45  ;;  %6418 = vmatmul.bf16.gmra.mxu3 %v5629_v0  ;;  %6325 = vmatmul.bf16.gmra.mxu1 %v5636_v28  ;;  %v5273_v45 = vpop.f32.mrf.mxu1  ;;  %v5271_v0 = vadd.f32 %v5270_v5, %v5222_v29  ;;  %v16191_v29 = vld [vmem:[#allocation3 + $0xa38] sm:$0xff] }
 0x6ce   :  { %v5322_v12 = vpop.f32.mrf.mxu2  ;;  %v5080_v17 = vadd.f32 %v18693_v42, %v5031_v11  ;;  %6444 = vmatpush.bf16.msra.mxu0 %v16191_v29  ;;  %v16215_v29 = vld [vmem:[#allocation3 + $0xaf8] sm:$0xff] }
 0x6cf   :  { %v5416_v23 = vadd.f32 %v18781_v25, %v5395_v38  ;;  %v5320_v38 = vadd.f32 %v5319_v47, %v5271_v0  ;;  %6591 = vmatpush.bf16.msra.mxu3 %v16215_v29  ;;  %v16213_v29 = vld [vmem:[#allocation3 + $0xae8] sm:$0xff] }
 0x6d0   :  { %v5129_v47 = vadd.f32 %v18704_v20, %v5080_v17 }
 0x6d1   :  { %v18911_v33 = vmax.f32 %v5416_v23, 0.0 }
 0x6d2   :  { %v5366_v53 = vpop.f32.mrf.mxu3  ;;  %v5464_v22 = vld [vmem:[#allocation2 + $0xb0] sm:$0xff] }
 0x6d3   :  { %v18913_v24 = vld [vmem:[#allocation2 + $0xb2] sm:$0xff]  ;;  %5448 = vst [vmem:[#allocation2 + $0xc1] sm:$0xff] %v18911_v33  ;;  %v5367_v36 = vadd.f32 %v5366_v53, %v5318_v27  ;;  %v5635_v14 = vpack.c.bf16 %v5464_v22, %v18800_v62  ;;  %v5639_v35 = vpack.c.bf16 %v18911_v33, %v18898_v32  ;;  %v5225_v53 = vadd.f32 %v5224_v8, %v18760_v6  ;;  %v16221_v32 = vld [vmem:[#allocation3 + $0xb28] sm:$0xff] }
 0x6d4   :  { %v5637_v56 = vpack.c.bf16 %v18913_v24, %v5495_v41  ;;  %v16198_v27 = vld [vmem:[#allocation3 + $0xa70] sm:$0xff]  ;;  %v5178_v6 = vadd.f32 %v18766_v21, %v5129_v47 }
 0x6d5   :  { %v5396_v59 = vmul.f32 %v18778_v9, %v5367_v36  ;;  %6276 = vmatmul.bf16.gmra.mxu0 %v5635_v14  ;;  %v16207_v36 = vld [vmem:[#allocation3 + $0xab8] sm:$0xff]  ;;  %6494 = vmatpush.bf16.msra.mxu1 %v16198_v27  ;;  %v5226_v14 = vpop.f32.mrf.mxu0  ;;  %v5274_v8 = vadd.f32 %v5273_v45, %v5225_v53  ;;  %v16190_v21 = vld [vmem:[#allocation3 + $0xa30] sm:$0xff] }
 0x6d6   :  { %6374 = vmatmul.bf16.gmra.mxu2 %v5637_v56  ;;  %v5227_v0 = vadd.f32 %v5226_v14, %v5178_v6  ;;  %6445 = vmatpush.bf16.msra.mxu0 %v16190_v21  ;;  %v16205_v14 = vld [vmem:[#allocation3 + $0xaa8] sm:$0xff] }
 0x6d7   :  { %v5417_v28 = vadd.f32 %v18781_v25, %v5396_v59  ;;  %6542 = vmatpush.bf16.msra.mxu2 %v16207_v36  ;;  %v5275_v59 = vpop.f32.mrf.mxu1  ;;  %v5323_v11 = vadd.f32 %v5322_v12, %v5274_v8  ;;  %v16206_v12 = vld [vmem:[#allocation3 + $0xab0] sm:$0xff]  ;;  %v16196_v36 = vld [vmem:[#allocation3 + $0xa60] sm:$0xff] }
 0x6d9   :  { %v18924_v13 = vmax.f32 %v5417_v28, 0.0  ;;  %v5324_v28 = vpop.f32.mrf.mxu2 }
 0x6da   :  { %v5368_v23 = vpop.f32.mrf.mxu3  ;;  %v5512_v41 = vld [vmem:[#allocation2 + $0xc0] sm:$0xff] }
 0x6db   :  { %5449 = vst [vmem:[#allocation2 + $0xd1] sm:$0xff] %v18924_v13  ;;  %v5369_v44 = vadd.f32 %v5368_v23, %v5320_v38  ;;  %v5638_v26 = vpack.c.bf16 %v5512_v41, %v5464_v22  ;;  %v18931_v5 = vpack.c.bf16 %v18924_v13, %v18911_v33  ;;  %v16197_v22 = vld [vmem:[#allocation3 + $0xa68] sm:$0xff]  ;;  %6543 = vmatpush.bf16.msra.mxu2 %v16206_v12  ;;  %v16204_v12 = vld [vmem:[#allocation3 + $0xaa0] sm:$0xff] }
 0x6dc   :  { %6495 = vmatpush.bf16.msra.mxu1 %v16197_v22  ;;  %v18940_v20 = vld [vmem:[#allocation2 + $0xc2] sm:$0xff]  ;;  %v5276_v22 = vadd.f32 %v5275_v59, %v5227_v0 }
 0x6dd   :  { %v5397_v42 = vmul.f32 %v18778_v9, %v5369_v44  ;;  %6423 = vmatmul.bf16.gmra.mxu3 %v5638_v26  ;;  %6330 = vmatmul.bf16.gmra.mxu1 %v18931_v5  ;;  %v16189_v26 = vld [vmem:[#allocation3 + $0xa28] sm:$0xff]  ;;  %v5229_v6 = vpop.f32.mrf.mxu0 }
 0x6de   :  { %6446 = vmatpush.bf16.msra.mxu0 %v16189_v26 }
 0x6df   :  { %v5418_v56 = vadd.f32 %v18781_v25, %v5397_v42  ;;  %v16214_v42 = vld [vmem:[#allocation3 + $0xaf0] sm:$0xff]  ;;  %6544 = vmatpush.bf16.msra.mxu2 %v16205_v14 }
 0x6e0   :  { %6496 = vmatpush.bf16.msra.mxu1 %v16196_v36  ;;  %6592 = vmatpush.bf16.msra.mxu3 %v16214_v42  ;;  %v5278_v36 = vpop.f32.mrf.mxu1  ;;  %v16212_v42 = vld [vmem:[#allocation3 + $0xae0] sm:$0xff] }
 0x6e1   :  { %v18938_v15 = vmax.f32 %v5418_v56, 0.0  ;;  %v16195_v56 = vld [vmem:[#allocation3 + $0xa58] sm:$0xff] }
 0x6e2   :  { %v5371_v38 = vpop.f32.mrf.mxu3  ;;  %v5466_v17 = vld [vmem:[#allocation2 + $0xd0] sm:$0xff] }
 0x6e3   :  { %v18942_v23 = vld [vmem:[#allocation2 + $0xd2] sm:$0xff]  ;;  %5450 = vst [vmem:[#allocation2 + $0xe1] sm:$0xff] %v18938_v15  ;;  %v5372_v27 = vadd.f32 %v5371_v38, %v5323_v11  ;;  %v18945_v45 = vpack.c.bf16 %v5466_v17, %v5512_v41  ;;  %v5648_v44 = vpack.c.bf16 %v18938_v15, %v18924_v13  ;;  %v5036_v41 = vadd.f32 %v18741_v57, %v18707_v54  ;;  %v16188_v11 = vld [vmem:[#allocation3 + $0xa20] sm:$0xff]  ;;  %v16217_v13 = vld [vmem:[#allocation3 + $0xb08] sm:$0xff] }
 0x6e4   :  { %v5646_v53 = vpack.c.bf16 %v18942_v23, %v18940_v20  ;;  %v5325_v38 = vadd.f32 %v5324_v28, %v5276_v22  ;;  %6497 = vmatpush.bf16.msra.mxu1 %v16195_v56  ;;  %v16194_v28 = vld [vmem:[#allocation3 + $0xa50] sm:$0xff]  ;;  %6447 = vmatpush.bf16.msra.mxu0 %v16188_v11 }
 0x6e5   :  { %v5398_v47 = vmul.f32 %v18778_v9, %v5372_v27  ;;  %6281 = vmatmul.bf16.gmra.mxu0 %v18945_v45  ;;  %v5085_v27 = vadd.f32 %v18746_v37, %v5036_v41  ;;  %6545 = vmatpush.bf16.msra.mxu2 %v16204_v12  ;;  %v5231_v56 = vpop.f32.mrf.mxu0 }
 0x6e6   :  { %6379 = vmatmul.bf16.gmra.mxu2 %v5646_v53  ;;  %v5230_v53 = vadd.f32 %v5229_v6, %v18770_v48  ;;  %v5327_v48 = vpop.f32.mrf.mxu2  ;;  %6593 = vmatpush.bf16.msra.mxu3 %v16213_v29 }
 0x6e7   :  { %v5419_v8 = vadd.f32 %v18781_v25, %v5398_v47  ;;  %v5134_v37 = vadd.f32 %v18748_v58, %v5085_v27  ;;  %v16187_v47 = vld [vmem:[#allocation3 + $0xa18] sm:$0xff]  ;;  %v16193_v58 = vld [vmem:[#allocation3 + $0xa48] sm:$0xff] }
 0x6e8   :  { %v5279_v6 = vadd.f32 %v5278_v36, %v5230_v53  ;;  %6498 = vmatpush.bf16.msra.mxu1 %v16194_v28  ;;  %6448 = vmatpush.bf16.msra.mxu0 %v16187_v47  ;;  %v16211_v53 = vld [vmem:[#allocation3 + $0xad8] sm:$0xff]  ;;  %v16192_v36 = vld [vmem:[#allocation3 + $0xa40] sm:$0xff] }
 0x6e9   :  { %v18956_v21 = vmax.f32 %v5419_v8, 0.0  ;;  %v5183_v14 = vadd.f32 %v18772_v51, %v5134_v37  ;;  %v16186_v8 = vld [vmem:[#allocation3 + $0xa10] sm:$0xff] }
 0x6ea   :  { %v5373_v54 = vpop.f32.mrf.mxu3  ;;  %v5514_v57 = vld [vmem:[#allocation2 + $0xe0] sm:$0xff]  ;;  %v5328_v11 = vadd.f32 %v5327_v48, %v5279_v6  ;;  %6594 = vmatpush.bf16.msra.mxu3 %v16212_v42  ;;  %v16185_v48 = vld [vmem:[#allocation3 + $0xa08] sm:$0xff]  ;;  %v16210_v42 = vld [vmem:[#allocation3 + $0xad0] sm:$0xff] }
 0x6eb   :  { %5451 = vst [vmem:[#allocation2 + $0xf1] sm:$0xff] %v18956_v21  ;;  %v5374_v59 = vadd.f32 %v5373_v54, %v5325_v38  ;;  %v5647_v0 = vpack.c.bf16 %v5514_v57, %v5466_v17  ;;  %v18963_v26 = vpack.c.bf16 %v18956_v21, %v18938_v15  ;;  %v16203_v17 = vld [vmem:[#allocation3 + $0xa98] sm:$0xff]  ;;  %v18972_v27 = vld [vmem:[#allocation2 + $0xe2] sm:$0xff]  ;;  %v16202_v54 = vld [vmem:[#allocation3 + $0xa90] sm:$0xff] }
 0x6ec   :  { %6546 = vmatpush.bf16.msra.mxu2 %v16203_v17  ;;  %6499 = vmatpush.bf16.msra.mxu1 %v16193_v58  ;;  %v16184_v58 = vld [vmem:[#allocation3 + $0xa00] sm:$0xff] }
 0x6ed   :  { %v5399_v41 = vmul.f32 %v18778_v9, %v5374_v59  ;;  %6428 = vmatmul.bf16.gmra.mxu3 %v5647_v0  ;;  %6335 = vmatmul.bf16.gmra.mxu1 %v18963_v26  ;;  %v5232_v59 = vadd.f32 %v5231_v56, %v5183_v14  ;;  %v5280_v14 = vpop.f32.mrf.mxu1 }
 0x6ee   :  { %6449 = vmatpush.bf16.msra.mxu0 %v16186_v8  ;;  %v5329_v17 = vpop.f32.mrf.mxu2  ;;  %6595 = vmatpush.bf16.msra.mxu3 %v16211_v53 }
 0x6ef   :  { %v5420_v22 = vadd.f32 %v18781_v25, %v5399_v41  ;;  %v5281_v6 = vadd.f32 %v5280_v14, %v5232_v59 }
 0x6f0   :  { %6547 = vmatpush.bf16.msra.mxu2 %v16202_v54  ;;  %6500 = vmatpush.bf16.msra.mxu1 %v16192_v36 }
 0x6f1   :  { %v18970_v38 = vmax.f32 %v5420_v22, 0.0  ;;  %v5330_v8 = vadd.f32 %v5329_v17, %v5281_v6 }
 0x6f2   :  { %v5376_v51 = vpop.f32.mrf.mxu3  ;;  %v5468_v12 = vld [vmem:[#allocation2 + $0xf0] sm:$0xff]  ;;  %6450 = vmatpush.bf16.msra.mxu0 %v16185_v48  ;;  %6596 = vmatpush.bf16.msra.mxu3 %v16210_v42  ;;  %v16208_v48 = vld [vmem:[#allocation3 + $0xac0] sm:$0xff] }
 0x6f3   :  { %v18974_v0 = vld [vmem:[#allocation2 + $0xf2] sm:$0xff]  ;;  %5452 = vst [vmem:[#allocation2 + $0x101] sm:$0xff] %v18970_v38  ;;  %v5377_v29 = vadd.f32 %v5376_v51, %v5328_v11  ;;  %v18977_v28 = vpack.c.bf16 %v5468_v12, %v5514_v57  ;;  %v5657_v47 = vpack.c.bf16 %v18970_v38, %v18956_v21  ;;  %v16201_v57 = vld [vmem:[#allocation3 + $0xa88] sm:$0xff] }
 0x6f4   :  { %v5655_v37 = vpack.c.bf16 %v18974_v0, %v18972_v27  ;;  %6548 = vmatpush.bf16.msra.mxu2 %v16201_v57 }
 0x6f5   :  { %v5400_v41 = vmul.f32 %v18778_v9, %v5377_v29  ;;  %6286 = vmatmul.bf16.gmra.mxu0 %v18977_v28  ;;  %v16200_v29 = vld [vmem:[#allocation3 + $0xa80] sm:$0xff] }
 0x6f6   :  { %6384 = vmatmul.bf16.gmra.mxu2 %v5655_v37  ;;  %v16209_v37 = vld [vmem:[#allocation3 + $0xac8] sm:$0xff]  ;;  %6451 = vmatpush.bf16.msra.mxu0 %v16184_v58 }
 0x6f7   :  { %v5421_v22 = vadd.f32 %v18781_v25, %v5400_v41  ;;  %6597 = vmatpush.bf16.msra.mxu3 %v16209_v37  ;;  %v19429_v37 = vpack.c.bf16 %v18794_v3, %v18787_v63 }
 0x6f8   :  { %6549 = vmatpush.bf16.msra.mxu2 %v16200_v29 }
 0x6f9   :  { %v18986_v56 = vmax.f32 %v5421_v22, 0.0 }
 0x6fa   :  { %v5378_v11 = vpop.f32.mrf.mxu3  ;;  %v5516_v51 = vld [vmem:[#allocation2 + $0x100] sm:$0xff] }
 0x6fb   :  { %5453 = vst [vmem:[#allocation2 + $0x111] sm:$0xff] %v18986_v56  ;;  %v5379_v54 = vadd.f32 %v5378_v11, %v5330_v8  ;;  %v5656_v53 = vpack.c.bf16 %v5516_v51, %v5468_v12  ;;  %v18991_v59 = vpack.c.bf16 %v18986_v56, %v18970_v38  ;;  %v18998_v57 = vld [vmem:[#allocation2 + $0x102] sm:$0xff]  ;;  %6598 = vmatpush.bf16.msra.mxu3 %v16208_v48 }
 0x6fc   :  { %v5604_v8 = vpack.c.bf16 %v18822_v1, %v18797_v10 }
 0x6fd   :  { %v5401_v36 = vmul.f32 %v18778_v9, %v5379_v54  ;;  %6433 = vmatmul.bf16.gmra.mxu3 %v5656_v53  ;;  %6340 = vmatmul.bf16.gmra.mxu1 %v18991_v59 }
 0x6ff   :  { %v5422_v41 = vadd.f32 %v18781_v25, %v5401_v36 }
 0x701   :  { %v18996_v14 = vmax.f32 %v5422_v41, 0.0 }
 0x702   :  { %v5470_v17 = vld [vmem:[#allocation2 + $0x110] sm:$0xff] }
 0x703   :  { %v19000_v12 = vld [vmem:[#allocation2 + $0x112] sm:$0xff]  ;;  %5454 = vst [vmem:[#allocation2 + $0x121] sm:$0xff] %v18996_v14  ;;  %v19003_v42 = vpack.c.bf16 %v5470_v17, %v5516_v51  ;;  %v5666_v6 = vpack.c.bf16 %v18996_v14, %v18986_v56 }
 0x704   :  { %v19007_v9 = vpack.c.bf16 %v19000_v12, %v18998_v57 }
 0x705   :  { %6291 = vmatmul.bf16.gmra.mxu0 %v19003_v42 }
 0x706   :  { %6389 = vmatmul.bf16.gmra.mxu2 %v19007_v9 }
 0x70a   :  { %v19013_v25 = vld [vmem:[#allocation2 + $0x120] sm:$0xff]  ;;  %v6306_v22 = vpop.f32.mrf.mxu1 }
 0x70b   :  { %v5665_v58 = vpack.c.bf16 %v19013_v25, %v5470_v17  ;;  %v5613_v17 = vpack.c.bf16 %v18850_v40, %v18824_v2 }
 0x70d   :  { %6438 = vmatmul.bf16.gmra.mxu3 %v5665_v58  ;;  %6501 = vmatmul.bf16.vlgmr.msra.gmra.mxu1 %v5604_v8 }
 0x712   :  { %v6257_v11 = vpop.f32.mrf.mxu0  ;;  %v6308_v51 = vpop.f32.mrf.mxu1 }
 0x713   :  { %v6307_v29 = vadd.f32 %v6306_v22, %v6257_v11 }
 0x715   :  { %6452 = vmatmul.bf16.vlgmr.msra.gmra.mxu0 %v19429_v37 }
 0x716   :  { %6550 = vmatmul.bf16.vlgmr.msra.gmra.mxu2 %v18827_v49  ;;  %v19430_v49 = vpack.c.bf16 %v18819_v18, %v18808_v4 }
 0x719   :  { %v6355_v54 = vpop.f32.mrf.mxu2 }
 0x71a   :  { %v6356_v53 = vadd.f32 %v6355_v54, %v6307_v29  ;;  %v6259_v36 = vpop.f32.mrf.mxu0  ;;  %v6311_v48 = vpop.f32.mrf.mxu1  ;;  %v5622_v54 = vpack.c.bf16 %v18882_v19, %v18852_v39  ;;  %v19042_v39 = vld [vmem:[#allocation2 + $0x82] sm:$0xff] }
 0x71b   :  { %v6309_v41 = vadd.f32 %v6308_v51, %v6259_v36 }
 0x71d   :  { %6599 = vmatmul.bf16.vlgmr.msra.gmra.mxu3 %v18814_v52  ;;  %6506 = vmatmul.bf16.gmra.mxu1 %v5613_v17  ;;  %v19431_v17 = vpack.c.bf16 %v18847_v7, %v18836_v31 }
 0x720   :  { %v6404_v1 = vpop.f32.mrf.mxu3 }
 0x721   :  { %v6357_v10 = vpop.f32.mrf.mxu2  ;;  %v19025_v58 = vadd.f32 %v6404_v1, %v6356_v53 }
 0x722   :  { %v6358_v22 = vadd.f32 %v6357_v10, %v6309_v41  ;;  %v6262_v63 = vpop.f32.mrf.mxu0  ;;  %v6313_v3 = vpop.f32.mrf.mxu1 }
 0x723   :  { %v6312_v8 = vadd.f32 %v6311_v48, %v6262_v63 }
 0x725   :  { %6457 = vmatmul.bf16.gmra.mxu0 %v19430_v49 }
 0x726   :  { %6555 = vmatmul.bf16.gmra.mxu2 %v18855_v55 }
 0x728   :  { %v6406_v51 = vpop.f32.mrf.mxu3 }
 0x729   :  { %v6360_v11 = vpop.f32.mrf.mxu2  ;;  %v19031_v40 = vadd.f32 %v6406_v51, %v6358_v22 }
 0x72a   :  { %v6361_v2 = vadd.f32 %v6360_v11, %v6312_v8  ;;  %v6264_v52 = vpop.f32.mrf.mxu0  ;;  %v6316_v29 = vpop.f32.mrf.mxu1  ;;  %v5631_v8 = vpack.c.bf16 %v19042_v39, %v18884_v30 }
 0x72b   :  { %v6314_v37 = vadd.f32 %v6313_v3, %v6264_v52  ;;  %v5632_v52 = vpack.c.bf16 %v18800_v62, %v18901_v50 }
 0x72d   :  { %6604 = vmatmul.bf16.gmra.mxu3 %v18842_v43  ;;  %6511 = vmatmul.bf16.gmra.mxu1 %v5622_v54 }
 0x730   :  { %v6409_v36 = vpop.f32.mrf.mxu3 }
 0x731   :  { %v6362_v53 = vpop.f32.mrf.mxu2  ;;  %v19036_v18 = vadd.f32 %v6409_v36, %v6361_v2 }
 0x732   :  { %v6363_v4 = vadd.f32 %v6362_v53, %v6314_v37  ;;  %v6267_v55 = vpop.f32.mrf.mxu0  ;;  %v6318_v48 = vpop.f32.mrf.mxu1 }
 0x733   :  { %v6317_v41 = vadd.f32 %v6316_v29, %v6267_v55 }
 0x735   :  { %6462 = vmatmul.bf16.gmra.mxu0 %v19431_v17 }
 0x736   :  { %6560 = vmatmul.bf16.gmra.mxu2 %v18887_v16 }
 0x738   :  { %v6411_v1 = vpop.f32.mrf.mxu3 }
 0x739   :  { %v6365_v10 = vpop.f32.mrf.mxu2  ;;  %v19044_v19 = vadd.f32 %v6411_v1, %v6363_v4 }
 0x73a   :  { %v6366_v43 = vadd.f32 %v6365_v10, %v6317_v41  ;;  %v6269_v22 = vpop.f32.mrf.mxu0  ;;  %v6321_v63 = vpop.f32.mrf.mxu1 }
 0x73b   :  { %v6319_v3 = vadd.f32 %v6318_v48, %v6269_v22  ;;  %v5640_v48 = vpack.c.bf16 %v18940_v20, %v18913_v24 }
 0x73d   :  { %6609 = vmatmul.bf16.gmra.mxu3 %v18873_v46  ;;  %6516 = vmatmul.bf16.gmra.mxu1 %v5631_v8  ;;  %v5574_v46 = vld [vmem:[#allocation2 + $0x91] sm:$0xff]  ;;  %v5649_v8 = vpack.c.bf16 %v18972_v27, %v18942_v23 }
 0x73e   :  { %v5633_v55 = vpack.c.bf16 %v5574_v46, %v18880_v34  ;;  %v16223_v34 = vld [vmem:[#allocation3 + $0xb38] sm:$0xff] }
 0x73f   :  { %6640 = vmatpush.bf16.msrb.mxu0 %v16223_v34 }
 0x740   :  { %v6414_v7 = vpop.f32.mrf.mxu3 }
 0x741   :  { %v6367_v31 = vpop.f32.mrf.mxu2  ;;  %v19049_v16 = vadd.f32 %v6414_v7, %v6366_v43 }
 0x742   :  { %v6368_v49 = vadd.f32 %v6367_v31, %v6319_v3  ;;  %v6272_v11 = vpop.f32.mrf.mxu0  ;;  %v6323_v51 = vpop.f32.mrf.mxu1  ;;  %v16222_v31 = vld [vmem:[#allocation3 + $0xb30] sm:$0xff] }
 0x743   :  { %v6322_v2 = vadd.f32 %v6321_v63, %v6272_v11  ;;  %6641 = vmatpush.bf16.msrb.mxu0 %v16222_v31 }
 0x745   :  { %6467 = vmatmul.bf16.gmra.mxu0 %v5630_v60 }
 0x746   :  { %6565 = vmatmul.bf16.gmra.mxu2 %v5632_v52 }
 0x747   :  { %6642 = vmatpush.bf16.msrb.mxu0 %v16221_v32 }
 0x748   :  { %v6416_v29 = vpop.f32.mrf.mxu3 }
 0x749   :  { %v6370_v30 = vpop.f32.mrf.mxu2  ;;  %v19056_v54 = vadd.f32 %v6416_v29, %v6368_v49  ;;  %v16218_v29 = vld [vmem:[#allocation3 + $0xb10] sm:$0xff] }
 0x74a   :  { %v6371_v37 = vadd.f32 %v6370_v30, %v6322_v2  ;;  %v6274_v53 = vpop.f32.mrf.mxu0  ;;  %v6326_v36 = vpop.f32.mrf.mxu1  ;;  %v5658_v30 = vpack.c.bf16 %v18998_v57, %v18974_v0  ;;  %v16216_v0 = vld [vmem:[#allocation3 + $0xb00] sm:$0xff] }
 0x74b   :  { %v6324_v4 = vadd.f32 %v6323_v51, %v6274_v53  ;;  %v16220_v51 = vld [vmem:[#allocation3 + $0xb20] sm:$0xff] }
 0x74c   :  { %6643 = vmatpush.bf16.msrb.mxu0 %v16220_v51 }
 0x74d   :  { %6614 = vmatmul.bf16.gmra.mxu3 %v5633_v55  ;;  %6521 = vmatmul.bf16.gmra.mxu1 %v5640_v48 }
 0x750   :  { %v6419_v61 = vpop.f32.mrf.mxu3 }
 0x751   :  { %v6372_v50 = vpop.f32.mrf.mxu2  ;;  %v19061_v41 = vadd.f32 %v6419_v61, %v6371_v37 }
 0x752   :  { %v6373_v60 = vadd.f32 %v6372_v50, %v6324_v4  ;;  %v6277_v17 = vpop.f32.mrf.mxu0  ;;  %v19063_v10 = vpop.f32.mrf.mxu1  ;;  %v19105_v4 = vld [vmem:[#allocation2 + $0x122] sm:$0xff] }
 0x753   :  { %v6327_v1 = vadd.f32 %v6326_v36, %v6277_v17  ;;  %v5667_v50 = vpack.c.bf16 %v19105_v4, %v19000_v12  ;;  %v5668_v17 = vpack.c.bf16 %v18800_v62, %v19013_v25  ;;  %v5583_v62 = vld [vmem:[#allocation2 + $0x22] sm:$0xff] }
 0x755   :  { %6472 = vmatmul.bf16.gmra.mxu0 %v5639_v35 }
 0x756   :  { %6570 = vmatmul.bf16.gmra.mxu2 %v18945_v45 }
 0x758   :  { %v6421_v20 = vpop.f32.mrf.mxu3 }
 0x759   :  { %v6375_v24 = vpop.f32.mrf.mxu2  ;;  %v19069_v22 = vadd.f32 %v6421_v20, %v6373_v60 }
 0x75a   :  { %v6376_v43 = vadd.f32 %v6375_v24, %v6327_v1  ;;  %v19071_v63 = vpop.f32.mrf.mxu0  ;;  %v6331_v3 = vpop.f32.mrf.mxu1 }
 0x75d   :  { %6619 = vmatmul.bf16.gmra.mxu3 %v18931_v5  ;;  %6526 = vmatmul.bf16.gmra.mxu1 %v5649_v8  ;;  %v16219_v5 = vld [vmem:[#allocation3 + $0xb18] sm:$0xff] }
 0x75e   :  { %6644 = vmatpush.bf16.msrb.mxu0 %v16219_v5 }
 0x760   :  { %v6424_v35 = vpop.f32.mrf.mxu3 }
 0x761   :  { %v19076_v33 = vpop.f32.mrf.mxu2  ;;  %v19078_v45 = vadd.f32 %v6424_v35, %v6376_v43  ;;  %v5586_v35 = vld [vmem:[#allocation2 + $0x52] sm:$0xff] }
 0x762   :  { %v6282_v7 = vpop.f32.mrf.mxu0  ;;  %v19080_v11 = vpop.f32.mrf.mxu1  ;;  %6645 = vmatpush.bf16.msrb.mxu0 %v16218_v29 }
 0x763   :  { %v6332_v49 = vadd.f32 %v6331_v3, %v6282_v7  ;;  %v5584_v3 = vld [vmem:[#allocation2 + $0x32] sm:$0xff] }
 0x764   :  { %v5607_v56 = vpack.c.bf16 %v5584_v3, %v5583_v62 }
 0x765   :  { %6477 = vmatmul.bf16.gmra.mxu0 %v5648_v44 }
 0x766   :  { %6575 = vmatmul.bf16.gmra.mxu2 %v18977_v28  ;;  %6646 = vmatpush.bf16.msrb.mxu0 %v16217_v13 }
 0x768   :  { %v19086_v27 = vpop.f32.mrf.mxu3 }
 0x769   :  { %v6380_v23 = vpop.f32.mrf.mxu2 }
 0x76a   :  { %v6381_v2 = vadd.f32 %v6380_v23, %v6332_v49  ;;  %v19088_v52 = vpop.f32.mrf.mxu0  ;;  %v6336_v46 = vpop.f32.mrf.mxu1  ;;  %6647 = vmatpush.bf16.msrb.mxu0 %v16216_v0  ;;  %v5585_v49 = vld [vmem:[#allocation2 + $0x42] sm:$0xff] }
 0x76b   :  { %v5616_v51 = vpack.c.bf16 %v5586_v35, %v5585_v49 }
 0x76d   :  { %6624 = vmatmul.bf16.gmra.mxu3 %v18963_v26  ;;  %6531 = vmatmul.bf16.gmra.mxu1 %v5658_v30  ;;  %v5587_v30 = vld [vmem:[#allocation2 + $0x62] sm:$0xff] }
 0x770   :  { %v6429_v44 = vpop.f32.mrf.mxu3 }
 0x771   :  { %v19093_v15 = vpop.f32.mrf.mxu2  ;;  %v19095_v28 = vadd.f32 %v6429_v44, %v6381_v2 }
 0x772   :  { %v6287_v37 = vpop.f32.mrf.mxu0  ;;  %v19101_v26 = vpop.f32.mrf.mxu1 }
 0x773   :  { %v6337_v53 = vadd.f32 %v6336_v46, %v6287_v37 }
 0x775   :  { %6482 = vmatmul.bf16.gmra.mxu0 %v5657_v47 }
 0x776   :  { %6580 = vmatmul.bf16.gmra.mxu2 %v19003_v42 }
 0x778   :  { %v19103_v36 = vpop.f32.mrf.mxu3 }
 0x779   :  { %v6385_v57 = vpop.f32.mrf.mxu2 }
 0x77a   :  { %v6386_v55 = vadd.f32 %v6385_v57, %v6337_v53  ;;  %v19107_v48 = vpop.f32.mrf.mxu0  ;;  %v6341_v61 = vpop.f32.mrf.mxu1 }
 0x77d   :  { %6629 = vmatmul.bf16.gmra.mxu3 %v18991_v59  ;;  %6536 = vmatmul.bf16.gmra.mxu1 %v5667_v50  ;;  %v5582_v59 = vld [vmem:[#allocation2 + $0x131] sm:$0xff] }
 0x77e   :  { %v5669_v20 = vpack.c.bf16 %v5582_v59, %v18996_v14 }
 0x780   :  { %v6434_v38 = vpop.f32.mrf.mxu3 }
 0x781   :  { %v19112_v21 = vpop.f32.mrf.mxu2  ;;  %v19114_v47 = vadd.f32 %v6434_v38, %v6386_v55  ;;  %v5591_v55 = vld [vmem:[#allocation2 + $0xc2] sm:$0xff] }
 0x782   :  { %v6292_v42 = vpop.f32.mrf.mxu0 }
 0x783   :  { %v6342_v60 = vadd.f32 %v6341_v61, %v6292_v42  ;;  %v5594_v42 = vld [vmem:[#allocation2 + $0xf2] sm:$0xff]  ;;  %v5593_v61 = vld [vmem:[#allocation2 + $0xe2] sm:$0xff] }
 0x785   :  { %6487 = vmatmul.bf16.gmra.mxu0 %v5666_v6 }
 0x786   :  { %6585 = vmatmul.bf16.gmra.mxu2 %v5668_v17  ;;  %v5652_v17 = vpack.c.bf16 %v5594_v42, %v5593_v61 }
 0x788   :  { %v19121_v1 = vpop.f32.mrf.mxu3 }
 0x789   :  { %v6390_v12 = vpop.f32.mrf.mxu2 }
 0x78a   :  { %v6391_v34 = vadd.f32 %v6390_v12, %v6342_v60  ;;  %v19123_v24 = vpop.f32.mrf.mxu0  ;;  %v19156_v60 = vpop.f32.mrf.mxu1 }
 0x78d   :  { %6634 = vmatmul.bf16.gmra.mxu3 %v5669_v20 }
 0x790   :  { %v6439_v43 = vpop.f32.mrf.mxu3 }
 0x791   :  { %v6440_v8 = vadd.f32 %v6439_v43, %v6391_v34 }
 0x792   :  { %v6453_v31 = vpop.f32.mrf.mxu0  ;;  %v6502_v59 = vpop.f32.mrf.mxu1 }
 0x793   :  { %v19127_v25 = vadd.f32 %v6453_v31, %v19025_v58  ;;  %v5588_v58 = vld [vmem:[#allocation2 + $0x72] sm:$0xff] }
 0x795   :  { %6648 = vmatmul.bf16.vlgmr.msrb.gmra.mxu0 %v5607_v56 }
 0x798   :  { %v19163_v12 = vpop.f32.mrf.mxu3 }
 0x79a   :  { %v6455_v6 = vpop.f32.mrf.mxu0  ;;  %v6504_v31 = vpop.f32.mrf.mxu1 }
 0x79b   :  { %v19130_v32 = vadd.f32 %v6455_v6, %v19031_v40  ;;  %v5625_v40 = vpack.c.bf16 %v5588_v58, %v5587_v30  ;;  %v5598_v6 = vld [vmem:[#allocation2 + $0x132] sm:$0xff] }
 0x7a0   :  { %v6600_v20 = vpop.f32.mrf.mxu3 }
 0x7a2   :  { %v6458_v7 = vpop.f32.mrf.mxu0  ;;  %v6507_v35 = vpop.f32.mrf.mxu1 }
 0x7a3   :  { %v19133_v14 = vadd.f32 %v6458_v7, %v19036_v18  ;;  %v5590_v18 = vld [vmem:[#allocation2 + $0x92] sm:$0xff] }
 0x7a5   :  { %6653 = vmatmul.bf16.gmra.mxu0 %v5616_v51 }
 0x7a8   :  { %v6602_v56 = vpop.f32.mrf.mxu3 }
 0x7aa   :  { %v6460_v5 = vpop.f32.mrf.mxu0 }
 0x7ab   :  { %v19136_v23 = vadd.f32 %v6460_v5, %v19044_v19  ;;  %v5634_v19 = vpack.c.bf16 %v5590_v18, %v19042_v39  ;;  %v19158_v39 = vpop.f32.mrf.mxu2  ;;  %v5670_v5 = vpack.c.bf16 %v5598_v6, %v19105_v4  ;;  %v16231_v4 = vld [vmem:[#allocation9 + $0x38] sm:$0xff]  ;;  %v16238_v6 = vld [vmem:[#allocation9 + $0x70] sm:$0xff] }
 0x7ac   :  { %11378 = vmatpush.bf16.msrb.mxu1 %v16231_v4 }
 0x7b0   :  { %v6605_v58 = vpop.f32.mrf.mxu3 }
 0x7b2   :  { %v6463_v2 = vpop.f32.mrf.mxu0 }
 0x7b3   :  { %v19139_v29 = vadd.f32 %v6463_v2, %v19049_v16  ;;  %v5592_v16 = vld [vmem:[#allocation2 + $0xd2] sm:$0xff]  ;;  %v6551_v34 = vpop.f32.mrf.mxu2 }
 0x7b5   :  { %6658 = vmatmul.bf16.gmra.mxu0 %v5625_v40 }
 0x7b8   :  { %v19181_v40 = vpop.f32.mrf.mxu3 }
 0x7ba   :  { %v6465_v46 = vpop.f32.mrf.mxu0 }
 0x7bb   :  { %v19142_v13 = vadd.f32 %v6465_v46, %v19056_v54  ;;  %v5643_v54 = vpack.c.bf16 %v5592_v16, %v5591_v55  ;;  %v6553_v62 = vpop.f32.mrf.mxu2  ;;  %v16239_v16 = vld [vmem:[#allocation9 + $0x78] sm:$0xff]  ;;  %v6505_v55 = vadd.f32 %v6504_v31, %v19130_v32  ;;  %v16246_v32 = vld [vmem:[#allocation9 + $0xb0] sm:$0xff] }
 0x7bc   :  { %11391 = vmatpush.bf16.msrb.mxu2 %v16239_v16 }
 0x7c0   :  { %11392 = vmatpush.bf16.msrb.mxu2 %v16238_v6  ;;  %v16325_v6 = vld [vmem:[#allocation9 + $0x328] sm:$0xff] }
 0x7c2   :  { %v6468_v44 = vpop.f32.mrf.mxu0 }
 0x7c3   :  { %v19145_v37 = vadd.f32 %v6468_v44, %v19061_v41  ;;  %v6556_v7 = vpop.f32.mrf.mxu2  ;;  %v19183_v44 = vld [vmem:[#allocation6 + $0x4] ss:$0 sm:$0xff] }
 0x7c5   :  { %6663 = vmatmul.bf16.gmra.mxu0 %v5634_v19 }
 0x7ca   :  { %v6470_v53 = vpop.f32.mrf.mxu0 }
 0x7cb   :  { %v19149_v0 = vadd.f32 %v6470_v53, %v19069_v22  ;;  %v19178_v30 = vpop.f32.mrf.mxu2 }
 0x7d2   :  { %v6473_v57 = vpop.f32.mrf.mxu0 }
 0x7d3   :  { %v19152_v50 = vadd.f32 %v6473_v57, %v19078_v45  ;;  %v16247_v57 = vld [vmem:[#allocation9 + $0xb8] sm:$0xff]  ;;  %v19190_v42 = vpop.f32.mrf.mxu2 }
 0x7d4   :  { %11404 = vmatpush.bf16.msrb.mxu3 %v16247_v57 }
 0x7d5   :  { %6668 = vmatmul.bf16.gmra.mxu0 %v5643_v54 }
 0x7d8   :  { %11405 = vmatpush.bf16.msrb.mxu3 %v16246_v32 }
 0x7da   :  { %v19154_v38 = vpop.f32.mrf.mxu0 }
 0x7e2   :  { %v6478_v41 = vpop.f32.mrf.mxu0 }
 0x7e3   :  { %v19161_v22 = vadd.f32 %v6478_v41, %v19095_v28  ;;  %v6554_v41 = vadd.f32 %v6553_v62, %v6505_v55 }
 0x7e5   :  { %6673 = vmatmul.bf16.gmra.mxu0 %v5652_v17  ;;  %v19194_v17 = vpop.f32.mrf.mxu3 }
 0x7ea   :  { %v19165_v45 = vpop.f32.mrf.mxu0 }
 0x7ed   :  { %v19203_v55 = vpop.f32.mrf.mxu3 }
 0x7f2   :  { %v6483_v43 = vpop.f32.mrf.mxu0 }
 0x7f3   :  { %v19168_v3 = vadd.f32 %v6483_v43, %v19114_v47  ;;  %v6509_v47 = vpop.f32.mrf.mxu1  ;;  %v16230_v43 = vld [vmem:[#allocation9 + $0x30] sm:$0xff] }
 0x7f4   :  { %11379 = vmatpush.bf16.msrb.mxu1 %v16230_v43 }
 0x7f5   :  { %6678 = vmatmul.bf16.gmra.mxu0 %v19007_v9  ;;  %v6503_v9 = vadd.f32 %v6502_v59, %v19127_v25  ;;  %v6603_v59 = vadd.f32 %v6602_v56, %v6554_v41  ;;  %v16244_v41 = vld [vmem:[#allocation9 + $0xa0] sm:$0xff] }
 0x7f7   :  { %v6552_v46 = vadd.f32 %v6551_v34, %v6503_v9  ;;  %v16327_v9 = vld [vmem:[#allocation9 + $0x338] sm:$0xff] }
 0x7f8   :  { %11534 = vmatpush.bf16.msra.mxu0 %v16327_v9 }
 0x7f9   :  { %v6601_v18 = vadd.f32 %v6600_v20, %v6552_v46  ;;  %v6508_v46 = vadd.f32 %v6507_v35, %v19133_v14  ;;  %v16228_v35 = vld [vmem:[#allocation9 + $0x20] sm:$0xff] }
 0x7fa   :  { %v19171_v28 = vpop.f32.mrf.mxu0 }
 0x7fb   :  { %v19188_v54 = vpop.f32.mrf.mxu1  ;;  %v6557_v56 = vadd.f32 %v6556_v7, %v6508_v46  ;;  %v16326_v7 = vld [vmem:[#allocation9 + $0x330] sm:$0xff] }
 0x7fc   :  { %11535 = vmatpush.bf16.msra.mxu0 %v16326_v7 }
 0x7fd   :  { %v6606_v16 = vadd.f32 %v6605_v58, %v6557_v56  ;;  %v16243_v58 = vld [vmem:[#allocation9 + $0x98] sm:$0xff] }
 0x800   :  { %11536 = vmatpush.bf16.msra.mxu0 %v16325_v6 }
 0x802   :  { %v6488_v49 = vpop.f32.mrf.mxu0 }
 0x803   :  { %v19173_v51 = vadd.f32 %v6488_v49, %v6440_v8  ;;  %v19185_v8 = vld [vmem:[#allocation8 + $0x4] ss:$0 sm:$0xff]  ;;  %v16229_v49 = vld [vmem:[#allocation9 + $0x28] sm:$0xff] }
 0x804   :  { %11380 = vmatpush.bf16.msrb.mxu1 %v16229_v49 }
 0x805   :  { %6683 = vmatmul.bf16.gmra.mxu0 %v5670_v5  ;;  %v16237_v5 = vld [vmem:[#allocation9 + $0x68] sm:$0xff] }
 0x806   :  { %11393 = vmatpush.bf16.msrb.mxu2 %v16237_v5 }
 0x808   :  { %11381 = vmatpush.bf16.msrb.mxu1 %v16228_v35  ;;  %v16241_v35 = vld [vmem:[#allocation9 + $0x88] sm:$0xff] }
 0x80a   :  { %v19176_v2 = vpop.f32.mrf.mxu0 }
 0x812   :  { %v6649_v19 = vpop.f32.mrf.mxu0 }
 0x813   :  { %v6650_v53 = vadd.f32 %v6649_v19, %v6601_v18  ;;  %v16245_v18 = vld [vmem:[#allocation9 + $0xa8] sm:$0xff]  ;;  %v19198_v19 = vpop.f32.mrf.mxu1 }
 0x814   :  { %11406 = vmatpush.bf16.msrb.mxu3 %v16245_v18  ;;  %v16242_v18 = vld [vmem:[#allocation9 + $0x90] sm:$0xff] }
 0x815   :  { %v6694_v25 = vmul.f32 %v19183_v44, %v6650_v53  ;;  %v19200_v53 = vpop.f32.mrf.mxu2 }
 0x817   :  { %v6715_v61 = vadd.f32 %v19185_v8, %v6694_v25  ;;  %v16236_v25 = vld [vmem:[#allocation9 + $0x60] sm:$0xff] }
 0x818   :  { %11394 = vmatpush.bf16.msrb.mxu2 %v16236_v25  ;;  %11407 = vmatpush.bf16.msrb.mxu3 %v16244_v41  ;;  %v16323_v25 = vld [vmem:[#allocation9 + $0x318] sm:$0xff] }
 0x819   :  { %v6731_v34 = vmax.f32 %v6715_v61, 0.0 }
 0x81a   :  { %v6651_v20 = vpop.f32.mrf.mxu0 }
 0x81b   :  { %6747 = vst [vmem:[#allocation2 + $0x11] sm:$0xff] %v6731_v34  ;;  %v6652_v31 = vadd.f32 %v6651_v20, %v6603_v59  ;;  %v16227_v59 = vld [vmem:[#allocation9 + $0x18] sm:$0xff]  ;;  %v6510_v20 = vadd.f32 %v6509_v47, %v19136_v23  ;;  %v19210_v5 = vpop.f32.mrf.mxu1  ;;  %v16226_v47 = vld [vmem:[#allocation9 + $0x10] sm:$0xff] }
 0x81c   :  { %v16235_v34 = vld [vmem:[#allocation9 + $0x58] sm:$0xff]  ;;  %11382 = vmatpush.bf16.msrb.mxu1 %v16227_v59  ;;  %11408 = vmatpush.bf16.msrb.mxu3 %v16243_v58 }
 0x81d   :  { %v6695_v62 = vmul.f32 %v19183_v44, %v6652_v31  ;;  %v6559_v32 = vadd.f32 %v19178_v30, %v6510_v20  ;;  %11395 = vmatpush.bf16.msrb.mxu2 %v16235_v34  ;;  %v19212_v9 = vpop.f32.mrf.mxu2  ;;  %v16324_v30 = vld [vmem:[#allocation9 + $0x320] sm:$0xff] }
 0x81e   :  { %11537 = vmatpush.bf16.msra.mxu0 %v16324_v30  ;;  %v16224_v20 = vld [vmem:[#allocation9] sm:$0xff] }
 0x81f   :  { %v6716_v4 = vadd.f32 %v19185_v8, %v6695_v62  ;;  %v6608_v49 = vadd.f32 %v19181_v40, %v6559_v32  ;;  %v16234_v62 = vld [vmem:[#allocation9 + $0x50] sm:$0xff]  ;;  %v16233_v40 = vld [vmem:[#allocation9 + $0x48] sm:$0xff]  ;;  %v16255_v32 = vld [vmem:[#allocation9 + $0xf8] sm:$0xff] }
 0x820   :  { %11383 = vmatpush.bf16.msrb.mxu1 %v16226_v47  ;;  %11409 = vmatpush.bf16.msrb.mxu3 %v16242_v18  ;;  %v16262_v18 = vld [vmem:[#allocation9 + $0x130] sm:$0xff] }
 0x821   :  { %v6732_v57 = vmax.f32 %v6716_v4, 0.0  ;;  %v19214_v4 = vpop.f32.mrf.mxu3  ;;  %11396 = vmatpush.bf16.msrb.mxu2 %v16234_v62  ;;  %v16254_v62 = vld [vmem:[#allocation9 + $0xf0] sm:$0xff] }
 0x822   :  { %v6654_v14 = vpop.f32.mrf.mxu0  ;;  %11538 = vmatpush.bf16.msra.mxu0 %v16323_v25  ;;  %v16261_v25 = vld [vmem:[#allocation9 + $0x128] sm:$0xff] }
 0x823   :  { %6748 = vst [vmem:[#allocation2 + $0x21] sm:$0xff] %v6732_v57  ;;  %v6655_v61 = vadd.f32 %v6654_v14, %v6606_v16  ;;  %v16225_v16 = vld [vmem:[#allocation9 + $0x8] sm:$0xff]  ;;  %v6513_v57 = vadd.f32 %v19188_v54, %v19139_v29  ;;  %v16232_v29 = vld [vmem:[#allocation9 + $0x40] sm:$0xff] }
 0x824   :  { %11384 = vmatpush.bf16.msrb.mxu1 %v16225_v16  ;;  %11410 = vmatpush.bf16.msrb.mxu3 %v16241_v35  ;;  %v16240_v54 = vld [vmem:[#allocation9 + $0x80] sm:$0xff]  ;;  %v16270_v16 = vld [vmem:[#allocation9 + $0x170] sm:$0xff]  ;;  %v16253_v35 = vld [vmem:[#allocation9 + $0xe8] sm:$0xff] }
 0x825   :  { %v6696_v43 = vmul.f32 %v19183_v44, %v6655_v61  ;;  %v6562_v41 = vadd.f32 %v19190_v42, %v6513_v57  ;;  %11397 = vmatpush.bf16.msrb.mxu2 %v16233_v40  ;;  %v19224_v58 = vpop.f32.mrf.mxu2  ;;  %v16322_v42 = vld [vmem:[#allocation9 + $0x310] sm:$0xff]  ;;  %v16320_v57 = vld [vmem:[#allocation9 + $0x300] sm:$0xff] }
 0x826   :  { %11539 = vmatpush.bf16.msra.mxu0 %v16322_v42  ;;  %v16358_v42 = vld [vmem:[#allocation9 + $0x430] sm:$0xff] }
 0x827   :  { %v6717_v31 = vadd.f32 %v19185_v8, %v6696_v43  ;;  %v6611_v7 = vadd.f32 %v19194_v17, %v6562_v41  ;;  %v19222_v43 = vpop.f32.mrf.mxu1  ;;  %v6515_v17 = vadd.f32 %v19198_v19, %v19142_v13  ;;  %v16269_v41 = vld [vmem:[#allocation9 + $0x168] sm:$0xff] }
 0x828   :  { %11385 = vmatpush.bf16.msrb.mxu1 %v16224_v20  ;;  %11411 = vmatpush.bf16.msrb.mxu3 %v16240_v54  ;;  %v16260_v20 = vld [vmem:[#allocation9 + $0x120] sm:$0xff] }
 0x829   :  { %v6733_v46 = vmax.f32 %v6717_v31, 0.0  ;;  %v16263_v31 = vld [vmem:[#allocation9 + $0x138] sm:$0xff]  ;;  %11398 = vmatpush.bf16.msrb.mxu2 %v16232_v29  ;;  %v19229_v47 = vpop.f32.mrf.mxu3 }
 0x82a   :  { %v6656_v23 = vpop.f32.mrf.mxu0 }
 0x82b   :  { %6749 = vst [vmem:[#allocation2 + $0x31] sm:$0xff] %v6733_v46  ;;  %v6657_v56 = vadd.f32 %v6656_v23, %v6608_v49  ;;  %v16271_v49 = vld [vmem:[#allocation9 + $0x178] sm:$0xff]  ;;  %v16321_v23 = vld [vmem:[#allocation9 + $0x308] sm:$0xff] }
 0x82c   :  { %11417 = vmatpush.bf16.msra.mxu1 %v16255_v32  ;;  %11443 = vmatpush.bf16.msra.mxu3 %v16271_v49 }
 0x82d   :  { %v6697_v14 = vmul.f32 %v19183_v44, %v6657_v56  ;;  %11430 = vmatpush.bf16.msra.mxu2 %v16263_v31  ;;  %v6564_v56 = vadd.f32 %v19200_v53, %v6515_v17  ;;  %11540 = vmatpush.bf16.msra.mxu0 %v16321_v23  ;;  %v6518_v53 = vadd.f32 %v19210_v5, %v19145_v37  ;;  %v16251_v17 = vld [vmem:[#allocation9 + $0xd8] sm:$0xff]  ;;  %v16357_v23 = vld [vmem:[#allocation9 + $0x428] sm:$0xff] }
 0x82f   :  { %v6718_v61 = vadd.f32 %v19185_v8, %v6697_v14  ;;  %v6613_v40 = vadd.f32 %v19203_v55, %v6564_v56  ;;  %v6567_v29 = vadd.f32 %v19212_v9, %v6518_v53  ;;  %v16267_v9 = vld [vmem:[#allocation9 + $0x158] sm:$0xff]  ;;  %v16258_v56 = vld [vmem:[#allocation9 + $0x110] sm:$0xff]  ;;  %v16265_v53 = vld [vmem:[#allocation9 + $0x148] sm:$0xff] }
 0x830   :  { %11418 = vmatpush.bf16.msra.mxu1 %v16254_v62  ;;  %11444 = vmatpush.bf16.msra.mxu3 %v16270_v16  ;;  %v6520_v62 = vadd.f32 %v19222_v43, %v19149_v0 }
 0x831   :  { %v6734_v59 = vmax.f32 %v6718_v61, 0.0  ;;  %11431 = vmatpush.bf16.msra.mxu2 %v16262_v18  ;;  %v16359_v61 = vld [vmem:[#allocation9 + $0x438] sm:$0xff]  ;;  %11541 = vmatpush.bf16.msra.mxu0 %v16320_v57  ;;  %v6620_v32 = vpop.f32.mrf.mxu3  ;;  %v6616_v37 = vadd.f32 %v19214_v4, %v6567_v29  ;;  %v16250_v4 = vld [vmem:[#allocation9 + $0xd0] sm:$0xff]  ;;  %v16356_v57 = vld [vmem:[#allocation9 + $0x420] sm:$0xff] }
 0x832   :  { %v6659_v34 = vpop.f32.mrf.mxu0  ;;  %v16248_v29 = vld [vmem:[#allocation9 + $0xc0] sm:$0xff] }
 0x833   :  { %6750 = vst [vmem:[#allocation2 + $0x41] sm:$0xff] %v6734_v59  ;;  %v6660_v6 = vadd.f32 %v6659_v34, %v6611_v7  ;;  %v6522_v7 = vpop.f32.mrf.mxu1  ;;  %v19236_v59 = vpop.f32.mrf.mxu2  ;;  %v16252_v34 = vld [vmem:[#allocation9 + $0xe0] sm:$0xff] }
 0x834   :  { %11419 = vmatpush.bf16.msra.mxu1 %v16253_v35  ;;  %11445 = vmatpush.bf16.msra.mxu3 %v16269_v41  ;;  %v16249_v41 = vld [vmem:[#allocation9 + $0xc8] sm:$0xff] }
 0x835   :  { %v6698_v46 = vmul.f32 %v19183_v44, %v6660_v6  ;;  %11432 = vmatpush.bf16.msra.mxu2 %v16261_v25  ;;  %11586 = vmatpush.bf16.msrb.mxu0 %v16359_v61  ;;  %v16268_v6 = vld [vmem:[#allocation9 + $0x160] sm:$0xff]  ;;  %v6329_v25 = vadd.f32 %v19063_v10, %v19071_v63  ;;  %v16257_v61 = vld [vmem:[#allocation9 + $0x108] sm:$0xff] }
 0x837   :  { %v6719_v30 = vadd.f32 %v19185_v8, %v6698_v46  ;;  %v16259_v46 = vld [vmem:[#allocation9 + $0x118] sm:$0xff] }
 0x838   :  { %11420 = vmatpush.bf16.msra.mxu1 %v16252_v34  ;;  %11446 = vmatpush.bf16.msra.mxu3 %v16268_v6  ;;  %v6378_v34 = vadd.f32 %v19076_v33, %v6329_v25 }
 0x839   :  { %v6735_v13 = vmax.f32 %v6719_v30, 0.0  ;;  %11433 = vmatpush.bf16.msra.mxu2 %v16260_v20  ;;  %11587 = vmatpush.bf16.msrb.mxu0 %v16358_v42  ;;  %v6569_v30 = vadd.f32 %v19224_v58, %v6520_v62  ;;  %v6622_v0 = vpop.f32.mrf.mxu3  ;;  %v16264_v42 = vld [vmem:[#allocation9 + $0x140] sm:$0xff] }
 0x83a   :  { %v6661_v19 = vpop.f32.mrf.mxu0  ;;  %v6427_v10 = vadd.f32 %v19086_v27, %v6378_v34  ;;  %v16353_v27 = vld [vmem:[#allocation9 + $0x408] sm:$0xff] }
 0x83b   :  { %6751 = vst [vmem:[#allocation2 + $0x51] sm:$0xff] %v6735_v13  ;;  %v6662_v14 = vadd.f32 %v6661_v19, %v6613_v40  ;;  %v6524_v16 = vpop.f32.mrf.mxu1  ;;  %v6573_v40 = vpop.f32.mrf.mxu2  ;;  %v16266_v19 = vld [vmem:[#allocation9 + $0x150] sm:$0xff] }
 0x83c   :  { %11421 = vmatpush.bf16.msra.mxu1 %v16251_v17  ;;  %11447 = vmatpush.bf16.msra.mxu3 %v16267_v9  ;;  %v6476_v33 = vadd.f32 %v19154_v38, %v6427_v10  ;;  %v16352_v38 = vld [vmem:[#allocation9 + $0x400] sm:$0xff] }
 0x83d   :  { %v6699_v55 = vmul.f32 %v19183_v44, %v6662_v14  ;;  %11434 = vmatpush.bf16.msra.mxu2 %v16259_v46  ;;  %11588 = vmatpush.bf16.msrb.mxu0 %v16357_v23  ;;  %v6618_v14 = vadd.f32 %v19229_v47, %v6569_v30  ;;  %v6523_v47 = vadd.f32 %v6522_v7, %v19152_v50 }
 0x83e   :  { %v6525_v46 = vadd.f32 %v6524_v16, %v6476_v33 }
 0x83f   :  { %v6720_v54 = vadd.f32 %v19185_v8, %v6699_v55  ;;  %v16355_v55 = vld [vmem:[#allocation9 + $0x418] sm:$0xff]  ;;  %v6572_v63 = vadd.f32 %v19236_v59, %v6523_v47 }
 0x840   :  { %11422 = vmatpush.bf16.msra.mxu1 %v16250_v4  ;;  %11448 = vmatpush.bf16.msra.mxu3 %v16266_v19  ;;  %v6574_v23 = vadd.f32 %v6573_v40, %v6525_v46  ;;  %v6334_v4 = vadd.f32 %v19080_v11, %v19088_v52 }
 0x841   :  { %v6736_v5 = vmax.f32 %v6720_v54, 0.0  ;;  %11435 = vmatpush.bf16.msra.mxu2 %v16258_v56  ;;  %11589 = vmatpush.bf16.msrb.mxu0 %v16356_v57  ;;  %v16256_v54 = vld [vmem:[#allocation9 + $0x100] sm:$0xff]  ;;  %v6625_v59 = vpop.f32.mrf.mxu3 }
 0x842   :  { %v6664_v31 = vpop.f32.mrf.mxu0  ;;  %v6383_v16 = vadd.f32 %v19093_v15, %v6334_v4 }
 0x843   :  { %6752 = vst [vmem:[#allocation2 + $0x61] sm:$0xff] %v6736_v5  ;;  %v6665_v49 = vadd.f32 %v6664_v31, %v6616_v37  ;;  %v16354_v37 = vld [vmem:[#allocation9 + $0x410] sm:$0xff]  ;;  %v6621_v5 = vadd.f32 %v6620_v32, %v6572_v63  ;;  %v6527_v50 = vpop.f32.mrf.mxu1  ;;  %v6576_v7 = vpop.f32.mrf.mxu2  ;;  %v6623_v32 = vadd.f32 %v6622_v0, %v6574_v23  ;;  %v6339_v23 = vadd.f32 %v19101_v26, %v19107_v48  ;;  %v16277_v26 = vld [vmem:[#allocation9 + $0x1a8] sm:$0xff] }
 0x844   :  { %11423 = vmatpush.bf16.msra.mxu1 %v16249_v41  ;;  %11449 = vmatpush.bf16.msra.mxu3 %v16265_v53  ;;  %v6528_v57 = vadd.f32 %v6527_v50, %v19161_v22 }
 0x845   :  { %v6700_v18 = vmul.f32 %v19183_v44, %v6665_v49  ;;  %11436 = vmatpush.bf16.msra.mxu2 %v16257_v61  ;;  %11590 = vmatpush.bf16.msrb.mxu0 %v16355_v55 }
 0x846   :  { %v6577_v0 = vadd.f32 %v6576_v7, %v6528_v57  ;;  %v16287_v7 = vld [vmem:[#allocation9 + $0x1f8] sm:$0xff] }
 0x847   :  { %v6721_v13 = vadd.f32 %v19185_v8, %v6700_v18 }
 0x848   :  { %11424 = vmatpush.bf16.msra.mxu1 %v16248_v29  ;;  %11450 = vmatpush.bf16.msra.mxu3 %v16264_v42  ;;  %v6626_v52 = vadd.f32 %v6625_v59, %v6577_v0  ;;  %v6767_v29 = vld [vmem:[#allocation2 + $0x13] sm:$0x1] }
 0x849   :  { %v6737_v35 = vmax.f32 %v6721_v13, 0.0  ;;  %11437 = vmatpush.bf16.msra.mxu2 %v16256_v54  ;;  %11591 = vmatpush.bf16.msrb.mxu0 %v16354_v37  ;;  %v16279_v37 = vld [vmem:[#allocation9 + $0x1b8] sm:$0xff] }
 0x84a   :  { %v6666_v43 = vpop.f32.mrf.mxu0 }
 0x84b   :  { %6753 = vst [vmem:[#allocation2 + $0x71] sm:$0xff] %v6737_v35  ;;  %v6667_v58 = vadd.f32 %v6666_v43, %v6618_v14  ;;  %v6529_v30 = vpop.f32.mrf.mxu1  ;;  %v6578_v13 = vpop.f32.mrf.mxu2  ;;  %v6432_v14 = vadd.f32 %v19103_v36, %v6383_v16  ;;  %v6763_v36 = vld [vmem:[#allocation2 + $0x11] sm:$0x1] }
 0x84c   :  { %v6627_v35 = vpop.f32.mrf.mxu3 }
 0x84d   :  { %v6701_v20 = vmul.f32 %v19183_v44, %v6667_v58  ;;  %11592 = vmatpush.bf16.msrb.mxu0 %v16353_v27  ;;  %v6481_v11 = vadd.f32 %v19165_v45, %v6432_v14  ;;  %v16391_v14 = vld [vmem:[#allocation9 + $0x538] sm:$0xff] }
 0x84f   :  { %v6722_v6 = vadd.f32 %v19185_v8, %v6701_v20  ;;  %v6530_v47 = vadd.f32 %v6529_v30, %v6481_v11  ;;  %v6765_v20 = vld [vmem:[#allocation2 + $0x12] sm:$0x1]  ;;  %v6388_v30 = vadd.f32 %v19112_v21, %v6339_v23  ;;  %v16293_v11 = vld [vmem:[#allocation9 + $0x228] sm:$0xff] }
 0x851   :  { %v6738_v31 = vmax.f32 %v6722_v6, 0.0  ;;  %11593 = vmatpush.bf16.msrb.mxu0 %v16352_v38  ;;  %v16286_v38 = vld [vmem:[#allocation9 + $0x1f0] sm:$0xff]  ;;  %v6437_v0 = vadd.f32 %v19121_v1, %v6388_v30  ;;  %v16276_v1 = vld [vmem:[#allocation9 + $0x1a0] sm:$0xff] }
 0x852   :  { %v6669_v49 = vpop.f32.mrf.mxu0 }
 0x853   :  { %6754 = vst [vmem:[#allocation2 + $0x81] sm:$0xff] %v6738_v31  ;;  %v6670_v17 = vadd.f32 %v6669_v49, %v6621_v5  ;;  %v6532_v54 = vpop.f32.mrf.mxu1  ;;  %v6581_v10 = vpop.f32.mrf.mxu2  ;;  %v16295_v31 = vld [vmem:[#allocation9 + $0x238] sm:$0xff]  ;;  %v6579_v49 = vadd.f32 %v6578_v13, %v6530_v47  ;;  %v6769_v47 = vld [vmem:[#allocation2 + $0x14] sm:$0x1] }
 0x854   :  { %v6630_v27 = vpop.f32.mrf.mxu3  ;;  %v6787_v13 = vld [vmem:[#allocation2 + $0x25] sm:$0x1]  ;;  %v6533_v57 = vadd.f32 %v6532_v54, %v19168_v3  ;;  %v16292_v54 = vld [vmem:[#allocation9 + $0x220] sm:$0xff] }
 0x855   :  { %v6702_v9 = vmul.f32 %v19183_v44, %v6670_v17  ;;  %v6628_v59 = vadd.f32 %v6627_v35, %v6579_v49  ;;  %v16283_v49 = vld [vmem:[#allocation9 + $0x1d8] sm:$0xff] }
 0x857   :  { %v6723_v62 = vadd.f32 %v19185_v8, %v6702_v9  ;;  %v16278_v9 = vld [vmem:[#allocation9 + $0x1b0] sm:$0xff] }
 0x859   :  { %v6739_v18 = vmax.f32 %v6723_v62, 0.0 }
 0x85a   :  { %v6671_v56 = vpop.f32.mrf.mxu0 }
 0x85b   :  { %6755 = vst [vmem:[#allocation2 + $0xb1] sm:$0xff] %v6739_v18  ;;  %v6672_v19 = vadd.f32 %v6671_v56, %v6623_v32  ;;  %v16294_v32 = vld [vmem:[#allocation9 + $0x230] sm:$0xff] }
 0x85d   :  { %v6703_v40 = vmul.f32 %v19183_v44, %v6672_v19 }
 0x85f   :  { %v6724_v43 = vadd.f32 %v19185_v8, %v6703_v40 }
 0x861   :  { %v6740_v25 = vmax.f32 %v6724_v43, 0.0  ;;  %v16285_v43 = vld [vmem:[#allocation9 + $0x1e8] sm:$0xff] }
 0x862   :  { %v6674_v58 = vpop.f32.mrf.mxu0  ;;  %v6764_v41 = vld [vmem:[#allocation2 + $0xb1] sm:$0x1]  ;;  %v6766_v61 = vld [vmem:[#allocation2 + $0xb2] sm:$0x1]  ;;  %v6768_v53 = vld [vmem:[#allocation2 + $0xb3] sm:$0x1] }
 0x863   :  { %6756 = vst [vmem:[#allocation2 + $0xc1] sm:$0xff] %v6740_v25  ;;  %v6675_v15 = vadd.f32 %v6674_v58, %v6626_v52  ;;  %v6899_v22 = vrot.slane %v6764_v41, 7  ;;  %v6905_v55 = vrot.slane %v6766_v61, 7  ;;  %v6910_v34 = vrot.slane %v6768_v53, 7  ;;  %v6770_v19 = vld [vmem:[#allocation2 + $0xb4] sm:$0x1]  ;;  %v6534_v25 = vpop.f32.mrf.mxu1  ;;  %v6583_v58 = vpop.f32.mrf.mxu2 }
 0x864   :  { %v6772_v16 = vld [vmem:[#allocation2 + $0xb5] sm:$0x1]  ;;  %v6774_v35 = vld [vmem:[#allocation2 + $0xb6] sm:$0x1]  ;;  %v6582_v52 = vadd.f32 %v6581_v10, %v6533_v57  ;;  %v6915_v41 = vrot.slane %v6770_v19, 7  ;;  %v16290_v19 = vld [vmem:[#allocation9 + $0x210] sm:$0xff] }
 0x865   :  { %v6704_v45 = vmul.f32 %v19183_v44, %v6675_v15  ;;  %v6901_v63 = vsel %vm6900_vm0, %v6899_v22, %v6763_v36  ;;  %v6906_v6 = vsel %vm6900_vm0, %v6905_v55, %v6765_v20  ;;  %v6911_v42 = vsel %vm6900_vm0, %v6910_v34, %v6767_v29  ;;  %v16390_v34 = vld [vmem:[#allocation9 + $0x530] sm:$0xff]  ;;  %v6632_v36 = vpop.f32.mrf.mxu3  ;;  %v16284_v29 = vld [vmem:[#allocation9 + $0x1e0] sm:$0xff]  ;;  %v6771_v10 = vld [vmem:[#allocation2 + $0x15] sm:$0x1] }
 0x866   :  { %v7218_v33 = vpack.c.bf16 %v6901_v63, %v6901_v63  ;;  %v7219_v5 = vpack.c.bf16 %v6906_v6, %v6906_v6  ;;  %v7220_v50 = vpack.c.bf16 %v6911_v42, %v6911_v42  ;;  %v6920_v61 = vrot.slane %v6772_v16, 7  ;;  %v6773_v6 = vld [vmem:[#allocation2 + $0x16] sm:$0x1]  ;;  %v6796_v16 = vld [vmem:[#allocation2 + $0x31] sm:$0x1] }
 0x867   :  { %v6725_v17 = vadd.f32 %v19185_v8, %v6704_v45  ;;  %v6925_v53 = vrot.slane %v6774_v35, 7  ;;  %v6486_v15 = vadd.f32 %v19171_v28, %v6437_v0  ;;  %v6631_v22 = vadd.f32 %v6630_v27, %v6582_v52  ;;  %v16289_v52 = vld [vmem:[#allocation9 + $0x208] sm:$0xff] }
 0x868   :  { %11386 = vmatmul.bf16.vlgmr.msrb.gmra.mxu1 %v7218_v33  ;;  %11399 = vmatmul.bf16.vlgmr.msrb.gmra.mxu2 %v7219_v5  ;;  %v6916_v63 = vsel %vm6900_vm0, %v6915_v41, %v6769_v47  ;;  %v6921_v28 = vsel %vm6900_vm0, %v6920_v61, %v6771_v10  ;;  %v16387_v41 = vld [vmem:[#allocation9 + $0x518] sm:$0xff]  ;;  %v16288_v47 = vld [vmem:[#allocation9 + $0x200] sm:$0xff] }
 0x869   :  { %v6741_v46 = vmax.f32 %v6725_v17, 0.0  ;;  %11412 = vmatmul.bf16.vlgmr.msrb.gmra.mxu3 %v7220_v50  ;;  %11456 = vmatpush.bf16.msrb.mxu1 %v16279_v37  ;;  %v6926_v42 = vsel %vm6900_vm0, %v6925_v53, %v6773_v6  ;;  %v6535_v33 = vadd.f32 %v6534_v25, %v6486_v15  ;;  %v16275_v50 = vld [vmem:[#allocation9 + $0x198] sm:$0xff] }
 0x86a   :  { %11469 = vmatpush.bf16.msrb.mxu2 %v16287_v7  ;;  %11482 = vmatpush.bf16.msrb.mxu3 %v16295_v31  ;;  %v6676_v62 = vpop.f32.mrf.mxu0  ;;  %v6788_v18 = vld [vmem:[#allocation2 + $0xc5] sm:$0x1]  ;;  %v7221_v7 = vpack.c.bf16 %v6916_v63, %v6916_v63  ;;  %v7222_v31 = vpack.c.bf16 %v6921_v28, %v6921_v28 }
 0x86b   :  { %6757 = vst [vmem:[#allocation2 + $0xd1] sm:$0xff] %v6741_v46  ;;  %v6677_v4 = vadd.f32 %v6676_v62, %v6628_v59  ;;  %v6960_v56 = vrot.slane %v6788_v18, 7  ;;  %v16291_v17 = vld [vmem:[#allocation9 + $0x218] sm:$0xff]  ;;  %v6584_v27 = vadd.f32 %v6583_v58, %v6535_v33  ;;  %v7223_v46 = vpack.c.bf16 %v6926_v42, %v6926_v42  ;;  %v6537_v62 = vpop.f32.mrf.mxu1  ;;  %v6780_v58 = vld [vmem:[#allocation2 + $0xc1] sm:$0x1] }
 0x86c   :  { %v6538_v35 = vadd.f32 %v6537_v62, %v19173_v51  ;;  %v16303_v10 = vld [vmem:[#allocation9 + $0x278] sm:$0xff]  ;;  %v6779_v33 = vld [vmem:[#allocation2 + $0x21] sm:$0x1] }
 0x86d   :  { %v6705_v40 = vmul.f32 %v19183_v44, %v6677_v4  ;;  %11457 = vmatpush.bf16.msrb.mxu1 %v16278_v9  ;;  %v6961_v48 = vsel %vm6900_vm0, %v6960_v56, %v6787_v13  ;;  %v16389_v9 = vld [vmem:[#allocation9 + $0x528] sm:$0xff]  ;;  %v16274_v4 = vld [vmem:[#allocation9 + $0x190] sm:$0xff]  ;;  %v6344_v56 = vadd.f32 %v19156_v60, %v19123_v24  ;;  %v16311_v28 = vld [vmem:[#allocation9 + $0x2b8] sm:$0xff] }
 0x86e   :  { %11470 = vmatpush.bf16.msrb.mxu2 %v16286_v38  ;;  %11483 = vmatpush.bf16.msrb.mxu3 %v16294_v32  ;;  %v7230_v21 = vpack.c.bf16 %v6961_v48, %v6961_v48  ;;  %v6586_v38 = vpop.f32.mrf.mxu2  ;;  %v6633_v32 = vadd.f32 %v6632_v36, %v6584_v27  ;;  %v16282_v13 = vld [vmem:[#allocation9 + $0x1d0] sm:$0xff]  ;;  %v16273_v24 = vld [vmem:[#allocation9 + $0x188] sm:$0xff]  ;;  %v16319_v6 = vld [vmem:[#allocation9 + $0x2f8] sm:$0xff] }
 0x86f   :  { %v6726_v3 = vadd.f32 %v19185_v8, %v6705_v40  ;;  %v16388_v40 = vld [vmem:[#allocation9 + $0x520] sm:$0xff]  ;;  %v6393_v48 = vadd.f32 %v19158_v39, %v6344_v56  ;;  %v6776_v60 = vld [vmem:[#allocation2 + $0xb7] sm:$0x1]  ;;  %v16310_v62 = vld [vmem:[#allocation9 + $0x2b0] sm:$0xff] }
 0x870   :  { %11542 = vmatmul.bf16.vlgmr.msra.gmra.mxu0 %v7230_v21  ;;  %v16281_v21 = vld [vmem:[#allocation9 + $0x1c8] sm:$0xff]  ;;  %v6930_v61 = vrot.slane %v6776_v60, 7  ;;  %v16308_v60 = vld [vmem:[#allocation9 + $0x2a0] sm:$0xff] }
 0x871   :  { %v6742_v55 = vmax.f32 %v6726_v3, 0.0  ;;  %11458 = vmatpush.bf16.msrb.mxu1 %v16277_v26  ;;  %11638 = vmatpush.bf16.msra.mxu0 %v16391_v14  ;;  %v6635_v14 = vpop.f32.mrf.mxu3  ;;  %v6587_v3 = vadd.f32 %v6586_v38, %v6538_v35  ;;  %v6775_v36 = vld [vmem:[#allocation2 + $0x17] sm:$0x1]  ;;  %v16318_v38 = vld [vmem:[#allocation9 + $0x2f0] sm:$0xff] }
 0x872   :  { %11471 = vmatpush.bf16.msrb.mxu2 %v16285_v43  ;;  %11484 = vmatpush.bf16.msrb.mxu3 %v16293_v11  ;;  %v6679_v20 = vpop.f32.mrf.mxu0  ;;  %v6797_v37 = vld [vmem:[#allocation2 + $0xd1] sm:$0x1]  ;;  %v6778_v43 = vld [vmem:[#allocation2 + $0xb8] sm:$0x1]  ;;  %v6442_v11 = vadd.f32 %v19163_v12, %v6393_v48  ;;  %v6931_v42 = vsel %vm6900_vm0, %v6930_v61, %v6775_v36  ;;  %v16423_v48 = vld [vmem:[#allocation9 + $0x638] sm:$0xff] }
 0x873   :  { %6758 = vst [vmem:[#allocation2 + $0xe1] sm:$0xff] %v6742_v55  ;;  %v6680_v45 = vadd.f32 %v6679_v20, %v6631_v22  ;;  %v6980_v23 = vrot.slane %v6797_v37, 7  ;;  %v6935_v53 = vrot.slane %v6778_v43, 7  ;;  %v6636_v15 = vadd.f32 %v6635_v14, %v6587_v3  ;;  %v16272_v12 = vld [vmem:[#allocation9 + $0x180] sm:$0xff]  ;;  %v6539_v20 = vpop.f32.mrf.mxu1  ;;  %v16306_v3 = vld [vmem:[#allocation9 + $0x290] sm:$0xff] }
 0x874   :  { %v6491_v51 = vadd.f32 %v19176_v2, %v6442_v11  ;;  %v6940_v55 = vrot.slane %v6780_v58, 7  ;;  %v16386_v2 = vld [vmem:[#allocation9 + $0x510] sm:$0xff]  ;;  %v7224_v27 = vpack.c.bf16 %v6931_v42, %v6931_v42  ;;  %v16316_v43 = vld [vmem:[#allocation9 + $0x2e0] sm:$0xff] }
 0x875   :  { %v6706_v5 = vmul.f32 %v19183_v44, %v6680_v45  ;;  %11459 = vmatpush.bf16.msrb.mxu1 %v16276_v1  ;;  %11639 = vmatpush.bf16.msra.mxu0 %v16390_v34  ;;  %v6981_v26 = vsel %vm6900_vm0, %v6980_v23, %v6796_v16  ;;  %v16280_v34 = vld [vmem:[#allocation9 + $0x1c0] sm:$0xff]  ;;  %v6777_v45 = vld [vmem:[#allocation2 + $0x18] sm:$0x1]  ;;  %v16298_v58 = vld [vmem:[#allocation9 + $0x250] sm:$0xff] }
 0x876   :  { %11472 = vmatpush.bf16.msrb.mxu2 %v16284_v29  ;;  %11485 = vmatpush.bf16.msrb.mxu3 %v16292_v54  ;;  %v7234_v25 = vpack.c.bf16 %v6981_v26, %v6981_v26  ;;  %v6588_v29 = vpop.f32.mrf.mxu2  ;;  %v6540_v63 = vadd.f32 %v6539_v20, %v6491_v51  ;;  %v6936_v37 = vsel %vm6900_vm0, %v6935_v53, %v6777_v45  ;;  %v16309_v16 = vld [vmem:[#allocation9 + $0x2a8] sm:$0xff]  ;;  %v6782_v61 = vld [vmem:[#allocation2 + $0xc2] sm:$0x1]  ;;  %v6784_v53 = vld [vmem:[#allocation2 + $0xc3] sm:$0x1] }
 0x877   :  { %v6727_v59 = vadd.f32 %v19185_v8, %v6706_v5  ;;  %v16297_v51 = vld [vmem:[#allocation9 + $0x248] sm:$0xff]  ;;  %v16304_v20 = vld [vmem:[#allocation9 + $0x280] sm:$0xff]  ;;  %v6783_v45 = vld [vmem:[#allocation2 + $0x23] sm:$0x1] }
 0x878   :  { %11425 = vmatmul.bf16.vlgmr.msra.gmra.mxu1 %v7221_v7  ;;  %11438 = vmatmul.bf16.vlgmr.msra.gmra.mxu2 %v7222_v31  ;;  %v6589_v7 = vadd.f32 %v6588_v29, %v6540_v63  ;;  %v16312_v29 = vld [vmem:[#allocation9 + $0x2c0] sm:$0xff]  ;;  %v16343_v63 = vld [vmem:[#allocation9 + $0x3b8] sm:$0xff] }
 0x879   :  { %v6743_v18 = vmax.f32 %v6727_v59, 0.0  ;;  %11451 = vmatmul.bf16.vlgmr.msra.gmra.mxu3 %v7223_v46  ;;  %11460 = vmatpush.bf16.msrb.mxu1 %v16275_v50  ;;  %v6941_v50 = vsel %vm6900_vm0, %v6940_v55, %v6779_v33  ;;  %v6637_v31 = vpop.f32.mrf.mxu3  ;;  %v7225_v59 = vpack.c.bf16 %v6936_v37, %v6936_v37  ;;  %v16385_v46 = vld [vmem:[#allocation9 + $0x508] sm:$0xff]  ;;  %v16419_v55 = vld [vmem:[#allocation9 + $0x618] sm:$0xff] }
 0x87a   :  { %11473 = vmatpush.bf16.msrb.mxu2 %v16283_v49  ;;  %11486 = vmatpush.bf16.msrb.mxu3 %v16291_v17  ;;  %v6681_v30 = vpop.f32.mrf.mxu0  ;;  %v6805_v49 = vld [vmem:[#allocation2 + $0xd5] sm:$0x1]  ;;  %v7226_v23 = vpack.c.bf16 %v6941_v50, %v6941_v50  ;;  %v6785_v37 = vld [vmem:[#allocation2 + $0x24] sm:$0x1] }
 0x87b   :  { %6759 = vst [vmem:[#allocation2 + $0xf1] sm:$0xff] %v6743_v18  ;;  %11640 = vmatpush.bf16.msra.mxu0 %v16389_v9  ;;  %v6682_v57 = vadd.f32 %v6681_v30, %v6633_v32  ;;  %v16302_v9 = vld [vmem:[#allocation9 + $0x270] sm:$0xff]  ;;  %v6638_v32 = vadd.f32 %v6637_v31, %v6589_v7  ;;  %v16417_v31 = vld [vmem:[#allocation9 + $0x608] sm:$0xff] }
 0x87d   :  { %v6707_v0 = vmul.f32 %v19183_v44, %v6682_v57  ;;  %11461 = vmatpush.bf16.msrb.mxu1 %v16274_v4  ;;  %v7000_v4 = vrot.slane %v6805_v49, 7  ;;  %v16317_v57 = vld [vmem:[#allocation9 + $0x2e8] sm:$0xff]  ;;  %v16334_v49 = vld [vmem:[#allocation9 + $0x370] sm:$0xff] }
 0x87e   :  { %11474 = vmatpush.bf16.msrb.mxu2 %v16282_v13  ;;  %11487 = vmatpush.bf16.msrb.mxu3 %v16290_v19  ;;  %v16384_v13 = vld [vmem:[#allocation9 + $0x500] sm:$0xff]  ;;  %v16301_v19 = vld [vmem:[#allocation9 + $0x268] sm:$0xff] }
 0x87f   :  { %v6728_v39 = vadd.f32 %v19185_v8, %v6707_v0  ;;  %11641 = vmatpush.bf16.msra.mxu0 %v16388_v40  ;;  %v6804_v40 = vld [vmem:[#allocation2 + $0x35] sm:$0x1]  ;;  %v16300_v0 = vld [vmem:[#allocation9 + $0x260] sm:$0xff] }
 0x880   :  { %11594 = vmatmul.bf16.vlgmr.msrb.gmra.mxu0 %v7234_v25  ;;  %v7001_v14 = vsel %vm6900_vm0, %v7000_v4, %v6804_v40  ;;  %v16315_v25 = vld [vmem:[#allocation9 + $0x2d8] sm:$0xff] }
 0x881   :  { %v6744_v22 = vmax.f32 %v6728_v39, 0.0  ;;  %11462 = vmatpush.bf16.msrb.mxu1 %v16273_v24  ;;  %v7238_v24 = vpack.c.bf16 %v7001_v14, %v7001_v14  ;;  %v16314_v39 = vld [vmem:[#allocation9 + $0x2d0] sm:$0xff]  ;;  %v16339_v40 = vld [vmem:[#allocation9 + $0x398] sm:$0xff] }
 0x882   :  { %11475 = vmatpush.bf16.msrb.mxu2 %v16281_v21  ;;  %11488 = vmatpush.bf16.msrb.mxu3 %v16289_v52  ;;  %v6684_v1 = vpop.f32.mrf.mxu0  ;;  %v16422_v21 = vld [vmem:[#allocation9 + $0x630] sm:$0xff]  ;;  %v16307_v52 = vld [vmem:[#allocation9 + $0x298] sm:$0xff] }
 0x883   :  { %6760 = vst [vmem:[#allocation2 + $0x101] sm:$0xff] %v6744_v22  ;;  %11642 = vmatpush.bf16.msra.mxu0 %v16387_v41  ;;  %v6685_v54 = vadd.f32 %v6684_v1, %v6636_v15  ;;  %v16420_v41 = vld [vmem:[#allocation9 + $0x620] sm:$0xff]  ;;  %v16305_v15 = vld [vmem:[#allocation9 + $0x288] sm:$0xff]  ;;  %v6945_v1 = vrot.slane %v6782_v61, 7  ;;  %v16330_v14 = vld [vmem:[#allocation9 + $0x350] sm:$0xff] }
 0x884   :  { %v16313_v22 = vld [vmem:[#allocation9 + $0x2c8] sm:$0xff]  ;;  %v6789_v61 = vld [vmem:[#allocation2 + $0x26] sm:$0x1] }
 0x885   :  { %v6708_v5 = vmul.f32 %v19183_v44, %v6685_v54  ;;  %11463 = vmatpush.bf16.msrb.mxu1 %v16272_v12  ;;  %v6786_v12 = vld [vmem:[#allocation2 + $0xc4] sm:$0x1]  ;;  %v6781_v54 = vld [vmem:[#allocation2 + $0x22] sm:$0x1] }
 0x886   :  { %11476 = vmatpush.bf16.msrb.mxu2 %v16280_v34  ;;  %11489 = vmatpush.bf16.msrb.mxu3 %v16288_v47  ;;  %v6950_v34 = vrot.slane %v6784_v53, 7  ;;  %v16296_v47 = vld [vmem:[#allocation9 + $0x240] sm:$0xff]  ;;  %v6955_v36 = vrot.slane %v6786_v12, 7  ;;  %v16450_v53 = vld [vmem:[#allocation9 + $0x710] sm:$0xff]  ;;  %v16375_v12 = vld [vmem:[#allocation9 + $0x4b8] sm:$0xff] }
 0x887   :  { %v6729_v17 = vadd.f32 %v19185_v8, %v6708_v5  ;;  %11643 = vmatpush.bf16.msra.mxu0 %v16386_v2  ;;  %v16418_v2 = vld [vmem:[#allocation9 + $0x610] sm:$0xff] }
 0x888   :  { %11464 = vmatmul.bf16.vlgmr.msrb.gmra.mxu1 %v7224_v27  ;;  %v6951_v42 = vsel %vm6900_vm0, %v6950_v34, %v6783_v45  ;;  %v6956_v33 = vsel %vm6900_vm0, %v6955_v36, %v6785_v37  ;;  %v6814_v5 = vld [vmem:[#allocation2 + $0xe1] sm:$0x1]  ;;  %v16365_v37 = vld [vmem:[#allocation9 + $0x468] sm:$0xff] }
 0x889   :  { %11495 = vmatpush.bf16.msra.mxu1 %v16303_v10  ;;  %v6745_v18 = vmax.f32 %v6729_v17, 0.0  ;;  %11477 = vmatmul.bf16.vlgmr.msrb.gmra.mxu2 %v7225_v59  ;;  %v16335_v10 = vld [vmem:[#allocation9 + $0x378] sm:$0xff]  ;;  %v7228_v7 = vpack.c.bf16 %v6951_v42, %v6951_v42  ;;  %v7229_v17 = vpack.c.bf16 %v6956_v33, %v6956_v33  ;;  %v16342_v27 = vld [vmem:[#allocation9 + $0x3b0] sm:$0xff]  ;;  %v16448_v42 = vld [vmem:[#allocation9 + $0x700] sm:$0xff] }
 0x88a   :  { %11508 = vmatpush.bf16.msra.mxu2 %v16311_v28  ;;  %11521 = vmatpush.bf16.msra.mxu3 %v16319_v6  ;;  %v6686_v56 = vpop.f32.mrf.mxu0  ;;  %v16351_v28 = vld [vmem:[#allocation9 + $0x3f8] sm:$0xff]  ;;  %v6946_v6 = vsel %vm6900_vm0, %v6945_v1, %v6781_v54  ;;  %v16350_v59 = vld [vmem:[#allocation9 + $0x3f0] sm:$0xff]  ;;  %v16373_v33 = vld [vmem:[#allocation9 + $0x4a8] sm:$0xff] }
 0x88b   :  { %11490 = vmatmul.bf16.vlgmr.msrb.gmra.mxu3 %v7226_v23  ;;  %6761 = vst [vmem:[#allocation2 + $0x111] sm:$0xff] %v6745_v18  ;;  %11644 = vmatpush.bf16.msra.mxu0 %v16385_v46  ;;  %v6687_v30 = vadd.f32 %v6686_v56, %v6638_v32  ;;  %v7227_v50 = vpack.c.bf16 %v6946_v6, %v6946_v6  ;;  %v7020_v46 = vrot.slane %v6814_v5, 7  ;;  %v16333_v23 = vld [vmem:[#allocation9 + $0x368] sm:$0xff]  ;;  %v6813_v32 = vld [vmem:[#allocation2 + $0x41] sm:$0x1]  ;;  %v16455_v18 = vld [vmem:[#allocation9 + $0x738] sm:$0xff] }
 0x88c   :  { %v16332_v56 = vld [vmem:[#allocation9 + $0x360] sm:$0xff]  ;;  %v16381_v5 = vld [vmem:[#allocation9 + $0x4e8] sm:$0xff] }
 0x88d   :  { %11496 = vmatpush.bf16.msra.mxu1 %v16302_v9  ;;  %v6709_v26 = vmul.f32 %v19183_v44, %v6687_v30  ;;  %v16299_v44 = vld [vmem:[#allocation9 + $0x258] sm:$0xff]  ;;  %v16416_v9 = vld [vmem:[#allocation9 + $0x600] sm:$0xff]  ;;  %v7021_v4 = vsel %vm6900_vm0, %v7020_v46, %v6813_v32  ;;  %v16486_v46 = vld [vmem:[#allocation9 + $0x830] sm:$0xff] }
 0x88e   :  { %11509 = vmatpush.bf16.msra.mxu2 %v16310_v62  ;;  %11522 = vmatpush.bf16.msra.mxu3 %v16318_v38  ;;  %v16341_v62 = vld [vmem:[#allocation9 + $0x3a8] sm:$0xff]  ;;  %v7242_v30 = vpack.c.bf16 %v7021_v4, %v7021_v4  ;;  %v16362_v32 = vld [vmem:[#allocation9 + $0x450] sm:$0xff] }
 0x88f   :  { %v6730_v35 = vadd.f32 %v19185_v8, %v6709_v26  ;;  %11645 = vmatpush.bf16.msra.mxu0 %v16384_v13  ;;  %v16421_v8 = vld [vmem:[#allocation9 + $0x628] sm:$0xff]  ;;  %v16340_v13 = vld [vmem:[#allocation9 + $0x3a0] sm:$0xff]  ;;  %v16347_v26 = vld [vmem:[#allocation9 + $0x3d8] sm:$0xff] }
 0x890   :  { %v16349_v38 = vld [vmem:[#allocation9 + $0x3e8] sm:$0xff]  ;;  %v16378_v4 = vld [vmem:[#allocation9 + $0x4d0] sm:$0xff] }
 0x891   :  { %11497 = vmatpush.bf16.msra.mxu1 %v16301_v19  ;;  %v6746_v11 = vmax.f32 %v6730_v35, 0.0  ;;  %v16348_v19 = vld [vmem:[#allocation9 + $0x3e0] sm:$0xff]  ;;  %v16338_v35 = vld [vmem:[#allocation9 + $0x390] sm:$0xff] }
 0x892   :  { %11510 = vmatpush.bf16.msra.mxu2 %v16309_v16  ;;  %11523 = vmatpush.bf16.msra.mxu3 %v16317_v57  ;;  %v16454_v16 = vld [vmem:[#allocation9 + $0x730] sm:$0xff]  ;;  %v16331_v57 = vld [vmem:[#allocation9 + $0x358] sm:$0xff] }
 0x893   :  { %11690 = vmatpush.bf16.msrb.mxu0 %v16423_v48  ;;  %6762 = vst [vmem:[#allocation2 + $0x121] sm:$0xff] %v6746_v11  ;;  %v16453_v48 = vld [vmem:[#allocation9 + $0x728] sm:$0xff]  ;;  %v6792_v11 = vld [vmem:[#allocation2 + $0xc7] sm:$0x1] }
 0x894   :  { %11646 = vmatmul.bf16.vlgmr.msra.gmra.mxu0 %v7238_v24  ;;  %v16452_v24 = vld [vmem:[#allocation9 + $0x720] sm:$0xff] }
 0x895   :  { %11498 = vmatpush.bf16.msra.mxu1 %v16300_v0  ;;  %v16346_v0 = vld [vmem:[#allocation9 + $0x3d0] sm:$0xff] }
 0x896   :  { %11511 = vmatpush.bf16.msra.mxu2 %v16308_v60  ;;  %11524 = vmatpush.bf16.msra.mxu3 %v16316_v43  ;;  %v16329_v60 = vld [vmem:[#allocation9 + $0x348] sm:$0xff]  ;;  %v6790_v43 = vld [vmem:[#allocation2 + $0xc6] sm:$0x1] }
 0x897   :  { %11691 = vmatpush.bf16.msrb.mxu0 %v16422_v21  ;;  %v16337_v21 = vld [vmem:[#allocation9 + $0x388] sm:$0xff] }
 0x899   :  { %11499 = vmatpush.bf16.msra.mxu1 %v16299_v44  ;;  %v16345_v44 = vld [vmem:[#allocation9 + $0x3c8] sm:$0xff] }
 0x89a   :  { %11512 = vmatpush.bf16.msra.mxu2 %v16307_v52  ;;  %11525 = vmatpush.bf16.msra.mxu3 %v16315_v25  ;;  %v6794_v52 = vld [vmem:[#allocation2 + $0xc8] sm:$0x1] }
 0x89b   :  { %11692 = vmatpush.bf16.msrb.mxu0 %v16421_v8  ;;  %v16451_v25 = vld [vmem:[#allocation9 + $0x718] sm:$0xff]  ;;  %v6965_v8 = vrot.slane %v6790_v43, 7  ;;  %v6798_v43 = vld [vmem:[#allocation2 + $0x32] sm:$0x1] }
 0x89d   :  { %11500 = vmatpush.bf16.msra.mxu1 %v16298_v58  ;;  %v6970_v58 = vrot.slane %v6792_v11, 7  ;;  %v6966_v1 = vsel %vm6900_vm0, %v6965_v8, %v6789_v61  ;;  %v16482_v11 = vld [vmem:[#allocation9 + $0x810] sm:$0xff] }
 0x89e   :  { %11513 = vmatpush.bf16.msra.mxu2 %v16306_v3  ;;  %11526 = vmatpush.bf16.msra.mxu3 %v16314_v39  ;;  %v16328_v3 = vld [vmem:[#allocation9 + $0x340] sm:$0xff]  ;;  %v6975_v39 = vrot.slane %v6794_v52, 7  ;;  %v16407_v52 = vld [vmem:[#allocation9 + $0x5b8] sm:$0xff] }
 0x89f   :  { %11693 = vmatpush.bf16.msrb.mxu0 %v16420_v41  ;;  %v16336_v41 = vld [vmem:[#allocation9 + $0x380] sm:$0xff] }
 0x8a1   :  { %11501 = vmatpush.bf16.msra.mxu1 %v16297_v51  ;;  %v16344_v51 = vld [vmem:[#allocation9 + $0x3c0] sm:$0xff] }
 0x8a2   :  { %11514 = vmatpush.bf16.msra.mxu2 %v16305_v15  ;;  %11527 = vmatpush.bf16.msra.mxu3 %v16313_v22  ;;  %v16367_v15 = vld [vmem:[#allocation9 + $0x478] sm:$0xff] }
 0x8a3   :  { %11694 = vmatpush.bf16.msrb.mxu0 %v16419_v55  ;;  %v6791_v22 = vld [vmem:[#allocation2 + $0x27] sm:$0x1] }
 0x8a4   :  { %v16383_v55 = vld [vmem:[#allocation9 + $0x4f8] sm:$0xff]  ;;  %v6971_v34 = vsel %vm6900_vm0, %v6970_v58, %v6791_v22 }
 0x8a5   :  { %11502 = vmatpush.bf16.msra.mxu1 %v16296_v47  ;;  %v6793_v47 = vld [vmem:[#allocation2 + $0x28] sm:$0x1]  ;;  %v7232_v54 = vpack.c.bf16 %v6971_v34, %v6971_v34  ;;  %v16480_v34 = vld [vmem:[#allocation9 + $0x800] sm:$0xff] }
 0x8a6   :  { %11515 = vmatpush.bf16.msra.mxu2 %v16304_v20  ;;  %11528 = vmatpush.bf16.msra.mxu3 %v16312_v29  ;;  %v6976_v36 = vsel %vm6900_vm0, %v6975_v39, %v6793_v47  ;;  %v6822_v20 = vld [vmem:[#allocation2 + $0xe5] sm:$0x1]  ;;  %v7231_v29 = vpack.c.bf16 %v6966_v1, %v6966_v1  ;;  %v16397_v47 = vld [vmem:[#allocation9 + $0x568] sm:$0xff] }
 0x8a7   :  { %11695 = vmatpush.bf16.msrb.mxu0 %v16418_v2  ;;  %v16449_v2 = vld [vmem:[#allocation9 + $0x708] sm:$0xff]  ;;  %v7233_v45 = vpack.c.bf16 %v6976_v36, %v6976_v36  ;;  %v7040_v6 = vrot.slane %v6822_v20, 7 }
 0x8a8   :  { %11503 = vmatmul.bf16.vlgmr.msra.gmra.mxu1 %v7227_v50  ;;  %v6821_v50 = vld [vmem:[#allocation2 + $0x45] sm:$0x1]  ;;  %v16405_v20 = vld [vmem:[#allocation9 + $0x5a8] sm:$0xff] }
 0x8a9   :  { %11547 = vmatpush.bf16.msrb.mxu1 %v16335_v10  ;;  %11516 = vmatmul.bf16.vlgmr.msra.gmra.mxu2 %v7228_v7  ;;  %v16366_v10 = vld [vmem:[#allocation9 + $0x470] sm:$0xff]  ;;  %v16487_v7 = vld [vmem:[#allocation9 + $0x838] sm:$0xff] }
 0x8aa   :  { %11560 = vmatpush.bf16.msrb.mxu2 %v16343_v63  ;;  %11573 = vmatpush.bf16.msrb.mxu3 %v16351_v28  ;;  %v16374_v63 = vld [vmem:[#allocation9 + $0x4b0] sm:$0xff] }
 0x8ab   :  { %11529 = vmatmul.bf16.vlgmr.msra.gmra.mxu3 %v7229_v17  ;;  %11696 = vmatpush.bf16.msrb.mxu0 %v16417_v31  ;;  %v16382_v28 = vld [vmem:[#allocation9 + $0x4f0] sm:$0xff]  ;;  %v7041_v31 = vsel %vm6900_vm0, %v7040_v6, %v6821_v50  ;;  %v16412_v6 = vld [vmem:[#allocation9 + $0x5e0] sm:$0xff]  ;;  %v16395_v50 = vld [vmem:[#allocation9 + $0x558] sm:$0xff] }
 0x8ac   :  { %v7246_v17 = vpack.c.bf16 %v7041_v31, %v7041_v31 }
 0x8ad   :  { %11548 = vmatpush.bf16.msrb.mxu1 %v16334_v49  ;;  %v16364_v49 = vld [vmem:[#allocation9 + $0x460] sm:$0xff] }
 0x8ae   :  { %11561 = vmatpush.bf16.msrb.mxu2 %v16342_v27  ;;  %11574 = vmatpush.bf16.msrb.mxu3 %v16350_v59  ;;  %v16372_v27 = vld [vmem:[#allocation9 + $0x4a0] sm:$0xff] }
 0x8af   :  { %11697 = vmatpush.bf16.msrb.mxu0 %v16416_v9  ;;  %v16380_v59 = vld [vmem:[#allocation9 + $0x4e0] sm:$0xff]  ;;  %v16363_v9 = vld [vmem:[#allocation9 + $0x458] sm:$0xff] }
 0x8b1   :  { %11549 = vmatpush.bf16.msrb.mxu1 %v16333_v23  ;;  %v16371_v23 = vld [vmem:[#allocation9 + $0x498] sm:$0xff] }
 0x8b2   :  { %11562 = vmatpush.bf16.msrb.mxu2 %v16341_v62  ;;  %11575 = vmatpush.bf16.msrb.mxu3 %v16349_v38  ;;  %v16379_v62 = vld [vmem:[#allocation9 + $0x4d8] sm:$0xff]  ;;  %v16485_v38 = vld [vmem:[#allocation9 + $0x828] sm:$0xff] }
 0x8b3   :  { %11742 = vmatpush.bf16.msra.mxu0 %v16455_v18  ;;  %v16370_v18 = vld [vmem:[#allocation9 + $0x490] sm:$0xff] }
 0x8b4   :  { %11698 = vmatmul.bf16.vlgmr.msrb.gmra.mxu0 %v7242_v30  ;;  %v16361_v30 = vld [vmem:[#allocation9 + $0x448] sm:$0xff] }
 0x8b5   :  { %11550 = vmatpush.bf16.msrb.mxu1 %v16332_v56  ;;  %v16484_v56 = vld [vmem:[#allocation9 + $0x820] sm:$0xff] }
 0x8b6   :  { %11563 = vmatpush.bf16.msrb.mxu2 %v16340_v13  ;;  %11576 = vmatpush.bf16.msrb.mxu3 %v16348_v19  ;;  %v6799_v13 = vld [vmem:[#allocation2 + $0xd2] sm:$0x1]  ;;  %v6801_v19 = vld [vmem:[#allocation2 + $0xd3] sm:$0x1] }
 0x8b7   :  { %11743 = vmatpush.bf16.msra.mxu0 %v16454_v16  ;;  %v16369_v16 = vld [vmem:[#allocation9 + $0x488] sm:$0xff] }
 0x8b9   :  { %11551 = vmatpush.bf16.msrb.mxu1 %v16331_v57  ;;  %v16377_v57 = vld [vmem:[#allocation9 + $0x4c8] sm:$0xff] }
 0x8ba   :  { %11564 = vmatpush.bf16.msrb.mxu2 %v16339_v40  ;;  %11577 = vmatpush.bf16.msrb.mxu3 %v16347_v26  ;;  %v6803_v40 = vld [vmem:[#allocation2 + $0xd4] sm:$0x1]  ;;  %v16483_v26 = vld [vmem:[#allocation9 + $0x818] sm:$0xff] }
 0x8bb   :  { %11744 = vmatpush.bf16.msra.mxu0 %v16453_v48  ;;  %v6985_v48 = vrot.slane %v6799_v13, 7  ;;  %v6809_v13 = vld [vmem:[#allocation2 + $0xd7] sm:$0x1] }
 0x8bd   :  { %11552 = vmatpush.bf16.msrb.mxu1 %v16330_v14  ;;  %v6990_v14 = vrot.slane %v6801_v19, 7  ;;  %v6986_v8 = vsel %vm6900_vm0, %v6985_v48, %v6798_v43  ;;  %v16401_v19 = vld [vmem:[#allocation9 + $0x588] sm:$0xff] }
 0x8be   :  { %11565 = vmatpush.bf16.msrb.mxu2 %v16338_v35  ;;  %11578 = vmatpush.bf16.msrb.mxu3 %v16346_v0  ;;  %v16360_v35 = vld [vmem:[#allocation9 + $0x440] sm:$0xff]  ;;  %v6995_v0 = vrot.slane %v6803_v40, 7  ;;  %v6811_v40 = vld [vmem:[#allocation2 + $0xd8] sm:$0x1]  ;;  %v6806_v43 = vld [vmem:[#allocation2 + $0x36] sm:$0x1] }
 0x8bf   :  { %11745 = vmatpush.bf16.msra.mxu0 %v16452_v24  ;;  %v16368_v24 = vld [vmem:[#allocation9 + $0x480] sm:$0xff] }
 0x8c1   :  { %11553 = vmatpush.bf16.msrb.mxu1 %v16329_v60  ;;  %v16376_v60 = vld [vmem:[#allocation9 + $0x4c0] sm:$0xff] }
 0x8c2   :  { %11566 = vmatpush.bf16.msrb.mxu2 %v16337_v21  ;;  %11579 = vmatpush.bf16.msrb.mxu3 %v16345_v44  ;;  %v16399_v21 = vld [vmem:[#allocation9 + $0x578] sm:$0xff]  ;;  %v6800_v44 = vld [vmem:[#allocation2 + $0x33] sm:$0x1] }
 0x8c3   :  { %11746 = vmatpush.bf16.msra.mxu0 %v16451_v25  ;;  %v16415_v25 = vld [vmem:[#allocation9 + $0x5f8] sm:$0xff]  ;;  %v6991_v58 = vsel %vm6900_vm0, %v6990_v14, %v6800_v44  ;;  %v7010_v14 = vrot.slane %v6809_v13, 7 }
 0x8c4   :  { %v7236_v61 = vpack.c.bf16 %v6991_v58, %v6991_v58 }
 0x8c5   :  { %11554 = vmatpush.bf16.msrb.mxu1 %v16328_v3  ;;  %v6802_v3 = vld [vmem:[#allocation2 + $0x34] sm:$0x1] }
 0x8c6   :  { %11567 = vmatpush.bf16.msrb.mxu2 %v16336_v41  ;;  %11580 = vmatpush.bf16.msrb.mxu3 %v16344_v51  ;;  %v6996_v39 = vsel %vm6900_vm0, %v6995_v0, %v6802_v3  ;;  %v6831_v41 = vld [vmem:[#allocation2 + $0xf1] sm:$0x1]  ;;  %v7235_v51 = vpack.c.bf16 %v6986_v8, %v6986_v8  ;;  %v7015_v0 = vrot.slane %v6811_v40, 7  ;;  %v16447_v8 = vld [vmem:[#allocation9 + $0x6f8] sm:$0xff] }
 0x8c7   :  { %11747 = vmatpush.bf16.msra.mxu0 %v16450_v53  ;;  %v16481_v53 = vld [vmem:[#allocation9 + $0x808] sm:$0xff]  ;;  %v7237_v22 = vpack.c.bf16 %v6996_v39, %v6996_v39  ;;  %v7060_v1 = vrot.slane %v6831_v41, 7  ;;  %v16548_v40 = vld [vmem:[#allocation9 + $0xa20] sm:$0xff] }
 0x8c8   :  { %11555 = vmatmul.bf16.vlgmr.msrb.gmra.mxu1 %v7231_v29  ;;  %v16413_v29 = vld [vmem:[#allocation9 + $0x5e8] sm:$0xff] }
 0x8c9   :  { %11599 = vmatpush.bf16.msra.mxu1 %v16367_v15  ;;  %11568 = vmatmul.bf16.vlgmr.msrb.gmra.mxu2 %v7232_v54  ;;  %v16398_v15 = vld [vmem:[#allocation9 + $0x570] sm:$0xff]  ;;  %v6830_v54 = vld [vmem:[#allocation2 + $0x51] sm:$0x1] }
 0x8ca   :  { %11612 = vmatpush.bf16.msra.mxu2 %v16375_v12  ;;  %11625 = vmatpush.bf16.msra.mxu3 %v16383_v55  ;;  %v16406_v12 = vld [vmem:[#allocation9 + $0x5b0] sm:$0xff] }
 0x8cb   :  { %11581 = vmatmul.bf16.vlgmr.msrb.gmra.mxu3 %v7233_v45  ;;  %11748 = vmatpush.bf16.msra.mxu0 %v16449_v2  ;;  %v16414_v55 = vld [vmem:[#allocation9 + $0x5f0] sm:$0xff]  ;;  %v16519_v2 = vld [vmem:[#allocation9 + $0x938] sm:$0xff]  ;;  %v16396_v45 = vld [vmem:[#allocation9 + $0x560] sm:$0xff] }
 0x8cd   :  { %11600 = vmatpush.bf16.msra.mxu1 %v16366_v10  ;;  %v7061_v10 = vsel %vm6900_vm0, %v7060_v1, %v6830_v54 }
 0x8ce   :  { %11613 = vmatpush.bf16.msra.mxu2 %v16374_v63  ;;  %11626 = vmatpush.bf16.msra.mxu3 %v16382_v28  ;;  %v7250_v63 = vpack.c.bf16 %v7061_v10, %v7061_v10  ;;  %v16404_v28 = vld [vmem:[#allocation9 + $0x5a0] sm:$0xff]  ;;  %v16429_v10 = vld [vmem:[#allocation9 + $0x668] sm:$0xff] }
 0x8cf   :  { %11749 = vmatpush.bf16.msra.mxu0 %v16448_v42  ;;  %v16518_v42 = vld [vmem:[#allocation9 + $0x930] sm:$0xff] }
 0x8d1   :  { %11601 = vmatpush.bf16.msra.mxu1 %v16365_v37 }
 0x8d2   :  { %11614 = vmatpush.bf16.msra.mxu2 %v16373_v33  ;;  %11627 = vmatpush.bf16.msra.mxu3 %v16381_v5 }
 0x8d3   :  { %11794 = vmatpush.bf16.msrb.mxu0 %v16487_v7 }
 0x8d4   :  { %11750 = vmatmul.bf16.vlgmr.msra.gmra.mxu0 %v7246_v17  ;;  %v16403_v17 = vld [vmem:[#allocation9 + $0x598] sm:$0xff] }
 0x8d5   :  { %11602 = vmatpush.bf16.msra.mxu1 %v16364_v49 }
 0x8d6   :  { %11615 = vmatpush.bf16.msra.mxu2 %v16372_v27  ;;  %11628 = vmatpush.bf16.msra.mxu3 %v16380_v59  ;;  %v16411_v27 = vld [vmem:[#allocation9 + $0x5d8] sm:$0xff]  ;;  %v16517_v59 = vld [vmem:[#allocation9 + $0x928] sm:$0xff] }
 0x8d7   :  { %11795 = vmatpush.bf16.msrb.mxu0 %v16486_v46  ;;  %v16394_v46 = vld [vmem:[#allocation9 + $0x550] sm:$0xff] }
 0x8d9   :  { %11603 = vmatpush.bf16.msra.mxu1 %v16363_v9  ;;  %v16402_v9 = vld [vmem:[#allocation9 + $0x590] sm:$0xff] }
 0x8da   :  { %11616 = vmatpush.bf16.msra.mxu2 %v16371_v23  ;;  %11629 = vmatpush.bf16.msra.mxu3 %v16379_v62  ;;  %v16410_v23 = vld [vmem:[#allocation9 + $0x5d0] sm:$0xff]  ;;  %v16516_v62 = vld [vmem:[#allocation9 + $0x920] sm:$0xff] }
 0x8db   :  { %11796 = vmatpush.bf16.msrb.mxu0 %v16485_v38 }
 0x8dd   :  { %11604 = vmatpush.bf16.msra.mxu1 %v16362_v32 }
 0x8de   :  { %11617 = vmatpush.bf16.msra.mxu2 %v16370_v18  ;;  %11630 = vmatpush.bf16.msra.mxu3 %v16378_v4  ;;  %v16393_v18 = vld [vmem:[#allocation9 + $0x548] sm:$0xff] }
 0x8df   :  { %11797 = vmatpush.bf16.msrb.mxu0 %v16484_v56 }
 0x8e1   :  { %11605 = vmatpush.bf16.msra.mxu1 %v16361_v30  ;;  %v6807_v30 = vld [vmem:[#allocation2 + $0xd6] sm:$0x1] }
 0x8e2   :  { %11618 = vmatpush.bf16.msra.mxu2 %v16369_v16  ;;  %11631 = vmatpush.bf16.msra.mxu3 %v16377_v57  ;;  %v16409_v16 = vld [vmem:[#allocation9 + $0x5c8] sm:$0xff]  ;;  %v7005_v48 = vrot.slane %v6807_v30, 7 }
 0x8e3   :  { %11798 = vmatpush.bf16.msrb.mxu0 %v16483_v26  ;;  %v16515_v26 = vld [vmem:[#allocation9 + $0x918] sm:$0xff] }
 0x8e4   :  { %v7006_v39 = vsel %vm6900_vm0, %v7005_v48, %v6806_v43  ;;  %v6816_v48 = vld [vmem:[#allocation2 + $0xe2] sm:$0x1]  ;;  %v16547_v43 = vld [vmem:[#allocation9 + $0xa18] sm:$0xff] }
 0x8e5   :  { %11606 = vmatpush.bf16.msra.mxu1 %v16360_v35  ;;  %v11387_v36 = vpop.f32.mrf.mxu1  ;;  %v16392_v35 = vld [vmem:[#allocation9 + $0x540] sm:$0xff] }
 0x8e6   :  { %11619 = vmatpush.bf16.msra.mxu2 %v16368_v24  ;;  %11632 = vmatpush.bf16.msra.mxu3 %v16376_v60  ;;  %v16400_v24 = vld [vmem:[#allocation9 + $0x580] sm:$0xff] }
 0x8e7   :  { %11799 = vmatpush.bf16.msrb.mxu0 %v16482_v11  ;;  %v16408_v60 = vld [vmem:[#allocation9 + $0x5c0] sm:$0xff]  ;;  %v16514_v11 = vld [vmem:[#allocation9 + $0x910] sm:$0xff] }
 0x8e8   :  { %11607 = vmatmul.bf16.vlgmr.msra.gmra.mxu1 %v7235_v51  ;;  %v6810_v51 = vld [vmem:[#allocation2 + $0x38] sm:$0x1] }
 0x8e9   :  { %11651 = vmatpush.bf16.msrb.mxu1 %v16399_v21  ;;  %11620 = vmatmul.bf16.vlgmr.msra.gmra.mxu2 %v7236_v61  ;;  %v16431_v21 = vld [vmem:[#allocation9 + $0x678] sm:$0xff]  ;;  %v7016_v61 = vsel %vm6900_vm0, %v7015_v0, %v6810_v51  ;;  %v16441_v0 = vld [vmem:[#allocation9 + $0x6c8] sm:$0xff] }
 0x8ea   :  { %11664 = vmatpush.bf16.msrb.mxu2 %v16407_v52  ;;  %11677 = vmatpush.bf16.msrb.mxu3 %v16415_v25  ;;  %v6808_v52 = vld [vmem:[#allocation2 + $0x37] sm:$0x1]  ;;  %v16439_v25 = vld [vmem:[#allocation9 + $0x6b8] sm:$0xff] }
 0x8eb   :  { %11633 = vmatmul.bf16.vlgmr.msra.gmra.mxu3 %v7237_v22  ;;  %11800 = vmatpush.bf16.msrb.mxu0 %v16481_v53  ;;  %v11400_v37 = vpop.f32.mrf.mxu2  ;;  %v7011_v41 = vsel %vm6900_vm0, %v7010_v14, %v6808_v52  ;;  %v6818_v14 = vld [vmem:[#allocation2 + $0xe3] sm:$0x1]  ;;  %v16463_v51 = vld [vmem:[#allocation9 + $0x778] sm:$0xff] }
 0x8ec   :  { %v11401_v33 = vadd.f32 %v11400_v37, %v11387_v36  ;;  %v11413_v5 = vpop.f32.mrf.mxu3  ;;  %v7240_v1 = vpack.c.bf16 %v7011_v41, %v7011_v41  ;;  %v7241_v36 = vpack.c.bf16 %v7016_v61, %v7016_v61  ;;  %v16551_v37 = vld [vmem:[#allocation9 + $0xa38] sm:$0xff]  ;;  %v16546_v41 = vld [vmem:[#allocation9 + $0xa10] sm:$0xff] }
 0x8ed   :  { %11652 = vmatpush.bf16.msrb.mxu1 %v16398_v15  ;;  %v11389_v7 = vpop.f32.mrf.mxu1  ;;  %v19315_v31 = vpop.f32.mrf.mxu0  ;;  %v6817_v61 = vld [vmem:[#allocation2 + $0x43] sm:$0x1] }
 0x8ee   :  { %11665 = vmatpush.bf16.msrb.mxu2 %v16406_v12  ;;  %11678 = vmatpush.bf16.msrb.mxu3 %v16414_v55  ;;  %v11414_v49 = vadd.f32 %v11413_v5, %v11401_v33  ;;  %v6839_v12 = vld [vmem:[#allocation2 + $0xf5] sm:$0x1]  ;;  %v7239_v55 = vpack.c.bf16 %v7006_v39, %v7006_v39  ;;  %v6815_v39 = vld [vmem:[#allocation2 + $0x42] sm:$0x1] }
 0x8ef   :  { %11801 = vmatpush.bf16.msrb.mxu0 %v16480_v34  ;;  %v16513_v34 = vld [vmem:[#allocation9 + $0x908] sm:$0xff]  ;;  %v7080_v54 = vrot.slane %v6839_v12, 7 }
 0x8f1   :  { %11653 = vmatpush.bf16.msrb.mxu1 %v16397_v47  ;;  %v16430_v47 = vld [vmem:[#allocation9 + $0x670] sm:$0xff] }
 0x8f2   :  { %11666 = vmatpush.bf16.msrb.mxu2 %v16405_v20  ;;  %11679 = vmatpush.bf16.msrb.mxu3 %v16413_v29  ;;  %v16438_v20 = vld [vmem:[#allocation9 + $0x6b0] sm:$0xff] }
 0x8f3   :  { %11846 = vmatpush.bf16.msra.mxu0 %v16519_v2  ;;  %v11402_v38 = vpop.f32.mrf.mxu2  ;;  %v16446_v29 = vld [vmem:[#allocation9 + $0x6f0] sm:$0xff]  ;;  %v16512_v2 = vld [vmem:[#allocation9 + $0x900] sm:$0xff] }
 0x8f4   :  { %11802 = vmatmul.bf16.vlgmr.msrb.gmra.mxu0 %v7250_v63  ;;  %v11415_v32 = vpop.f32.mrf.mxu3  ;;  %v16437_v63 = vld [vmem:[#allocation9 + $0x6a8] sm:$0xff] }
 0x8f5   :  { %11654 = vmatpush.bf16.msrb.mxu1 %v16396_v45  ;;  %v11426_v4 = vpop.f32.mrf.mxu1  ;;  %v11545_v56 = vpop.f32.mrf.mxu0  ;;  %v16549_v32 = vld [vmem:[#allocation9 + $0xa28] sm:$0xff] }
 0x8f6   :  { %11667 = vmatpush.bf16.msrb.mxu2 %v16404_v28  ;;  %11680 = vmatpush.bf16.msrb.mxu3 %v16412_v6  ;;  %v11427_v57 = vadd.f32 %v11426_v4, %v11414_v49  ;;  %v16445_v28 = vld [vmem:[#allocation9 + $0x6e8] sm:$0xff]  ;;  %v16428_v49 = vld [vmem:[#allocation9 + $0x660] sm:$0xff] }
 0x8f7   :  { %11847 = vmatpush.bf16.msra.mxu0 %v16518_v42  ;;  %v6838_v42 = vld [vmem:[#allocation2 + $0x55] sm:$0x1] }
 0x8f8   :  { %v7081_v33 = vsel %vm6900_vm0, %v7080_v54, %v6838_v42  ;;  %v16462_v54 = vld [vmem:[#allocation9 + $0x770] sm:$0xff]  ;;  %v16469_v42 = vld [vmem:[#allocation9 + $0x7a8] sm:$0xff] }
 0x8f9   :  { %11655 = vmatpush.bf16.msrb.mxu1 %v16395_v50 }
 0x8fa   :  { %11668 = vmatpush.bf16.msrb.mxu2 %v16403_v17  ;;  %11681 = vmatpush.bf16.msrb.mxu3 %v16411_v27  ;;  %v7254_v17 = vpack.c.bf16 %v7081_v33, %v7081_v33  ;;  %v16436_v27 = vld [vmem:[#allocation9 + $0x6a0] sm:$0xff]  ;;  %v6847_v33 = vld [vmem:[#allocation2 + $0x61] sm:$0x1] }
 0x8fb   :  { %11848 = vmatpush.bf16.msra.mxu0 %v16517_v59  ;;  %v11439_v44 = vpop.f32.mrf.mxu2  ;;  %v16444_v59 = vld [vmem:[#allocation9 + $0x6e0] sm:$0xff] }
 0x8fc   :  { %v11440_v58 = vadd.f32 %v11439_v44, %v11427_v57  ;;  %v11452_v3 = vpop.f32.mrf.mxu3  ;;  %v16442_v57 = vld [vmem:[#allocation9 + $0x6d0] sm:$0xff]  ;;  %v7030_v44 = vrot.slane %v6818_v14, 7  ;;  %v16580_v14 = vld [vmem:[#allocation9 + $0xb20] sm:$0xff] }
 0x8fd   :  { %11656 = vmatpush.bf16.msrb.mxu1 %v16394_v46  ;;  %v11428_v53 = vpop.f32.mrf.mxu1  ;;  %v19320_v15 = vpop.f32.mrf.mxu0  ;;  %v16550_v46 = vld [vmem:[#allocation9 + $0xa30] sm:$0xff] }
 0x8fe   :  { %11669 = vmatpush.bf16.msrb.mxu2 %v16402_v9  ;;  %11682 = vmatpush.bf16.msrb.mxu3 %v16410_v23  ;;  %v11453_v22 = vadd.f32 %v11452_v3, %v11440_v58  ;;  %v16427_v9 = vld [vmem:[#allocation9 + $0x658] sm:$0xff]  ;;  %v16432_v58 = vld [vmem:[#allocation9 + $0x680] sm:$0xff] }
 0x8ff   :  { %11849 = vmatpush.bf16.msra.mxu0 %v16516_v62  ;;  %v16435_v23 = vld [vmem:[#allocation9 + $0x698] sm:$0xff]  ;;  %v16440_v3 = vld [vmem:[#allocation9 + $0x6c0] sm:$0xff] }
 0x900   :  { %v16443_v62 = vld [vmem:[#allocation9 + $0x6d8] sm:$0xff] }
 0x901   :  { %11657 = vmatpush.bf16.msrb.mxu1 %v16393_v18  ;;  %v16471_v53 = vld [vmem:[#allocation9 + $0x7b8] sm:$0xff] }
 0x902   :  { %11670 = vmatpush.bf16.msrb.mxu2 %v16401_v19  ;;  %11683 = vmatpush.bf16.msrb.mxu3 %v16409_v16  ;;  %v16426_v19 = vld [vmem:[#allocation9 + $0x650] sm:$0xff] }
 0x903   :  { %11850 = vmatpush.bf16.msra.mxu0 %v16515_v26  ;;  %v11441_v45 = vpop.f32.mrf.mxu2  ;;  %v16434_v16 = vld [vmem:[#allocation9 + $0x690] sm:$0xff]  ;;  %v16425_v26 = vld [vmem:[#allocation9 + $0x648] sm:$0xff] }
 0x904   :  { %v11454_v6 = vpop.f32.mrf.mxu3  ;;  %v16478_v45 = vld [vmem:[#allocation9 + $0x7f0] sm:$0xff] }
 0x905   :  { %11658 = vmatpush.bf16.msrb.mxu1 %v16392_v35  ;;  %v11597_v5 = vpop.f32.mrf.mxu0  ;;  %v11465_v50 = vpop.f32.mrf.mxu1  ;;  %v16433_v35 = vld [vmem:[#allocation9 + $0x688] sm:$0xff] }
 0x906   :  { %11671 = vmatpush.bf16.msrb.mxu2 %v16400_v24  ;;  %11684 = vmatpush.bf16.msrb.mxu3 %v16408_v60  ;;  %v11466_v7 = vadd.f32 %v11465_v50, %v11453_v22  ;;  %v6820_v60 = vld [vmem:[#allocation2 + $0xe4] sm:$0x1]  ;;  %v16461_v6 = vld [vmem:[#allocation9 + $0x768] sm:$0xff] }
 0x907   :  { %11851 = vmatpush.bf16.msra.mxu0 %v16514_v11  ;;  %v16479_v22 = vld [vmem:[#allocation9 + $0x7f8] sm:$0xff] }
 0x908   :  { %11659 = vmatmul.bf16.vlgmr.msrb.gmra.mxu1 %v7239_v55  ;;  %v7031_v55 = vsel %vm6900_vm0, %v7030_v44, %v6817_v61  ;;  %v16583_v5 = vld [vmem:[#allocation9 + $0xb38] sm:$0xff]  ;;  %v16578_v61 = vld [vmem:[#allocation9 + $0xb10] sm:$0xff] }
 0x909   :  { %11703 = vmatpush.bf16.msra.mxu1 %v16431_v21  ;;  %11672 = vmatmul.bf16.vlgmr.msrb.gmra.mxu2 %v7240_v1  ;;  %v7025_v21 = vrot.slane %v6816_v48, 7  ;;  %v6819_v1 = vld [vmem:[#allocation2 + $0x44] sm:$0x1] }
 0x90a   :  { %11716 = vmatpush.bf16.msra.mxu2 %v16439_v25  ;;  %11729 = vmatpush.bf16.msra.mxu3 %v16447_v8  ;;  %v16424_v25 = vld [vmem:[#allocation9 + $0x640] sm:$0xff]  ;;  %v7035_v8 = vrot.slane %v6820_v60, 7  ;;  %v16465_v60 = vld [vmem:[#allocation9 + $0x788] sm:$0xff]  ;;  %v16579_v44 = vld [vmem:[#allocation9 + $0xb18] sm:$0xff] }
 0x90b   :  { %11685 = vmatmul.bf16.vlgmr.msrb.gmra.mxu3 %v7241_v36  ;;  %11852 = vmatpush.bf16.msra.mxu0 %v16513_v34  ;;  %v7026_v12 = vsel %vm6900_vm0, %v7025_v21, %v6815_v39  ;;  %v6828_v21 = vld [vmem:[#allocation2 + $0xe8] sm:$0x1]  ;;  %v16464_v39 = vld [vmem:[#allocation9 + $0x780] sm:$0xff] }
 0x90c   :  { %v11478_v38 = vpop.f32.mrf.mxu2  ;;  %v7036_v34 = vsel %vm6900_vm0, %v7035_v8, %v6819_v1  ;;  %v7243_v36 = vpack.c.bf16 %v7026_v12, %v7026_v12  ;;  %v16503_v12 = vld [vmem:[#allocation9 + $0x8b8] sm:$0xff] }
 0x90d   :  { %11704 = vmatpush.bf16.msra.mxu1 %v16430_v47  ;;  %v11479_v18 = vadd.f32 %v11478_v38, %v11466_v7  ;;  %v11467_v56 = vpop.f32.mrf.mxu1  ;;  %v6848_v47 = vld [vmem:[#allocation2 + $0x101] sm:$0x1]  ;;  %v16475_v38 = vld [vmem:[#allocation9 + $0x7d8] sm:$0xff] }
 0x90e   :  { %11717 = vmatpush.bf16.msra.mxu2 %v16438_v20  ;;  %11730 = vmatpush.bf16.msra.mxu3 %v16446_v29  ;;  %v11491_v4 = vpop.f32.mrf.mxu3  ;;  %v7244_v20 = vpack.c.bf16 %v7031_v55, %v7031_v55  ;;  %v16545_v29 = vld [vmem:[#allocation9 + $0xa08] sm:$0xff]  ;;  %v16511_v55 = vld [vmem:[#allocation9 + $0x8f8] sm:$0xff] }
 0x90f   :  { %11853 = vmatpush.bf16.msra.mxu0 %v16512_v2  ;;  %v19323_v30 = vadd.f32 %v11491_v4, %v11479_v18  ;;  %v7245_v2 = vpack.c.bf16 %v7036_v34, %v7036_v34  ;;  %v16581_v18 = vld [vmem:[#allocation9 + $0xb28] sm:$0xff] }
 0x911   :  { %11705 = vmatpush.bf16.msra.mxu1 %v16429_v10  ;;  %v19325_v13 = vpop.f32.mrf.mxu0  ;;  %v16470_v10 = vld [vmem:[#allocation9 + $0x7b0] sm:$0xff] }
 0x912   :  { %11718 = vmatpush.bf16.msra.mxu2 %v16437_v63  ;;  %11731 = vmatpush.bf16.msra.mxu3 %v16445_v28  ;;  %v7100_v63 = vrot.slane %v6848_v47, 7  ;;  %v16544_v28 = vld [vmem:[#allocation9 + $0xa00] sm:$0xff]  ;;  %v6827_v47 = vld [vmem:[#allocation2 + $0x48] sm:$0x1] }
 0x913   :  { %11898 = vmatpush.bf16.msrb.mxu0 %v16551_v37  ;;  %v16477_v37 = vld [vmem:[#allocation9 + $0x7e8] sm:$0xff] }
 0x914   :  { %11854 = vmatmul.bf16.vlgmr.msra.gmra.mxu0 %v7254_v17  ;;  %v11480_v24 = vpop.f32.mrf.mxu2  ;;  %v7101_v50 = vsel %vm6900_vm0, %v7100_v63, %v6847_v33  ;;  %v16460_v17 = vld [vmem:[#allocation9 + $0x760] sm:$0xff]  ;;  %v16502_v63 = vld [vmem:[#allocation9 + $0x8b0] sm:$0xff]  ;;  %v16501_v33 = vld [vmem:[#allocation9 + $0x8a8] sm:$0xff] }
 0x915   :  { %11706 = vmatpush.bf16.msra.mxu1 %v16428_v49  ;;  %v6826_v24 = vld [vmem:[#allocation2 + $0xe7] sm:$0x1] }
 0x916   :  { %11719 = vmatpush.bf16.msra.mxu2 %v16436_v27  ;;  %11732 = vmatpush.bf16.msra.mxu3 %v16444_v59  ;;  %v11493_v11 = vpop.f32.mrf.mxu3  ;;  %v7258_v27 = vpack.c.bf16 %v7101_v50, %v7101_v50  ;;  %v16468_v59 = vld [vmem:[#allocation9 + $0x7a0] sm:$0xff]  ;;  %v7050_v8 = vrot.slane %v6826_v24, 7  ;;  %v6855_v50 = vld [vmem:[#allocation2 + $0x65] sm:$0x1]  ;;  %v16489_v24 = vld [vmem:[#allocation9 + $0x848] sm:$0xff] }
 0x917   :  { %11899 = vmatpush.bf16.msrb.mxu0 %v16550_v46  ;;  %v16476_v46 = vld [vmem:[#allocation9 + $0x7e0] sm:$0xff] }
 0x919   :  { %11707 = vmatpush.bf16.msra.mxu1 %v16427_v9  ;;  %v11649_v52 = vpop.f32.mrf.mxu0  ;;  %v16582_v9 = vld [vmem:[#allocation9 + $0xb30] sm:$0xff] }
 0x91a   :  { %11720 = vmatpush.bf16.msra.mxu2 %v16435_v23  ;;  %11733 = vmatpush.bf16.msra.mxu3 %v16443_v62  ;;  %v16459_v23 = vld [vmem:[#allocation9 + $0x758] sm:$0xff] }
 0x91b   :  { %11900 = vmatpush.bf16.msrb.mxu0 %v16549_v32  ;;  %v16467_v62 = vld [vmem:[#allocation9 + $0x798] sm:$0xff] }
 0x91d   :  { %11708 = vmatpush.bf16.msra.mxu1 %v16426_v19 }
 0x91e   :  { %11721 = vmatpush.bf16.msra.mxu2 %v16434_v16  ;;  %11734 = vmatpush.bf16.msra.mxu3 %v16442_v57  ;;  %v16458_v57 = vld [vmem:[#allocation9 + $0x750] sm:$0xff] }
 0x91f   :  { %11901 = vmatpush.bf16.msrb.mxu0 %v16548_v40  ;;  %v16466_v40 = vld [vmem:[#allocation9 + $0x790] sm:$0xff] }
 0x921   :  { %11709 = vmatpush.bf16.msra.mxu1 %v16425_v26  ;;  %v16474_v26 = vld [vmem:[#allocation9 + $0x7d0] sm:$0xff] }
 0x922   :  { %11722 = vmatpush.bf16.msra.mxu2 %v16433_v35  ;;  %11735 = vmatpush.bf16.msra.mxu3 %v16441_v0  ;;  %v16457_v35 = vld [vmem:[#allocation9 + $0x748] sm:$0xff]  ;;  %v6824_v0 = vld [vmem:[#allocation2 + $0xe6] sm:$0x1] }
 0x923   :  { %11902 = vmatpush.bf16.msrb.mxu0 %v16547_v43  ;;  %v16473_v43 = vld [vmem:[#allocation9 + $0x7c8] sm:$0xff] }
 0x925   :  { %11710 = vmatpush.bf16.msra.mxu1 %v16424_v25  ;;  %v11504_v7 = vpop.f32.mrf.mxu1  ;;  %v7045_v25 = vrot.slane %v6824_v0, 7  ;;  %v16612_v0 = vld [vmem:[#allocation9 + $0xc20] sm:$0xff] }
 0x926   :  { %11723 = vmatpush.bf16.msra.mxu2 %v16432_v58  ;;  %11736 = vmatpush.bf16.msra.mxu3 %v16440_v3  ;;  %v11505_v49 = vadd.f32 %v11504_v7, %v19323_v30  ;;  %v7055_v3 = vrot.slane %v6828_v21, 7  ;;  %v16615_v7 = vld [vmem:[#allocation9 + $0xc38] sm:$0xff]  ;;  %v16505_v21 = vld [vmem:[#allocation9 + $0x8c8] sm:$0xff] }
 0x927   :  { %11903 = vmatpush.bf16.msrb.mxu0 %v16546_v41  ;;  %v16472_v41 = vld [vmem:[#allocation9 + $0x7c0] sm:$0xff] }
 0x928   :  { %11711 = vmatmul.bf16.vlgmr.msra.gmra.mxu1 %v7243_v36  ;;  %v7056_v36 = vsel %vm6900_vm0, %v7055_v3, %v6827_v47 }
 0x929   :  { %11755 = vmatpush.bf16.msrb.mxu1 %v16463_v51  ;;  %11724 = vmatmul.bf16.vlgmr.msra.gmra.mxu2 %v7244_v20  ;;  %v6823_v51 = vld [vmem:[#allocation2 + $0x46] sm:$0x1]  ;;  %v6856_v20 = vld [vmem:[#allocation2 + $0x105] sm:$0x1] }
 0x92a   :  { %11768 = vmatpush.bf16.msrb.mxu2 %v16471_v53  ;;  %11781 = vmatpush.bf16.msrb.mxu3 %v16479_v22  ;;  %v16495_v53 = vld [vmem:[#allocation9 + $0x878] sm:$0xff]  ;;  %v7046_v1 = vsel %vm6900_vm0, %v7045_v25, %v6823_v51  ;;  %v16496_v51 = vld [vmem:[#allocation9 + $0x880] sm:$0xff] }
 0x92b   :  { %11737 = vmatmul.bf16.vlgmr.msra.gmra.mxu3 %v7245_v2  ;;  %11904 = vmatpush.bf16.msrb.mxu0 %v16545_v29  ;;  %v6825_v22 = vld [vmem:[#allocation2 + $0x47] sm:$0x1]  ;;  %v7247_v29 = vpack.c.bf16 %v7046_v1, %v7046_v1  ;;  %v16577_v2 = vld [vmem:[#allocation9 + $0xb08] sm:$0xff] }
 0x92c   :  { %v11517_v32 = vpop.f32.mrf.mxu2  ;;  %v7051_v34 = vsel %vm6900_vm0, %v7050_v8, %v6825_v22  ;;  %v16611_v25 = vld [vmem:[#allocation9 + $0xc18] sm:$0xff]  ;;  %v16610_v22 = vld [vmem:[#allocation9 + $0xc10] sm:$0xff] }
 0x92d   :  { %11756 = vmatpush.bf16.msrb.mxu1 %v16462_v54  ;;  %v11518_v4 = vadd.f32 %v11517_v32, %v11505_v49  ;;  %v11506_v30 = vpop.f32.mrf.mxu1  ;;  %v7248_v54 = vpack.c.bf16 %v7051_v34, %v7051_v34  ;;  %v16499_v32 = vld [vmem:[#allocation9 + $0x898] sm:$0xff] }
 0x92e   :  { %11769 = vmatpush.bf16.msrb.mxu2 %v16470_v10  ;;  %11782 = vmatpush.bf16.msrb.mxu3 %v16478_v45  ;;  %v11530_v56 = vpop.f32.mrf.mxu3  ;;  %v16494_v10 = vld [vmem:[#allocation9 + $0x870] sm:$0xff]  ;;  %v7249_v45 = vpack.c.bf16 %v7056_v36, %v7056_v36  ;;  %v16535_v1 = vld [vmem:[#allocation9 + $0x9b8] sm:$0xff] }
 0x92f   :  { %11905 = vmatpush.bf16.msrb.mxu0 %v16544_v28  ;;  %v11531_v19 = vadd.f32 %v11530_v56, %v11518_v4  ;;  %v16510_v28 = vld [vmem:[#allocation9 + $0x8f0] sm:$0xff]  ;;  %v16613_v56 = vld [vmem:[#allocation9 + $0xc28] sm:$0xff]  ;;  %v16543_v34 = vld [vmem:[#allocation9 + $0x9f8] sm:$0xff] }
 0x931   :  { %11757 = vmatpush.bf16.msrb.mxu1 %v16461_v6  ;;  %v19332_v16 = vpop.f32.mrf.mxu0  ;;  %v19335_v48 = vadd.f32 %v19315_v31, %v11531_v19  ;;  %v16456_v31 = vld [vmem:[#allocation9 + $0x740] sm:$0xff]  ;;  %v7120_v6 = vrot.slane %v6856_v20, 7  ;;  %v6836_v20 = vld [vmem:[#allocation2 + $0x54] sm:$0x1] }
 0x932   :  { %11770 = vmatpush.bf16.msrb.mxu2 %v16469_v42  ;;  %11783 = vmatpush.bf16.msrb.mxu3 %v16477_v37  ;;  %v16576_v42 = vld [vmem:[#allocation9 + $0xb00] sm:$0xff]  ;;  %v16493_v37 = vld [vmem:[#allocation9 + $0x868] sm:$0xff] }
 0x933   :  { %11950 = vmatpush.bf16.msra.mxu0 %v16583_v5  ;;  %v16509_v5 = vld [vmem:[#allocation9 + $0x8e8] sm:$0xff]  ;;  %v7121_v49 = vsel %vm6900_vm0, %v7120_v6, %v6855_v50  ;;  %v16534_v6 = vld [vmem:[#allocation9 + $0x9b0] sm:$0xff] }
 0x934   :  { %11906 = vmatmul.bf16.vlgmr.msrb.gmra.mxu0 %v7258_v27  ;;  %v11519_v11 = vpop.f32.mrf.mxu2  ;;  %v16533_v50 = vld [vmem:[#allocation9 + $0x9a8] sm:$0xff] }
 0x935   :  { %11758 = vmatpush.bf16.msrb.mxu1 %v16460_v17  ;;  %v16497_v11 = vld [vmem:[#allocation9 + $0x888] sm:$0xff] }
 0x936   :  { %11771 = vmatpush.bf16.msrb.mxu2 %v16468_v59  ;;  %11784 = vmatpush.bf16.msrb.mxu3 %v16476_v46  ;;  %v11532_v52 = vpop.f32.mrf.mxu3  ;;  %v16492_v59 = vld [vmem:[#allocation9 + $0x860] sm:$0xff]  ;;  %v7262_v46 = vpack.c.bf16 %v7121_v49, %v7121_v49 }
 0x937   :  { %11951 = vmatpush.bf16.msra.mxu0 %v16582_v9  ;;  %v16500_v9 = vld [vmem:[#allocation9 + $0x8a0] sm:$0xff]  ;;  %v6837_v52 = vld [vmem:[#allocation2 + $0xf4] sm:$0x1] }
 0x938   :  { %v6864_v49 = vld [vmem:[#allocation2 + $0x71] sm:$0x1] }
 0x939   :  { %11759 = vmatpush.bf16.msrb.mxu1 %v16459_v23  ;;  %v11701_v58 = vpop.f32.mrf.mxu0  ;;  %v16508_v23 = vld [vmem:[#allocation9 + $0x8e0] sm:$0xff] }
 0x93a   :  { %11772 = vmatpush.bf16.msrb.mxu2 %v16467_v62  ;;  %11785 = vmatpush.bf16.msrb.mxu3 %v16475_v38  ;;  %v16614_v62 = vld [vmem:[#allocation9 + $0xc30] sm:$0xff]  ;;  %v16491_v38 = vld [vmem:[#allocation9 + $0x858] sm:$0xff] }
 0x93b   :  { %11952 = vmatpush.bf16.msra.mxu0 %v16581_v18  ;;  %v16507_v18 = vld [vmem:[#allocation9 + $0x8d8] sm:$0xff] }
 0x93d   :  { %11760 = vmatpush.bf16.msrb.mxu1 %v16458_v57 }
 0x93e   :  { %11773 = vmatpush.bf16.msrb.mxu2 %v16466_v40  ;;  %11786 = vmatpush.bf16.msrb.mxu3 %v16474_v26 }
 0x93f   :  { %11953 = vmatpush.bf16.msra.mxu0 %v16580_v14  ;;  %v16498_v14 = vld [vmem:[#allocation9 + $0x890] sm:$0xff] }
 0x941   :  { %11761 = vmatpush.bf16.msrb.mxu1 %v16457_v35  ;;  %v16506_v35 = vld [vmem:[#allocation9 + $0x8d0] sm:$0xff] }
 0x942   :  { %11774 = vmatpush.bf16.msrb.mxu2 %v16465_v60  ;;  %11787 = vmatpush.bf16.msrb.mxu3 %v16473_v43  ;;  %v6833_v60 = vld [vmem:[#allocation2 + $0xf2] sm:$0x1]  ;;  %v6835_v43 = vld [vmem:[#allocation2 + $0xf3] sm:$0x1] }
 0x943   :  { %11954 = vmatpush.bf16.msra.mxu0 %v16579_v44  ;;  %v7065_v58 = vrot.slane %v6833_v60, 7  ;;  %v16538_v60 = vld [vmem:[#allocation9 + $0x9d0] sm:$0xff] }
 0x945   :  { %11762 = vmatpush.bf16.msrb.mxu1 %v16456_v31  ;;  %v11556_v17 = vpop.f32.mrf.mxu1  ;;  %v7070_v31 = vrot.slane %v6835_v43, 7  ;;  %v16644_v43 = vld [vmem:[#allocation9 + $0xd20] sm:$0xff] }
 0x946   :  { %11775 = vmatpush.bf16.msrb.mxu2 %v16464_v39  ;;  %11788 = vmatpush.bf16.msrb.mxu3 %v16472_v41  ;;  %v11557_v27 = vadd.f32 %v11556_v17, %v19335_v48  ;;  %v16490_v48 = vld [vmem:[#allocation9 + $0x850] sm:$0xff]  ;;  %v16488_v39 = vld [vmem:[#allocation9 + $0x840] sm:$0xff]  ;;  %v7075_v41 = vrot.slane %v6837_v52, 7  ;;  %v16529_v52 = vld [vmem:[#allocation9 + $0x988] sm:$0xff] }
 0x947   :  { %11955 = vmatpush.bf16.msra.mxu0 %v16578_v61  ;;  %v16504_v61 = vld [vmem:[#allocation9 + $0x8c0] sm:$0xff] }
 0x948   :  { %11763 = vmatmul.bf16.vlgmr.msrb.gmra.mxu1 %v7247_v29  ;;  %v7076_v29 = vsel %vm6900_vm0, %v7075_v41, %v6836_v20  ;;  %v16575_v20 = vld [vmem:[#allocation9 + $0xaf8] sm:$0xff] }
 0x949   :  { %11807 = vmatpush.bf16.msra.mxu1 %v16495_v53  ;;  %11776 = vmatmul.bf16.vlgmr.msrb.gmra.mxu2 %v7248_v54  ;;  %v6832_v53 = vld [vmem:[#allocation2 + $0x52] sm:$0x1]  ;;  %v6865_v54 = vld [vmem:[#allocation2 + $0x111] sm:$0x1] }
 0x94a   :  { %11820 = vmatpush.bf16.msra.mxu2 %v16503_v12  ;;  %11833 = vmatpush.bf16.msra.mxu3 %v16511_v55  ;;  %v16527_v12 = vld [vmem:[#allocation9 + $0x978] sm:$0xff]  ;;  %v6834_v55 = vld [vmem:[#allocation2 + $0x53] sm:$0x1]  ;;  %v7066_v47 = vsel %vm6900_vm0, %v7065_v58, %v6832_v53  ;;  %v6845_v58 = vld [vmem:[#allocation2 + $0xf8] sm:$0x1] }
 0x94b   :  { %11789 = vmatmul.bf16.vlgmr.msrb.gmra.mxu3 %v7249_v45  ;;  %11956 = vmatpush.bf16.msra.mxu0 %v16577_v2  ;;  %v7071_v36 = vsel %vm6900_vm0, %v7070_v31, %v6834_v55  ;;  %v7251_v2 = vpack.c.bf16 %v7066_v47, %v7066_v47  ;;  %v16609_v45 = vld [vmem:[#allocation9 + $0xc08] sm:$0xff]  ;;  %v16643_v31 = vld [vmem:[#allocation9 + $0xd18] sm:$0xff]  ;;  %v7095_v53 = vrot.slane %v6845_v58, 7 }
 0x94c   :  { %v11569_v4 = vpop.f32.mrf.mxu2  ;;  %v6840_v55 = vld [vmem:[#allocation2 + $0x56] sm:$0x1]  ;;  %v6842_v47 = vld [vmem:[#allocation2 + $0x57] sm:$0x1] }
 0x94d   :  { %11808 = vmatpush.bf16.msra.mxu1 %v16494_v10  ;;  %v11570_v30 = vadd.f32 %v11569_v4, %v11557_v27  ;;  %v11558_v57 = vpop.f32.mrf.mxu1  ;;  %v7252_v10 = vpack.c.bf16 %v7071_v36, %v7071_v36  ;;  %v16647_v27 = vld [vmem:[#allocation9 + $0xd38] sm:$0xff]  ;;  %v16561_v58 = vld [vmem:[#allocation9 + $0xa88] sm:$0xff] }
 0x94e   :  { %11821 = vmatpush.bf16.msra.mxu2 %v16502_v63  ;;  %11834 = vmatpush.bf16.msra.mxu3 %v16510_v28  ;;  %v11582_v19 = vpop.f32.mrf.mxu3  ;;  %v16526_v63 = vld [vmem:[#allocation9 + $0x970] sm:$0xff]  ;;  %v7253_v28 = vpack.c.bf16 %v7076_v29, %v7076_v29  ;;  %v16523_v4 = vld [vmem:[#allocation9 + $0x958] sm:$0xff] }
 0x94f   :  { %11957 = vmatpush.bf16.msra.mxu0 %v16576_v42  ;;  %v19342_v40 = vadd.f32 %v11582_v19, %v11570_v30  ;;  %v16542_v42 = vld [vmem:[#allocation9 + $0x9f0] sm:$0xff]  ;;  %v16645_v19 = vld [vmem:[#allocation9 + $0xd28] sm:$0xff]  ;;  %v16567_v36 = vld [vmem:[#allocation9 + $0xab8] sm:$0xff] }
 0x951   :  { %11809 = vmatpush.bf16.msra.mxu1 %v16493_v37  ;;  %v19344_v26 = vpop.f32.mrf.mxu0  ;;  %v7140_v37 = vrot.slane %v6865_v54, 7  ;;  %v11596_v17 = vadd.f32 %v19320_v15, %v19342_v40  ;;  %v16531_v15 = vld [vmem:[#allocation9 + $0x998] sm:$0xff] }
 0x952   :  { %11822 = vmatpush.bf16.msra.mxu2 %v16501_v33  ;;  %11835 = vmatpush.bf16.msra.mxu3 %v16509_v5  ;;  %v16608_v33 = vld [vmem:[#allocation9 + $0xc00] sm:$0xff]  ;;  %v16525_v5 = vld [vmem:[#allocation9 + $0x968] sm:$0xff] }
 0x953   :  { %12002 = vmatpush.bf16.msrb.mxu0 %v16615_v7  ;;  %v16541_v7 = vld [vmem:[#allocation9 + $0x9e8] sm:$0xff] }
 0x954   :  { %11958 = vmatmul.bf16.vlgmr.msra.gmra.mxu0 %v7262_v46  ;;  %v11571_v44 = vpop.f32.mrf.mxu2 }
 0x955   :  { %11810 = vmatpush.bf16.msra.mxu1 %v16492_v59  ;;  %v7141_v59 = vsel %vm6900_vm0, %v7140_v37, %v6864_v49  ;;  %v6843_v44 = vld [vmem:[#allocation2 + $0xf7] sm:$0x1] }
 0x956   :  { %11823 = vmatpush.bf16.msra.mxu2 %v16500_v9  ;;  %11836 = vmatpush.bf16.msra.mxu3 %v16508_v23  ;;  %v11584_v8 = vpop.f32.mrf.mxu3  ;;  %v16524_v23 = vld [vmem:[#allocation9 + $0x960] sm:$0xff]  ;;  %v7090_v41 = vrot.slane %v6843_v44, 7  ;;  %v16557_v49 = vld [vmem:[#allocation9 + $0xa68] sm:$0xff] }
 0x957   :  { %12003 = vmatpush.bf16.msrb.mxu0 %v16614_v62  ;;  %v7266_v62 = vpack.c.bf16 %v7141_v59, %v7141_v59  ;;  %v6872_v59 = vld [vmem:[#allocation2 + $0x75] sm:$0x1]  ;;  %v16676_v44 = vld [vmem:[#allocation9 + $0xe20] sm:$0xff] }
 0x958   :  { %v7091_v54 = vsel %vm6900_vm0, %v7090_v41, %v6842_v47  ;;  %v16675_v41 = vld [vmem:[#allocation9 + $0xe18] sm:$0xff]  ;;  %v6849_v47 = vld [vmem:[#allocation2 + $0x62] sm:$0x1] }
 0x959   :  { %11811 = vmatpush.bf16.msra.mxu1 %v16491_v38  ;;  %v11753_v3 = vpop.f32.mrf.mxu0  ;;  %v16532_v38 = vld [vmem:[#allocation9 + $0x9a0] sm:$0xff] }
 0x95a   :  { %11824 = vmatpush.bf16.msra.mxu2 %v16499_v32  ;;  %11837 = vmatpush.bf16.msra.mxu3 %v16507_v18  ;;  %v16540_v32 = vld [vmem:[#allocation9 + $0x9e0] sm:$0xff]  ;;  %v16646_v18 = vld [vmem:[#allocation9 + $0xd30] sm:$0xff] }
 0x95b   :  { %12004 = vmatpush.bf16.msrb.mxu0 %v16613_v56  ;;  %v16539_v56 = vld [vmem:[#allocation9 + $0x9d8] sm:$0xff] }
 0x95d   :  { %11812 = vmatpush.bf16.msra.mxu1 %v16490_v48 }
 0x95e   :  { %11825 = vmatpush.bf16.msra.mxu2 %v16498_v14  ;;  %11838 = vmatpush.bf16.msra.mxu3 %v16506_v35 }
 0x95f   :  { %12005 = vmatpush.bf16.msrb.mxu0 %v16612_v0  ;;  %v16522_v0 = vld [vmem:[#allocation9 + $0x950] sm:$0xff] }
 0x961   :  { %11813 = vmatpush.bf16.msra.mxu1 %v16489_v24  ;;  %v16530_v24 = vld [vmem:[#allocation9 + $0x990] sm:$0xff] }
 0x962   :  { %11826 = vmatpush.bf16.msra.mxu2 %v16497_v11  ;;  %11839 = vmatpush.bf16.msra.mxu3 %v16505_v21  ;;  %v16521_v11 = vld [vmem:[#allocation9 + $0x948] sm:$0xff] }
 0x963   :  { %12006 = vmatpush.bf16.msrb.mxu0 %v16611_v25  ;;  %v6841_v21 = vld [vmem:[#allocation2 + $0xf6] sm:$0x1] }
 0x964   :  { %v16537_v25 = vld [vmem:[#allocation9 + $0x9c8] sm:$0xff] }
 0x965   :  { %11814 = vmatpush.bf16.msra.mxu1 %v16488_v39  ;;  %v11608_v46 = vpop.f32.mrf.mxu1  ;;  %v7085_v39 = vrot.slane %v6841_v21, 7  ;;  %v16570_v21 = vld [vmem:[#allocation9 + $0xad0] sm:$0xff] }
 0x966   :  { %11827 = vmatpush.bf16.msra.mxu2 %v16496_v51  ;;  %11840 = vmatpush.bf16.msra.mxu3 %v16504_v61  ;;  %v11609_v9 = vadd.f32 %v11608_v46, %v11596_v17  ;;  %v16520_v61 = vld [vmem:[#allocation9 + $0x940] sm:$0xff]  ;;  %v16565_v17 = vld [vmem:[#allocation9 + $0xaa8] sm:$0xff] }
 0x967   :  { %12007 = vmatpush.bf16.msrb.mxu0 %v16610_v22  ;;  %v16528_v22 = vld [vmem:[#allocation9 + $0x980] sm:$0xff]  ;;  %v7086_v29 = vsel %vm6900_vm0, %v7085_v39, %v6840_v55  ;;  %v6854_v39 = vld [vmem:[#allocation2 + $0x104] sm:$0x1] }
 0x968   :  { %11815 = vmatmul.bf16.vlgmr.msra.gmra.mxu1 %v7251_v2  ;;  %v6844_v2 = vld [vmem:[#allocation2 + $0x58] sm:$0x1]  ;;  %v7115_v55 = vrot.slane %v6854_v39, 7 }
 0x969   :  { %11859 = vmatpush.bf16.msrb.mxu1 %v16527_v12  ;;  %11828 = vmatmul.bf16.vlgmr.msra.gmra.mxu2 %v7252_v10  ;;  %v16536_v12 = vld [vmem:[#allocation9 + $0x9c0] sm:$0xff]  ;;  %v7096_v10 = vsel %vm6900_vm0, %v7095_v53, %v6844_v2  ;;  %v16607_v2 = vld [vmem:[#allocation9 + $0xbf8] sm:$0xff]  ;;  %v16593_v39 = vld [vmem:[#allocation9 + $0xb88] sm:$0xff] }
 0x96a   :  { %11872 = vmatpush.bf16.msrb.mxu2 %v16535_v1  ;;  %11885 = vmatpush.bf16.msrb.mxu3 %v16543_v34  ;;  %v16642_v1 = vld [vmem:[#allocation9 + $0xd10] sm:$0xff]  ;;  %v16559_v34 = vld [vmem:[#allocation9 + $0xa78] sm:$0xff]  ;;  %v7257_v37 = vpack.c.bf16 %v7096_v10, %v7096_v10 }
 0x96b   :  { %11841 = vmatmul.bf16.vlgmr.msra.gmra.mxu3 %v7253_v28  ;;  %12008 = vmatpush.bf16.msrb.mxu0 %v16609_v45  ;;  %v6873_v45 = vld [vmem:[#allocation2 + $0x115] sm:$0x1]  ;;  %v7256_v28 = vpack.c.bf16 %v7091_v54, %v7091_v54  ;;  %v16599_v54 = vld [vmem:[#allocation9 + $0xbb8] sm:$0xff] }
 0x96c   :  { %v11621_v30 = vpop.f32.mrf.mxu2 }
 0x96d   :  { %11860 = vmatpush.bf16.msrb.mxu1 %v16526_v63  ;;  %v11622_v57 = vadd.f32 %v11621_v30, %v11609_v9  ;;  %v11610_v48 = vpop.f32.mrf.mxu1  ;;  %v7255_v63 = vpack.c.bf16 %v7086_v29, %v7086_v29  ;;  %v16679_v9 = vld [vmem:[#allocation9 + $0xe38] sm:$0xff]  ;;  %v6851_v29 = vld [vmem:[#allocation2 + $0x63] sm:$0x1] }
 0x96e   :  { %11873 = vmatpush.bf16.msrb.mxu2 %v16534_v6  ;;  %11886 = vmatpush.bf16.msrb.mxu3 %v16542_v42  ;;  %v11634_v40 = vpop.f32.mrf.mxu3  ;;  %v16641_v6 = vld [vmem:[#allocation9 + $0xd08] sm:$0xff]  ;;  %v16558_v42 = vld [vmem:[#allocation9 + $0xa70] sm:$0xff]  ;;  %v16555_v30 = vld [vmem:[#allocation9 + $0xa58] sm:$0xff] }
 0x96f   :  { %12009 = vmatpush.bf16.msrb.mxu0 %v16608_v33  ;;  %v19352_v14 = vadd.f32 %v11634_v40, %v11622_v57  ;;  %v16566_v33 = vld [vmem:[#allocation9 + $0xab0] sm:$0xff]  ;;  %v16677_v40 = vld [vmem:[#allocation9 + $0xe28] sm:$0xff] }
 0x971   :  { %11861 = vmatpush.bf16.msrb.mxu1 %v16525_v5  ;;  %v19354_v35 = vpop.f32.mrf.mxu0  ;;  %v16574_v5 = vld [vmem:[#allocation9 + $0xaf0] sm:$0xff]  ;;  %v11648_v46 = vadd.f32 %v19325_v13, %v19352_v14  ;;  %v16563_v13 = vld [vmem:[#allocation9 + $0xa98] sm:$0xff] }
 0x972   :  { %11874 = vmatpush.bf16.msrb.mxu2 %v16533_v50  ;;  %11887 = vmatpush.bf16.msrb.mxu3 %v16541_v7  ;;  %v7160_v50 = vrot.slane %v6873_v45, 7  ;;  %v16640_v7 = vld [vmem:[#allocation9 + $0xd00] sm:$0xff] }
 0x973   :  { %12054 = vmatpush.bf16.msra.mxu0 %v16647_v27  ;;  %v16573_v27 = vld [vmem:[#allocation9 + $0xae8] sm:$0xff] }
 0x974   :  { %12010 = vmatmul.bf16.vlgmr.msrb.gmra.mxu0 %v7266_v62  ;;  %v11623_v8 = vpop.f32.mrf.mxu2 }
 0x975   :  { %11862 = vmatpush.bf16.msrb.mxu1 %v16524_v23  ;;  %v7161_v23 = vsel %vm6900_vm0, %v7160_v50, %v6872_v59  ;;  %v6852_v8 = vld [vmem:[#allocation2 + $0x103] sm:$0x1]  ;;  %v16589_v59 = vld [vmem:[#allocation9 + $0xb68] sm:$0xff] }
 0x976   :  { %11875 = vmatpush.bf16.msrb.mxu2 %v16532_v38  ;;  %11888 = vmatpush.bf16.msrb.mxu3 %v16540_v32  ;;  %v11636_v3 = vpop.f32.mrf.mxu3  ;;  %v16556_v32 = vld [vmem:[#allocation9 + $0xa60] sm:$0xff]  ;;  %v7110_v53 = vrot.slane %v6852_v8, 7 }
 0x977   :  { %12055 = vmatpush.bf16.msra.mxu0 %v16646_v18  ;;  %v7270_v18 = vpack.c.bf16 %v7161_v23, %v7161_v23  ;;  %v6881_v23 = vld [vmem:[#allocation2 + $0x81] sm:$0x1]  ;;  %v16708_v8 = vld [vmem:[#allocation9 + $0xf20] sm:$0xff] }
 0x978   :  { %v7111_v45 = vsel %vm6900_vm0, %v7110_v53, %v6851_v29  ;;  %v16707_v53 = vld [vmem:[#allocation9 + $0xf18] sm:$0xff] }
 0x979   :  { %11863 = vmatpush.bf16.msrb.mxu1 %v16523_v4  ;;  %v11805_v51 = vpop.f32.mrf.mxu0  ;;  %v16564_v4 = vld [vmem:[#allocation9 + $0xaa0] sm:$0xff]  ;;  %v6857_v29 = vld [vmem:[#allocation2 + $0x66] sm:$0x1] }
 0x97a   :  { %11876 = vmatpush.bf16.msrb.mxu2 %v16531_v15  ;;  %11889 = vmatpush.bf16.msrb.mxu3 %v16539_v56  ;;  %v16572_v15 = vld [vmem:[#allocation9 + $0xae0] sm:$0xff]  ;;  %v16678_v56 = vld [vmem:[#allocation9 + $0xe30] sm:$0xff] }
 0x97b   :  { %12056 = vmatpush.bf16.msra.mxu0 %v16645_v19  ;;  %v16571_v19 = vld [vmem:[#allocation9 + $0xad8] sm:$0xff] }
 0x97d   :  { %11864 = vmatpush.bf16.msrb.mxu1 %v16522_v0 }
 0x97e   :  { %11877 = vmatpush.bf16.msrb.mxu2 %v16530_v24  ;;  %11890 = vmatpush.bf16.msrb.mxu3 %v16538_v60 }
 0x97f   :  { %12057 = vmatpush.bf16.msra.mxu0 %v16644_v43  ;;  %v16554_v43 = vld [vmem:[#allocation9 + $0xa50] sm:$0xff] }
 0x981   :  { %11865 = vmatpush.bf16.msrb.mxu1 %v16521_v11  ;;  %v16562_v11 = vld [vmem:[#allocation9 + $0xa90] sm:$0xff] }
 0x982   :  { %11878 = vmatpush.bf16.msrb.mxu2 %v16529_v52  ;;  %11891 = vmatpush.bf16.msrb.mxu3 %v16537_v25  ;;  %v16553_v52 = vld [vmem:[#allocation9 + $0xa48] sm:$0xff]  ;;  %v6850_v25 = vld [vmem:[#allocation2 + $0x102] sm:$0x1] }
 0x983   :  { %12058 = vmatpush.bf16.msra.mxu0 %v16643_v31  ;;  %v16569_v31 = vld [vmem:[#allocation9 + $0xac8] sm:$0xff] }
 0x985   :  { %11866 = vmatpush.bf16.msrb.mxu1 %v16520_v61  ;;  %v11660_v62 = vpop.f32.mrf.mxu1  ;;  %v7105_v61 = vrot.slane %v6850_v25, 7  ;;  %v16602_v25 = vld [vmem:[#allocation9 + $0xbd0] sm:$0xff] }
 0x986   :  { %11879 = vmatpush.bf16.msrb.mxu2 %v16528_v22  ;;  %11892 = vmatpush.bf16.msrb.mxu3 %v16536_v12  ;;  %v11661_v38 = vadd.f32 %v11660_v62, %v11648_v46  ;;  %v16552_v12 = vld [vmem:[#allocation9 + $0xa40] sm:$0xff]  ;;  %v16597_v46 = vld [vmem:[#allocation9 + $0xba8] sm:$0xff] }
 0x987   :  { %12059 = vmatpush.bf16.msra.mxu0 %v16642_v1  ;;  %v16560_v1 = vld [vmem:[#allocation9 + $0xa80] sm:$0xff]  ;;  %v7106_v10 = vsel %vm6900_vm0, %v7105_v61, %v6849_v47  ;;  %v6862_v61 = vld [vmem:[#allocation2 + $0x108] sm:$0x1] }
 0x988   :  { %11867 = vmatmul.bf16.vlgmr.msrb.gmra.mxu1 %v7255_v63  ;;  %v6853_v63 = vld [vmem:[#allocation2 + $0x64] sm:$0x1]  ;;  %v7135_v47 = vrot.slane %v6862_v61, 7 }
 0x989   :  { %11911 = vmatpush.bf16.msra.mxu1 %v16559_v34  ;;  %11880 = vmatmul.bf16.vlgmr.msrb.gmra.mxu2 %v7256_v28  ;;  %v16568_v34 = vld [vmem:[#allocation9 + $0xac0] sm:$0xff]  ;;  %v7116_v28 = vsel %vm6900_vm0, %v7115_v55, %v6853_v63  ;;  %v16639_v63 = vld [vmem:[#allocation9 + $0xcf8] sm:$0xff] }
 0x98a   :  { %11924 = vmatpush.bf16.msra.mxu2 %v16567_v36  ;;  %11937 = vmatpush.bf16.msra.mxu3 %v16575_v20  ;;  %v16674_v36 = vld [vmem:[#allocation9 + $0xe10] sm:$0xff]  ;;  %v16591_v20 = vld [vmem:[#allocation9 + $0xb78] sm:$0xff]  ;;  %v7261_v50 = vpack.c.bf16 %v7116_v28, %v7116_v28 }
 0x98b   :  { %11893 = vmatmul.bf16.vlgmr.msrb.gmra.mxu3 %v7257_v37  ;;  %12060 = vmatpush.bf16.msra.mxu0 %v16641_v6  ;;  %v6882_v6 = vld [vmem:[#allocation2 + $0x121] sm:$0x1]  ;;  %v7260_v37 = vpack.c.bf16 %v7111_v45, %v7111_v45  ;;  %v16631_v45 = vld [vmem:[#allocation9 + $0xcb8] sm:$0xff] }
 0x98c   :  { %v11673_v57 = vpop.f32.mrf.mxu2 }
 0x98d   :  { %11912 = vmatpush.bf16.msra.mxu1 %v16558_v42  ;;  %v11674_v48 = vadd.f32 %v11673_v57, %v11661_v38  ;;  %v11662_v0 = vpop.f32.mrf.mxu1  ;;  %v7259_v42 = vpack.c.bf16 %v7106_v10, %v7106_v10  ;;  %v16711_v38 = vld [vmem:[#allocation9 + $0xf38] sm:$0xff] }
 0x98e   :  { %11925 = vmatpush.bf16.msra.mxu2 %v16566_v33  ;;  %11938 = vmatpush.bf16.msra.mxu3 %v16574_v5  ;;  %v11686_v14 = vpop.f32.mrf.mxu3  ;;  %v16673_v33 = vld [vmem:[#allocation9 + $0xe08] sm:$0xff]  ;;  %v16590_v5 = vld [vmem:[#allocation9 + $0xb70] sm:$0xff]  ;;  %v16587_v57 = vld [vmem:[#allocation9 + $0xb58] sm:$0xff] }
 0x98f   :  { %12061 = vmatpush.bf16.msra.mxu0 %v16640_v7  ;;  %v19362_v24 = vadd.f32 %v11686_v14, %v11674_v48  ;;  %v16598_v7 = vld [vmem:[#allocation9 + $0xbb0] sm:$0xff]  ;;  %v16709_v14 = vld [vmem:[#allocation9 + $0xf28] sm:$0xff]  ;;  %v6859_v10 = vld [vmem:[#allocation2 + $0x67] sm:$0x1] }
 0x991   :  { %11913 = vmatpush.bf16.msra.mxu1 %v16557_v49  ;;  %v19364_v60 = vpop.f32.mrf.mxu0  ;;  %v16606_v49 = vld [vmem:[#allocation9 + $0xbf0] sm:$0xff]  ;;  %v11700_v62 = vadd.f32 %v19332_v16, %v19362_v24  ;;  %v16595_v16 = vld [vmem:[#allocation9 + $0xb98] sm:$0xff] }
 0x992   :  { %11926 = vmatpush.bf16.msra.mxu2 %v16565_v17  ;;  %11939 = vmatpush.bf16.msra.mxu3 %v16573_v27  ;;  %v7180_v17 = vrot.slane %v6882_v6, 7  ;;  %v16672_v27 = vld [vmem:[#allocation9 + $0xe00] sm:$0xff] }
 0x993   :  { %12106 = vmatpush.bf16.msrb.mxu0 %v16679_v9  ;;  %v16605_v9 = vld [vmem:[#allocation9 + $0xbe8] sm:$0xff] }
 0x994   :  { %12062 = vmatmul.bf16.vlgmr.msra.gmra.mxu0 %v7270_v18  ;;  %v11675_v3 = vpop.f32.mrf.mxu2 }
 0x995   :  { %11914 = vmatpush.bf16.msra.mxu1 %v16556_v32  ;;  %v7181_v32 = vsel %vm6900_vm0, %v7180_v17, %v6881_v23  ;;  %v6860_v3 = vld [vmem:[#allocation2 + $0x107] sm:$0x1]  ;;  %v16621_v23 = vld [vmem:[#allocation9 + $0xc68] sm:$0xff] }
 0x996   :  { %11927 = vmatpush.bf16.msra.mxu2 %v16564_v4  ;;  %11940 = vmatpush.bf16.msra.mxu3 %v16572_v15  ;;  %v11688_v51 = vpop.f32.mrf.mxu3  ;;  %v16588_v15 = vld [vmem:[#allocation9 + $0xb60] sm:$0xff]  ;;  %v7130_v55 = vrot.slane %v6860_v3, 7  ;;  %v6871_v3 = vld [vmem:[#allocation2 + $0x114] sm:$0x1] }
 0x997   :  { %12107 = vmatpush.bf16.msrb.mxu0 %v16678_v56  ;;  %v7274_v56 = vpack.c.bf16 %v7181_v32, %v7181_v32  ;;  %v6889_v32 = vld [vmem:[#allocation2 + $0x85] sm:$0x1] }
 0x998   :  { %v7131_v6 = vsel %vm6900_vm0, %v7130_v55, %v6859_v10  ;;  %v6870_v10 = vld [vmem:[#allocation2 + $0x74] sm:$0x1] }
 0x999   :  { %11915 = vmatpush.bf16.msra.mxu1 %v16555_v30  ;;  %v11857_v22 = vpop.f32.mrf.mxu0  ;;  %v16596_v30 = vld [vmem:[#allocation9 + $0xba0] sm:$0xff] }
 0x99a   :  { %11928 = vmatpush.bf16.msra.mxu2 %v16563_v13  ;;  %11941 = vmatpush.bf16.msra.mxu3 %v16571_v19  ;;  %v16604_v13 = vld [vmem:[#allocation9 + $0xbe0] sm:$0xff]  ;;  %v16710_v19 = vld [vmem:[#allocation9 + $0xf30] sm:$0xff] }
 0x99b   :  { %12108 = vmatpush.bf16.msrb.mxu0 %v16677_v40  ;;  %v16603_v40 = vld [vmem:[#allocation9 + $0xbd8] sm:$0xff] }
 0x99d   :  { %11916 = vmatpush.bf16.msra.mxu1 %v16554_v43 }
 0x99e   :  { %11929 = vmatpush.bf16.msra.mxu2 %v16562_v11  ;;  %11942 = vmatpush.bf16.msra.mxu3 %v16570_v21 }
 0x99f   :  { %12109 = vmatpush.bf16.msrb.mxu0 %v16676_v44  ;;  %v16586_v44 = vld [vmem:[#allocation9 + $0xb50] sm:$0xff] }
 0x9a1   :  { %11917 = vmatpush.bf16.msra.mxu1 %v16553_v52  ;;  %v16594_v52 = vld [vmem:[#allocation9 + $0xb90] sm:$0xff] }
 0x9a2   :  { %11930 = vmatpush.bf16.msra.mxu2 %v16561_v58  ;;  %11943 = vmatpush.bf16.msra.mxu3 %v16569_v31  ;;  %v16585_v58 = vld [vmem:[#allocation9 + $0xb48] sm:$0xff]  ;;  %v6858_v31 = vld [vmem:[#allocation2 + $0x106] sm:$0x1] }
 0x9a3   :  { %12110 = vmatpush.bf16.msrb.mxu0 %v16675_v41  ;;  %v16601_v41 = vld [vmem:[#allocation9 + $0xbc8] sm:$0xff] }
 0x9a5   :  { %11918 = vmatpush.bf16.msra.mxu1 %v16552_v12  ;;  %v11712_v18 = vpop.f32.mrf.mxu1  ;;  %v7125_v12 = vrot.slane %v6858_v31, 7  ;;  %v6869_v31 = vld [vmem:[#allocation2 + $0x113] sm:$0x1] }
 0x9a6   :  { %11931 = vmatpush.bf16.msra.mxu2 %v16560_v1  ;;  %11944 = vmatpush.bf16.msra.mxu3 %v16568_v34  ;;  %v11713_v4 = vadd.f32 %v11712_v18, %v11700_v62  ;;  %v16584_v34 = vld [vmem:[#allocation9 + $0xb40] sm:$0xff]  ;;  %v16629_v62 = vld [vmem:[#allocation9 + $0xca8] sm:$0xff] }
 0x9a7   :  { %12111 = vmatpush.bf16.msrb.mxu0 %v16674_v36  ;;  %v16592_v36 = vld [vmem:[#allocation9 + $0xb80] sm:$0xff]  ;;  %v7126_v28 = vsel %vm6900_vm0, %v7125_v12, %v6857_v29  ;;  %v7155_v12 = vrot.slane %v6871_v3, 7  ;;  %v16655_v29 = vld [vmem:[#allocation9 + $0xd78] sm:$0xff] }
 0x9a8   :  { %11919 = vmatmul.bf16.vlgmr.msra.gmra.mxu1 %v7259_v42  ;;  %v6861_v42 = vld [vmem:[#allocation2 + $0x68] sm:$0x1]  ;;  %v16656_v3 = vld [vmem:[#allocation9 + $0xd80] sm:$0xff] }
 0x9a9   :  { %11963 = vmatpush.bf16.msrb.mxu1 %v16591_v20  ;;  %11932 = vmatmul.bf16.vlgmr.msra.gmra.mxu2 %v7260_v37  ;;  %v16600_v20 = vld [vmem:[#allocation9 + $0xbc0] sm:$0xff]  ;;  %v7136_v37 = vsel %vm6900_vm0, %v7135_v47, %v6861_v42 }
 0x9aa   :  { %11976 = vmatpush.bf16.msrb.mxu2 %v16599_v54  ;;  %11989 = vmatpush.bf16.msrb.mxu3 %v16607_v2  ;;  %v16706_v54 = vld [vmem:[#allocation9 + $0xf10] sm:$0xff]  ;;  %v16623_v2 = vld [vmem:[#allocation9 + $0xc78] sm:$0xff]  ;;  %v7265_v17 = vpack.c.bf16 %v7136_v37, %v7136_v37  ;;  %v16624_v47 = vld [vmem:[#allocation9 + $0xc80] sm:$0xff] }
 0x9ab   :  { %11945 = vmatmul.bf16.vlgmr.msra.gmra.mxu3 %v7261_v50  ;;  %12112 = vmatpush.bf16.msrb.mxu0 %v16673_v33  ;;  %v6890_v33 = vld [vmem:[#allocation2 + $0x125] sm:$0x1]  ;;  %v7264_v50 = vpack.c.bf16 %v7131_v6, %v7131_v6 }
 0x9ac   :  { %v11725_v48 = vpop.f32.mrf.mxu2 }
 0x9ad   :  { %11964 = vmatpush.bf16.msrb.mxu1 %v16590_v5  ;;  %v11726_v0 = vadd.f32 %v11725_v48, %v11713_v4  ;;  %v11714_v43 = vpop.f32.mrf.mxu1  ;;  %v7263_v5 = vpack.c.bf16 %v7126_v28, %v7126_v28  ;;  %v16635_v48 = vld [vmem:[#allocation9 + $0xcd8] sm:$0xff]  ;;  %v7156_v28 = vsel %vm6900_vm0, %v7155_v12, %v6870_v10  ;;  %v16685_v10 = vld [vmem:[#allocation9 + $0xe68] sm:$0xff] }
 0x9ae   :  { %11977 = vmatpush.bf16.msrb.mxu2 %v16598_v7  ;;  %11990 = vmatpush.bf16.msrb.mxu3 %v16606_v49  ;;  %v11738_v24 = vpop.f32.mrf.mxu3  ;;  %v16705_v7 = vld [vmem:[#allocation9 + $0xf08] sm:$0xff]  ;;  %v16622_v49 = vld [vmem:[#allocation9 + $0xc70] sm:$0xff]  ;;  %v7269_v37 = vpack.c.bf16 %v7156_v28, %v7156_v28 }
 0x9af   :  { %12113 = vmatpush.bf16.msrb.mxu0 %v16672_v27  ;;  %v19372_v11 = vadd.f32 %v11738_v24, %v11726_v0  ;;  %v16630_v27 = vld [vmem:[#allocation9 + $0xcb0] sm:$0xff] }
 0x9b1   :  { %11965 = vmatpush.bf16.msrb.mxu1 %v16589_v59  ;;  %v19374_v21 = vpop.f32.mrf.mxu0  ;;  %v16638_v59 = vld [vmem:[#allocation9 + $0xcf0] sm:$0xff]  ;;  %v11752_v4 = vadd.f32 %v19344_v26, %v19372_v11 }
 0x9b2   :  { %11978 = vmatpush.bf16.msrb.mxu2 %v16597_v46  ;;  %11991 = vmatpush.bf16.msrb.mxu3 %v16605_v9  ;;  %v7200_v46 = vrot.slane %v6890_v33, 7  ;;  %v16704_v9 = vld [vmem:[#allocation9 + $0xf00] sm:$0xff]  ;;  %v16654_v33 = vld [vmem:[#allocation9 + $0xd70] sm:$0xff] }
 0x9b3   :  { %12158 = vmatpush.bf16.msra.mxu0 %v16711_v38  ;;  %v16637_v38 = vld [vmem:[#allocation9 + $0xce8] sm:$0xff] }
 0x9b4   :  { %12114 = vmatmul.bf16.vlgmr.msrb.gmra.mxu0 %v7274_v56  ;;  %v11727_v51 = vpop.f32.mrf.mxu2  ;;  %v7201_v18 = vsel %vm6900_vm0, %v7200_v46, %v6889_v32  ;;  %v16659_v32 = vld [vmem:[#allocation9 + $0xd98] sm:$0xff] }
 0x9b5   :  { %11966 = vmatpush.bf16.msrb.mxu1 %v16588_v15 }
 0x9b6   :  { %11979 = vmatpush.bf16.msrb.mxu2 %v16596_v30  ;;  %11992 = vmatpush.bf16.msrb.mxu3 %v16604_v13  ;;  %v11740_v22 = vpop.f32.mrf.mxu3  ;;  %v16620_v30 = vld [vmem:[#allocation9 + $0xc60] sm:$0xff]  ;;  %v7278_v13 = vpack.c.bf16 %v7201_v18, %v7201_v18  ;;  %v16667_v18 = vld [vmem:[#allocation9 + $0xdd8] sm:$0xff] }
 0x9b7   :  { %12159 = vmatpush.bf16.msra.mxu0 %v16710_v19  ;;  %v16628_v19 = vld [vmem:[#allocation9 + $0xca0] sm:$0xff]  ;;  %v7150_v22 = vrot.slane %v6869_v31, 7 }
 0x9b8   :  { %v16648_v31 = vld [vmem:[#allocation9 + $0xd40] sm:$0xff] }
 0x9b9   :  { %11967 = vmatpush.bf16.msrb.mxu1 %v16587_v57  ;;  %v11909_v1 = vpop.f32.mrf.mxu0  ;;  %v16636_v57 = vld [vmem:[#allocation9 + $0xce0] sm:$0xff] }
 0x9ba   :  { %11980 = vmatpush.bf16.msrb.mxu2 %v16595_v16  ;;  %11993 = vmatpush.bf16.msrb.mxu3 %v16603_v40  ;;  %v16619_v16 = vld [vmem:[#allocation9 + $0xc58] sm:$0xff]  ;;  %v16616_v1 = vld [vmem:[#allocation9 + $0xc40] sm:$0xff] }
 0x9bb   :  { %12160 = vmatpush.bf16.msra.mxu0 %v16709_v14  ;;  %v16627_v40 = vld [vmem:[#allocation9 + $0xc98] sm:$0xff] }
 0x9bd   :  { %11968 = vmatpush.bf16.msrb.mxu1 %v16586_v44  ;;  %v16618_v44 = vld [vmem:[#allocation9 + $0xc50] sm:$0xff] }
 0x9be   :  { %11981 = vmatpush.bf16.msrb.mxu2 %v16594_v52  ;;  %11994 = vmatpush.bf16.msrb.mxu3 %v16602_v25  ;;  %v16626_v52 = vld [vmem:[#allocation9 + $0xc90] sm:$0xff] }
 0x9bf   :  { %12161 = vmatpush.bf16.msra.mxu0 %v16708_v8  ;;  %v16634_v25 = vld [vmem:[#allocation9 + $0xcd0] sm:$0xff]  ;;  %v6867_v8 = vld [vmem:[#allocation2 + $0x112] sm:$0x1] }
 0x9c1   :  { %11969 = vmatpush.bf16.msrb.mxu1 %v16585_v58  ;;  %v16617_v58 = vld [vmem:[#allocation9 + $0xc48] sm:$0xff] }
 0x9c2   :  { %11982 = vmatpush.bf16.msrb.mxu2 %v16593_v39  ;;  %11995 = vmatpush.bf16.msrb.mxu3 %v16601_v41  ;;  %v16625_v39 = vld [vmem:[#allocation9 + $0xc88] sm:$0xff] }
 0x9c3   :  { %12162 = vmatpush.bf16.msra.mxu0 %v16707_v53  ;;  %v16633_v41 = vld [vmem:[#allocation9 + $0xcc8] sm:$0xff]  ;;  %v7145_v53 = vrot.slane %v6867_v8, 7 }
 0x9c5   :  { %11970 = vmatpush.bf16.msrb.mxu1 %v16584_v34  ;;  %v11764_v15 = vpop.f32.mrf.mxu1  ;;  %v6866_v34 = vld [vmem:[#allocation2 + $0x72] sm:$0x1] }
 0x9c6   :  { %11983 = vmatpush.bf16.msrb.mxu2 %v16592_v36  ;;  %11996 = vmatpush.bf16.msrb.mxu3 %v16600_v20  ;;  %v11765_v56 = vadd.f32 %v11764_v15, %v11752_v4  ;;  %v16632_v36 = vld [vmem:[#allocation9 + $0xcc0] sm:$0xff] }
 0x9c7   :  { %12163 = vmatpush.bf16.msra.mxu0 %v16706_v54  ;;  %v6868_v20 = vld [vmem:[#allocation2 + $0x73] sm:$0x1]  ;;  %v16663_v54 = vld [vmem:[#allocation9 + $0xdb8] sm:$0xff] }
 0x9c8   :  { %11971 = vmatmul.bf16.vlgmr.msrb.gmra.mxu1 %v7263_v5  ;;  %v16662_v5 = vld [vmem:[#allocation9 + $0xdb0] sm:$0xff] }
 0x9c9   :  { %12015 = vmatpush.bf16.msra.mxu1 %v16623_v2  ;;  %11984 = vmatmul.bf16.vlgmr.msrb.gmra.mxu2 %v7264_v50  ;;  %v7146_v2 = vsel %vm6900_vm0, %v7145_v53, %v6866_v34  ;;  %v16670_v50 = vld [vmem:[#allocation9 + $0xdf0] sm:$0xff]  ;;  %v16695_v53 = vld [vmem:[#allocation9 + $0xeb8] sm:$0xff] }
 0x9ca   :  { %12028 = vmatpush.bf16.msra.mxu2 %v16631_v45  ;;  %12041 = vmatpush.bf16.msra.mxu3 %v16639_v63  ;;  %v16671_v45 = vld [vmem:[#allocation9 + $0xdf8] sm:$0xff]  ;;  %v7151_v63 = vsel %vm6900_vm0, %v7150_v22, %v6868_v20  ;;  %v7267_v6 = vpack.c.bf16 %v7146_v2, %v7146_v2  ;;  %v16686_v20 = vld [vmem:[#allocation9 + $0xe70] sm:$0xff] }
 0x9cb   :  { %11997 = vmatmul.bf16.vlgmr.msrb.gmra.mxu3 %v7265_v17  ;;  %12164 = vmatpush.bf16.msra.mxu0 %v16705_v7  ;;  %v7268_v42 = vpack.c.bf16 %v7151_v63, %v7151_v63  ;;  %v16653_v7 = vld [vmem:[#allocation9 + $0xd68] sm:$0xff]  ;;  %v16703_v22 = vld [vmem:[#allocation9 + $0xef8] sm:$0xff]  ;;  %v16702_v2 = vld [vmem:[#allocation9 + $0xef0] sm:$0xff] }
 0x9cc   :  { %v11777_v14 = vpop.f32.mrf.mxu2  ;;  %v16669_v17 = vld [vmem:[#allocation9 + $0xde8] sm:$0xff] }
 0x9cd   :  { %12016 = vmatpush.bf16.msra.mxu1 %v16622_v49  ;;  %v11778_v0 = vadd.f32 %v11777_v14, %v11765_v56  ;;  %v11766_v24 = vpop.f32.mrf.mxu1  ;;  %v16661_v49 = vld [vmem:[#allocation9 + $0xda8] sm:$0xff] }
 0x9ce   :  { %12029 = vmatpush.bf16.msra.mxu2 %v16630_v27  ;;  %12042 = vmatpush.bf16.msra.mxu3 %v16638_v59  ;;  %v11790_v26 = vpop.f32.mrf.mxu3  ;;  %v16649_v14 = vld [vmem:[#allocation9 + $0xd48] sm:$0xff] }
 0x9cf   :  { %12165 = vmatpush.bf16.msra.mxu0 %v16704_v9  ;;  %v11791_v43 = vadd.f32 %v11790_v26, %v11778_v0  ;;  %v16652_v9 = vld [vmem:[#allocation9 + $0xd60] sm:$0xff]  ;;  %v16657_v0 = vld [vmem:[#allocation9 + $0xd88] sm:$0xff] }
 0x9d0   :  { %v6879_v26 = vld [vmem:[#allocation2 + $0x118] sm:$0x1] }
 0x9d1   :  { %12017 = vmatpush.bf16.msra.mxu1 %v16621_v23  ;;  %v19382_v11 = vpop.f32.mrf.mxu0  ;;  %v11804_v27 = vadd.f32 %v19354_v35, %v11791_v43  ;;  %v16660_v23 = vld [vmem:[#allocation9 + $0xda0] sm:$0xff]  ;;  %v16665_v24 = vld [vmem:[#allocation9 + $0xdc8] sm:$0xff]  ;;  %v7175_v8 = vrot.slane %v6879_v26, 7 }
 0x9d2   :  { %12030 = vmatpush.bf16.msra.mxu2 %v16629_v62  ;;  %12043 = vmatpush.bf16.msra.mxu3 %v16637_v38  ;;  %v16668_v62 = vld [vmem:[#allocation9 + $0xde0] sm:$0xff]  ;;  %v16651_v38 = vld [vmem:[#allocation9 + $0xd58] sm:$0xff]  ;;  %v16701_v63 = vld [vmem:[#allocation9 + $0xee8] sm:$0xff] }
 0x9d3   :  { %12166 = vmatmul.bf16.vlgmr.msra.gmra.mxu0 %v7278_v13  ;;  %v16688_v26 = vld [vmem:[#allocation9 + $0xe80] sm:$0xff] }
 0x9d4   :  { %v11779_v51 = vpop.f32.mrf.mxu2 }
 0x9d5   :  { %12018 = vmatpush.bf16.msra.mxu1 %v16620_v30  ;;  %v16687_v51 = vld [vmem:[#allocation9 + $0xe78] sm:$0xff] }
 0x9d6   :  { %12031 = vmatpush.bf16.msra.mxu2 %v16628_v19  ;;  %12044 = vmatpush.bf16.msra.mxu3 %v16636_v57  ;;  %v11792_v61 = vpop.f32.mrf.mxu3  ;;  %v16650_v19 = vld [vmem:[#allocation9 + $0xd50] sm:$0xff] }
 0x9d7   :  { %v16658_v57 = vld [vmem:[#allocation9 + $0xd90] sm:$0xff]  ;;  %v6876_v61 = vld [vmem:[#allocation2 + $0x77] sm:$0x1] }
 0x9d9   :  { %12019 = vmatpush.bf16.msra.mxu1 %v16619_v16  ;;  %v11961_v55 = vpop.f32.mrf.mxu0  ;;  %v16666_v16 = vld [vmem:[#allocation9 + $0xdd0] sm:$0xff] }
 0x9da   :  { %12032 = vmatpush.bf16.msra.mxu2 %v16627_v40  ;;  %12045 = vmatpush.bf16.msra.mxu3 %v16635_v48  ;;  %v6875_v40 = vld [vmem:[#allocation2 + $0x116] sm:$0x1]  ;;  %v6877_v48 = vld [vmem:[#allocation2 + $0x117] sm:$0x1] }
 0x9dd   :  { %12020 = vmatpush.bf16.msra.mxu1 %v16618_v44 }
 0x9de   :  { %12033 = vmatpush.bf16.msra.mxu2 %v16626_v52  ;;  %12046 = vmatpush.bf16.msra.mxu3 %v16634_v25  ;;  %v7165_v52 = vrot.slane %v6875_v40, 7  ;;  %v7170_v25 = vrot.slane %v6877_v48, 7  ;;  %v16680_v48 = vld [vmem:[#allocation9 + $0xe40] sm:$0xff] }
 0x9e0   :  { %v7171_v55 = vsel %vm6900_vm0, %v7170_v25, %v6876_v61  ;;  %v16718_v61 = vld [vmem:[#allocation9 + $0xf70] sm:$0xff] }
 0x9e1   :  { %12021 = vmatpush.bf16.msra.mxu1 %v16617_v58 }
 0x9e2   :  { %12034 = vmatpush.bf16.msra.mxu2 %v16625_v39  ;;  %12047 = vmatpush.bf16.msra.mxu3 %v16633_v41  ;;  %v6874_v39 = vld [vmem:[#allocation2 + $0x76] sm:$0x1]  ;;  %v16664_v41 = vld [vmem:[#allocation9 + $0xdc0] sm:$0xff] }
 0x9e3   :  { %v7166_v12 = vsel %vm6900_vm0, %v7165_v52, %v6874_v39  ;;  %v16727_v52 = vld [vmem:[#allocation9 + $0xfb8] sm:$0xff] }
 0x9e5   :  { %12022 = vmatpush.bf16.msra.mxu1 %v16616_v1  ;;  %v11816_v59 = vpop.f32.mrf.mxu1  ;;  %v6878_v1 = vld [vmem:[#allocation2 + $0x78] sm:$0x1] }
 0x9e6   :  { %12035 = vmatpush.bf16.msra.mxu2 %v16624_v47  ;;  %12048 = vmatpush.bf16.msra.mxu3 %v16632_v36  ;;  %v11817_v46 = vadd.f32 %v11816_v59, %v11804_v27  ;;  %v7176_v34 = vsel %vm6900_vm0, %v7175_v8, %v6878_v1  ;;  %v7271_v47 = vpack.c.bf16 %v7166_v12, %v7166_v12  ;;  %v6887_v8 = vld [vmem:[#allocation2 + $0x84] sm:$0x1]  ;;  %v16717_v12 = vld [vmem:[#allocation9 + $0xf68] sm:$0xff] }
 0x9e7   :  { %v7272_v36 = vpack.c.bf16 %v7171_v55, %v7171_v55  ;;  %v16725_v55 = vld [vmem:[#allocation9 + $0xfa8] sm:$0xff] }
 0x9e8   :  { %12023 = vmatmul.bf16.vlgmr.msra.gmra.mxu1 %v7267_v6  ;;  %v16733_v1 = vld [vmem:[#allocation9 + $0xfe8] sm:$0xff] }
 0x9e9   :  { %12067 = vmatpush.bf16.msrb.mxu1 %v16655_v29  ;;  %12036 = vmatmul.bf16.vlgmr.msra.gmra.mxu2 %v7268_v42  ;;  %v7273_v29 = vpack.c.bf16 %v7176_v34, %v7176_v34  ;;  %v16684_v42 = vld [vmem:[#allocation9 + $0xe60] sm:$0xff] }
 0x9ea   :  { %12080 = vmatpush.bf16.msrb.mxu2 %v16663_v54  ;;  %12093 = vmatpush.bf16.msrb.mxu3 %v16671_v45  ;;  %v16694_v54 = vld [vmem:[#allocation9 + $0xeb0] sm:$0xff]  ;;  %v16693_v45 = vld [vmem:[#allocation9 + $0xea8] sm:$0xff] }
 0x9eb   :  { %12049 = vmatmul.bf16.vlgmr.msra.gmra.mxu3 %v7269_v37 }
 0x9ec   :  { %v11829_v4 = vpop.f32.mrf.mxu2 }
 0x9ed   :  { %12068 = vmatpush.bf16.msrb.mxu1 %v16654_v33  ;;  %v11830_v15 = vadd.f32 %v11829_v4, %v11817_v46  ;;  %v11818_v30 = vpop.f32.mrf.mxu1  ;;  %v16692_v33 = vld [vmem:[#allocation9 + $0xea0] sm:$0xff]  ;;  %v6886_v4 = vld [vmem:[#allocation2 + $0x123] sm:$0x1] }
 0x9ee   :  { %12081 = vmatpush.bf16.msrb.mxu2 %v16662_v5  ;;  %12094 = vmatpush.bf16.msrb.mxu3 %v16670_v50  ;;  %v11842_v56 = vpop.f32.mrf.mxu3  ;;  %v16700_v5 = vld [vmem:[#allocation9 + $0xee0] sm:$0xff]  ;;  %v16683_v50 = vld [vmem:[#allocation9 + $0xe58] sm:$0xff]  ;;  %v16697_v30 = vld [vmem:[#allocation9 + $0xec8] sm:$0xff] }
 0x9ef   :  { %v11843_v35 = vadd.f32 %v11842_v56, %v11830_v15  ;;  %v6888_v15 = vld [vmem:[#allocation2 + $0x124] sm:$0x1]  ;;  %v16689_v56 = vld [vmem:[#allocation9 + $0xe88] sm:$0xff] }
 0x9f0   :  { %v7195_v40 = vrot.slane %v6888_v15, 7 }
 0x9f1   :  { %12069 = vmatpush.bf16.msrb.mxu1 %v16653_v7  ;;  %v19388_v13 = vpop.f32.mrf.mxu0  ;;  %v11856_v28 = vadd.f32 %v19364_v60, %v11843_v35  ;;  %v16691_v7 = vld [vmem:[#allocation9 + $0xe98] sm:$0xff]  ;;  %v16682_v60 = vld [vmem:[#allocation9 + $0xe50] sm:$0xff] }
 0x9f2   :  { %12082 = vmatpush.bf16.msrb.mxu2 %v16661_v49  ;;  %12095 = vmatpush.bf16.msrb.mxu3 %v16669_v17  ;;  %v16699_v49 = vld [vmem:[#allocation9 + $0xed8] sm:$0xff] }
 0x9f4   :  { %v11831_v43 = vpop.f32.mrf.mxu2 }
 0x9f5   :  { %12070 = vmatpush.bf16.msrb.mxu1 %v16652_v9  ;;  %v6885_v43 = vld [vmem:[#allocation2 + $0x83] sm:$0x1] }
 0x9f6   :  { %12083 = vmatpush.bf16.msrb.mxu2 %v16660_v23  ;;  %12096 = vmatpush.bf16.msrb.mxu3 %v16668_v62  ;;  %v11844_v44 = vpop.f32.mrf.mxu3  ;;  %v16690_v62 = vld [vmem:[#allocation9 + $0xe90] sm:$0xff] }
 0x9f7   :  { %v16719_v44 = vld [vmem:[#allocation9 + $0xf78] sm:$0xff] }
 0x9f9   :  { %12071 = vmatpush.bf16.msrb.mxu1 %v16651_v38  ;;  %v12013_v58 = vpop.f32.mrf.mxu0  ;;  %v16698_v38 = vld [vmem:[#allocation9 + $0xed0] sm:$0xff] }
 0x9fa   :  { %12084 = vmatpush.bf16.msrb.mxu2 %v16659_v32  ;;  %12097 = vmatpush.bf16.msrb.mxu3 %v16667_v18  ;;  %v6884_v32 = vld [vmem:[#allocation2 + $0x122] sm:$0x1]  ;;  %v16681_v18 = vld [vmem:[#allocation9 + $0xe48] sm:$0xff]  ;;  %v16735_v58 = vld [vmem:[#allocation9 + $0xff8] sm:$0xff] }
 0x9fd   :  { %12072 = vmatpush.bf16.msrb.mxu1 %v16650_v19  ;;  %v7185_v19 = vrot.slane %v6884_v32, 7 }
 0x9fe   :  { %12085 = vmatpush.bf16.msrb.mxu2 %v16658_v57  ;;  %12098 = vmatpush.bf16.msrb.mxu3 %v16666_v16  ;;  %v7190_v16 = vrot.slane %v6886_v4, 7  ;;  %v16720_v4 = vld [vmem:[#allocation9 + $0xf80] sm:$0xff] }
 0xa01   :  { %12073 = vmatpush.bf16.msrb.mxu1 %v16649_v14  ;;  %v6883_v14 = vld [vmem:[#allocation2 + $0x82] sm:$0x1] }
 0xa02   :  { %12086 = vmatpush.bf16.msrb.mxu2 %v16657_v0  ;;  %12099 = vmatpush.bf16.msrb.mxu3 %v16665_v24  ;;  %v16696_v24 = vld [vmem:[#allocation9 + $0xec0] sm:$0xff]  ;;  %v7186_v25 = vsel %vm6900_vm0, %v7185_v19, %v6883_v14 }
 0xa03   :  { %v7275_v39 = vpack.c.bf16 %v7186_v25, %v7186_v25 }
 0xa05   :  { %12074 = vmatpush.bf16.msrb.mxu1 %v16648_v31  ;;  %v11868_v6 = vpop.f32.mrf.mxu1  ;;  %v7191_v31 = vsel %vm6900_vm0, %v7190_v16, %v6885_v43  ;;  %v6895_v16 = vld [vmem:[#allocation2 + $0x88] sm:$0x1] }
 0xa06   :  { %12087 = vmatpush.bf16.msrb.mxu2 %v16656_v3  ;;  %12100 = vmatpush.bf16.msrb.mxu3 %v16664_v41  ;;  %v11869_v37 = vadd.f32 %v11868_v6, %v11856_v28  ;;  %v7196_v3 = vsel %vm6900_vm0, %v7195_v40, %v6887_v8  ;;  %v7276_v41 = vpack.c.bf16 %v7191_v31, %v7191_v31 }
 0xa08   :  { %12075 = vmatmul.bf16.vlgmr.msrb.gmra.mxu1 %v7271_v47 }
 0xa09   :  { %12119 = vmatpush.bf16.msra.mxu1 %v16687_v51  ;;  %12088 = vmatmul.bf16.vlgmr.msrb.gmra.mxu2 %v7272_v36  ;;  %v7277_v51 = vpack.c.bf16 %v7196_v3, %v7196_v3  ;;  %v16716_v36 = vld [vmem:[#allocation9 + $0xf60] sm:$0xff] }
 0xa0a   :  { %12132 = vmatpush.bf16.msra.mxu2 %v16695_v53  ;;  %12145 = vmatpush.bf16.msra.mxu3 %v16703_v22  ;;  %v16726_v53 = vld [vmem:[#allocation9 + $0xfb0] sm:$0xff] }
 0xa0b   :  { %12101 = vmatmul.bf16.vlgmr.msrb.gmra.mxu3 %v7273_v29  ;;  %v16734_v22 = vld [vmem:[#allocation9 + $0xff0] sm:$0xff] }
 0xa0c   :  { %v11881_v17 = vpop.f32.mrf.mxu2 }
 0xa0d   :  { %12120 = vmatpush.bf16.msra.mxu1 %v16686_v20  ;;  %v11882_v27 = vadd.f32 %v11881_v17, %v11869_v37  ;;  %v11870_v46 = vpop.f32.mrf.mxu1  ;;  %v16724_v20 = vld [vmem:[#allocation9 + $0xfa0] sm:$0xff]  ;;  %v16722_v37 = vld [vmem:[#allocation9 + $0xf90] sm:$0xff]  ;;  %v16713_v17 = vld [vmem:[#allocation9 + $0xf48] sm:$0xff] }
 0xa0e   :  { %12133 = vmatpush.bf16.msra.mxu2 %v16694_v54  ;;  %12146 = vmatpush.bf16.msra.mxu3 %v16702_v2  ;;  %v11894_v59 = vpop.f32.mrf.mxu3  ;;  %v16732_v54 = vld [vmem:[#allocation9 + $0xfe0] sm:$0xff]  ;;  %v16715_v2 = vld [vmem:[#allocation9 + $0xf58] sm:$0xff]  ;;  %v16729_v46 = vld [vmem:[#allocation9 + $0xfc8] sm:$0xff] }
 0xa0f   :  { %v11895_v9 = vadd.f32 %v11894_v59, %v11882_v27  ;;  %v16721_v27 = vld [vmem:[#allocation9 + $0xf88] sm:$0xff]  ;;  %v6896_v59 = vld [vmem:[#allocation2 + $0x128] sm:$0x1] }
 0xa10   :  { %v7215_v32 = vrot.slane %v6896_v59, 7  ;;  %v16736_v59 = vld [vmem:[#allocation14] sm:$0xff] }
 0xa11   :  { %12121 = vmatpush.bf16.msra.mxu1 %v16685_v10  ;;  %v19394_v23 = vpop.f32.mrf.mxu0  ;;  %v11908_v34 = vadd.f32 %v19374_v21, %v11895_v9  ;;  %v16723_v10 = vld [vmem:[#allocation9 + $0xf98] sm:$0xff] }
 0xa12   :  { %12134 = vmatpush.bf16.msra.mxu2 %v16693_v45  ;;  %12147 = vmatpush.bf16.msra.mxu3 %v16701_v63  ;;  %v16731_v45 = vld [vmem:[#allocation9 + $0xfd8] sm:$0xff]  ;;  %v7216_v40 = vsel %vm6900_vm0, %v7215_v32, %v6895_v16 }
 0xa14   :  { %v11883_v35 = vpop.f32.mrf.mxu2 }
 0xa15   :  { %12122 = vmatpush.bf16.msra.mxu1 %v16684_v42  ;;  %v16714_v42 = vld [vmem:[#allocation9 + $0xf50] sm:$0xff]  ;;  %v6893_v35 = vld [vmem:[#allocation2 + $0x87] sm:$0x1] }
 0xa16   :  { %12135 = vmatpush.bf16.msra.mxu2 %v16692_v33  ;;  %12148 = vmatpush.bf16.msra.mxu3 %v16700_v5  ;;  %v11896_v57 = vpop.f32.mrf.mxu3 }
 0xa19   :  { %12123 = vmatpush.bf16.msra.mxu1 %v16683_v50  ;;  %v12065_v0 = vpop.f32.mrf.mxu0  ;;  %v16730_v50 = vld [vmem:[#allocation9 + $0xfd0] sm:$0xff] }
 0xa1a   :  { %12136 = vmatpush.bf16.msra.mxu2 %v16691_v7  ;;  %12149 = vmatpush.bf16.msra.mxu3 %v16699_v49  ;;  %v6892_v7 = vld [vmem:[#allocation2 + $0x126] sm:$0x1]  ;;  %v6894_v49 = vld [vmem:[#allocation2 + $0x127] sm:$0x1]  ;;  %v7281_v0 = vpack.c.bf16 %v7216_v40, %v7216_v40  ;;  %v16769_v40 = vld [vmem:[#allocation12] ss:$0 sm:$0xff] }
 0xa1b   :  { %v7205_v9 = vrot.slane %v6892_v7, 7 }
 0xa1d   :  { %12124 = vmatpush.bf16.msra.mxu1 %v16682_v60 }
 0xa1e   :  { %12137 = vmatpush.bf16.msra.mxu2 %v16690_v62  ;;  %12150 = vmatpush.bf16.msra.mxu3 %v16698_v38  ;;  %v7210_v62 = vrot.slane %v6894_v49, 7  ;;  %v16737_v49 = vld [vmem:[#allocation14 + $0x8] sm:$0xff] }
 0xa20   :  { %v7211_v57 = vsel %vm6900_vm0, %v7210_v62, %v6893_v35 }
 0xa21   :  { %12125 = vmatpush.bf16.msra.mxu1 %v16681_v18  ;;  %v16712_v18 = vld [vmem:[#allocation9 + $0xf40] sm:$0xff]  ;;  %v7280_v14 = vpack.c.bf16 %v7211_v57, %v7211_v57 }
 0xa22   :  { %12138 = vmatpush.bf16.msra.mxu2 %v16689_v56  ;;  %12151 = vmatpush.bf16.msra.mxu3 %v16697_v30  ;;  %v16728_v56 = vld [vmem:[#allocation9 + $0xfc0] sm:$0xff]  ;;  %v6891_v30 = vld [vmem:[#allocation2 + $0x86] sm:$0x1] }
 0xa23   :  { %v7206_v19 = vsel %vm6900_vm0, %v7205_v9, %v6891_v30 }
 0xa25   :  { %12126 = vmatpush.bf16.msra.mxu1 %v16680_v48  ;;  %v11920_v47 = vpop.f32.mrf.mxu1  ;;  %v7279_v48 = vpack.c.bf16 %v7206_v19, %v7206_v19  ;;  %v16768_v19 = vld [vmem:[#allocation11] ss:$0 sm:$0xff] }
 0xa26   :  { %12139 = vmatpush.bf16.msra.mxu2 %v16688_v26  ;;  %12152 = vmatpush.bf16.msra.mxu3 %v16696_v24  ;;  %v11921_v29 = vadd.f32 %v11920_v47, %v11908_v34 }
 0xa28   :  { %12127 = vmatmul.bf16.vlgmr.msra.gmra.mxu1 %v7275_v39 }
 0xa29   :  { %12171 = vmatpush.bf16.msrb.mxu1 %v16719_v44  ;;  %12140 = vmatmul.bf16.vlgmr.msra.gmra.mxu2 %v7276_v41 }
 0xa2a   :  { %12184 = vmatpush.bf16.msrb.mxu2 %v16727_v52  ;;  %12197 = vmatpush.bf16.msrb.mxu3 %v16735_v58 }
 0xa2b   :  { %12153 = vmatmul.bf16.vlgmr.msra.gmra.mxu3 %v7277_v51 }
 0xa2c   :  { %v11933_v63 = vpop.f32.mrf.mxu2 }
 0xa2d   :  { %12172 = vmatpush.bf16.msrb.mxu1 %v16718_v61  ;;  %v11934_v28 = vadd.f32 %v11933_v63, %v11921_v29  ;;  %v11922_v21 = vpop.f32.mrf.mxu1 }
 0xa2e   :  { %12185 = vmatpush.bf16.msrb.mxu2 %v16726_v53  ;;  %12198 = vmatpush.bf16.msrb.mxu3 %v16734_v22  ;;  %v11946_v6 = vpop.f32.mrf.mxu3 }
 0xa2f   :  { %v11947_v33 = vadd.f32 %v11946_v6, %v11934_v28  ;;  %v16740_v28 = vld [vmem:[#allocation14 + $0x20] sm:$0xff]  ;;  %v16739_v6 = vld [vmem:[#allocation14 + $0x18] sm:$0xff] }
 0xa31   :  { %12173 = vmatpush.bf16.msrb.mxu1 %v16717_v12  ;;  %v19400_v5 = vpop.f32.mrf.mxu0  ;;  %v11960_v26 = vadd.f32 %v19382_v11, %v11947_v33 }
 0xa32   :  { %12186 = vmatpush.bf16.msrb.mxu2 %v16725_v55  ;;  %12199 = vmatpush.bf16.msrb.mxu3 %v16733_v1 }
 0xa34   :  { %v11935_v60 = vpop.f32.mrf.mxu2 }
 0xa35   :  { %12174 = vmatpush.bf16.msrb.mxu1 %v16716_v36 }
 0xa36   :  { %12187 = vmatpush.bf16.msrb.mxu2 %v16724_v20  ;;  %12200 = vmatpush.bf16.msrb.mxu3 %v16732_v54  ;;  %v11948_v38 = vpop.f32.mrf.mxu3 }
 0xa39   :  { %12175 = vmatpush.bf16.msrb.mxu1 %v16715_v2  ;;  %v12117_v15 = vpop.f32.mrf.mxu0  ;;  %v16743_v2 = vld [vmem:[#allocation14 + $0x38] sm:$0xff] }
 0xa3a   :  { %12188 = vmatpush.bf16.msrb.mxu2 %v16723_v10  ;;  %12201 = vmatpush.bf16.msrb.mxu3 %v16731_v45  ;;  %v16742_v45 = vld [vmem:[#allocation14 + $0x30] sm:$0xff] }
 0xa3b   :  { %12290 = vmatpush.bf16.msrb.mxu0 %v16743_v2 }
 0xa3d   :  { %12176 = vmatpush.bf16.msrb.mxu1 %v16714_v42  ;;  %v16738_v42 = vld [vmem:[#allocation14 + $0x10] sm:$0xff] }
 0xa3e   :  { %12189 = vmatpush.bf16.msrb.mxu2 %v16722_v37  ;;  %12202 = vmatpush.bf16.msrb.mxu3 %v16730_v50 }
 0xa3f   :  { %12291 = vmatpush.bf16.msrb.mxu0 %v16742_v45 }
 0xa41   :  { %12177 = vmatpush.bf16.msrb.mxu1 %v16713_v17 }
 0xa42   :  { %12190 = vmatpush.bf16.msrb.mxu2 %v16721_v27  ;;  %12203 = vmatpush.bf16.msrb.mxu3 %v16729_v46 }
 0xa45   :  { %12178 = vmatpush.bf16.msrb.mxu1 %v16712_v18  ;;  %v11972_v24 = vpop.f32.mrf.mxu1 }
 0xa46   :  { %12191 = vmatpush.bf16.msrb.mxu2 %v16720_v4  ;;  %12204 = vmatpush.bf16.msrb.mxu3 %v16728_v56  ;;  %v11973_v43 = vadd.f32 %v11972_v24, %v11960_v26 }
 0xa48   :  { %12179 = vmatmul.bf16.vlgmr.msrb.gmra.mxu1 %v7279_v48 }
 0xa49   :  { %12192 = vmatmul.bf16.vlgmr.msrb.gmra.mxu2 %v7280_v14  ;;  %12205 = vmatmul.bf16.vlgmr.msrb.gmra.mxu3 %v7281_v0 }
 0xa4c   :  { %v11985_v44 = vpop.f32.mrf.mxu2 }
 0xa4d   :  { %v11986_v52 = vadd.f32 %v11985_v44, %v11973_v43  ;;  %v11974_v8 = vpop.f32.mrf.mxu1 }
 0xa4e   :  { %v11998_v25 = vpop.f32.mrf.mxu3 }
 0xa4f   :  { %v11999_v58 = vadd.f32 %v11998_v25, %v11986_v52 }
 0xa50   :  { %v12167_v31 = vpop.f32.mrf.mxu0 }
 0xa51   :  { %v12012_v51 = vadd.f32 %v19388_v13, %v11999_v58  ;;  %v16741_v13 = vld [vmem:[#allocation14 + $0x28] sm:$0xff] }
 0xa52   :  { %12292 = vmatpush.bf16.msrb.mxu0 %v16741_v13 }
 0xa54   :  { %v11987_v3 = vpop.f32.mrf.mxu2 }
 0xa56   :  { %v12000_v39 = vpop.f32.mrf.mxu3  ;;  %12293 = vmatpush.bf16.msrb.mxu0 %v16740_v28 }
 0xa58   :  { %v12169_v41 = vpop.f32.mrf.mxu0 }
 0xa5a   :  { %12294 = vmatpush.bf16.msrb.mxu0 %v16739_v6 }
 0xa5e   :  { %12295 = vmatpush.bf16.msrb.mxu0 %v16738_v42 }
 0xa62   :  { %12296 = vmatpush.bf16.msrb.mxu0 %v16737_v49 }
 0xa65   :  { %v12024_v61 = vpop.f32.mrf.mxu1 }
 0xa66   :  { %v12025_v53 = vadd.f32 %v12024_v61, %v12012_v51  ;;  %12297 = vmatpush.bf16.msrb.mxu0 %v16736_v59 }
 0xa6c   :  { %v12037_v22 = vpop.f32.mrf.mxu2 }
 0xa6d   :  { %v12038_v55 = vadd.f32 %v12037_v22, %v12025_v53  ;;  %v12026_v1 = vpop.f32.mrf.mxu1 }
 0xa6e   :  { %v12050_v12 = vpop.f32.mrf.mxu3 }
 0xa6f   :  { %v12051_v11 = vadd.f32 %v12050_v12, %v12038_v55 }
 0xa71   :  { %v12064_v7 = vadd.f32 %v19394_v23, %v12051_v11 }
 0xa74   :  { %v12039_v34 = vpop.f32.mrf.mxu2 }
 0xa76   :  { %v12052_v47 = vpop.f32.mrf.mxu3 }
 0xa85   :  { %v12076_v36 = vpop.f32.mrf.mxu1 }
 0xa86   :  { %v12077_v17 = vadd.f32 %v12076_v36, %v12064_v7 }
 0xa8c   :  { %v12089_v20 = vpop.f32.mrf.mxu2 }
 0xa8d   :  { %v12078_v54 = vpop.f32.mrf.mxu1  ;;  %v12090_v27 = vadd.f32 %v12089_v20, %v12077_v17 }
 0xa8e   :  { %v12102_v29 = vpop.f32.mrf.mxu3 }
 0xa8f   :  { %v12103_v9 = vadd.f32 %v12102_v29, %v12090_v27 }
 0xa91   :  { %v12116_v62 = vadd.f32 %v19400_v5, %v12103_v9  ;;  %v16770_v5 = vld [vmem:[#allocation15] ss:$0 sm:$0xff] }
 0xa94   :  { %v12091_v10 = vpop.f32.mrf.mxu2 }
 0xa96   :  { %v12104_v63 = vpop.f32.mrf.mxu3 }
 0xaa5   :  { %v12128_v21 = vpop.f32.mrf.mxu1 }
 0xaa6   :  { %v12129_v38 = vadd.f32 %v12128_v21, %v12116_v62 }
 0xaac   :  { %v12141_v37 = vpop.f32.mrf.mxu2 }
 0xaad   :  { %v12130_v50 = vpop.f32.mrf.mxu1  ;;  %v12142_v32 = vadd.f32 %v12141_v37, %v12129_v38 }
 0xaae   :  { %v12154_v33 = vpop.f32.mrf.mxu3 }
 0xaaf   :  { %v12155_v18 = vadd.f32 %v12154_v33, %v12142_v32 }
 0xab1   :  { %v12168_v15 = vadd.f32 %v12167_v31, %v12155_v18 }
 0xab4   :  { %v12143_v46 = vpop.f32.mrf.mxu2 }
 0xab6   :  { %v12156_v60 = vpop.f32.mrf.mxu3 }
 0xac5   :  { %v12180_v4 = vpop.f32.mrf.mxu1 }
 0xac6   :  { %v12181_v56 = vadd.f32 %v12180_v4, %v12168_v15 }
 0xacc   :  { %v12193_v30 = vpop.f32.mrf.mxu2  ;;  %v12206_v23 = vpop.f32.mrf.mxu3 }
 0xacd   :  { %v12194_v35 = vadd.f32 %v12193_v30, %v12181_v56  ;;  %v12182_v57 = vpop.f32.mrf.mxu1 }
 0xacf   :  { %v12207_v16 = vadd.f32 %v12206_v23, %v12194_v35 }
 0xad1   :  { %v12214_v48 = vmul.f32 %v16768_v19, %v12207_v16 }
 0xad3   :  { %v12219_v14 = vadd.f32 %v16769_v40, %v12214_v48 }
 0xad4   :  { %v12195_v0 = vpop.f32.mrf.mxu2  ;;  %v12208_v24 = vpop.f32.mrf.mxu3 }
 0xad5   :  { %v12220_v26 = vmax.f32 %v12219_v14, 0.0 }
 0xad7   :  { %v12221_v43 = vpack.c.bf16 %v12220_v26, %v12220_v26 }
 0xad9   :  { %12298 = vmatmul.bf16.vlgmr.msrb.gmra.mxu0 %v12221_v43 }
 0xb56   :  { %v12299_v44 = vpop.f32.mrf.mxu0 }
 0xb57   :  { %v12300_v52 = vadd.f32 %v16770_v5, %v12299_v44 }
 0xb59   :  { %v12303_v25 = vsub.f32 0.0, %v12300_v52 }
 0xb5b   :  { %v12304_v8 = vmul.f32 1.442695, %v12303_v25 }
 0xb5d   :  { %16771 = vpow2.f32 %v12304_v8 }
 0xb5e   :  { %v12301_v58 = vpop.f32.mrf.mxu0 }
 0xb63   :  { %v16772_v31 = vpop.eup %16771 }
 0xb64   :  { %v12306_v3 = vadd.f32 1.0, %v16772_v31 }
 0xb66   :  { %16773 = vrcp.f32 %v12306_v3  ;;  %v12318_v61 = vand.u32 2147483648, %v12306_v3  ;;  %v12316_v22 = vand.u32 2147483647, %v12306_v3  ;;  %vm12312_vm2 = vweird.f32 %v12306_v3 }
 0xb68   :  { %v12319_v55 = vor.u32 1.1754944e-38, %v12318_v61  ;;  %vm12317_vm4 = vcmp.eq.f32.partialorder %v12316_v22, 8.507059e+37 }
 0xb6c   :  { %v16774_v39 = vpop.eup %16773 }
 0xb6d   :  { %v12308_v41 = vmul.f32 %v16774_v39, %v12306_v3  ;;  %vm12313_vm1 = vweird.f32 %v16774_v39 }
 0xb6e   :  { %vm12314_vm3 = vmor %vm12312_vm2, %vm12313_vm1 }
 0xb6f   :  { %v12309_v51 = vsub.f32 1.0, %v12308_v41 }
 0xb71   :  { %v12310_v53 = vmul.f32 %v16774_v39, %v12309_v51 }
 0xb73   :  { %v12311_v12 = vadd.f32 %v16774_v39, %v12310_v53 }
 0xb75   :  { %v12315_v1 = vsel %vm12314_vm3, %v16774_v39, %v12311_v12 }
 0xb76   :  { %v12320_v11 = vsel %vm12317_vm4, %v12319_v55, %v12315_v1 }
 0xb77   :  { %12322 = vst [vmem:[#allocation17] sm:$0x3] %v12320_v11 }
 0xb78   :  { %12333 = dma.vmem_to_hbm [thread:$0]  %s12329_s24, 32, %s12331_s28, [#allocation5]  }
 0xb79   :  { %17005 = dma.done.wait [#allocation5], 32  }
 0xb7a   :  { %17006 = vsyncadd [#allocation5], 4294967264 }
 0xb7b   :  { %12338 = vsyncpa [#allocation4], 1 }
 0xb7c   :  { %12339 = vsyncpa [#allocation7], 1 }
 0xb7d   :  { %12340 = vsyncpa [#allocation10], 1 }
 0xb7e   :  { %12341 = vsyncpa [#allocation13], 1 }
 0xb7f   :  { %12342 = vsyncpa [#allocation16], 1 }
 0xb80   :  { %12343 = vsyncpa [#allocation5], 1 }

</bundles_post_ra>
